<compile_context>
chip_gen: v5e
topology: v5e:2x2
jax: 0.10.0
libtpu: 0.0.40
codegen_flags: <defaults>
</compile_context>

<pallas_src>
import functools

import jax
import jax.numpy as jnp
import numpy as np
from jax.experimental import pallas as pl
from jax.experimental.pallas import tpu as pltpu

BN_EPS = 1e-5
_HIGHEST = jax.lax.Precision.HIGHEST

# (kernel_hw, stride, padding, output_padding) of the 4 ConvTranspose2d layers
LAYER_CFGS = [((2, 2), 1, 0, 0),
              ((4, 4), 2, 1, 0),
              ((4, 3), 2, 1, 0),
              ((4, 4), 3, 1, 1)]

# Lane-dense (multiple-of-128) padded widths of the flattened per-layer
# activations; true widths are 128, 256, 448, 504.
LANE_PAD = {1: 128, 2: 256, 3: 512, 4: 512}


# ----------------------------- Pallas kernel --------------------------------

def _netg_fused_kernel(h0_ref,
                       m1_ref, m2_ref, m3_ref, m4_ref,
                       g1_ref, ggt1_ref, bl1_ref,
                       g2_ref, ggt2_ref, bl2_ref,
                       g3_ref, ggt3_ref, bl3_ref,
                       o_ref,
                       *, batch, inv_counts, bias4):
    """Whole generator forward on VMEM-resident data.

    Activations are (Bp, Lp) with the flattened spatial*channel axis lane-dense
    (128 / 256 / 512 / 512).  ConvTranspose2d layers are dense matmuls against
    pre-unrolled bf16 weight matrices.  Train-mode BatchNorm reduces per-channel
    stats via a 0/1 gather matmul and scatters scale/shift back to lanes through
    a gamma-folded (C, Lp) matrix; beta arrives pre-scattered as a (1, Lp) lane
    vector.  BN-layer conv biases are omitted (exactly cancelled by batch-stat
    normalization); the final layer's scalar bias is baked in."""
    bp = h0_ref.shape[0]

    # Validity mask for batch-padding rows: keeps padded rows at exactly zero
    # so they never leak into the next layer's BatchNorm statistics.
    row = jax.lax.broadcasted_iota(jnp.int32, (bp, 1), 0)
    mask = (row < batch).astype(jnp.float32)

    def convt(h, m_ref):
        # bf16 operands, f32 accumulation on the MXU.
        return jnp.dot(h.astype(jnp.bfloat16), m_ref[...],
                       preferred_element_type=jnp.float32)

    def bn_train(y, g_ref, ggt_ref, bl_ref, inv_count):
        # y: (Bp, Lp) f32 conv output; padded rows / padded lanes are exactly 0.
        s = jnp.sum(y, axis=0, keepdims=True)                  # (1, Lp)
        ss = jnp.sum(y * y, axis=0, keepdims=True)             # (1, Lp) single pass
        # Per-channel stats via 0/1 gather matmuls.  Pinned to full precision:
        # default-precision f32 MXU matmuls run at bf16 operand precision,
        # which distorts the E[x^2] - E[x]^2 variance.
        mean_c = jnp.dot(s, g_ref[...], precision=_HIGHEST,
                         preferred_element_type=jnp.float32) * inv_count
        ex2_c = jnp.dot(ss, g_ref[...], precision=_HIGHEST,
                        preferred_element_type=jnp.float32) * inv_count
        var_c = jnp.maximum(ex2_c - mean_c * mean_c, 0.0)      # biased, like torch
        r_c = jax.lax.rsqrt(var_c + BN_EPS)                    # (1, C)
        # gamma is folded into the channel->lane scatter matrix ggt host-side,
        # beta is pre-scattered into the (1, Lp) lane vector bl host-side.
        scale_l = jnp.dot(r_c, ggt_ref[...], precision=_HIGHEST,
                          preferred_element_type=jnp.float32)  # (1, Lp)
        mscale_l = jnp.dot(mean_c * r_c, ggt_ref[...], precision=_HIGHEST,
                           preferred_element_type=jnp.float32)
        shift_l = bl_ref[...] - mscale_l
        out = (y * scale_l + shift_l) * mask
        # Next matmul consumes bf16 anyway; emitting bf16 halves vreg pressure.
        return out.astype(jnp.bfloat16)

    h = h0_ref[...]
    h = bn_train(convt(h, m1_ref), g1_ref, ggt1_ref, bl1_ref, inv_counts[0])
    h = bn_train(convt(h, m2_ref), g2_ref, ggt2_ref, bl2_ref, inv_counts[1])
    h = bn_train(convt(h, m3_ref), g3_ref, ggt3_ref, bl3_ref, inv_counts[2])
    # Final layer has Cout == 1, so its bias is the single scalar `bias4`.
    o_ref[...] = jnp.tanh(convt(h, m4_ref) + bias4)


def _full_spec(shape):
    # Whole-array block (block_shape == array shape satisfies TPU tiling rules).
    return pl.BlockSpec(shape, lambda i: (0,) * len(shape))


# ---------------------- one-time parameter preparation -----------------------

def _unrolled_convt_matrix(w, hi, wi, stride, padding, output_padding=0):
    """Dense (Hi*Wi*Cin, Ho*Wo*Cout) matrix of a PyTorch ConvTranspose2d.

    Row index = (ih*Wi + iw)*Cin + ci, column index = (oh*Wo + ow)*Cout + co,
    with oh = ih*stride - padding + kh_i (analogously for width)."""
    w = np.asarray(w, dtype=np.float32)                 # (Cin, Cout, kh, kw)
    cin, cout, kh, kw = w.shape
    ho = (hi - 1) * stride - 2 * padding + kh + output_padding
    wo = (wi - 1) * stride - 2 * padding + kw + output_padding
    m = np.zeros((hi * wi * cin, ho * wo * cout), np.float32)
    for ih in range(hi):
        for iw in range(wi):
            r0 = (ih * wi + iw) * cin
            for ki in range(kh):
                oh = ih * stride - padding + ki
                if not 0 <= oh < ho:
                    continue
                for kj in range(kw):
                    ow = iw * stride - padding + kj
                    if not 0 <= ow < wo:
                        continue
                    c0 = (oh * wo + ow) * cout
                    m[r0:r0 + cin, c0:c0 + cout] += w[:, :, ki, kj]
    return m, ho, wo


def _pad_to(m, rows, cols):
    out = np.zeros((rows, cols), np.float32)
    out[:m.shape[0], :m.shape[1]] = m
    return out


def prepare_params(params):
    """Hoisted out of the forward pass: unroll each ConvTranspose2d into a dense
    bf16 matmul matrix with lane-dense (multiple-of-128) padded output width,
    build 0/1 channel gather matrices and gamma-folded channel->lane scatter
    matrices for in-kernel BatchNorm, pre-scatter beta to a lane vector, and
    extract the final-layer scalar bias.  Biases of the three BN layers are
    dropped (exact no-op under training-mode BatchNorm)."""
    prep = {}
    hi, wi = 1, 1
    spatial, mats = [], []
    for li, (_khw, s, p, op) in enumerate(LAYER_CFGS, start=1):
        m, hi, wi = _unrolled_convt_matrix(params[f"w{li}"], hi, wi, s, p, op)
        mats.append(m)
        spatial.append((hi, wi))

    # Lane-pad layer-3 output 448 -> 512 (m3 cols, m4 rows) and the final
    # output 504 -> 512 (m4 cols); padded rows/cols are zero.
    mats[2] = _pad_to(mats[2], mats[2].shape[0], LANE_PAD[3])
    mats[3] = _pad_to(mats[3], LANE_PAD[3], LANE_PAD[4])
    for li, m in enumerate(mats, start=1):
        prep[f"m{li}"] = jnp.asarray(m, jnp.bfloat16)

    for li in (1, 2, 3):
        gamma = np.asarray(params[f"gamma{li}"], np.float32)
        beta = np.asarray(params[f"beta{li}"], np.float32)
        c = gamma.shape[0]
        ho, wo = spatial[li - 1]
        L, Lp = ho * wo * c, LANE_PAD[li]
        g = np.zeros((Lp, c), np.float32)                       # (Lp, C) 0/1 gather
        g[:L, :] = np.tile(np.eye(c, dtype=np.float32), (ho * wo, 1))
        prep[f"g{li}"] = jnp.asarray(g)
        # gamma folded into the channel->lane scatter matrix (C, Lp).
        prep[f"ggt{li}"] = jnp.asarray(np.ascontiguousarray((g * gamma[None, :]).T))
        bl = np.zeros((1, Lp), np.float32)                      # beta pre-scattered
        bl[0, :L] = np.tile(beta, ho * wo)
        prep[f"bl{li}"] = jnp.asarray(bl)
        prep[f"hw{li}"] = ho * wo

    prep["b4"] = float(np.asarray(params["b4"]).reshape(-1)[0])  # Cout == 1 scalar
    prep["out_hw"] = spatial[3]
    return prep


def init_params(key, ndf, ngf, nz, nclasses):
    cin = nz + ndf + nclasses + 1
    conv_shapes = [
        (cin, ngf, 2, 2),
        (ngf, ngf // 2, 4, 4),
        (ngf // 2, ngf // 4, 4, 3),
        (ngf // 4, 1, 4, 4),
    ]
    params = {}
    keys = jax.random.split(key, 2 * len(conv_shapes))
    for i, shp in enumerate(conv_shapes, start=1):
        fan = shp[0] * shp[2] * shp[3]
        bound = float(fan) ** -0.5
        params[f"w{i}"] = jax.random.uniform(keys[2 * (i - 1)], shp, jnp.float32,
                                             -bound, bound)
        params[f"b{i}"] = jax.random.uniform(keys[2 * (i - 1) + 1], (shp[1],),
                                             jnp.float32, -bound, bound)
    for i, c in enumerate([ngf, ngf // 2, ngf // 4], start=1):
        params[f"gamma{i}"] = jnp.ones((c,), jnp.float32)
        params[f"beta{i}"] = jnp.zeros((c,), jnp.float32)
    return params


# --------------------------------- forward ----------------------------------

def netg_forward(prep, x, noise, *, ndf, nclasses):
    """Mirrors _netG.forward: x -> (-1, ndf+nclasses+1, 1, 1), concat noise on
    channels, then 4 ConvTranspose2d (training-mode BN after the first 3, Tanh
    at the end), all inside one fused Pallas kernel."""
    # TODO(synk): torch samples noise ~ N(0,1) inside forward; here it is an
    # explicit deterministic input (no clean in-kernel equivalent of torch RNG).
    # TODO(synk): BatchNorm running_mean/running_var updates (training-time side
    # effect of the torch module) are not reproduced; only the output is returned.
    x = x.reshape(-1, ndf + nclasses + 1)
    b = x.shape[0]
    h0 = jnp.concatenate([x, noise.reshape(b, -1)], axis=1).astype(jnp.float32)

    # Pad batch to the f32 sublane multiple of 8; padded rows are zero and are
    # masked out of the in-kernel BatchNorm statistics.
    bp = max(8, ((b + 7) // 8) * 8)
    if bp != b:
        h0 = jnp.pad(h0, ((0, bp - b), (0, 0)))

    ho, wo = prep["out_hw"]
    inv_counts = tuple(1.0 / float(b * prep[f"hw{li}"]) for li in (1, 2, 3))
    kernel = functools.partial(_netg_fused_kernel, batch=b,
                               inv_counts=inv_counts, bias4=prep["b4"])

    operands = (h0,
                prep["m1"], prep["m2"], prep["m3"], prep["m4"],
                prep["g1"], prep["ggt1"], prep["bl1"],
                prep["g2"], prep["ggt2"], prep["bl2"],
                prep["g3"], prep["ggt3"], prep["bl3"])
    out_pad = pl.pallas_call(
        kernel,
        out_shape=jax.ShapeDtypeStruct((bp, LANE_PAD[4]), jnp.float32),
        grid=(1,),
        in_specs=[_full_spec(op.shape) for op in operands],
        out_specs=_full_spec((bp, LANE_PAD[4])),
        compiler_params=pltpu.CompilerParams(dimension_semantics=("arbitrary",)),
    )(*operands)
    # Drop batch-pad rows and lane-pad cols (512 -> 504).  Final layer has
    # Cout == 1: lane index == oh*Wo + ow, so no transpose is needed.
    out = out_pad[:b, :ho * wo]
    return out.reshape(b, ho, wo)[:, None, :, :]


if __name__ == "__main__":
    # opt.ndf=4, opt.ngf=32, opt.nz=8, nclasses=3, batch=2
    B, ndf, ngf, nz, nclasses = 2, 4, 32, 8, 3
    key = jax.random.PRNGKey(0)
    k_param, k_x, k_noise = jax.random.split(key, 3)

    params = init_params(k_param, ndf, ngf, nz, nclasses)
    prep = prepare_params(params)          # one-time, hoisted out of forward

    x = jax.random.normal(k_x, (B, ndf + nclasses + 1, 1, 1), jnp.float32)
    noise = jax.random.normal(k_noise, (B, nz, 1, 1), jnp.float32)

    out = netg_forward(prep, x, noise, ndf=ndf, nclasses=nclasses)
    out = jax.block_until_ready(out)
    # ConvT chain: 1x1 -> 2x2 -> 4x4 -> 8x7 -> 24x21, single output channel.
    assert out.shape == (B, 1, 24, 21), out.shape
    assert bool(jnp.all(jnp.isfinite(out)))
    print("KERNEL_OK")
</pallas_src>

<mosaic_0001>
module attributes {stable_mosaic.version = 11 : i64} {
  func.func @_netg_fused_kernel(%arg0: i32, %arg1: memref<8x16xf32, #tpu.memory_space<vmem>>, %arg2: memref<16x128xbf16, #tpu.memory_space<vmem>>, %arg3: memref<128x256xbf16, #tpu.memory_space<vmem>>, %arg4: memref<256x512xbf16, #tpu.memory_space<vmem>>, %arg5: memref<512x512xbf16, #tpu.memory_space<vmem>>, %arg6: memref<128x32xf32, #tpu.memory_space<vmem>>, %arg7: memref<32x128xf32, #tpu.memory_space<vmem>>, %arg8: memref<1x128xf32, #tpu.memory_space<vmem>>, %arg9: memref<256x16xf32, #tpu.memory_space<vmem>>, %arg10: memref<16x256xf32, #tpu.memory_space<vmem>>, %arg11: memref<1x256xf32, #tpu.memory_space<vmem>>, %arg12: memref<512x8xf32, #tpu.memory_space<vmem>>, %arg13: memref<8x512xf32, #tpu.memory_space<vmem>>, %arg14: memref<1x512xf32, #tpu.memory_space<vmem>>, %arg15: memref<8x512xf32, #tpu.memory_space<vmem>>) attributes {dimension_semantics = [#tpu.dimension_semantics<arbitrary>], iteration_bounds = array<i64: 1>, scalar_prefetch = 0 : i64, scratch_operands = 0 : i64, tpu.core_type = #tpu.core_type<tc>, window_params = [{pipeline_mode = #tpu.pipeline_mode<synchronous>, transform_indices = @transform_0, window_bounds = array<i64: 8, 16>}, {pipeline_mode = #tpu.pipeline_mode<synchronous>, transform_indices = @transform_1, window_bounds = array<i64: 16, 128>}, {pipeline_mode = #tpu.pipeline_mode<synchronous>, transform_indices = @transform_2, window_bounds = array<i64: 128, 256>}, {pipeline_mode = #tpu.pipeline_mode<synchronous>, transform_indices = @transform_3, window_bounds = array<i64: 256, 512>}, {pipeline_mode = #tpu.pipeline_mode<synchronous>, transform_indices = @transform_4, window_bounds = array<i64: 512, 512>}, {pipeline_mode = #tpu.pipeline_mode<synchronous>, transform_indices = @transform_5, window_bounds = array<i64: 128, 32>}, {pipeline_mode = #tpu.pipeline_mode<synchronous>, transform_indices = @transform_6, window_bounds = array<i64: 32, 128>}, {pipeline_mode = #tpu.pipeline_mode<synchronous>, transform_indices = @transform_7, window_bounds = array<i64: 1, 128>}, {pipeline_mode = #tpu.pipeline_mode<synchronous>, transform_indices = @transform_8, window_bounds = array<i64: 256, 16>}, {pipeline_mode = #tpu.pipeline_mode<synchronous>, transform_indices = @transform_9, window_bounds = array<i64: 16, 256>}, {pipeline_mode = #tpu.pipeline_mode<synchronous>, transform_indices = @transform_10, window_bounds = array<i64: 1, 256>}, {pipeline_mode = #tpu.pipeline_mode<synchronous>, transform_indices = @transform_11, window_bounds = array<i64: 512, 8>}, {pipeline_mode = #tpu.pipeline_mode<synchronous>, transform_indices = @transform_12, window_bounds = array<i64: 8, 512>}, {pipeline_mode = #tpu.pipeline_mode<synchronous>, transform_indices = @transform_13, window_bounds = array<i64: 1, 512>}, {pipeline_mode = #tpu.pipeline_mode<synchronous>, transform_indices = @transform_14, window_bounds = array<i64: 8, 512>}]} {
    %0 = tpu.iota {dimensions = array<i32: 0>} : vector<8x1xi32>
    %c2_i32 = arith.constant 2 : i32
    %1 = vector.broadcast %c2_i32 : i32 to vector<8x1xi32>
    %2 = arith.cmpi slt, %0, %1 : vector<8x1xi32>
    %3 = arith.extui %2 : vector<8x1xi1> to vector<8x1xi32>
    %4 = arith.sitofp %3 : vector<8x1xi32> to vector<8x1xf32>
    %c0 = arith.constant 0 : index
    %c0_0 = arith.constant 0 : index
    %5 = vector.load %arg1[%c0, %c0_0] : memref<8x16xf32, #tpu.memory_space<vmem>>, vector<8x16xf32>
    %6 = arith.truncf %5 : vector<8x16xf32> to vector<8x16xbf16>
    %c0_1 = arith.constant 0 : index
    %c0_2 = arith.constant 0 : index
    %7 = vector.load %arg2[%c0_1, %c0_2] : memref<16x128xbf16, #tpu.memory_space<vmem>>, vector<16x128xbf16>
    %cst = arith.constant dense<0.000000e+00> : vector<8x128xf32>
    %8 = tpu.matmul %6, %7, %cst {dimension_numbers = #tpu.dot_dimension_numbers<[1], [0], [0], [1], [0, 0, 1, 1], [], []>} : vector<8x16xbf16>, vector<16x128xbf16>, vector<8x128xf32> -> vector<8x128xf32>
    %cst_3 = arith.constant dense<0.000000e+00> : vector<128xf32>
    %9 = vector.multi_reduction <add>, %8, %cst_3 [0] : vector<8x128xf32> to vector<128xf32>
    %10 = vector.shape_cast %9 : vector<128xf32> to vector<1x128xf32>
    %11 = arith.mulf %8, %8 : vector<8x128xf32>
    %cst_4 = arith.constant dense<0.000000e+00> : vector<128xf32>
    %12 = vector.multi_reduction <add>, %11, %cst_4 [0] : vector<8x128xf32> to vector<128xf32>
    %13 = vector.shape_cast %12 : vector<128xf32> to vector<1x128xf32>
    %c0_5 = arith.constant 0 : index
    %c0_6 = arith.constant 0 : index
    %14 = vector.load %arg6[%c0_5, %c0_6] : memref<128x32xf32, #tpu.memory_space<vmem>>, vector<128x32xf32>
    %cst_7 = arith.constant dense<0.000000e+00> : vector<1x32xf32>
    %15 = tpu.matmul %10, %14, %cst_7 {dimension_numbers = #tpu.dot_dimension_numbers<[1], [0], [0], [1], [0, 0, 1, 1], [], []>, precision = #tpu.contract_precision<fp32>} : vector<1x128xf32>, vector<128x32xf32>, vector<1x32xf32> -> vector<1x32xf32>
    %cst_8 = arith.constant 1.250000e-01 : f32
    %16 = vector.broadcast %cst_8 : f32 to vector<1x32xf32>
    %17 = arith.mulf %15, %16 : vector<1x32xf32>
    %c0_9 = arith.constant 0 : index
    %c0_10 = arith.constant 0 : index
    %18 = vector.load %arg6[%c0_9, %c0_10] : memref<128x32xf32, #tpu.memory_space<vmem>>, vector<128x32xf32>
    %cst_11 = arith.constant dense<0.000000e+00> : vector<1x32xf32>
    %19 = tpu.matmul %13, %18, %cst_11 {dimension_numbers = #tpu.dot_dimension_numbers<[1], [0], [0], [1], [0, 0, 1, 1], [], []>, precision = #tpu.contract_precision<fp32>} : vector<1x128xf32>, vector<128x32xf32>, vector<1x32xf32> -> vector<1x32xf32>
    %cst_12 = arith.constant 1.250000e-01 : f32
    %20 = vector.broadcast %cst_12 : f32 to vector<1x32xf32>
    %21 = arith.mulf %19, %20 : vector<1x32xf32>
    %22 = arith.mulf %17, %17 : vector<1x32xf32>
    %23 = arith.subf %21, %22 : vector<1x32xf32>
    %cst_13 = arith.constant 0.000000e+00 : f32
    %24 = vector.broadcast %cst_13 : f32 to vector<1x32xf32>
    %25 = arith.maximumf %23, %24 : vector<1x32xf32>
    %cst_14 = arith.constant 9.99999974E-6 : f32
    %26 = vector.broadcast %cst_14 : f32 to vector<1x32xf32>
    %27 = arith.addf %25, %26 : vector<1x32xf32>
    %28 = math.rsqrt %27 : vector<1x32xf32>
    %c0_15 = arith.constant 0 : index
    %c0_16 = arith.constant 0 : index
    %29 = vector.load %arg7[%c0_15, %c0_16] : memref<32x128xf32, #tpu.memory_space<vmem>>, vector<32x128xf32>
    %cst_17 = arith.constant dense<0.000000e+00> : vector<1x128xf32>
    %30 = tpu.matmul %28, %29, %cst_17 {dimension_numbers = #tpu.dot_dimension_numbers<[1], [0], [0], [1], [0, 0, 1, 1], [], []>, precision = #tpu.contract_precision<fp32>} : vector<1x32xf32>, vector<32x128xf32>, vector<1x128xf32> -> vector<1x128xf32>
    %31 = arith.mulf %17, %28 : vector<1x32xf32>
    %c0_18 = arith.constant 0 : index
    %c0_19 = arith.constant 0 : index
    %32 = vector.load %arg7[%c0_18, %c0_19] : memref<32x128xf32, #tpu.memory_space<vmem>>, vector<32x128xf32>
    %cst_20 = arith.constant dense<0.000000e+00> : vector<1x128xf32>
    %33 = tpu.matmul %31, %32, %cst_20 {dimension_numbers = #tpu.dot_dimension_numbers<[1], [0], [0], [1], [0, 0, 1, 1], [], []>, precision = #tpu.contract_precision<fp32>} : vector<1x32xf32>, vector<32x128xf32>, vector<1x128xf32> -> vector<1x128xf32>
    %c0_21 = arith.constant 0 : index
    %c0_22 = arith.constant 0 : index
    %34 = vector.load %arg8[%c0_21, %c0_22] : memref<1x128xf32, #tpu.memory_space<vmem>>, vector<1x128xf32>
    %35 = arith.subf %34, %33 : vector<1x128xf32>
    %36 = vector.broadcast %30 : vector<1x128xf32> to vector<8x128xf32>
    %37 = arith.mulf %8, %36 : vector<8x128xf32>
    %38 = vector.broadcast %35 : vector<1x128xf32> to vector<8x128xf32>
    %39 = arith.addf %37, %38 : vector<8x128xf32>
    %40 = vector.broadcast %4 : vector<8x1xf32> to vector<8x128xf32>
    %41 = arith.mulf %39, %40 : vector<8x128xf32>
    %42 = arith.truncf %41 : vector<8x128xf32> to vector<8x128xbf16>
    %c0_23 = arith.constant 0 : index
    %c0_24 = arith.constant 0 : index
    %43 = vector.load %arg3[%c0_23, %c0_24] : memref<128x256xbf16, #tpu.memory_space<vmem>>, vector<128x256xbf16>
    %cst_25 = arith.constant dense<0.000000e+00> : vector<8x256xf32>
    %44 = tpu.matmul %42, %43, %cst_25 {dimension_numbers = #tpu.dot_dimension_numbers<[1], [0], [0], [1], [0, 0, 1, 1], [], []>} : vector<8x128xbf16>, vector<128x256xbf16>, vector<8x256xf32> -> vector<8x256xf32>
    %cst_26 = arith.constant dense<0.000000e+00> : vector<256xf32>
    %45 = vector.multi_reduction <add>, %44, %cst_26 [0] : vector<8x256xf32> to vector<256xf32>
    %46 = vector.shape_cast %45 : vector<256xf32> to vector<1x256xf32>
    %47 = arith.mulf %44, %44 : vector<8x256xf32>
    %cst_27 = arith.constant dense<0.000000e+00> : vector<256xf32>
    %48 = vector.multi_reduction <add>, %47, %cst_27 [0] : vector<8x256xf32> to vector<256xf32>
    %49 = vector.shape_cast %48 : vector<256xf32> to vector<1x256xf32>
    %c0_28 = arith.constant 0 : index
    %c0_29 = arith.constant 0 : index
    %50 = vector.load %arg9[%c0_28, %c0_29] : memref<256x16xf32, #tpu.memory_space<vmem>>, vector<256x16xf32>
    %cst_30 = arith.constant dense<0.000000e+00> : vector<1x16xf32>
    %51 = tpu.matmul %46, %50, %cst_30 {dimension_numbers = #tpu.dot_dimension_numbers<[1], [0], [0], [1], [0, 0, 1, 1], [], []>, precision = #tpu.contract_precision<fp32>} : vector<1x256xf32>, vector<256x16xf32>, vector<1x16xf32> -> vector<1x16xf32>
    %cst_31 = arith.constant 3.125000e-02 : f32
    %52 = vector.broadcast %cst_31 : f32 to vector<1x16xf32>
    %53 = arith.mulf %51, %52 : vector<1x16xf32>
    %c0_32 = arith.constant 0 : index
    %c0_33 = arith.constant 0 : index
    %54 = vector.load %arg9[%c0_32, %c0_33] : memref<256x16xf32, #tpu.memory_space<vmem>>, vector<256x16xf32>
    %cst_34 = arith.constant dense<0.000000e+00> : vector<1x16xf32>
    %55 = tpu.matmul %49, %54, %cst_34 {dimension_numbers = #tpu.dot_dimension_numbers<[1], [0], [0], [1], [0, 0, 1, 1], [], []>, precision = #tpu.contract_precision<fp32>} : vector<1x256xf32>, vector<256x16xf32>, vector<1x16xf32> -> vector<1x16xf32>
    %cst_35 = arith.constant 3.125000e-02 : f32
    %56 = vector.broadcast %cst_35 : f32 to vector<1x16xf32>
    %57 = arith.mulf %55, %56 : vector<1x16xf32>
    %58 = arith.mulf %53, %53 : vector<1x16xf32>
    %59 = arith.subf %57, %58 : vector<1x16xf32>
    %cst_36 = arith.constant 0.000000e+00 : f32
    %60 = vector.broadcast %cst_36 : f32 to vector<1x16xf32>
    %61 = arith.maximumf %59, %60 : vector<1x16xf32>
    %cst_37 = arith.constant 9.99999974E-6 : f32
    %62 = vector.broadcast %cst_37 : f32 to vector<1x16xf32>
    %63 = arith.addf %61, %62 : vector<1x16xf32>
    %64 = math.rsqrt %63 : vector<1x16xf32>
    %c0_38 = arith.constant 0 : index
    %c0_39 = arith.constant 0 : index
    %65 = vector.load %arg10[%c0_38, %c0_39] : memref<16x256xf32, #tpu.memory_space<vmem>>, vector<16x256xf32>
    %cst_40 = arith.constant dense<0.000000e+00> : vector<1x256xf32>
    %66 = tpu.matmul %64, %65, %cst_40 {dimension_numbers = #tpu.dot_dimension_numbers<[1], [0], [0], [1], [0, 0, 1, 1], [], []>, precision = #tpu.contract_precision<fp32>} : vector<1x16xf32>, vector<16x256xf32>, vector<1x256xf32> -> vector<1x256xf32>
    %67 = arith.mulf %53, %64 : vector<1x16xf32>
    %c0_41 = arith.constant 0 : index
    %c0_42 = arith.constant 0 : index
    %68 = vector.load %arg10[%c0_41, %c0_42] : memref<16x256xf32, #tpu.memory_space<vmem>>, vector<16x256xf32>
    %cst_43 = arith.constant dense<0.000000e+00> : vector<1x256xf32>
    %69 = tpu.matmul %67, %68, %cst_43 {dimension_numbers = #tpu.dot_dimension_numbers<[1], [0], [0], [1], [0, 0, 1, 1], [], []>, precision = #tpu.contract_precision<fp32>} : vector<1x16xf32>, vector<16x256xf32>, vector<1x256xf32> -> vector<1x256xf32>
    %c0_44 = arith.constant 0 : index
    %c0_45 = arith.constant 0 : index
    %70 = vector.load %arg11[%c0_44, %c0_45] : memref<1x256xf32, #tpu.memory_space<vmem>>, vector<1x256xf32>
    %71 = arith.subf %70, %69 : vector<1x256xf32>
    %72 = vector.broadcast %66 : vector<1x256xf32> to vector<8x256xf32>
    %73 = arith.mulf %44, %72 : vector<8x256xf32>
    %74 = vector.broadcast %71 : vector<1x256xf32> to vector<8x256xf32>
    %75 = arith.addf %73, %74 : vector<8x256xf32>
    %76 = vector.broadcast %4 : vector<8x1xf32> to vector<8x256xf32>
    %77 = arith.mulf %75, %76 : vector<8x256xf32>
    %78 = arith.truncf %77 : vector<8x256xf32> to vector<8x256xbf16>
    %c0_46 = arith.constant 0 : index
    %c0_47 = arith.constant 0 : index
    %79 = vector.load %arg4[%c0_46, %c0_47] : memref<256x512xbf16, #tpu.memory_space<vmem>>, vector<256x512xbf16>
    %cst_48 = arith.constant dense<0.000000e+00> : vector<8x512xf32>
    %80 = tpu.matmul %78, %79, %cst_48 {dimension_numbers = #tpu.dot_dimension_numbers<[1], [0], [0], [1], [0, 0, 1, 1], [], []>} : vector<8x256xbf16>, vector<256x512xbf16>, vector<8x512xf32> -> vector<8x512xf32>
    %cst_49 = arith.constant dense<0.000000e+00> : vector<512xf32>
    %81 = vector.multi_reduction <add>, %80, %cst_49 [0] : vector<8x512xf32> to vector<512xf32>
    %82 = vector.shape_cast %81 : vector<512xf32> to vector<1x512xf32>
    %83 = arith.mulf %80, %80 : vector<8x512xf32>
    %cst_50 = arith.constant dense<0.000000e+00> : vector<512xf32>
    %84 = vector.multi_reduction <add>, %83, %cst_50 [0] : vector<8x512xf32> to vector<512xf32>
    %85 = vector.shape_cast %84 : vector<512xf32> to vector<1x512xf32>
    %c0_51 = arith.constant 0 : index
    %c0_52 = arith.constant 0 : index
    %86 = vector.load %arg12[%c0_51, %c0_52] : memref<512x8xf32, #tpu.memory_space<vmem>>, vector<512x8xf32>
    %cst_53 = arith.constant dense<0.000000e+00> : vector<1x8xf32>
    %87 = tpu.matmul %82, %86, %cst_53 {dimension_numbers = #tpu.dot_dimension_numbers<[1], [0], [0], [1], [0, 0, 1, 1], [], []>, precision = #tpu.contract_precision<fp32>} : vector<1x512xf32>, vector<512x8xf32>, vector<1x8xf32> -> vector<1x8xf32>
    %cst_54 = arith.constant 0.00892857183 : f32
    %88 = vector.broadcast %cst_54 : f32 to vector<1x8xf32>
    %89 = arith.mulf %87, %88 : vector<1x8xf32>
    %c0_55 = arith.constant 0 : index
    %c0_56 = arith.constant 0 : index
    %90 = vector.load %arg12[%c0_55, %c0_56] : memref<512x8xf32, #tpu.memory_space<vmem>>, vector<512x8xf32>
    %cst_57 = arith.constant dense<0.000000e+00> : vector<1x8xf32>
    %91 = tpu.matmul %85, %90, %cst_57 {dimension_numbers = #tpu.dot_dimension_numbers<[1], [0], [0], [1], [0, 0, 1, 1], [], []>, precision = #tpu.contract_precision<fp32>} : vector<1x512xf32>, vector<512x8xf32>, vector<1x8xf32> -> vector<1x8xf32>
    %cst_58 = arith.constant 0.00892857183 : f32
    %92 = vector.broadcast %cst_58 : f32 to vector<1x8xf32>
    %93 = arith.mulf %91, %92 : vector<1x8xf32>
    %94 = arith.mulf %89, %89 : vector<1x8xf32>
    %95 = arith.subf %93, %94 : vector<1x8xf32>
    %cst_59 = arith.constant 0.000000e+00 : f32
    %96 = vector.broadcast %cst_59 : f32 to vector<1x8xf32>
    %97 = arith.maximumf %95, %96 : vector<1x8xf32>
    %cst_60 = arith.constant 9.99999974E-6 : f32
    %98 = vector.broadcast %cst_60 : f32 to vector<1x8xf32>
    %99 = arith.addf %97, %98 : vector<1x8xf32>
    %100 = math.rsqrt %99 : vector<1x8xf32>
    %c0_61 = arith.constant 0 : index
    %c0_62 = arith.constant 0 : index
    %101 = vector.load %arg13[%c0_61, %c0_62] : memref<8x512xf32, #tpu.memory_space<vmem>>, vector<8x512xf32>
    %cst_63 = arith.constant dense<0.000000e+00> : vector<1x512xf32>
    %102 = tpu.matmul %100, %101, %cst_63 {dimension_numbers = #tpu.dot_dimension_numbers<[1], [0], [0], [1], [0, 0, 1, 1], [], []>, precision = #tpu.contract_precision<fp32>} : vector<1x8xf32>, vector<8x512xf32>, vector<1x512xf32> -> vector<1x512xf32>
    %103 = arith.mulf %89, %100 : vector<1x8xf32>
    %c0_64 = arith.constant 0 : index
    %c0_65 = arith.constant 0 : index
    %104 = vector.load %arg13[%c0_64, %c0_65] : memref<8x512xf32, #tpu.memory_space<vmem>>, vector<8x512xf32>
    %cst_66 = arith.constant dense<0.000000e+00> : vector<1x512xf32>
    %105 = tpu.matmul %103, %104, %cst_66 {dimension_numbers = #tpu.dot_dimension_numbers<[1], [0], [0], [1], [0, 0, 1, 1], [], []>, precision = #tpu.contract_precision<fp32>} : vector<1x8xf32>, vector<8x512xf32>, vector<1x512xf32> -> vector<1x512xf32>
    %c0_67 = arith.constant 0 : index
    %c0_68 = arith.constant 0 : index
    %106 = vector.load %arg14[%c0_67, %c0_68] : memref<1x512xf32, #tpu.memory_space<vmem>>, vector<1x512xf32>
    %107 = arith.subf %106, %105 : vector<1x512xf32>
    %108 = vector.broadcast %102 : vector<1x512xf32> to vector<8x512xf32>
    %109 = arith.mulf %80, %108 : vector<8x512xf32>
    %110 = vector.broadcast %107 : vector<1x512xf32> to vector<8x512xf32>
    %111 = arith.addf %109, %110 : vector<8x512xf32>
    %112 = vector.broadcast %4 : vector<8x1xf32> to vector<8x512xf32>
    %113 = arith.mulf %111, %112 : vector<8x512xf32>
    %114 = arith.truncf %113 : vector<8x512xf32> to vector<8x512xbf16>
    %c0_69 = arith.constant 0 : index
    %c0_70 = arith.constant 0 : index
    %115 = vector.load %arg5[%c0_69, %c0_70] : memref<512x512xbf16, #tpu.memory_space<vmem>>, vector<512x512xbf16>
    %cst_71 = arith.constant dense<0.000000e+00> : vector<8x512xf32>
    %116 = tpu.matmul %114, %115, %cst_71 {dimension_numbers = #tpu.dot_dimension_numbers<[1], [0], [0], [1], [0, 0, 1, 1], [], []>} : vector<8x512xbf16>, vector<512x512xbf16>, vector<8x512xf32> -> vector<8x512xf32>
    %cst_72 = arith.constant -0.0644099936 : f32
    %117 = vector.broadcast %cst_72 : f32 to vector<8x512xf32>
    %118 = arith.addf %116, %117 : vector<8x512xf32>
    %119 = math.tanh %118 : vector<8x512xf32>
    %c0_73 = arith.constant 0 : index
    %c0_74 = arith.constant 0 : index
    %120 = vector.load %arg15[%c0_73, %c0_74] : memref<8x512xf32, #tpu.memory_space<vmem>>, vector<8x512xf32>
    tpu.vector_store %arg15[%c0_73, %c0_74], %119 {strides = array<i32>} : memref<8x512xf32, #tpu.memory_space<vmem>>, vector<8x512xf32>,
    return
  }
  func.func @transform_0(%arg0: i32) -> (i32, i32) {
    %c0_i32 = arith.constant 0 : i32
    %c0_i32_0 = arith.constant 0 : i32
    %c0_i32_1 = arith.constant 0 : i32
    return %c0_i32, %c0_i32_0 : i32, i32
  }
  func.func @transform_1(%arg0: i32) -> (i32, i32) {
    %c0_i32 = arith.constant 0 : i32
    %c0_i32_0 = arith.constant 0 : i32
    %c0_i32_1 = arith.constant 0 : i32
    return %c0_i32, %c0_i32_0 : i32, i32
  }
  func.func @transform_2(%arg0: i32) -> (i32, i32) {
    %c0_i32 = arith.constant 0 : i32
    %c0_i32_0 = arith.constant 0 : i32
    %c0_i32_1 = arith.constant 0 : i32
    return %c0_i32, %c0_i32_0 : i32, i32
  }
  func.func @transform_3(%arg0: i32) -> (i32, i32) {
    %c0_i32 = arith.constant 0 : i32
    %c0_i32_0 = arith.constant 0 : i32
    %c0_i32_1 = arith.constant 0 : i32
    return %c0_i32, %c0_i32_0 : i32, i32
  }
  func.func @transform_4(%arg0: i32) -> (i32, i32) {
    %c0_i32 = arith.constant 0 : i32
    %c0_i32_0 = arith.constant 0 : i32
    %c0_i32_1 = arith.constant 0 : i32
    return %c0_i32, %c0_i32_0 : i32, i32
  }
  func.func @transform_5(%arg0: i32) -> (i32, i32) {
    %c0_i32 = arith.constant 0 : i32
    %c0_i32_0 = arith.constant 0 : i32
    %c0_i32_1 = arith.constant 0 : i32
    return %c0_i32, %c0_i32_0 : i32, i32
  }
  func.func @transform_6(%arg0: i32) -> (i32, i32) {
    %c0_i32 = arith.constant 0 : i32
    %c0_i32_0 = arith.constant 0 : i32
    %c0_i32_1 = arith.constant 0 : i32
    return %c0_i32, %c0_i32_0 : i32, i32
  }
  func.func @transform_7(%arg0: i32) -> (i32, i32) {
    %c0_i32 = arith.constant 0 : i32
    %c0_i32_0 = arith.constant 0 : i32
    %c0_i32_1 = arith.constant 0 : i32
    return %c0_i32, %c0_i32_0 : i32, i32
  }
  func.func @transform_8(%arg0: i32) -> (i32, i32) {
    %c0_i32 = arith.constant 0 : i32
    %c0_i32_0 = arith.constant 0 : i32
    %c0_i32_1 = arith.constant 0 : i32
    return %c0_i32, %c0_i32_0 : i32, i32
  }
  func.func @transform_9(%arg0: i32) -> (i32, i32) {
    %c0_i32 = arith.constant 0 : i32
    %c0_i32_0 = arith.constant 0 : i32
    %c0_i32_1 = arith.constant 0 : i32
    return %c0_i32, %c0_i32_0 : i32, i32
  }
  func.func @transform_10(%arg0: i32) -> (i32, i32) {
    %c0_i32 = arith.constant 0 : i32
    %c0_i32_0 = arith.constant 0 : i32
    %c0_i32_1 = arith.constant 0 : i32
    return %c0_i32, %c0_i32_0 : i32, i32
  }
  func.func @transform_11(%arg0: i32) -> (i32, i32) {
    %c0_i32 = arith.constant 0 : i32
    %c0_i32_0 = arith.constant 0 : i32
    %c0_i32_1 = arith.constant 0 : i32
    return %c0_i32, %c0_i32_0 : i32, i32
  }
  func.func @transform_12(%arg0: i32) -> (i32, i32) {
    %c0_i32 = arith.constant 0 : i32
    %c0_i32_0 = arith.constant 0 : i32
    %c0_i32_1 = arith.constant 0 : i32
    return %c0_i32, %c0_i32_0 : i32, i32
  }
  func.func @transform_13(%arg0: i32) -> (i32, i32) {
    %c0_i32 = arith.constant 0 : i32
    %c0_i32_0 = arith.constant 0 : i32
    %c0_i32_1 = arith.constant 0 : i32
    return %c0_i32, %c0_i32_0 : i32, i32
  }
  func.func @transform_14(%arg0: i32) -> (i32, i32) {
    %c0_i32 = arith.constant 0 : i32
    %c0_i32_0 = arith.constant 0 : i32
    %c0_i32_1 = arith.constant 0 : i32
    return %c0_i32, %c0_i32_0 : i32, i32
  }
}

</mosaic_0001>

<bundles_post_ra>
// kernel: tpu_custom_call.1
= control target key start
LH: loop header
LB: loop body
LE: loop exit
PB: predicated region body
PF: predicated region fallthrough
CT: control target
= control target key end

     0   :  { %19 = vsyncpa [#allocation3], 0  ;;  %s14385_s0 = inlined_call_operand.vmem [shape: f32[8,16], index: 0, kind: input, shape index: {}]   ;;  %s14386_s1 = inlined_call_operand.vmem [shape: bf16[16,128], index: 1, kind: input, shape index: {}]   ;;  %s14387_s2 = inlined_call_operand.vmem [shape: bf16[128,256], index: 2, kind: input, shape index: {}]   ;;  %s14388_s3 = inlined_call_operand.vmem [shape: bf16[256,512], index: 3, kind: input, shape index: {}]   ;;  %s14389_s4 = inlined_call_operand.hbm [shape: bf16[512,512], index: 4, kind: input, shape index: {}]   ;;  %s14390_s5 = inlined_call_operand.vmem [shape: f32[128,32], index: 5, kind: input, shape index: {}]   ;;  %s14391_s6 = inlined_call_operand.vmem [shape: f32[32,128], index: 6, kind: input, shape index: {}]   ;;  %s14392_s7 = inlined_call_operand.vmem [shape: f32[1,128], index: 7, kind: input, shape index: {}]   ;;  %s14393_s8 = inlined_call_operand.vmem [shape: f32[256,16], index: 8, kind: input, shape index: {}]   ;;  %s14394_s9 = inlined_call_operand.vmem [shape: f32[16,256], index: 9, kind: input, shape index: {}]   ;;  %s14395_s10 = inlined_call_operand.vmem [shape: f32[1,256], index: 10, kind: input, shape index: {}]   ;;  %s14396_s11 = inlined_call_operand.vmem [shape: f32[512,8], index: 11, kind: input, shape index: {}]   ;;  %s14397_s12 = inlined_call_operand.vmem [shape: f32[8,512], index: 12, kind: input, shape index: {}]   ;;  %s14398_s13 = inlined_call_operand.vmem [shape: f32[1,512], index: 13, kind: input, shape index: {}]   ;;  %s14399_s14 = inlined_call_operand.hbm [shape: f32[8,512], index: 14, kind: output, shape index: {}]  }
   0x1   :  { %20 = vsyncpa [#allocation4], 0  ;;  %s33_s15 = sshll.u32 %s14389_s4, 4  ;;  %s10137_s16 = smov [#allocation2]   ;;  %s34_s15 = int_to_ptr.hbm [resolvable:$true] %s33_s15 }
   0x2   :  { %s35_s17 = sshll.u32 %s10137_s16, 4  ;;  %s10138_s18 = smov 256   ;;  %s36_s17 = int_to_ptr.vmem [resolvable:$true] %s35_s17 }
   0x3   :  { %s10139_s19 = smov 16  }
   0x4   :  { %41 = dma.hbm_to_vmem [thread:$0]  %s34_s15, 16384, %s36_s17, [#allocation3], %s10138_s18, %s10138_s18, %s10139_s19  }
   0x5   :  { %10133 = dma.done.wait [#allocation3], 16384  }
   0x6   :  { %10134 = vsyncadd [#allocation3], 4294950912  ;;  %v9857_v0 = vld [vmem:[%s14386_s1] sm:$0xff]  ;;  %v125_v2 = vld [vmem:[%s14390_s5 + $0x78] sm:$0xff]  ;;  %vm80_vm0 = vcmask 130048   ;;  %vm828_vm3 = vcmask 261120  }
   0x7   :  { %v70_v1 = vld [vmem:[%s14385_s0] sm:$0xff]  ;;  %v10229_v4 = vand.u32 4294901760, %v125_v2  ;;  %v124_v5 = vld [vmem:[%s14390_s5 + $0x70] sm:$0xff]  ;;  %v123_v6 = vld [vmem:[%s14390_s5 + $0x68] sm:$0xff]  ;;  %91 = vmatpush.bf16.msra.mxu0 %v9857_v0  ;;  %vm3427_vm9 = vcmask 1040384   ;;  %vm6798_vm12 = vcmask 64512  }
   0x8   :  { %v71_v3 = vpack.c.bf16 %v70_v1, %v70_v1  ;;  %v122_v7 = vld [vmem:[%s14390_s5 + $0x60] sm:$0xff]  ;;  %v10240_v8 = vand.u32 4294901760, %v124_v5  ;;  %v10242_v9 = vand.u32 4294901760, %v123_v6  ;;  %v121_v11 = vld [vmem:[%s14390_s5 + $0x58] sm:$0xff]  ;;  %v120_v12 = vld [vmem:[%s14390_s5 + $0x50] sm:$0xff]  ;;  %vm7983_vm14 = vcmask 1042434  }
   0x9   :  { %v10244_v10 = vand.u32 4294901760, %v122_v7  ;;  %v119_v13 = vld [vmem:[%s14390_s5 + $0x48] sm:$0xff]  ;;  %v10256_v14 = vsub.f32 %v125_v2, %v10229_v4  ;;  %127 = vmatpush.msra.mxu1 %v10229_v4  ;;  %v10260_v15 = vand.u32 4294901760, %v121_v11  ;;  %v10262_v16 = vand.u32 4294901760, %v120_v12  ;;  %v118_v18 = vld [vmem:[%s14390_s5 + $0x40] sm:$0xff]  ;;  %v117_v35 = vld [vmem:[%s14390_s5 + $0x38] sm:$0xff] }
   0xa   :  { %v10264_v17 = vand.u32 4294901760, %v119_v13  ;;  %v10270_v19 = vsub.f32 %v124_v5, %v10240_v8  ;;  %v10273_v20 = vsub.f32 %v123_v6, %v10242_v9  ;;  %v10278_v22 = vand.u32 4294901760, %v118_v18  ;;  %9024 = vmatmul.msk.bf16.vlgmr.msra.gmra.mxu0 %vm80_vm0, %v71_v3  ;;  %v116_v39 = vld [vmem:[%s14390_s5 + $0x30] sm:$0xff]  ;;  %v115_v40 = vld [vmem:[%s14390_s5 + $0x28] sm:$0xff]  ;;  %v114_v43 = vld [vmem:[%s14390_s5 + $0x20] sm:$0xff]  ;;  %s9009_s19 = sshll.u32 %s14399_s14, 4  ;;  %s9010_s19 = int_to_ptr.hbm [resolvable:$true] %s9009_s19 }
   0xb   :  { %323 = vmatpush.msrb.mxu0 %v10229_v4  ;;  %v10276_v21 = vsub.f32 %v122_v7, %v10244_v10  ;;  %v10282_v23 = vand.u32 4294901760, %v10256_v14  ;;  %270 = vmatpush.msra.mxu3 %v10256_v14  ;;  %v10286_v24 = vsub.f32 %v121_v11, %v10260_v15  ;;  %v10289_v25 = vsub.f32 %v120_v12, %v10262_v16  ;;  %v113_v50 = vld [vmem:[%s14390_s5 + $0x18] sm:$0xff]  ;;  %v112_v57 = vld [vmem:[%s14390_s5 + $0x10] sm:$0xff]  ;;  %v111_v63 = vld [vmem:[%s14390_s5 + $0x8] sm:$0xff] }
   0xc   :  { %v10292_v26 = vand.u32 4294901760, %v10270_v19  ;;  %v10295_v27 = vand.u32 4294901760, %v10273_v20  ;;  %129 = vmatpush.msra.mxu1 %v10240_v8  ;;  %v10303_v29 = vsub.f32 %v119_v13, %v10264_v17  ;;  %v10318_v34 = vsub.f32 %v118_v18, %v10278_v22  ;;  %v110_v6 = vld [vmem:[%s14390_s5] sm:$0xff] }
   0xd   :  { %v10298_v28 = vand.u32 4294901760, %v10276_v21  ;;  %325 = vmatpush.msrb.mxu0 %v10240_v8  ;;  %v170_v30 = vsub.f32 %v10256_v14, %v10282_v23  ;;  %273 = vmatpush.msra.mxu3 %v10270_v19  ;;  %v10309_v31 = vand.u32 4294901760, %v10286_v24  ;;  %v10329_v38 = vand.u32 4294901760, %v10289_v25 }
   0xe   :  { %v176_v32 = vsub.f32 %v10270_v19, %v10292_v26  ;;  %v182_v33 = vsub.f32 %v10273_v20, %v10295_v27  ;;  %131 = vmatpush.msra.mxu1 %v10242_v9  ;;  %v10341_v42 = vand.u32 4294901760, %v10303_v29  ;;  %v10353_v46 = vand.u32 4294901760, %v117_v35 }
   0xf   :  { %327 = vmatpush.msrb.mxu0 %v10242_v9  ;;  %v10323_v36 = vand.u32 4294901760, %v170_v30  ;;  %v188_v37 = vsub.f32 %v10276_v21, %v10298_v28  ;;  %276 = vmatpush.msra.mxu3 %v10273_v20  ;;  %v194_v45 = vsub.f32 %v10286_v24, %v10309_v31  ;;  %v10357_v47 = vand.u32 4294901760, %v10318_v34 }
  0x10   :  { %v10337_v41 = vand.u32 4294901760, %v176_v32  ;;  %133 = vmatpush.msra.mxu1 %v10244_v10  ;;  %v10348_v44 = vand.u32 4294901760, %v182_v33  ;;  %v10360_v48 = vand.u32 4294901760, %v116_v39  ;;  %v10362_v49 = vand.u32 4294901760, %v115_v40 }
  0x11   :  { %329 = vmatpush.msrb.mxu0 %v10244_v10  ;;  %172 = vmatpush.msra.mxu2 %v10323_v36  ;;  %v10368_v51 = vand.u32 4294901760, %v188_v37  ;;  %v200_v52 = vsub.f32 %v10289_v25, %v10329_v38  ;;  %v10374_v53 = vsub.f32 %v117_v35, %v10353_v46  ;;  %v10376_v54 = vand.u32 4294901760, %v114_v43 }
  0x12   :  { %279 = vmatpush.msra.mxu3 %v10276_v21  ;;  %135 = vmatpush.msra.mxu1 %v10260_v15  ;;  %v206_v55 = vsub.f32 %v10303_v29, %v10341_v42  ;;  %v10383_v56 = vsub.f32 %v116_v39, %v10360_v48  ;;  %v10389_v58 = vand.u32 4294901760, %v194_v45  ;;  %v10396_v60 = vsub.f32 %v115_v40, %v10362_v49 }
  0x13   :  { %331 = vmatpush.msrb.mxu0 %v10260_v15  ;;  %178 = vmatpush.msra.mxu2 %v10337_v41  ;;  %v10393_v59 = vand.u32 4294901760, %v10374_v53  ;;  %v10398_v61 = vand.u32 4294901760, %v113_v50  ;;  %v212_v62 = vsub.f32 %v10318_v34, %v10357_v47  ;;  %v10408_v0 = vand.u32 4294901760, %v200_v52 }
  0x14   :  { %282 = vmatpush.msra.mxu3 %v10286_v24  ;;  %137 = vmatpush.msra.mxu1 %v10262_v16  ;;  %v10412_v1 = vand.u32 4294901760, %v10383_v56  ;;  %v10415_v2 = vsub.f32 %v114_v43, %v10376_v54  ;;  %v10417_v3 = vand.u32 4294901760, %v112_v57  ;;  %v10419_v5 = vand.u32 4294901760, %v206_v55 }
  0x15   :  { %333 = vmatpush.msrb.mxu0 %v10262_v16  ;;  %184 = vmatpush.msra.mxu2 %v10348_v44  ;;  %v218_v7 = vsub.f32 %v10374_v53, %v10393_v59  ;;  %v10431_v11 = vand.u32 4294901760, %v10396_v60  ;;  %v10434_v12 = vsub.f32 %v113_v50, %v10398_v61  ;;  %v10436_v13 = vand.u32 4294901760, %v111_v63 }
  0x16   :  { %285 = vmatpush.msra.mxu3 %v10289_v25  ;;  %139 = vmatpush.msra.mxu1 %v10264_v17  ;;  %14800 = vst [vmem:[#allocation8_spill] sm:$0xff] %v10415_v2  ;;  %v10438_v18 = vand.u32 4294901760, %v212_v62  ;;  %v224_v30 = vsub.f32 %v10383_v56, %v10412_v1  ;;  %v10447_v32 = vand.u32 4294901760, %v10415_v2  ;;  %v10450_v33 = vsub.f32 %v112_v57, %v10417_v3 }
  0x17   :  { %335 = vmatpush.msrb.mxu0 %v10264_v17  ;;  %190 = vmatpush.msra.mxu2 %v10368_v51  ;;  %14801 = vst [vmem:[#allocation9_spill] sm:$0xff] %v10434_v12  ;;  %v10452_v35 = vand.u32 4294901760, %v110_v6  ;;  %v10457_v37 = vand.u32 4294901760, %v218_v7  ;;  %v230_v39 = vsub.f32 %v10396_v60, %v10431_v11  ;;  %v10463_v40 = vand.u32 4294901760, %v10434_v12 }
  0x18   :  { %288 = vmatpush.msra.mxu3 %v10303_v29  ;;  %141 = vmatpush.msra.mxu1 %v10278_v22  ;;  %v10466_v43 = vsub.f32 %v111_v63, %v10436_v13  ;;  %v10471_v45 = vand.u32 4294901760, %v224_v30  ;;  %v236_v50 = vsub.f32 %v10415_v2, %v10447_v32  ;;  %v10477_v52 = vand.u32 4294901760, %v10450_v33 }
  0x19   :  { %337 = vmatpush.msrb.mxu0 %v10278_v22  ;;  %196 = vmatpush.msra.mxu2 %v10389_v58  ;;  %v10480_v55 = vsub.f32 %v110_v6, %v10452_v35  ;;  %v10485_v57 = vand.u32 4294901760, %v230_v39  ;;  %v242_v62 = vsub.f32 %v10434_v12, %v10463_v40  ;;  %vm7985_vm15 = vcmask 1041408  }
  0x1a   :  { %291 = vmatpush.msra.mxu3 %v10318_v34  ;;  %143 = vmatpush.msra.mxu1 %v10353_v46  ;;  %v10491_v63 = vand.u32 4294901760, %v10466_v43  ;;  %v10496_v6 = vand.u32 4294901760, %v236_v50  ;;  %v248_v7 = vsub.f32 %v10450_v33, %v10477_v52 }
  0x1b   :  { %339 = vmatpush.msrb.mxu0 %v10353_v46  ;;  %202 = vmatpush.msra.mxu2 %v10408_v0  ;;  %v10502_v30 = vand.u32 4294901760, %v10480_v55  ;;  %v10507_v39 = vand.u32 4294901760, %v242_v62 }
  0x1c   :  { %294 = vmatpush.msra.mxu3 %v10374_v53  ;;  %145 = vmatpush.msra.mxu1 %v10360_v48  ;;  %v254_v50 = vsub.f32 %v10466_v43, %v10491_v63 }
  0x1d   :  { %341 = vmatpush.msrb.mxu0 %v10360_v48  ;;  %208 = vmatpush.msra.mxu2 %v10419_v5 }
  0x1e   :  { %297 = vmatpush.msra.mxu3 %v10383_v56  ;;  %147 = vmatpush.msra.mxu1 %v10362_v49  ;;  %v255_v62 = vand.u32 4294901760, %v254_v50 }
  0x1f   :  { %343 = vmatpush.msrb.mxu0 %v10362_v49  ;;  %214 = vmatpush.msra.mxu2 %v10438_v18 }
  0x20   :  { %300 = vmatpush.msra.mxu3 %v10396_v60  ;;  %149 = vmatpush.msra.mxu1 %v10376_v54 }
  0x21   :  { %345 = vmatpush.msrb.mxu0 %v10376_v54  ;;  %220 = vmatpush.msra.mxu2 %v10457_v37 }
  0x22   :  { %303 = vmatpush.msra.mxu3 %v10415_v2  ;;  %151 = vmatpush.msra.mxu1 %v10398_v61  ;;  %v260_v2 = vsub.f32 %v10480_v55, %v10502_v30 }
  0x23   :  { %347 = vmatpush.msrb.mxu0 %v10398_v61  ;;  %226 = vmatpush.msra.mxu2 %v10471_v45 }
  0x24   :  { %306 = vmatpush.msra.mxu3 %v10434_v12  ;;  %153 = vmatpush.msra.mxu1 %v10417_v3  ;;  %v249_v12 = vand.u32 4294901760, %v248_v7  ;;  %v261_v7 = vand.u32 4294901760, %v260_v2 }
  0x25   :  { %349 = vmatpush.msrb.mxu0 %v10417_v3  ;;  %232 = vmatpush.msra.mxu2 %v10485_v57 }
  0x26   :  { %309 = vmatpush.msra.mxu3 %v10450_v33  ;;  %155 = vmatpush.msra.mxu1 %v10436_v13 }
  0x27   :  { %351 = vmatpush.msrb.mxu0 %v10436_v13  ;;  %238 = vmatpush.msra.mxu2 %v10496_v6 }
  0x28   :  { %312 = vmatpush.msra.mxu3 %v10466_v43  ;;  %157 = vmatpush.msra.mxu1 %v10452_v35 }
  0x29   :  { %353 = vmatpush.msrb.mxu0 %v10452_v35  ;;  %244 = vmatpush.msra.mxu2 %v10507_v39 }
  0x2a   :  { %315 = vmatpush.msra.mxu3 %v10480_v55  ;;  %364 = vmatpush.msrb.mxu1 %v10282_v23 }
  0x2b   :  { %514 = vmatpush.msra.mxu0 %v10323_v36  ;;  %250 = vmatpush.msra.mxu2 %v249_v12 }
  0x2c   :  { %469 = vmatpush.msrb.mxu3 %v10229_v4  ;;  %368 = vmatpush.msrb.mxu1 %v10292_v26 }
  0x2d   :  { %520 = vmatpush.msra.mxu0 %v10337_v41  ;;  %256 = vmatpush.msra.mxu2 %v255_v62 }
  0x2e   :  { %471 = vmatpush.msrb.mxu3 %v10240_v8  ;;  %372 = vmatpush.msrb.mxu1 %v10295_v27 }
  0x2f   :  { %526 = vmatpush.msra.mxu0 %v10348_v44  ;;  %262 = vmatpush.msra.mxu2 %v261_v7 }
  0x30   :  { %473 = vmatpush.msrb.mxu3 %v10242_v9  ;;  %376 = vmatpush.msrb.mxu1 %v10298_v28 }
  0x31   :  { %431 = vmatpush.msrb.mxu2 %v10229_v4  ;;  %532 = vmatpush.msra.mxu0 %v10368_v51 }
  0x32   :  { %475 = vmatpush.msrb.mxu3 %v10244_v10  ;;  %380 = vmatpush.msrb.mxu1 %v10309_v31 }
  0x33   :  { %433 = vmatpush.msrb.mxu2 %v10240_v8  ;;  %538 = vmatpush.msra.mxu0 %v10389_v58 }
  0x34   :  { %477 = vmatpush.msrb.mxu3 %v10260_v15  ;;  %384 = vmatpush.msrb.mxu1 %v10329_v38 }
  0x35   :  { %435 = vmatpush.msrb.mxu2 %v10242_v9  ;;  %544 = vmatpush.msra.mxu0 %v10408_v0 }
  0x36   :  { %479 = vmatpush.msrb.mxu3 %v10262_v16  ;;  %388 = vmatpush.msrb.mxu1 %v10341_v42 }
  0x37   :  { %437 = vmatpush.msrb.mxu2 %v10244_v10  ;;  %550 = vmatpush.msra.mxu0 %v10419_v5 }
  0x38   :  { %481 = vmatpush.msrb.mxu3 %v10264_v17  ;;  %392 = vmatpush.msrb.mxu1 %v10357_v47 }
  0x39   :  { %439 = vmatpush.msrb.mxu2 %v10260_v15  ;;  %556 = vmatpush.msra.mxu0 %v10438_v18 }
  0x3a   :  { %483 = vmatpush.msrb.mxu3 %v10278_v22  ;;  %396 = vmatpush.msrb.mxu1 %v10393_v59 }
  0x3b   :  { %441 = vmatpush.msrb.mxu2 %v10262_v16  ;;  %562 = vmatpush.msra.mxu0 %v10457_v37 }
  0x3c   :  { %485 = vmatpush.msrb.mxu3 %v10353_v46  ;;  %400 = vmatpush.msrb.mxu1 %v10412_v1 }
  0x3d   :  { %443 = vmatpush.msrb.mxu2 %v10264_v17  ;;  %568 = vmatpush.msra.mxu0 %v10471_v45 }
  0x3e   :  { %487 = vmatpush.msrb.mxu3 %v10360_v48  ;;  %404 = vmatpush.msrb.mxu1 %v10431_v11 }
  0x3f   :  { %445 = vmatpush.msrb.mxu2 %v10278_v22  ;;  %574 = vmatpush.msra.mxu0 %v10485_v57 }
  0x40   :  { %489 = vmatpush.msrb.mxu3 %v10362_v49  ;;  %408 = vmatpush.msrb.mxu1 %v10447_v32 }
  0x41   :  { %447 = vmatpush.msrb.mxu2 %v10353_v46  ;;  %580 = vmatpush.msra.mxu0 %v10496_v6 }
  0x42   :  { %491 = vmatpush.msrb.mxu3 %v10376_v54  ;;  %412 = vmatpush.msrb.mxu1 %v10463_v40 }
  0x43   :  { %449 = vmatpush.msrb.mxu2 %v10360_v48  ;;  %586 = vmatpush.msra.mxu0 %v10507_v39 }
  0x44   :  { %493 = vmatpush.msrb.mxu3 %v10398_v61  ;;  %416 = vmatpush.msrb.mxu1 %v10477_v52 }
  0x45   :  { %451 = vmatpush.msrb.mxu2 %v10362_v49  ;;  %592 = vmatpush.msra.mxu0 %v249_v12 }
  0x46   :  { %495 = vmatpush.msrb.mxu3 %v10417_v3  ;;  %420 = vmatpush.msrb.mxu1 %v10491_v63 }
  0x47   :  { %453 = vmatpush.msrb.mxu2 %v10376_v54  ;;  %598 = vmatpush.msra.mxu0 %v255_v62 }
  0x48   :  { %497 = vmatpush.msrb.mxu3 %v10436_v13  ;;  %424 = vmatpush.msrb.mxu1 %v10502_v30 }
  0x49   :  { %455 = vmatpush.msrb.mxu2 %v10398_v61  ;;  %604 = vmatpush.msra.mxu0 %v261_v7 }
  0x4a   :  { %499 = vmatpush.msrb.mxu3 %v10452_v35 }
  0x4b   :  { %457 = vmatpush.msrb.mxu2 %v10417_v3 }
  0x4d   :  { %459 = vmatpush.msrb.mxu2 %v10436_v13 }
  0x4f   :  { %461 = vmatpush.msrb.mxu2 %v10452_v35 }
  0x87   :  { %v10583_v36 = vpop.f32.mrf.mxu0 }
  0x88   :  { %14802 = vst [vmem:[#allocation10_spill] sm:$0xff] %v10583_v36  ;;  %v97_v41 = vrot.slane %v10583_v36, 4  ;;  %v103_v44 = vmul.f32 %v10583_v36, %v10583_v36 }
  0x8a   :  { %v98_v51 = vadd.f32 %v97_v41, %v10583_v36  ;;  %v104_v58 = vrot.slane %v103_v44, 4 }
  0x8c   :  { %v99_v0 = vrot.slane %v98_v51, 2  ;;  %v105_v2 = vadd.f32 %v104_v58, %v103_v44 }
  0x8e   :  { %v100_v5 = vadd.f32 %v99_v0, %v98_v51  ;;  %v106_v12 = vrot.slane %v105_v2, 2 }
  0x8f   :  { %v95_v18 = vpop.f32.mrf.mxu0 }
  0x90   :  { %v101_v37 = vrot.slane %v100_v5, 1  ;;  %v107_v45 = vadd.f32 %v106_v12, %v105_v2 }
  0x92   :  { %v108_v57 = vrot.slane %v107_v45, 1  ;;  %v102_v6 = vadd.f32 %v101_v37, %v100_v5 }
  0x94   :  { %v158_v39 = vand.u32 4294901760, %v102_v6  ;;  %v109_v50 = vadd.f32 %v108_v57, %v107_v45 }
  0x96   :  { %264 = vmatmul.f32.vlgmr.msra.gmra.mxu2 %v158_v39  ;;  %v159_v62 = vsub.f32 %v102_v6, %v158_v39  ;;  %v10589_v7 = vand.u32 4294901760, %v109_v50 }
  0x97   :  { %665 = vmatpush.msra.mxu2 %v10229_v4 }
  0x98   :  { %318 = vmatmul.f32.vlgmr.msra.gmra.mxu3 %v159_v62  ;;  %v160_v41 = vand.u32 4294901760, %v159_v62  ;;  %v10593_v36 = vsub.f32 %v109_v50, %v10589_v7 }
  0x99   :  { %667 = vmatpush.msra.mxu2 %v10240_v8  ;;  %706 = vmatpush.msra.mxu3 %v10282_v23 }
  0x9a   :  { %357 = vmatmul.f32.vlgmr.msrb.gmra.mxu0 %v160_v41  ;;  %v161_v44 = vsub.f32 %v159_v62, %v160_v41  ;;  %v502_v51 = vand.u32 4294901760, %v10593_v36 }
  0x9b   :  { %669 = vmatpush.msra.mxu2 %v10242_v9  ;;  %710 = vmatpush.msra.mxu3 %v10292_v26  ;;  %v825_v26 = vld [vmem:[%s14391_s6 + $0x8] sm:$0xff] }
  0x9c   :  { %773 = vmatpush.msrb.mxu0 %v10229_v4  ;;  %v162_v58 = vand.u32 4294901760, %v161_v44  ;;  %v503_v0 = vsub.f32 %v10593_v36, %v502_v51  ;;  %v14803_v4 = vld [vmem:[#allocation8_spill] sm:$0xff] }
  0x9d   :  { %671 = vmatpush.msra.mxu2 %v10244_v10  ;;  %714 = vmatpush.msra.mxu3 %v10295_v27 }
  0x9e   :  { %775 = vmatpush.msrb.mxu0 %v10240_v8  ;;  %163 = vmatmul.f32.vlgmr.msra.gmra.mxu1 %v162_v58  ;;  %v504_v23 = vand.u32 4294901760, %v503_v0  ;;  %v14804_v8 = vld [vmem:[#allocation9_spill] sm:$0xff] }
  0x9f   :  { %463 = vmatmul.f32.vlgmr.msrb.gmra.mxu2 %v158_v39  ;;  %612 = vmatpush.msra.mxu1 %v10256_v14 }
  0xa0   :  { %673 = vmatpush.msra.mxu2 %v10260_v15  ;;  %718 = vmatpush.msra.mxu3 %v10298_v28 }
  0xa1   :  { %777 = vmatpush.msrb.mxu0 %v10242_v9  ;;  %505 = vmatmul.f32.vlgmr.msrb.gmra.mxu3 %v504_v23 }
  0xa2   :  { %615 = vmatpush.msra.mxu1 %v10270_v19  ;;  %675 = vmatpush.msra.mxu2 %v10262_v16 }
  0xa3   :  { %722 = vmatpush.msra.mxu3 %v10309_v31  ;;  %779 = vmatpush.msrb.mxu0 %v10244_v10  ;;  %v10689_v31 = vand.u32 4294901760, %v825_v26 }
  0xa4   :  { %606 = vmatmul.f32.vlgmr.msra.gmra.mxu0 %v10589_v7  ;;  %618 = vmatpush.msra.mxu1 %v10273_v20 }
  0xa5   :  { %677 = vmatpush.msra.mxu2 %v10264_v17  ;;  %726 = vmatpush.msra.mxu3 %v10329_v38  ;;  %v824_v38 = vld [vmem:[%s14391_s6] sm:$0xff] }
  0xa6   :  { %781 = vmatpush.msrb.mxu0 %v10260_v15  ;;  %621 = vmatpush.msra.mxu1 %v10276_v21  ;;  %v826_v21 = vld [vmem:[%s14391_s6 + $0x10] sm:$0xff] }
  0xa7   :  { %679 = vmatpush.msra.mxu2 %v10278_v22  ;;  %730 = vmatpush.msra.mxu3 %v10341_v42 }
  0xa8   :  { %783 = vmatpush.msrb.mxu0 %v10262_v16  ;;  %426 = vmatmul.f32.vlgmr.msrb.gmra.mxu1 %v158_v39 }
  0xa9   :  { %624 = vmatpush.msra.mxu1 %v10286_v24  ;;  %681 = vmatpush.msra.mxu2 %v10353_v46 }
  0xaa   :  { %734 = vmatpush.msra.mxu3 %v10357_v47  ;;  %785 = vmatpush.msrb.mxu0 %v10264_v17  ;;  %v827_v17 = vld [vmem:[%s14391_s6 + $0x18] sm:$0xff] }
  0xab   :  { %627 = vmatpush.msra.mxu1 %v10289_v25  ;;  %683 = vmatpush.msra.mxu2 %v10360_v48  ;;  %v10667_v19 = vand.u32 4294901760, %v827_v17  ;;  %v10675_v25 = vand.u32 4294901760, %v826_v21 }
  0xac   :  { %738 = vmatpush.msra.mxu3 %v10393_v59  ;;  %787 = vmatpush.msrb.mxu0 %v10278_v22 }
  0xad   :  { %630 = vmatpush.msra.mxu1 %v10303_v29  ;;  %685 = vmatpush.msra.mxu2 %v10362_v49  ;;  %v10673_v24 = vsub.f32 %v827_v17, %v10667_v19  ;;  %v10686_v29 = vsub.f32 %v826_v21, %v10675_v25 }
  0xae   :  { %742 = vmatpush.msra.mxu3 %v10412_v1  ;;  %789 = vmatpush.msrb.mxu0 %v10353_v46 }
  0xaf   :  { %633 = vmatpush.msra.mxu1 %v10318_v34  ;;  %687 = vmatpush.msra.mxu2 %v10376_v54  ;;  %v10683_v28 = vand.u32 4294901760, %v10673_v24  ;;  %v10699_v47 = vand.u32 4294901760, %v10686_v29 }
  0xb0   :  { %746 = vmatpush.msra.mxu3 %v10431_v11  ;;  %791 = vmatpush.msrb.mxu0 %v10360_v48  ;;  %v10702_v48 = vsub.f32 %v825_v26, %v10689_v31  ;;  %v9085_v26 = vld [vmem:[%s14387_s2 + $0x78] sm:$0xf0] }
  0xb1   :  { %636 = vmatpush.msra.mxu1 %v10374_v53  ;;  %689 = vmatpush.msra.mxu2 %v10398_v61  ;;  %v876_v46 = vsub.f32 %v10673_v24, %v10683_v28  ;;  %v882_v59 = vsub.f32 %v10686_v29, %v10699_v47 }
  0xb2   :  { %750 = vmatpush.msra.mxu3 %v10447_v32  ;;  %793 = vmatpush.msrb.mxu0 %v10362_v49  ;;  %v10705_v49 = vand.u32 4294901760, %v824_v38 }
  0xb3   :  { %639 = vmatpush.msra.mxu1 %v10383_v56  ;;  %691 = vmatpush.msra.mxu2 %v10417_v3  ;;  %v877_v56 = vand.u32 4294901760, %v876_v46  ;;  %v883_v11 = vand.u32 4294901760, %v882_v59  ;;  %v9067_v46 = vld [vmem:[%s14387_s2 + $0x50] sm:$0xf]  ;;  %v9867_v59 = vld [vmem:[%s14387_s2 + $0x44] sm:$0xf0] }
  0xb4   :  { %754 = vmatpush.msra.mxu3 %v10463_v40  ;;  %795 = vmatpush.msrb.mxu0 %v10376_v54 }
  0xb5   :  { %642 = vmatpush.msra.mxu1 %v10396_v60  ;;  %693 = vmatpush.msra.mxu2 %v10436_v13  ;;  %v10712_v60 = vand.u32 4294901760, %v10702_v48 }
  0xb6   :  { %758 = vmatpush.msra.mxu3 %v10477_v52  ;;  %797 = vmatpush.msrb.mxu0 %v10398_v61  ;;  %v10715_v61 = vsub.f32 %v824_v38, %v10705_v49  ;;  %v9077_v38 = vld [vmem:[%s14387_s2 + $0x68] sm:$0xf0] }
  0xb7   :  { %645 = vmatpush.msra.mxu1 %v14803_v4  ;;  %695 = vmatpush.msra.mxu2 %v10452_v35 }
  0xb8   :  { %762 = vmatpush.msra.mxu3 %v10491_v63  ;;  %799 = vmatpush.msrb.mxu0 %v10417_v3  ;;  %v10723_v32 = vand.u32 4294901760, %v10715_v61 }
  0xb9   :  { %699 = vmatmul.f32.vlgmr.msra.gmra.mxu2 %v502_v51  ;;  %648 = vmatpush.msra.mxu1 %v14804_v8 }
  0xba   :  { %766 = vmatpush.msra.mxu3 %v10502_v30  ;;  %801 = vmatpush.msrb.mxu0 %v10436_v13  ;;  %v888_v13 = vsub.f32 %v10702_v48, %v10712_v60  ;;  %v894_v52 = vsub.f32 %v10715_v61, %v10723_v32 }
  0xbb   :  { %768 = vmatmul.f32.vlgmr.msra.gmra.mxu3 %v10589_v7  ;;  %651 = vmatpush.msra.mxu1 %v10450_v33 }
  0xbc   :  { %803 = vmatpush.msrb.mxu0 %v10452_v35  ;;  %916 = vmatpush.msrb.mxu3 %v10673_v24  ;;  %v895_v30 = vand.u32 4294901760, %v894_v52  ;;  %v9863_v52 = vld [vmem:[%s14387_s2 + $0x24] sm:$0xf0] }
  0xbd   :  { %805 = vmatmul.f32.vlgmr.msrb.gmra.mxu0 %v10589_v7  ;;  %654 = vmatpush.msra.mxu1 %v10466_v43  ;;  %v889_v43 = vand.u32 4294901760, %v888_v13  ;;  %v9865_v13 = vld [vmem:[%s14387_s2 + $0x34] sm:$0xf0] }
  0xbe   :  { %945 = vmatpush.msra.mxu0 %v10667_v19  ;;  %919 = vmatpush.msrb.mxu3 %v10686_v29 }
  0xbf   :  { %657 = vmatpush.msra.mxu1 %v10480_v55  ;;  %878 = vmatpush.msrb.mxu2 %v877_v56 }
  0xc0   :  { %660 = vmatmul.f32.vlgmr.msra.gmra.mxu1 %v10593_v36  ;;  %947 = vmatpush.msra.mxu0 %v10675_v25 }
  0xc1   :  { %845 = vmatpush.msrb.mxu1 %v10667_v19  ;;  %922 = vmatpush.msrb.mxu3 %v10702_v48 }
  0xc2   :  { %949 = vmatpush.msra.mxu0 %v10689_v31  ;;  %884 = vmatpush.msrb.mxu2 %v883_v11 }
  0xc3   :  { %847 = vmatpush.msrb.mxu1 %v10675_v25  ;;  %925 = vmatpush.msrb.mxu3 %v10715_v61 }
  0xc4   :  { %951 = vmatpush.msra.mxu0 %v10705_v49  ;;  %890 = vmatpush.msrb.mxu2 %v889_v43 }
  0xc5   :  { %849 = vmatpush.msrb.mxu1 %v10689_v31  ;;  %1034 = vmatpush.msra.mxu3 %v10667_v19 }
  0xc6   :  { %1067 = vmatpush.msrb.mxu0 %v877_v56  ;;  %896 = vmatpush.msrb.mxu2 %v895_v30  ;;  %v9059_v56 = vld [vmem:[%s14387_s2 + $0x40] sm:$0xf] }
  0xc7   :  { %851 = vmatpush.msrb.mxu1 %v10705_v49  ;;  %1036 = vmatpush.msra.mxu3 %v10675_v25 }
  0xc8   :  { %1073 = vmatpush.msrb.mxu0 %v883_v11  ;;  %1005 = vmatpush.msra.mxu2 %v10667_v19  ;;  %v9051_v11 = vld [vmem:[%s14387_s2 + $0x30] sm:$0xf] }
  0xc9   :  { %974 = vmatpush.msra.mxu1 %v10683_v28  ;;  %1038 = vmatpush.msra.mxu3 %v10689_v31 }
  0xca   :  { %1079 = vmatpush.msrb.mxu0 %v889_v43  ;;  %1007 = vmatpush.msra.mxu2 %v10675_v25  ;;  %v9043_v43 = vld [vmem:[%s14387_s2 + $0x20] sm:$0xf] }
  0xcb   :  { %978 = vmatpush.msra.mxu1 %v10699_v47  ;;  %1040 = vmatpush.msra.mxu3 %v10705_v49 }
  0xcc   :  { %1085 = vmatpush.msrb.mxu0 %v895_v30  ;;  %1009 = vmatpush.msra.mxu2 %v10689_v31  ;;  %v9045_v30 = vld [vmem:[%s14387_s2 + $0x28] sm:$0xf0] }
  0xcd   :  { %982 = vmatpush.msra.mxu1 %v10712_v60 }
  0xce   :  { %1011 = vmatpush.msra.mxu2 %v10705_v49 }
  0xcf   :  { %986 = vmatpush.msra.mxu1 %v10723_v32 }
 0x117   :  { %v358_v16 = vpop.f32.mrf.mxu0 }
 0x119   :  { %v265_v10 = vpop.f32.mrf.mxu2 }
 0x11b   :  { %v164_v9 = vpop.f32.mrf.mxu1  ;;  %v319_v14 = vpop.f32.mrf.mxu3 }
 0x11c   :  { %v266_v15 = vadd.f32 %v265_v10, %v164_v9 }
 0x11e   :  { %v320_v20 = vadd.f32 %v319_v14, %v266_v15 }
 0x120   :  { %v359_v34 = vadd.f32 %v358_v16, %v320_v20 }
 0x121   :  { %v607_v54 = vpop.f32.mrf.mxu0 }
 0x122   :  { %v464_v27 = vpop.f32.mrf.mxu2 }
 0x124   :  { %v506_v42 = vpop.f32.mrf.mxu3 }
 0x125   :  { %v427_v22 = vpop.f32.mrf.mxu1  ;;  %v608_v1 = vadd.f32 %v607_v54, %v506_v42 }
 0x126   :  { %v428_v53 = vadd.f32 %v427_v22, %v359_v34  ;;  %v9873_v22 = vld [vmem:[%s14387_s2 + $0x74] sm:$0xf0] }
 0x128   :  { %v465_v33 = vadd.f32 %v464_v27, %v428_v53  ;;  %v9069_v53 = vld [vmem:[%s14387_s2 + $0x58] sm:$0xf0] }
 0x12a   :  { %v467_v36 = vmul.f32 0.125, %v465_v33  ;;  %v9052_v33 = vor.u32 %v9865_v13, %v9051_v11 }
 0x12c   :  { %v810_v18 = vmul.f32 %v467_v36, %v467_v36 }
 0x13a   :  { %v806_v5 = vpop.f32.mrf.mxu0 }
 0x13c   :  { %v700_v40 = vpop.f32.mrf.mxu2 }
 0x13d   :  { %v661_v3 = vpop.f32.mrf.mxu1 }
 0x13e   :  { %v662_v35 = vadd.f32 %v661_v3, %v608_v1  ;;  %v769_v63 = vpop.f32.mrf.mxu3  ;;  %v9061_v1 = vld [vmem:[%s14387_s2 + $0x48] sm:$0xf0] }
 0x140   :  { %v701_v55 = vadd.f32 %v700_v40, %v662_v35  ;;  %v9053_v35 = vld [vmem:[%s14387_s2 + $0x38] sm:$0xf0] }
 0x142   :  { %v770_v2 = vadd.f32 %v769_v63, %v701_v55  ;;  %v9862_v55 = vld [vmem:[%s14387_s2 + $0x24] sm:$0xf]  ;;  %v9044_v63 = vor.u32 %v9863_v52, %v9043_v43  ;;  %v1371_v43 = vld [vmem:[%s14393_s8 + $0x38] sm:$0xff]  ;;  %v1370_v52 = vld [vmem:[%s14393_s8 + $0x30] sm:$0xff] }
 0x144   :  { %v807_v12 = vadd.f32 %v806_v5, %v770_v2  ;;  %v9035_v2 = vld [vmem:[%s14387_s2 + $0x10] sm:$0xf]  ;;  %v9861_v5 = vld [vmem:[%s14387_s2 + $0x14] sm:$0xf0] }
 0x146   :  { %v809_v37 = vmul.f32 0.125, %v807_v12  ;;  %v9860_v12 = vld [vmem:[%s14387_s2 + $0x14] sm:$0xf] }
 0x148   :  { %v811_v45 = vsub.f32 %v809_v37, %v810_v18  ;;  %v9036_v18 = vor.u32 %v9861_v5, %v9035_v2  ;;  %v9037_v37 = vld [vmem:[%s14387_s2 + $0x18] sm:$0xf0]  ;;  %v1368_v2 = vld [vmem:[%s14393_s8 + $0x20] sm:$0xff] }
 0x14a   :  { %v812_v57 = vmax.f32 %v811_v45, 0.0  ;;  %v9040_v45 = vor.u32 %v9860_v12, %v9037_v37 }
 0x14c   :  { %v813_v6 = vadd.f32 1e-05, %v812_v57  ;;  %v9027_v57 = vld [vmem:[%s14387_s2] sm:$0xf] }
 0x14e   :  { %10071 = vrsqrt.f32 %v813_v6  ;;  %vm820_vm2 = vweird.f32 %v813_v6 }
 0x154   :  { %v10072_v39 = vpop.eup %10071 }
 0x155   :  { %v815_v50 = vmul.f32 %v10072_v39, %v813_v6  ;;  %vm821_vm1 = vweird.f32 %v10072_v39  ;;  %v9859_v6 = vld [vmem:[%s14387_s2 + $0x4] sm:$0xf0] }
 0x156   :  { %vm822_vm4 = vmor %vm820_vm2, %vm821_vm1 }
 0x157   :  { %v816_v62 = vmul.f32 %v10072_v39, %v815_v50 }
 0x159   :  { %v817_v7 = vmul.f32 0.5, %v816_v62  ;;  %v9028_v62 = vor.u32 %v9859_v6, %v9027_v57 }
 0x15b   :  { %v818_v41 = vsub.f32 1.5, %v817_v7  ;;  %v9029_v7 = vld [vmem:[%s14387_s2 + $0x8] sm:$0xf0] }
 0x15d   :  { %v819_v44 = vmul.f32 %v10072_v39, %v818_v41 }
 0x15f   :  { %v823_v51 = vsel %vm822_vm4, %v10072_v39, %v819_v44  ;;  %v9858_v39 = vld [vmem:[%s14387_s2 + $0x4] sm:$0xf] }
 0x160   :  { %v830_v58 = vsel %vm828_vm3, %v823_v51, 0  ;;  %v1017_v0 = vmul.f32 %v823_v51, %v467_v36  ;;  %v9048_v36 = vor.u32 %v9862_v55, %v9045_v30  ;;  %v9032_v41 = vor.u32 %v9858_v39, %v9029_v7 }
 0x161   :  { %v852_v23 = vand.u32 4294901760, %v830_v58  ;;  %v10984_v39 = vand.u32 4294901760, %v1371_v43 }
 0x162   :  { %v1019_v4 = vsel %vm828_vm3, %v1017_v0, 0 }
 0x163   :  { %898 = vmatmul.f32.vlgmr.msrb.gmra.mxu2 %v852_v23  ;;  %v1041_v8 = vand.u32 4294901760, %v1019_v4  ;;  %v853_v9 = vsub.f32 %v830_v58, %v852_v23  ;;  %14830 = vst [vmem:[#allocation34_spill] sm:$0xff] %v10984_v39 }
 0x164   :  { %1134 = vmatpush.msrb.mxu2 %v10667_v19 }
 0x165   :  { %v1042_v10 = vsub.f32 %v1019_v4, %v1041_v8  ;;  %928 = vmatmul.f32.vlgmr.msrb.gmra.mxu3 %v853_v9  ;;  %v854_v14 = vand.u32 4294901760, %v853_v9  ;;  %v1379_v4 = vld [vmem:[%s14393_s8 + $0x78] sm:$0xff] }
 0x166   :  { %1136 = vmatpush.msrb.mxu2 %v10675_v25  ;;  %1163 = vmatpush.msrb.mxu3 %v10683_v28  ;;  %v9075_v28 = vld [vmem:[%s14387_s2 + $0x60] sm:$0xf] }
 0x167   :  { %955 = vmatmul.f32.vlgmr.msra.gmra.mxu0 %v854_v14  ;;  %v855_v15 = vsub.f32 %v853_v9, %v854_v14  ;;  %v1043_v16 = vand.u32 4294901760, %v1042_v10  ;;  %v1377_v9 = vld [vmem:[%s14393_s8 + $0x68] sm:$0xff]  ;;  %v10861_v14 = vand.u32 4294901760, %v1379_v4 }
 0x168   :  { %1138 = vmatpush.msrb.mxu2 %v10689_v31  ;;  %1167 = vmatpush.msrb.mxu3 %v10699_v47  ;;  %v9869_v47 = vld [vmem:[%s14387_s2 + $0x54] sm:$0xf0] }
 0x169   :  { %v856_v17 = vand.u32 4294901760, %v855_v15  ;;  %v1044_v20 = vsub.f32 %v1042_v10, %v1043_v16  ;;  %1194 = vmatpush.msra.mxu0 %v10667_v19  ;;  %v9083_v19 = vld [vmem:[%s14387_s2 + $0x70] sm:$0xf]  ;;  %14805 = vst [vmem:[#allocation8_spill] sm:$0xff] %v10861_v14 }
 0x16a   :  { %1140 = vmatpush.msrb.mxu2 %v10705_v49  ;;  %1171 = vmatpush.msrb.mxu3 %v10712_v60  ;;  %v9866_v60 = vld [vmem:[%s14387_s2 + $0x44] sm:$0xf] }
 0x16b   :  { %857 = vmatmul.f32.vlgmr.msrb.gmra.mxu1 %v856_v17  ;;  %1013 = vmatmul.f32.vlgmr.msra.gmra.mxu2 %v852_v23  ;;  %v1045_v21 = vand.u32 4294901760, %v1044_v20  ;;  %v9064_v3 = vor.u32 %v9866_v60, %v9061_v1  ;;  %v1376_v17 = vld [vmem:[%s14393_s8 + $0x60] sm:$0xff]  ;;  %v1375_v20 = vld [vmem:[%s14393_s8 + $0x58] sm:$0xff] }
 0x16c   :  { %1196 = vmatpush.msra.mxu0 %v10675_v25  ;;  %1105 = vmatpush.msrb.mxu1 %v10673_v24  ;;  %v9872_v24 = vld [vmem:[%s14387_s2 + $0x74] sm:$0xf]  ;;  %v9084_v25 = vor.u32 %v9873_v22, %v9083_v19  ;;  %v10876_v19 = vand.u32 4294901760, %v1376_v17  ;;  %v10878_v22 = vand.u32 4294901760, %v1375_v20 }
 0x16d   :  { %1046 = vmatmul.f32.vlgmr.msra.gmra.mxu3 %v1045_v21  ;;  %v9088_v27 = vor.u32 %v9872_v24, %v9085_v26  ;;  %v1374_v21 = vld [vmem:[%s14393_s8 + $0x50] sm:$0xff]  ;;  %v10886_v26 = vsub.f32 %v1379_v4, %v10861_v14 }
 0x16e   :  { %1175 = vmatpush.msrb.mxu3 %v10723_v32  ;;  %1198 = vmatpush.msra.mxu0 %v10689_v31  ;;  %v9870_v31 = vld [vmem:[%s14387_s2 + $0x64] sm:$0xf]  ;;  %v9864_v32 = vld [vmem:[%s14387_s2 + $0x34] sm:$0xf]  ;;  %14808 = vst [vmem:[#allocation12_spill] sm:$0xff] %v10876_v19  ;;  %v10880_v24 = vand.u32 4294901760, %v1374_v21 }
 0x16f   :  { %1087 = vmatmul.f32.vlgmr.msrb.gmra.mxu0 %v1041_v8  ;;  %1108 = vmatpush.msrb.mxu1 %v10686_v29  ;;  %v9871_v29 = vld [vmem:[%s14387_s2 + $0x64] sm:$0xf0]  ;;  %v9080_v42 = vor.u32 %v9870_v31, %v9077_v38  ;;  %v9056_v40 = vor.u32 %v9864_v32, %v9053_v35  ;;  %14809 = vst [vmem:[#allocation13_spill] sm:$0xff] %v10878_v22 }
 0x170   :  { %1200 = vmatpush.msra.mxu0 %v10705_v49  ;;  %1325 = vmatpush.bf16.msra.mxu2 %v9088_v27  ;;  %v9076_v34 = vor.u32 %v9871_v29, %v9075_v28  ;;  %v9068_v49 = vor.u32 %v9869_v47, %v9067_v46  ;;  %14810 = vst [vmem:[#allocation14_spill] sm:$0xff] %v10880_v24  ;;  %v1372_v46 = vld [vmem:[%s14393_s8 + $0x40] sm:$0xff] }
 0x171   :  { %1111 = vmatpush.msrb.mxu1 %v10702_v48  ;;  %v9868_v48 = vld [vmem:[%s14387_s2 + $0x54] sm:$0xf]  ;;  %14811 = vst [vmem:[#allocation15_spill] sm:$0xff] %v10886_v26  ;;  %1397 = vmatpush.msra.mxu3 %v10861_v14  ;;  %v10902_v38 = vsub.f32 %v1375_v20, %v10878_v22 }
 0x172   :  { %v9072_v54 = vor.u32 %v9868_v48, %v9069_v53  ;;  %v10913_v53 = vand.u32 4294901760, %v10886_v26 }
 0x173   :  { %988 = vmatmul.f32.vlgmr.msra.gmra.mxu1 %v852_v23  ;;  %1144 = vmatmul.f32.vlgmr.msrb.gmra.mxu2 %v1043_v16  ;;  %v10865_v16 = vand.u32 4294901760, %v1377_v9  ;;  %14816 = vst [vmem:[#allocation20_spill] sm:$0xff] %v10902_v38 }
 0x174   :  { %1114 = vmatpush.msrb.mxu1 %v10715_v61  ;;  %1326 = vmatpush.bf16.msra.mxu2 %v9080_v42  ;;  %v9060_v61 = vor.u32 %v9867_v59, %v9059_v56  ;;  %v10905_v42 = vsub.f32 %v1374_v21, %v10880_v24  ;;  %14818 = vst [vmem:[#allocation22_spill] sm:$0xff] %v10913_v53 }
 0x175   :  { %1177 = vmatmul.f32.vlgmr.msrb.gmra.mxu3 %v1041_v8  ;;  %14807 = vst [vmem:[#allocation11_spill] sm:$0xff] %v10865_v16  ;;  %v10892_v28 = vsub.f32 %v1377_v9, %v10865_v16  ;;  %v1440_v11 = vsub.f32 %v10886_v26, %v10913_v53 }
 0x176   :  { %1312 = vmatpush.bf16.msra.mxu1 %v9084_v25  ;;  %v1373_v25 = vld [vmem:[%s14393_s8 + $0x48] sm:$0xff]  ;;  %14817 = vst [vmem:[#allocation21_spill] sm:$0xff] %v10905_v42 }
 0x177   :  { %1202 = vmatmul.f32.vlgmr.msra.gmra.mxu0 %v1041_v8  ;;  %v1378_v8 = vld [vmem:[%s14393_s8 + $0x70] sm:$0xff]  ;;  %14813 = vst [vmem:[#allocation17_spill] sm:$0xff] %v10892_v28  ;;  %v10896_v29 = vand.u32 4294901760, %v1373_v25  ;;  %v10920_v56 = vand.u32 4294901760, %v10892_v28 }
 0x178   :  { %1327 = vmatpush.bf16.msra.mxu2 %v9072_v54  ;;  %v10863_v15 = vand.u32 4294901760, %v1378_v8 }
 0x179   :  { %14814 = vst [vmem:[#allocation18_spill] sm:$0xff] %v10896_v29  ;;  %v10931_v1 = vsub.f32 %v1373_v25, %v10896_v29  ;;  %v1452_v32 = vsub.f32 %v10892_v28, %v10920_v56 }
 0x17a   :  { %1313 = vmatpush.bf16.msra.mxu1 %v9076_v34  ;;  %14806 = vst [vmem:[#allocation9_spill] sm:$0xff] %v10863_v15  ;;  %v10889_v27 = vsub.f32 %v1378_v8, %v10863_v15  ;;  %v10899_v34 = vsub.f32 %v1376_v17, %v10876_v19  ;;  %1399 = vmatpush.msra.mxu3 %v10863_v15  ;;  %v1366_v8 = vld [vmem:[%s14393_s8 + $0x10] sm:$0xff] }
 0x17b   :  { %1117 = vmatmul.f32.vlgmr.msrb.gmra.mxu1 %v1042_v10  ;;  %v65_v10 = vlaneseq  ;;  %14820 = vst [vmem:[#allocation24_spill] sm:$0xff] %v10920_v56  ;;  %v10971_v37 = vand.u32 4294901760, %v10931_v1  ;;  %v10978_v57 = vand.u32 4294901760, %v1452_v32 }
 0x17c   :  { %1328 = vmatpush.bf16.msra.mxu2 %v9064_v3  ;;  %14812 = vst [vmem:[#allocation16_spill] sm:$0xff] %v10889_v27  ;;  %v10916_v54 = vand.u32 4294901760, %v10889_v27  ;;  %v10924_v60 = vand.u32 4294901760, %v10899_v34  ;;  %1401 = vmatpush.msra.mxu3 %v10865_v16 }
 0x17d   :  { %14815 = vst [vmem:[#allocation19_spill] sm:$0xff] %v10899_v34 }
 0x17e   :  { %1314 = vmatpush.bf16.msra.mxu1 %v9068_v49  ;;  %v10910_v49 = vshrl.u32 %v65_v10, 7  ;;  %14819 = vst [vmem:[#allocation23_spill] sm:$0xff] %v10916_v54  ;;  %v1446_v13 = vsub.f32 %v10889_v27, %v10916_v54  ;;  %v1458_v35 = vsub.f32 %v10899_v34, %v10924_v60  ;;  %1403 = vmatpush.msra.mxu3 %v10876_v19 }
 0x17f   :  { %14821 = vst [vmem:[#allocation25_spill] sm:$0xff] %v10924_v60 }
 0x180   :  { %1329 = vmatpush.bf16.msra.mxu2 %v9056_v40  ;;  %14823 = vst [vmem:[#allocation27_spill] sm:$0xff] %v10931_v1  ;;  %v10946_v40 = vand.u32 4294901760, %v10905_v42  ;;  %vm67_vm5 = vcmp.lt.s32.totalorder %v10910_v49, 2  ;;  %v10958_v30 = vand.u32 4294901760, %v1446_v13  ;;  %1405 = vmatpush.msra.mxu3 %v10878_v22 }
 0x181   :  { %14827 = vst [vmem:[#allocation31_spill] sm:$0xff] %v10971_v37 }
 0x182   :  { %1315 = vmatpush.bf16.msra.mxu1 %v9060_v61  ;;  %v10927_v61 = vand.u32 4294901760, %v10902_v38  ;;  %14825 = vst [vmem:[#allocation29_spill] sm:$0xff] %v10946_v40  ;;  %v1470_v7 = vsub.f32 %v10905_v42, %v10946_v40  ;;  %1407 = vmatpush.msra.mxu3 %v10880_v24 }
 0x183   :  { %14826 = vst [vmem:[#allocation30_spill] sm:$0xff] %v10958_v30 }
 0x184   :  { %1330 = vmatpush.bf16.msra.mxu2 %v9048_v36  ;;  %14822 = vst [vmem:[#allocation26_spill] sm:$0xff] %v10927_v61  ;;  %v1369_v36 = vld [vmem:[%s14393_s8 + $0x28] sm:$0xff]  ;;  %1409 = vmatpush.msra.mxu3 %v10896_v29  ;;  %v11044_v32 = vand.u32 4294901760, %v1470_v7  ;;  %v1206_v7 = vld [vmem:[%s14392_s7] sm:$0x1] }
 0x185   :  { %14828 = vst [vmem:[#allocation32_spill] sm:$0xff] %v10978_v57 }
 0x186   :  { %1316 = vmatpush.bf16.msra.mxu1 %v9052_v33  ;;  %v10941_v33 = vand.u32 4294901760, %v1372_v46  ;;  %14845 = vst [vmem:[#allocation49_spill] sm:$0xff] %v11044_v32 }
 0x188   :  { %1331 = vmatpush.bf16.msra.mxu2 %v9040_v45  ;;  %14824 = vst [vmem:[#allocation28_spill] sm:$0xff] %v10941_v33  ;;  %v1367_v45 = vld [vmem:[%s14393_s8 + $0x18] sm:$0xff]  ;;  %v10982_v6 = vsub.f32 %v1372_v46, %v10941_v33  ;;  %1411 = vmatpush.msra.mxu3 %v10941_v33 }
 0x189   :  { %v11009_v4 = vand.u32 4294901760, %v1367_v45 }
 0x18a   :  { %1317 = vmatpush.bf16.msra.mxu1 %v9044_v63  ;;  %v10956_v63 = vand.u32 4294901760, %v1440_v11  ;;  %14829 = vst [vmem:[#allocation33_spill] sm:$0xff] %v10982_v6  ;;  %v1365_v11 = vld [vmem:[%s14393_s8 + $0x8] sm:$0xff]  ;;  %1413 = vmatpush.msra.mxu3 %v10984_v39 }
 0x18b   :  { %14838 = vst [vmem:[#allocation42_spill] sm:$0xff] %v11009_v4 }
 0x18c   :  { %1332 = vmatpush.bf16.msra.mxu2 %v9032_v41  ;;  %1442 = vmatpush.msrb.mxu0 %v10956_v63  ;;  %v10994_v41 = vand.u32 4294901760, %v1369_v36 }
 0x18e   :  { %1318 = vmatpush.bf16.msra.mxu1 %v9036_v18  ;;  %v1464_v18 = vsub.f32 %v10902_v38, %v10927_v61  ;;  %14833 = vst [vmem:[#allocation37_spill] sm:$0xff] %v10994_v41  ;;  %1448 = vmatpush.msrb.mxu0 %v10958_v30  ;;  %v11017_v10 = vsub.f32 %v1369_v36, %v10994_v41 }
 0x190   :  { %1593 = vmatpush.msrb.mxu2 %v10861_v14  ;;  %14839 = vst [vmem:[#allocation43_spill] sm:$0xff] %v11017_v10  ;;  %1454 = vmatpush.msrb.mxu0 %v10978_v57  ;;  %v11023_v25 = vand.u32 4294901760, %v1464_v18  ;;  %v14850_v18 = vld [vmem:[#allocation10_spill] sm:$0xff] }
 0x192   :  { %1319 = vmatpush.bf16.msra.mxu1 %v9028_v62  ;;  %1595 = vmatpush.msrb.mxu2 %v10863_v15  ;;  %v10988_v62 = vand.u32 4294901760, %v1458_v35  ;;  %14841 = vst [vmem:[#allocation45_spill] sm:$0xff] %v11023_v25  ;;  %v11048_v35 = vand.u32 4294901760, %v11017_v10 }
 0x194   :  { %1597 = vmatpush.msrb.mxu2 %v10865_v16  ;;  %14832 = vst [vmem:[#allocation36_spill] sm:$0xff] %v10988_v62  ;;  %1460 = vmatpush.msrb.mxu0 %v10988_v62 }
 0x195   :  { %14846 = vst [vmem:[#allocation50_spill] sm:$0xff] %v11048_v35 }
 0x196   :  { %1540 = vmatpush.msrb.mxu1 %v10886_v26  ;;  %1599 = vmatpush.msrb.mxu2 %v10876_v19 }
 0x197   :  { %1466 = vmatpush.msrb.mxu0 %v11023_v25 }
 0x198   :  { %1543 = vmatpush.msrb.mxu1 %v10889_v27  ;;  %1601 = vmatpush.msrb.mxu2 %v10878_v22 }
 0x199   :  { %1472 = vmatpush.msrb.mxu0 %v11044_v32  ;;  %v1391_v32 = vld [vmem:[%s14393_s8 + $0xd8] sm:$0xff] }
 0x19a   :  { %1546 = vmatpush.msrb.mxu1 %v10892_v28  ;;  %1603 = vmatpush.msrb.mxu2 %v10880_v24 }
 0x19c   :  { %1549 = vmatpush.msrb.mxu1 %v10899_v34  ;;  %1605 = vmatpush.msrb.mxu2 %v10896_v29 }
 0x19e   :  { %1552 = vmatpush.msrb.mxu1 %v10902_v38  ;;  %1607 = vmatpush.msrb.mxu2 %v10941_v33 }
 0x1a0   :  { %1555 = vmatpush.msrb.mxu1 %v10905_v42  ;;  %1609 = vmatpush.msrb.mxu2 %v10984_v39 }
 0x1a2   :  { %1558 = vmatpush.msrb.mxu1 %v10931_v1 }
 0x1a4   :  { %1561 = vmatpush.msrb.mxu1 %v10982_v6 }
 0x1e4   :  { %v956_v0 = vpop.f32.mrf.mxu0 }
 0x1e6   :  { %v899_v50 = vpop.f32.mrf.mxu2 }
 0x1e8   :  { %v858_v44 = vpop.f32.mrf.mxu1  ;;  %v929_v51 = vpop.f32.mrf.mxu3 }
 0x1e9   :  { %v900_v58 = vadd.f32 %v899_v50, %v858_v44  ;;  %v10986_v50 = vand.u32 4294901760, %v1370_v52  ;;  %v10996_v44 = vand.u32 4294901760, %v1368_v2 }
 0x1eb   :  { %v930_v23 = vadd.f32 %v929_v51, %v900_v58  ;;  %14831 = vst [vmem:[#allocation35_spill] sm:$0xff] %v10986_v50  ;;  %v11001_v58 = vand.u32 4294901760, %v10982_v6  ;;  %v11020_v17 = vsub.f32 %v1368_v2, %v10996_v44  ;;  %1611 = vmatpush.msrb.mxu2 %v10986_v50  ;;  %1415 = vmatpush.msra.mxu3 %v10986_v50 }
 0x1ec   :  { %v1088_v55 = vpop.f32.mrf.mxu0  ;;  %14834 = vst [vmem:[#allocation38_spill] sm:$0xff] %v10996_v44 }
 0x1ed   :  { %v957_v31 = vadd.f32 %v956_v0, %v930_v23  ;;  %14835 = vst [vmem:[#allocation39_spill] sm:$0xff] %v11001_v58  ;;  %v11004_v0 = vsub.f32 %v1371_v43, %v10984_v39  ;;  %v11007_v23 = vsub.f32 %v1370_v52, %v10986_v50  ;;  %v11051_v43 = vsub.f32 %v1367_v45, %v11009_v4 }
 0x1ee   :  { %v1014_v47 = vpop.f32.mrf.mxu2  ;;  %14840 = vst [vmem:[#allocation44_spill] sm:$0xff] %v11020_v17  ;;  %v11060_v2 = vand.u32 4294901760, %v11020_v17  ;;  %1613 = vmatpush.msrb.mxu2 %v10994_v41  ;;  %1417 = vmatpush.msra.mxu3 %v10994_v41 }
 0x1ef   :  { %14836 = vst [vmem:[#allocation40_spill] sm:$0xff] %v11004_v0  ;;  %v11029_v46 = vand.u32 4294901760, %v11004_v0  ;;  %1564 = vmatpush.msrb.mxu1 %v11004_v0 }
 0x1f0   :  { %v989_v48 = vpop.f32.mrf.mxu1  ;;  %v1047_v3 = vpop.f32.mrf.mxu3  ;;  %14837 = vst [vmem:[#allocation41_spill] sm:$0xff] %v11007_v23  ;;  %v1506_v42 = vsub.f32 %v11020_v17, %v11060_v2  ;;  %1615 = vmatpush.msrb.mxu2 %v10996_v44  ;;  %1419 = vmatpush.msra.mxu3 %v10996_v44 }
 0x1f1   :  { %v990_v59 = vadd.f32 %v989_v48, %v957_v31  ;;  %v1089_v12 = vadd.f32 %v1088_v55, %v1047_v3  ;;  %v1476_v31 = vsub.f32 %v10931_v1, %v10971_v37  ;;  %14842 = vst [vmem:[#allocation46_spill] sm:$0xff] %v11029_v46  ;;  %v1482_v48 = vsub.f32 %v10982_v6, %v11001_v58  ;;  %v1392_v6 = vld [vmem:[%s14393_s8 + $0xe0] sm:$0xff] }
 0x1f2   :  { %v11038_v3 = vand.u32 4294901760, %v1366_v8  ;;  %14847 = vst [vmem:[#allocation51_spill] sm:$0xff] %v11051_v43  ;;  %v10140_v55 = vmov 0.0   ;;  %1567 = vmatpush.msrb.mxu1 %v11007_v23  ;;  %v11130_v25 = vand.u32 4294901760, %v1392_v6  ;;  %1617 = vmatpush.msrb.mxu2 %v11009_v4 }
 0x1f3   :  { %v1015_v5 = vadd.f32 %v1014_v47, %v990_v59  ;;  %v11035_v59 = vand.u32 4294901760, %v11007_v23  ;;  %v11055_v36 = vsel %vm67_vm5, 1.0, %v10140_v55  ;;  %14849 = vst [vmem:[#allocation53_spill] sm:$0xff] %v11060_v2  ;;  %v11086_v55 = vand.u32 4294901760, %v1482_v48  ;;  %1421 = vmatpush.msra.mxu3 %v11009_v4 }
 0x1f4   :  { %14844 = vst [vmem:[#allocation48_spill] sm:$0xff] %v11038_v3  ;;  %v1203_v49 = vpop.f32.mrf.mxu0  ;;  %v1500_v48 = vsub.f32 %v11017_v10, %v11048_v35  ;;  %1570 = vmatpush.msrb.mxu1 %v11017_v10  ;;  %v11178_v10 = vand.u32 4294901760, %v1506_v42  ;;  %1619 = vmatpush.msrb.mxu2 %v11038_v3 }
 0x1f5   :  { %v1208_v20 = vperm.slane %v1015_v5, 0  ;;  %14843 = vst [vmem:[#allocation47_spill] sm:$0xff] %v11035_v59  ;;  %v1364_v5 = vld [vmem:[%s14393_s8] sm:$0xff]  ;;  %1423 = vmatpush.msra.mxu3 %v11038_v3 }
 0x1f6   :  { %v1145_v21 = vpop.f32.mrf.mxu2  ;;  %14848 = vst [vmem:[#allocation52_spill] sm:$0xff] %v11055_v36  ;;  %1573 = vmatpush.msrb.mxu1 %v11020_v17 }
 0x1f7   :  { %v1209_v45 = vmul.f32 %v1208_v20, %v14850_v18  ;;  %v1394_v20 = vld [vmem:[%s14393_s8 + $0xf0] sm:$0xff]  ;;  %14853 = vst [vmem:[#allocation55_spill] sm:$0xff] %v11086_v55  ;;  %v11093_v18 = vsub.f32 %v1366_v8, %v11038_v3 }
 0x1f8   :  { %v1118_v51 = vpop.f32.mrf.mxu1  ;;  %v1178_v13 = vpop.f32.mrf.mxu3  ;;  %v11113_v38 = vand.u32 4294901760, %v1394_v20  ;;  %14864 = vst [vmem:[#allocation66_spill] sm:$0xff] %v11178_v10  ;;  %1576 = vmatpush.msrb.mxu1 %v11051_v43 }
 0x1f9   :  { %v1119_v9 = vadd.f32 %v1118_v51, %v1089_v12  ;;  %v1395_v12 = vld [vmem:[%s14393_s8 + $0xf8] sm:$0xff]  ;;  %v11073_v51 = vand.u32 4294901760, %v1476_v31  ;;  %v1494_v31 = vsub.f32 %v11007_v23, %v11035_v59  ;;  %14854 = vst [vmem:[#allocation56_spill] sm:$0xff] %v11093_v18  ;;  %v11136_v27 = vand.u32 4294901760, %v11093_v18 }
 0x1fa   :  { %v11107_v1 = vand.u32 4294901760, %v1395_v12  ;;  %v11156_v23 = vand.u32 4294901760, %v1391_v32  ;;  %1579 = vmatpush.msrb.mxu1 %v11093_v18 }
 0x1fb   :  { %v1146_v47 = vadd.f32 %v1145_v21, %v1119_v9  ;;  %14851 = vst [vmem:[#allocation10_spill] sm:$0xff] %v11073_v51  ;;  %v1488_v9 = vsub.f32 %v11004_v0, %v11029_v46  ;;  %v11078_v21 = vand.u32 4294901760, %v1365_v11  ;;  %1478 = vmatpush.msrb.mxu0 %v11073_v51  ;;  %v11132_v62 = vand.u32 4294901760, %v1494_v31 }
 0x1fc   :  { %14860 = vst [vmem:[#allocation62_spill] sm:$0xff] %v11136_v27  ;;  %v11158_v51 = vand.u32 4294901760, %v1500_v48 }
 0x1fd   :  { %v1179_v52 = vadd.f32 %v1178_v13, %v1146_v47  ;;  %14852 = vst [vmem:[#allocation54_spill] sm:$0xff] %v11078_v21  ;;  %v1393_v47 = vld [vmem:[%s14393_s8 + $0xe8] sm:$0xff]  ;;  %v11121_v34 = vand.u32 4294901760, %v1488_v9  ;;  %v11140_v9 = vsub.f32 %v1394_v20, %v11113_v38  ;;  %1484 = vmatpush.msrb.mxu0 %v11086_v55  ;;  %1621 = vmatpush.msrb.mxu2 %v11078_v21 }
 0x1fe   :  { %v11115_v0 = vand.u32 4294901760, %v1393_v47  ;;  %14859 = vst [vmem:[#allocation61_spill] sm:$0xff] %v11132_v62  ;;  %1425 = vmatpush.msra.mxu3 %v11078_v21 }
 0x1ff   :  { %v1204_v13 = vadd.f32 %v1203_v49, %v1179_v52  ;;  %v11103_v52 = vand.u32 4294901760, %v11051_v43  ;;  %v11105_v49 = vand.u32 4294901760, %v1364_v5  ;;  %14857 = vst [vmem:[#allocation59_spill] sm:$0xff] %v11121_v34  ;;  %1490 = vmatpush.msrb.mxu0 %v11121_v34  ;;  %v1518_v34 = vsub.f32 %v11093_v18, %v11136_v27 }
 0x200   :  { %14862 = vst [vmem:[#allocation64_spill] sm:$0xff] %v11158_v51 }
 0x201   :  { %14855 = vst [vmem:[#allocation57_spill] sm:$0xff] %v11103_v52  ;;  %v1207_v8 = vsub.f32 %v1206_v7, %v1204_v13  ;;  %v11125_v7 = vsub.f32 %v1365_v11, %v11078_v21  ;;  %v11128_v13 = vsub.f32 %v1395_v12, %v11107_v1  ;;  %v1390_v11 = vld [vmem:[%s14393_s8 + $0xd0] sm:$0xff]  ;;  %v11148_v12 = vsub.f32 %v1364_v5, %v11105_v49 }
 0x202   :  { %14856 = vst [vmem:[#allocation58_spill] sm:$0xff] %v11105_v49  ;;  %v1512_v57 = vsub.f32 %v11051_v43, %v11103_v52  ;;  %1496 = vmatpush.msrb.mxu0 %v11132_v62  ;;  %1623 = vmatpush.msrb.mxu2 %v11105_v49 }
 0x203   :  { %14858 = vst [vmem:[#allocation60_spill] sm:$0xff] %v11125_v7  ;;  %v1211_v28 = vperm.slane %v1207_v8, 0  ;;  %v11151_v31 = vand.u32 4294901760, %v11128_v13  ;;  %v11154_v8 = vsub.f32 %v1393_v47, %v11115_v0  ;;  %v11167_v5 = vand.u32 4294901760, %v11125_v7  ;;  %1582 = vmatpush.msrb.mxu1 %v11125_v7  ;;  %1427 = vmatpush.msra.mxu3 %v11105_v49 }
 0x204   :  { %14861 = vst [vmem:[#allocation63_spill] sm:$0xff] %v11148_v12  ;;  %v11170_v47 = vand.u32 4294901760, %v11140_v9  ;;  %v11197_v55 = vand.u32 4294901760, %v1512_v57  ;;  %1502 = vmatpush.msrb.mxu0 %v11158_v51 }
 0x205   :  { %v1213_v20 = vadd.f32 %v1211_v28, %v1209_v45  ;;  %14863 = vst [vmem:[#allocation65_spill] sm:$0xff] %v11167_v5  ;;  %v11173_v28 = vsub.f32 %v1392_v6, %v11130_v25  ;;  %v11175_v45 = vand.u32 4294901760, %v1390_v11  ;;  %v11187_v6 = vand.u32 4294901760, %v11148_v12  ;;  %1585 = vmatpush.msrb.mxu1 %v11148_v12  ;;  %1634 = vmatpush.msrb.mxu3 %v10913_v53 }
 0x206   :  { %v1781_v17 = vsub.f32 %v11128_v13, %v11151_v31  ;;  %v11192_v42 = vand.u32 4294901760, %v11154_v8  ;;  %14866 = vst [vmem:[#allocation68_spill] sm:$0xff] %v11197_v55  ;;  %v1524_v43 = vsub.f32 %v11125_v7, %v11167_v5  ;;  %v1787_v62 = vsub.f32 %v11140_v9, %v11170_v47  ;;  %1508 = vmatpush.msrb.mxu0 %v11178_v10 }
 0x207   :  { %v1214_v48 = vmul.f32 %v11055_v36, %v1213_v20  ;;  %14865 = vst [vmem:[#allocation67_spill] sm:$0xff] %v11187_v6  ;;  %v11195_v20 = vsub.f32 %v1391_v32, %v11156_v23  ;;  %v11208_v32 = vand.u32 4294901760, %v11173_v28  ;;  %v11211_v57 = vsub.f32 %v1390_v11, %v11175_v45  ;;  %1638 = vmatpush.msrb.mxu3 %v10916_v54 }
 0x208   :  { %v1530_v51 = vsub.f32 %v11148_v12, %v11187_v6  ;;  %v11219_v18 = vand.u32 4294901760, %v1781_v17  ;;  %v1793_v26 = vsub.f32 %v11154_v8, %v11192_v42  ;;  %1514 = vmatpush.msrb.mxu0 %v11197_v55 }
 0x209   :  { %v1215_v36 = vpack.c.bf16 %v1214_v48, %v1214_v48  ;;  %v11213_v48 = vand.u32 4294901760, %v1518_v34  ;;  %v11224_v30 = vand.u32 4294901760, %v11195_v20  ;;  %v11229_v34 = vand.u32 4294901760, %v1524_v43  ;;  %1642 = vmatpush.msrb.mxu3 %v10920_v56 }
 0x20a   :  { %14868 = vst [vmem:[#allocation70_spill] sm:$0xff] %v11219_v18  ;;  %v1799_v17 = vsub.f32 %v11173_v28, %v11208_v32  ;;  %v11237_v11 = vand.u32 4294901760, %v11211_v57  ;;  %v11242_v7 = vand.u32 4294901760, %v1530_v51  ;;  %v11245_v43 = vand.u32 4294901760, %v1793_v26 }
 0x20b   :  { %1320 = vmatmul.bf16.vlgmr.msra.gmra.mxu1 %v1215_v36  ;;  %1333 = vmatmul.bf16.vlgmr.msra.gmra.mxu2 %v1215_v36  ;;  %14867 = vst [vmem:[#allocation69_spill] sm:$0xff] %v11213_v48  ;;  %v11232_v36 = vand.u32 4294901760, %v1787_v62  ;;  %v1805_v62 = vsub.f32 %v11195_v20, %v11224_v30 }
 0x20c   :  { %14869 = vst [vmem:[#allocation71_spill] sm:$0xff] %v11229_v34  ;;  %1738 = vmatpush.msra.mxu1 %v11107_v1  ;;  %1520 = vmatpush.msrb.mxu0 %v11213_v48  ;;  %v11253_v12 = vand.u32 4294901760, %v1799_v17  ;;  %v1811_v51 = vsub.f32 %v11211_v57, %v11237_v11  ;;  %v1389_v17 = vld [vmem:[%s14393_s8 + $0xc8] sm:$0xff] }
 0x20d   :  { %14870 = vst [vmem:[#allocation72_spill] sm:$0xff] %v11232_v36  ;;  %1783 = vmatpush.msra.mxu2 %v11219_v18  ;;  %v11261_v26 = vand.u32 4294901760, %v1805_v62  ;;  %v11278_v62 = vand.u32 4294901760, %v1389_v17  ;;  %1646 = vmatpush.msrb.mxu3 %v10924_v60 }
 0x20e   :  { %14871 = vst [vmem:[#allocation73_spill] sm:$0xff] %v11242_v7  ;;  %1740 = vmatpush.msra.mxu1 %v11113_v38  ;;  %1526 = vmatpush.msrb.mxu0 %v11229_v34 }
 0x20f   :  { %14872 = vst [vmem:[#allocation74_spill] sm:$0xff] %v11245_v43  ;;  %1789 = vmatpush.msra.mxu2 %v11232_v36  ;;  %v11270_v36 = vand.u32 4294901760, %v1811_v51  ;;  %1650 = vmatpush.msrb.mxu3 %v10927_v61  ;;  %v1388_v51 = vld [vmem:[%s14393_s8 + $0xc0] sm:$0xff] }
 0x210   :  { %14873 = vst [vmem:[#allocation75_spill] sm:$0xff] %v11253_v12  ;;  %1742 = vmatpush.msra.mxu1 %v11115_v0  ;;  %1532 = vmatpush.msrb.mxu0 %v11242_v7  ;;  %v1381_v7 = vld [vmem:[%s14393_s8 + $0x88] sm:$0xff] }
 0x211   :  { %1795 = vmatpush.msra.mxu2 %v11245_v43  ;;  %14874 = vst [vmem:[#allocation76_spill] sm:$0xff] %v11261_v26  ;;  %1654 = vmatpush.msrb.mxu3 %v10946_v40  ;;  %v1383_v43 = vld [vmem:[%s14393_s8 + $0x98] sm:$0xff] }
 0x212   :  { %1701 = vmatpush.msra.mxu0 %v10861_v14  ;;  %1744 = vmatpush.msra.mxu1 %v11130_v25  ;;  %14875 = vst [vmem:[#allocation77_spill] sm:$0xff] %v11270_v36  ;;  %v11385_v53 = vand.u32 4294901760, %v1383_v43 }
 0x213   :  { %1801 = vmatpush.msra.mxu2 %v11253_v12  ;;  %1658 = vmatpush.msrb.mxu3 %v10971_v37 }
 0x214   :  { %1703 = vmatpush.msra.mxu0 %v10863_v15  ;;  %1746 = vmatpush.msra.mxu1 %v11156_v23 }
 0x215   :  { %1807 = vmatpush.msra.mxu2 %v11261_v26  ;;  %1662 = vmatpush.msrb.mxu3 %v11001_v58 }
 0x216   :  { %1705 = vmatpush.msra.mxu0 %v10865_v16  ;;  %1748 = vmatpush.msra.mxu1 %v11175_v45 }
 0x217   :  { %1813 = vmatpush.msra.mxu2 %v11270_v36  ;;  %1666 = vmatpush.msrb.mxu3 %v11029_v46 }
 0x218   :  { %1707 = vmatpush.msra.mxu0 %v10876_v19  ;;  %1750 = vmatpush.msra.mxu1 %v11278_v62 }
 0x219   :  { %1670 = vmatpush.msrb.mxu3 %v11035_v59  ;;  %v1386_v59 = vld [vmem:[%s14393_s8 + $0xb0] sm:$0xff] }
 0x21a   :  { %1709 = vmatpush.msra.mxu0 %v10878_v22  ;;  %v11337_v58 = vand.u32 4294901760, %v1386_v59 }
 0x21b   :  { %1674 = vmatpush.msrb.mxu3 %v11048_v35 }
 0x21c   :  { %1711 = vmatpush.msra.mxu0 %v10880_v24  ;;  %v11356_v26 = vsub.f32 %v1386_v59, %v11337_v58 }
 0x21d   :  { %1678 = vmatpush.msrb.mxu3 %v11060_v2  ;;  %v11311_v2 = vand.u32 4294901760, %v1388_v51 }
 0x21e   :  { %1713 = vmatpush.msra.mxu0 %v10896_v29  ;;  %v11373_v59 = vand.u32 4294901760, %v11356_v26 }
 0x21f   :  { %1682 = vmatpush.msrb.mxu3 %v11103_v52  ;;  %v11314_v52 = vsub.f32 %v1389_v17, %v11278_v62  ;;  %1752 = vmatpush.msra.mxu1 %v11311_v2  ;;  %v11326_v35 = vsub.f32 %v1388_v51, %v11311_v2  ;;  %v1385_v51 = vld [vmem:[%s14393_s8 + $0xa8] sm:$0xff] }
 0x220   :  { %1715 = vmatpush.msra.mxu0 %v10941_v33  ;;  %v11353_v60 = vand.u32 4294901760, %v1385_v51  ;;  %v1835_v18 = vsub.f32 %v11356_v26, %v11373_v59 }
 0x221   :  { %1686 = vmatpush.msrb.mxu3 %v11136_v27  ;;  %v1387_v27 = vld [vmem:[%s14393_s8 + $0xb8] sm:$0xff]  ;;  %v11335_v46 = vand.u32 4294901760, %v11326_v35 }
 0x222   :  { %1717 = vmatpush.msra.mxu0 %v10984_v39  ;;  %v11370_v54 = vsub.f32 %v1385_v51, %v11353_v60 }
 0x223   :  { %1690 = vmatpush.msrb.mxu3 %v11167_v5  ;;  %v11321_v5 = vand.u32 4294901760, %v11314_v52  ;;  %v1823_v61 = vsub.f32 %v11326_v35, %v11335_v46 }
 0x224   :  { %1719 = vmatpush.msra.mxu0 %v10986_v50  ;;  %14878 = vst [vmem:[#allocation80_spill] sm:$0xff] %v11370_v54 }
 0x225   :  { %1694 = vmatpush.msrb.mxu3 %v11187_v6  ;;  %v11323_v6 = vand.u32 4294901760, %v1387_v27  ;;  %v1817_v17 = vsub.f32 %v11314_v52, %v11321_v5 }
 0x226   :  { %1721 = vmatpush.msra.mxu0 %v10994_v41 }
 0x227   :  { %1754 = vmatpush.msra.mxu1 %v11323_v6  ;;  %v11340_v37 = vsub.f32 %v1387_v27, %v11323_v6  ;;  %v11345_v40 = vand.u32 4294901760, %v1817_v17  ;;  %v1384_v27 = vld [vmem:[%s14393_s8 + $0xa0] sm:$0xff]  ;;  %v11362_v17 = vand.u32 4294901760, %v1823_v61 }
 0x228   :  { %1723 = vmatpush.msra.mxu0 %v10996_v44  ;;  %v11367_v12 = vand.u32 4294901760, %v1384_v27  ;;  %v11420_v44 = vand.u32 4294901760, %v1381_v7 }
 0x229   :  { %14876 = vst [vmem:[#allocation78_spill] sm:$0xff] %v11345_v40  ;;  %1756 = vmatpush.msra.mxu1 %v11337_v58  ;;  %v11351_v36 = vand.u32 4294901760, %v11340_v37  ;;  %1819 = vmatpush.msra.mxu2 %v11345_v40  ;;  %v11383_v40 = vand.u32 4294901760, %v11370_v54 }
 0x22a   :  { %1725 = vmatpush.msra.mxu0 %v11009_v4  ;;  %14877 = vst [vmem:[#allocation79_spill] sm:$0xff] %v11362_v17  ;;  %v11388_v51 = vsub.f32 %v1384_v27, %v11367_v12  ;;  %v11405_v27 = vsub.f32 %v1383_v43, %v11385_v53  ;;  %v1380_v43 = vld [vmem:[%s14393_s8 + $0x80] sm:$0xff]  ;;  %v11437_v55 = vsub.f32 %v1381_v7, %v11420_v44 }
 0x22b   :  { %v1829_v56 = vsub.f32 %v11340_v37, %v11351_v36  ;;  %1758 = vmatpush.msra.mxu1 %v11353_v60  ;;  %1825 = vmatpush.msra.mxu2 %v11362_v17  ;;  %v11434_v41 = vand.u32 4294901760, %v1380_v43 }
 0x22c   :  { %1727 = vmatpush.msra.mxu0 %v11038_v3  ;;  %14880 = vst [vmem:[#allocation82_spill] sm:$0xff] %v11388_v51  ;;  %v11400_v17 = vand.u32 4294901760, %v11388_v51  ;;  %v11407_v3 = vand.u32 4294901760, %v1835_v18  ;;  %v11418_v34 = vand.u32 4294901760, %v11405_v27 }
 0x22d   :  { %v11379_v61 = vand.u32 4294901760, %v1829_v56  ;;  %1760 = vmatpush.msra.mxu1 %v11367_v12  ;;  %v1841_v56 = vsub.f32 %v11370_v54, %v11383_v40  ;;  %14881 = vst [vmem:[#allocation83_spill] sm:$0xff] %v11405_v27  ;;  %v11450_v50 = vsub.f32 %v1380_v43, %v11434_v41 }
 0x22e   :  { %1729 = vmatpush.msra.mxu0 %v11078_v21  ;;  %14882 = vst [vmem:[#allocation84_spill] sm:$0xff] %v11407_v3  ;;  %v1847_v4 = vsub.f32 %v11388_v51, %v11400_v17  ;;  %v1853_v48 = vsub.f32 %v11405_v27, %v11418_v34 }
 0x22f   :  { %14879 = vst [vmem:[#allocation81_spill] sm:$0xff] %v11379_v61  ;;  %1831 = vmatpush.msra.mxu2 %v11379_v61  ;;  %1762 = vmatpush.msra.mxu1 %v11385_v53  ;;  %v11412_v61 = vand.u32 4294901760, %v1841_v56  ;;  %v11458_v10 = vand.u32 4294901760, %v11450_v50 }
 0x230   :  { %1731 = vmatpush.msra.mxu0 %v11105_v49  ;;  %v1382_v49 = vld [vmem:[%s14393_s8 + $0x90] sm:$0xff]  ;;  %v11429_v56 = vand.u32 4294901760, %v1847_v4  ;;  %14886 = vst [vmem:[#allocation88_spill] sm:$0xff] %v11437_v55  ;;  %v11447_v4 = vand.u32 4294901760, %v11437_v55 }
 0x231   :  { %v11402_v21 = vand.u32 4294901760, %v1382_v49  ;;  %14883 = vst [vmem:[#allocation85_spill] sm:$0xff] %v11412_v61  ;;  %1837 = vmatpush.msra.mxu2 %v11407_v3  ;;  %v11443_v3 = vand.u32 4294901760, %v1853_v48  ;;  %v1871_v43 = vsub.f32 %v11450_v50, %v11458_v10 }
 0x232   :  { %14885 = vst [vmem:[#allocation87_spill] sm:$0xff] %v11429_v56 }
 0x233   :  { %1764 = vmatpush.msra.mxu1 %v11402_v21  ;;  %v11424_v18 = vsub.f32 %v1382_v49, %v11402_v21  ;;  %1843 = vmatpush.msra.mxu2 %v11412_v61  ;;  %14888 = vst [vmem:[#allocation90_spill] sm:$0xff] %v11443_v3  ;;  %v1865_v61 = vsub.f32 %v11437_v55, %v11447_v4 }
 0x234   :  { %14889 = vst [vmem:[#allocation91_spill] sm:$0xff] %v11447_v4 }
 0x235   :  { %14884 = vst [vmem:[#allocation86_spill] sm:$0xff] %v11424_v18  ;;  %1766 = vmatpush.msra.mxu1 %v11420_v44  ;;  %v11441_v49 = vand.u32 4294901760, %v11424_v18  ;;  %1849 = vmatpush.msra.mxu2 %v11429_v56  ;;  %v11463_v39 = vand.u32 4294901760, %v1865_v61  ;;  %v11468_v56 = vand.u32 4294901760, %v1871_v43 }
 0x236   :  { %14890 = vst [vmem:[#allocation92_spill] sm:$0xff] %v11450_v50 }
 0x237   :  { %14887 = vst [vmem:[#allocation89_spill] sm:$0xff] %v11441_v49  ;;  %1768 = vmatpush.msra.mxu1 %v11434_v41  ;;  %v1859_v7 = vsub.f32 %v11424_v18, %v11441_v49  ;;  %1855 = vmatpush.msra.mxu2 %v11443_v3 }
 0x238   :  { %14891 = vst [vmem:[#allocation93_spill] sm:$0xff] %v11458_v10 }
 0x239   :  { %v11461_v48 = vand.u32 4294901760, %v1859_v7  ;;  %14893 = vst [vmem:[#allocation95_spill] sm:$0xff] %v11463_v39 }
 0x23a   :  { %14894 = vst [vmem:[#allocation96_spill] sm:$0xff] %v11468_v56 }
 0x23b   :  { %14892 = vst [vmem:[#allocation94_spill] sm:$0xff] %v11461_v48  ;;  %1861 = vmatpush.msra.mxu2 %v11461_v48 }
 0x23d   :  { %1867 = vmatpush.msra.mxu2 %v11463_v39 }
 0x23f   :  { %1873 = vmatpush.msra.mxu2 %v11468_v56 }
 0x288   :  { %v11472_v33 = vpop.f32.mrf.mxu1 }
 0x289   :  { %14895 = vst [vmem:[#allocation97_spill] sm:$0xff] %v11472_v33  ;;  %v1338_v29 = vrot.slane %v11472_v33, 4 }
 0x28b   :  { %v1339_v7 = vadd.f32 %v1338_v29, %v11472_v33 }
 0x28d   :  { %v1340_v3 = vrot.slane %v1339_v7, 2 }
 0x28e   :  { %v11476_v61 = vpop.f32.mrf.mxu2 }
 0x28f   :  { %14896 = vst [vmem:[#allocation98_spill] sm:$0xff] %v11476_v61  ;;  %v1341_v24 = vadd.f32 %v1340_v3, %v1339_v7  ;;  %v1344_v22 = vrot.slane %v11476_v61, 4  ;;  %v14901_v7 = vld [vmem:[#allocation16_spill] sm:$0xff] }
 0x290   :  { %v1323_v19 = vpop.f32.mrf.mxu1 }
 0x291   :  { %v1345_v43 = vadd.f32 %v1344_v22, %v11476_v61  ;;  %v1342_v48 = vrot.slane %v1341_v24, 1 }
 0x293   :  { %v1346_v16 = vrot.slane %v1345_v43, 2  ;;  %v1343_v39 = vadd.f32 %v1342_v48, %v1341_v24  ;;  %v14900_v48 = vld [vmem:[#allocation32_spill] sm:$0xff] }
 0x295   :  { %v1347_v50 = vadd.f32 %v1346_v16, %v1345_v43  ;;  %v1428_v56 = vand.u32 4294901760, %v1343_v39  ;;  %v14902_v43 = vld [vmem:[#allocation8_spill] sm:$0xff] }
 0x296   :  { %v1336_v15 = vpop.f32.mrf.mxu2 }
 0x297   :  { %1534 = vmatmul.f32.vlgmr.msrb.gmra.mxu0 %v1428_v56  ;;  %v1429_v55 = vsub.f32 %v1343_v39, %v1428_v56  ;;  %v1348_v14 = vrot.slane %v1347_v50, 1 }
 0x298   :  { %1934 = vmatpush.msrb.mxu0 %v11107_v1 }
 0x299   :  { %1588 = vmatmul.f32.vlgmr.msrb.gmra.mxu1 %v1429_v55  ;;  %v1430_v29 = vand.u32 4294901760, %v1429_v55  ;;  %v1349_v18 = vadd.f32 %v1348_v14, %v1347_v50  ;;  %v1350_v50 = vmul.f32 %v11472_v33, %v11472_v33  ;;  %v14921_v33 = vld [vmem:[#allocation33_spill] sm:$0xff] }
 0x29a   :  { %1936 = vmatpush.msrb.mxu0 %v11113_v38  ;;  %1975 = vmatpush.msrb.mxu1 %v11151_v31 }
 0x29b   :  { %1627 = vmatmul.f32.vlgmr.msrb.gmra.mxu2 %v1430_v29  ;;  %v1431_v19 = vsub.f32 %v1429_v55, %v1430_v29  ;;  %v11483_v22 = vand.u32 4294901760, %v1349_v18  ;;  %v1352_v3 = vrot.slane %v1350_v50, 4  ;;  %v14897_v55 = vld [vmem:[#allocation30_spill] sm:$0xff]  ;;  %v14903_v29 = vld [vmem:[#allocation88_spill] sm:$0xff] }
 0x29c   :  { %1938 = vmatpush.msrb.mxu0 %v11115_v0  ;;  %1979 = vmatpush.msrb.mxu1 %v11170_v47 }
 0x29d   :  { %2042 = vmatpush.msrb.mxu2 %v11107_v1  ;;  %v1432_v15 = vand.u32 4294901760, %v1431_v19  ;;  %v11489_v16 = vsub.f32 %v1349_v18, %v11483_v22  ;;  %v14898_v18 = vld [vmem:[#allocation15_spill] sm:$0xff]  ;;  %v14904_v19 = vld [vmem:[#allocation36_spill] sm:$0xff] }
 0x29e   :  { %1940 = vmatpush.msrb.mxu0 %v11130_v25  ;;  %1983 = vmatpush.msrb.mxu1 %v11192_v42 }
 0x29f   :  { %2044 = vmatpush.msrb.mxu2 %v11113_v38  ;;  %1433 = vmatmul.f32.vlgmr.msra.gmra.mxu3 %v1432_v15  ;;  %v1771_v14 = vand.u32 4294901760, %v11489_v16  ;;  %v14905_v15 = vld [vmem:[#allocation17_spill] sm:$0xff] }
 0x2a0   :  { %1733 = vmatmul.f32.vlgmr.msra.gmra.mxu0 %v1428_v56  ;;  %1881 = vmatpush.msra.mxu3 %v11128_v13 }
 0x2a1   :  { %1942 = vmatpush.msrb.mxu0 %v11156_v23  ;;  %1987 = vmatpush.msrb.mxu1 %v11208_v32  ;;  %v1772_v24 = vsub.f32 %v11489_v16, %v1771_v14 }
 0x2a2   :  { %2046 = vmatpush.msrb.mxu2 %v11115_v0  ;;  %1884 = vmatpush.msra.mxu3 %v11140_v9 }
 0x2a3   :  { %1944 = vmatpush.msrb.mxu0 %v11175_v45  ;;  %1991 = vmatpush.msrb.mxu1 %v11224_v30  ;;  %v1773_v39 = vand.u32 4294901760, %v1772_v24  ;;  %v14907_v24 = vld [vmem:[#allocation92_spill] sm:$0xff] }
 0x2a4   :  { %2048 = vmatpush.msrb.mxu2 %v11130_v25  ;;  %1887 = vmatpush.msra.mxu3 %v11154_v8 }
 0x2a5   :  { %1875 = vmatmul.f32.vlgmr.msra.gmra.mxu2 %v11483_v22  ;;  %1946 = vmatpush.msrb.mxu0 %v11278_v62 }
 0x2a6   :  { %1995 = vmatpush.msrb.mxu1 %v11237_v11  ;;  %2050 = vmatpush.msrb.mxu2 %v11156_v23 }
 0x2a7   :  { %1774 = vmatmul.f32.vlgmr.msra.gmra.mxu1 %v1773_v39  ;;  %1890 = vmatpush.msra.mxu3 %v11173_v28  ;;  %v14908_v39 = vld [vmem:[#allocation45_spill] sm:$0xff] }
 0x2a8   :  { %1948 = vmatpush.msrb.mxu0 %v11311_v2  ;;  %1999 = vmatpush.msrb.mxu1 %v11321_v5 }
 0x2a9   :  { %2052 = vmatpush.msrb.mxu2 %v11175_v45  ;;  %1696 = vmatmul.f32.vlgmr.msrb.gmra.mxu3 %v1428_v56  ;;  %v14899_v56 = vld [vmem:[#allocation86_spill] sm:$0xff] }
 0x2aa   :  { %1893 = vmatpush.msra.mxu3 %v11195_v20  ;;  %1950 = vmatpush.msrb.mxu0 %v11323_v6 }
 0x2ab   :  { %2003 = vmatpush.msrb.mxu1 %v11335_v46  ;;  %2054 = vmatpush.msrb.mxu2 %v11278_v62 }
 0x2ac   :  { %1896 = vmatpush.msra.mxu3 %v11211_v57  ;;  %1952 = vmatpush.msrb.mxu0 %v11337_v58 }
 0x2ad   :  { %2007 = vmatpush.msrb.mxu1 %v11351_v36  ;;  %2056 = vmatpush.msrb.mxu2 %v11311_v2 }
 0x2ae   :  { %1899 = vmatpush.msra.mxu3 %v11314_v52  ;;  %1954 = vmatpush.msrb.mxu0 %v11353_v60 }
 0x2af   :  { %2011 = vmatpush.msrb.mxu1 %v11373_v59  ;;  %2058 = vmatpush.msrb.mxu2 %v11323_v6 }
 0x2b0   :  { %1902 = vmatpush.msra.mxu3 %v11326_v35  ;;  %1956 = vmatpush.msrb.mxu0 %v11367_v12 }
 0x2b1   :  { %2015 = vmatpush.msrb.mxu1 %v11383_v40  ;;  %2060 = vmatpush.msrb.mxu2 %v11337_v58 }
 0x2b2   :  { %1905 = vmatpush.msra.mxu3 %v11340_v37  ;;  %1958 = vmatpush.msrb.mxu0 %v11385_v53 }
 0x2b3   :  { %2019 = vmatpush.msrb.mxu1 %v11400_v17  ;;  %2062 = vmatpush.msrb.mxu2 %v11353_v60 }
 0x2b4   :  { %1908 = vmatpush.msra.mxu3 %v11356_v26  ;;  %1960 = vmatpush.msrb.mxu0 %v11402_v21 }
 0x2b5   :  { %2023 = vmatpush.msrb.mxu1 %v11418_v34  ;;  %2064 = vmatpush.msrb.mxu2 %v11367_v12 }
 0x2b6   :  { %1911 = vmatpush.msra.mxu3 %v11370_v54  ;;  %1962 = vmatpush.msrb.mxu0 %v11420_v44  ;;  %v14941_v54 = vld [vmem:[#allocation73_spill] sm:$0xff] }
 0x2b7   :  { %2027 = vmatpush.msrb.mxu1 %v11441_v49  ;;  %2066 = vmatpush.msrb.mxu2 %v11385_v53  ;;  %v14945_v49 = vld [vmem:[#allocation54_spill] sm:$0xff] }
 0x2b8   :  { %1914 = vmatpush.msra.mxu3 %v11388_v51  ;;  %1964 = vmatpush.msrb.mxu0 %v11434_v41  ;;  %v14940_v51 = vld [vmem:[#allocation42_spill] sm:$0xff] }
 0x2b9   :  { %2031 = vmatpush.msrb.mxu1 %v11447_v4  ;;  %2068 = vmatpush.msrb.mxu2 %v11402_v21 }
 0x2ba   :  { %1968 = vmatmul.f32.vlgmr.msrb.gmra.mxu0 %v1771_v14  ;;  %1917 = vmatpush.msra.mxu3 %v11405_v27  ;;  %v14906_v14 = vld [vmem:[#allocation9_spill] sm:$0xff]  ;;  %v14932_v27 = vld [vmem:[#allocation68_spill] sm:$0xff] }
 0x2bb   :  { %2125 = vmatpush.msra.mxu0 %v10956_v63  ;;  %2035 = vmatpush.msrb.mxu1 %v11458_v10  ;;  %v1353_v63 = vadd.f32 %v1352_v3, %v1350_v50  ;;  %v14909_v50 = vld [vmem:[#allocation19_spill] sm:$0xff] }
 0x2bc   :  { %2070 = vmatpush.msrb.mxu2 %v11420_v44  ;;  %2037 = vmatmul.f32.vlgmr.msrb.gmra.mxu1 %v11483_v22  ;;  %v14910_v3 = vld [vmem:[#allocation11_spill] sm:$0xff] }
 0x2bd   :  { %2131 = vmatpush.msra.mxu0 %v14897_v55  ;;  %2223 = vmatpush.msra.mxu1 %v14898_v18  ;;  %v14911_v55 = vld [vmem:[#allocation49_spill] sm:$0xff]  ;;  %v14912_v18 = vld [vmem:[#allocation20_spill] sm:$0xff]  ;;  %v14938_v10 = vld [vmem:[#allocation71_spill] sm:$0xff] }
 0x2be   :  { %1920 = vmatpush.msra.mxu3 %v14899_v56  ;;  %2072 = vmatpush.msrb.mxu2 %v11434_v41  ;;  %v14929_v56 = vld [vmem:[#allocation66_spill] sm:$0xff] }
 0x2bf   :  { %2074 = vmatmul.f32.vlgmr.msrb.gmra.mxu2 %v11483_v22  ;;  %2137 = vmatpush.msra.mxu0 %v14900_v48  ;;  %v1354_v22 = vrot.slane %v1353_v63, 2  ;;  %v14913_v48 = vld [vmem:[#allocation12_spill] sm:$0xff] }
 0x2c0   :  { %2226 = vmatpush.msra.mxu1 %v14901_v7  ;;  %2276 = vmatpush.msra.mxu2 %v14902_v43  ;;  %v14914_v7 = vld [vmem:[#allocation10_spill] sm:$0xff] }
 0x2c1   :  { %1923 = vmatpush.msra.mxu3 %v14903_v29  ;;  %2143 = vmatpush.msra.mxu0 %v14904_v19  ;;  %v14915_v19 = vld [vmem:[#allocation21_spill] sm:$0xff]  ;;  %v1351_v29 = vmul.f32 %v11476_v61, %v11476_v61 }
 0x2c2   :  { %2229 = vmatpush.msra.mxu1 %v14905_v15  ;;  %2278 = vmatpush.msra.mxu2 %v14906_v14  ;;  %v1355_v15 = vadd.f32 %v1354_v22, %v1353_v63  ;;  %v14922_v63 = vld [vmem:[#allocation18_spill] sm:$0xff]  ;;  %v14923_v22 = vld [vmem:[#allocation61_spill] sm:$0xff] }
 0x2c3   :  { %1926 = vmatpush.msra.mxu3 %v14907_v24  ;;  %2149 = vmatpush.msra.mxu0 %v14908_v39  ;;  %v14917_v39 = vld [vmem:[#allocation55_spill] sm:$0xff]  ;;  %v14927_v24 = vld [vmem:[#allocation41_spill] sm:$0xff] }
 0x2c4   :  { %1929 = vmatmul.f32.vlgmr.msra.gmra.mxu3 %v11489_v16  ;;  %2232 = vmatpush.msra.mxu1 %v14909_v50  ;;  %v14916_v16 = vld [vmem:[#allocation13_spill] sm:$0xff]  ;;  %v14918_v50 = vld [vmem:[#allocation27_spill] sm:$0xff] }
 0x2c5   :  { %2080 = vmatpush.msrb.mxu3 %v14902_v43  ;;  %2280 = vmatpush.msra.mxu2 %v14910_v3  ;;  %v14935_v61 = vld [vmem:[#allocation69_spill] sm:$0xff] }
 0x2c6   :  { %2155 = vmatpush.msra.mxu0 %v14911_v55  ;;  %2235 = vmatpush.msra.mxu1 %v14912_v18  ;;  %v14919_v55 = vld [vmem:[#allocation14_spill] sm:$0xff]  ;;  %v14920_v18 = vld [vmem:[#allocation59_spill] sm:$0xff] }
 0x2c7   :  { %2082 = vmatpush.msrb.mxu3 %v14906_v14  ;;  %2282 = vmatpush.msra.mxu2 %v14913_v48 }
 0x2c8   :  { %2161 = vmatpush.msra.mxu0 %v14914_v7  ;;  %2238 = vmatpush.msra.mxu1 %v14915_v19  ;;  %v1356_v7 = vrot.slane %v1355_v15, 1  ;;  %v14924_v19 = vld [vmem:[#allocation40_spill] sm:$0xff] }
 0x2c9   :  { %2084 = vmatpush.msrb.mxu3 %v14910_v3  ;;  %2284 = vmatpush.msra.mxu2 %v14916_v16 }
 0x2ca   :  { %2167 = vmatpush.msra.mxu0 %v14917_v39  ;;  %2241 = vmatpush.msra.mxu1 %v14918_v50  ;;  %v14925_v39 = vld [vmem:[#allocation28_spill] sm:$0xff] }
 0x2cb   :  { %2086 = vmatpush.msrb.mxu3 %v14913_v48  ;;  %2286 = vmatpush.msra.mxu2 %v14919_v55  ;;  %v14926_v50 = vld [vmem:[#allocation64_spill] sm:$0xff] }
 0x2cc   :  { %2173 = vmatpush.msra.mxu0 %v14920_v18  ;;  %2244 = vmatpush.msra.mxu1 %v14921_v33  ;;  %v1357_v18 = vadd.f32 %v1356_v7, %v1355_v15  ;;  %v14928_v33 = vld [vmem:[#allocation34_spill] sm:$0xff]  ;;  %v14934_v15 = vld [vmem:[#allocation37_spill] sm:$0xff]  ;;  %v1358_v7 = vrot.slane %v1351_v29, 4 }
 0x2cd   :  { %2088 = vmatpush.msrb.mxu3 %v14916_v16  ;;  %2288 = vmatpush.msra.mxu2 %v14922_v63 }
 0x2ce   :  { %2179 = vmatpush.msra.mxu0 %v14923_v22  ;;  %2247 = vmatpush.msra.mxu1 %v14924_v19  ;;  %v14930_v22 = vld [vmem:[#allocation43_spill] sm:$0xff]  ;;  %v1359_v4 = vadd.f32 %v1358_v7, %v1351_v29 }
 0x2cf   :  { %2090 = vmatpush.msrb.mxu3 %v14919_v55  ;;  %2290 = vmatpush.msra.mxu2 %v14925_v39  ;;  %v14931_v19 = vld [vmem:[#allocation35_spill] sm:$0xff] }
 0x2d0   :  { %2185 = vmatpush.msra.mxu0 %v14926_v50  ;;  %2250 = vmatpush.msra.mxu1 %v14927_v24  ;;  %v14933_v50 = vld [vmem:[#allocation44_spill] sm:$0xff]  ;;  %v11602_v24 = vand.u32 4294901760, %v1357_v18 }
 0x2d1   :  { %2092 = vmatpush.msrb.mxu3 %v14922_v63  ;;  %2292 = vmatpush.msra.mxu2 %v14928_v33 }
 0x2d2   :  { %2191 = vmatpush.msra.mxu0 %v14929_v56  ;;  %2253 = vmatpush.msra.mxu1 %v14930_v22  ;;  %v14936_v56 = vld [vmem:[#allocation51_spill] sm:$0xff]  ;;  %v14937_v22 = vld [vmem:[#allocation38_spill] sm:$0xff] }
 0x2d3   :  { %2094 = vmatpush.msrb.mxu3 %v14925_v39  ;;  %2294 = vmatpush.msra.mxu2 %v14931_v19 }
 0x2d4   :  { %2197 = vmatpush.msra.mxu0 %v14932_v27  ;;  %2256 = vmatpush.msra.mxu1 %v14933_v50  ;;  %v14939_v27 = vld [vmem:[#allocation56_spill] sm:$0xff]  ;;  %v2112_v50 = vsub.f32 %v1357_v18, %v11602_v24  ;;  %v1360_v18 = vrot.slane %v1359_v4, 2 }
 0x2d5   :  { %2096 = vmatpush.msrb.mxu3 %v14928_v33  ;;  %2296 = vmatpush.msra.mxu2 %v14934_v15 }
 0x2d6   :  { %2203 = vmatpush.msra.mxu0 %v14935_v61  ;;  %2259 = vmatpush.msra.mxu1 %v14936_v56  ;;  %v14942_v61 = vld [vmem:[#allocation60_spill] sm:$0xff]  ;;  %v1361_v7 = vadd.f32 %v1360_v18, %v1359_v4  ;;  %v14949_v4 = vld [vmem:[#allocation22_spill] sm:$0xff] }
 0x2d7   :  { %2098 = vmatpush.msrb.mxu3 %v14931_v19  ;;  %2298 = vmatpush.msra.mxu2 %v14937_v22  ;;  %v14943_v56 = vld [vmem:[#allocation48_spill] sm:$0xff] }
 0x2d8   :  { %2209 = vmatpush.msra.mxu0 %v14938_v10  ;;  %2262 = vmatpush.msra.mxu1 %v14939_v27  ;;  %v14944_v10 = vld [vmem:[#allocation63_spill] sm:$0xff]  ;;  %v2113_v27 = vand.u32 4294901760, %v2112_v50  ;;  %v14954_v18 = vld [vmem:[#allocation76_spill] sm:$0xff] }
 0x2d9   :  { %2100 = vmatpush.msrb.mxu3 %v14934_v15  ;;  %2300 = vmatpush.msra.mxu2 %v14940_v51 }
 0x2da   :  { %2215 = vmatpush.msra.mxu0 %v14941_v54  ;;  %2265 = vmatpush.msra.mxu1 %v14942_v61  ;;  %v14946_v54 = vld [vmem:[#allocation58_spill] sm:$0xff]  ;;  %v2114_v29 = vsub.f32 %v2112_v50, %v2113_v27 }
 0x2db   :  { %2102 = vmatpush.msrb.mxu3 %v14937_v22  ;;  %2302 = vmatpush.msra.mxu2 %v14943_v56 }
 0x2dc   :  { %2217 = vmatmul.f32.vlgmr.msra.gmra.mxu0 %v11602_v24  ;;  %2268 = vmatpush.msra.mxu1 %v14944_v10  ;;  %v2115_v61 = vand.u32 4294901760, %v2114_v29  ;;  %v14952_v10 = vld [vmem:[#allocation75_spill] sm:$0xff]  ;;  %v14956_v29 = vld [vmem:[#allocation77_spill] sm:$0xff] }
 0x2dd   :  { %2384 = vmatpush.msrb.mxu0 %v14902_v43  ;;  %2104 = vmatpush.msrb.mxu3 %v14940_v51  ;;  %v14947_v43 = vld [vmem:[#allocation70_spill] sm:$0xff] }
 0x2de   :  { %2304 = vmatpush.msra.mxu2 %v14945_v49  ;;  %2271 = vmatmul.f32.vlgmr.msra.gmra.mxu1 %v2112_v50  ;;  %v1362_v50 = vrot.slane %v1361_v7, 1 }
 0x2df   :  { %2386 = vmatpush.msrb.mxu0 %v14906_v14  ;;  %2421 = vmatpush.msrb.mxu1 %v11107_v1  ;;  %v14948_v14 = vld [vmem:[#allocation72_spill] sm:$0xff] }
 0x2e0   :  { %2106 = vmatpush.msrb.mxu3 %v14943_v56  ;;  %2306 = vmatpush.msra.mxu2 %v14946_v54 }
 0x2e1   :  { %2310 = vmatmul.f32.vlgmr.msra.gmra.mxu2 %v2113_v27  ;;  %2388 = vmatpush.msrb.mxu0 %v14910_v3  ;;  %v14950_v3 = vld [vmem:[#allocation74_spill] sm:$0xff]  ;;  %v14953_v27 = vld [vmem:[#allocation24_spill] sm:$0xff] }
 0x2e2   :  { %2423 = vmatpush.msrb.mxu1 %v11113_v38  ;;  %2466 = vmatpush.msrb.mxu2 %v14947_v43  ;;  %v14957_v43 = vld [vmem:[#allocation26_spill] sm:$0xff] }
 0x2e3   :  { %2108 = vmatpush.msrb.mxu3 %v14945_v49  ;;  %2390 = vmatpush.msrb.mxu0 %v14913_v48  ;;  %v14951_v48 = vld [vmem:[#allocation23_spill] sm:$0xff] }
 0x2e4   :  { %2425 = vmatpush.msrb.mxu1 %v11115_v0  ;;  %2472 = vmatpush.msrb.mxu2 %v14948_v14  ;;  %v14960_v14 = vld [vmem:[#allocation79_spill] sm:$0xff] }
 0x2e5   :  { %2110 = vmatpush.msrb.mxu3 %v14946_v54  ;;  %2392 = vmatpush.msrb.mxu0 %v14916_v16  ;;  %v1363_v16 = vadd.f32 %v1362_v50, %v1361_v7  ;;  %v14958_v7 = vld [vmem:[#allocation78_spill] sm:$0xff]  ;;  %v14962_v50 = vld [vmem:[#allocation81_spill] sm:$0xff] }
 0x2e6   :  { %2116 = vmatmul.f32.vlgmr.msrb.gmra.mxu3 %v2115_v61  ;;  %2427 = vmatpush.msrb.mxu1 %v11130_v25  ;;  %v14961_v61 = vld [vmem:[#allocation31_spill] sm:$0xff] }
 0x2e7   :  { %2317 = vmatpush.msra.mxu3 %v14949_v4  ;;  %2478 = vmatpush.msrb.mxu2 %v14950_v3  ;;  %v14964_v4 = vld [vmem:[#allocation84_spill] sm:$0xff]  ;;  %v14965_v3 = vld [vmem:[#allocation46_spill] sm:$0xff] }
 0x2e8   :  { %2394 = vmatpush.msrb.mxu0 %v14919_v55  ;;  %2429 = vmatpush.msrb.mxu1 %v11156_v23  ;;  %v14955_v55 = vld [vmem:[#allocation25_spill] sm:$0xff] }
 0x2e9   :  { %2321 = vmatpush.msra.mxu3 %v14951_v48  ;;  %2484 = vmatpush.msrb.mxu2 %v14952_v10  ;;  %v14966_v48 = vld [vmem:[#allocation85_spill] sm:$0xff]  ;;  %v14968_v10 = vld [vmem:[#allocation87_spill] sm:$0xff] }
 0x2ea   :  { %2396 = vmatpush.msrb.mxu0 %v14922_v63  ;;  %2431 = vmatpush.msrb.mxu1 %v11175_v45  ;;  %v11654_v63 = vand.u32 4294901760, %v1363_v16 }
 0x2eb   :  { %2325 = vmatpush.msra.mxu3 %v14953_v27  ;;  %2490 = vmatpush.msrb.mxu2 %v14954_v18  ;;  %v14970_v27 = vld [vmem:[#allocation90_spill] sm:$0xff] }
 0x2ec   :  { %2398 = vmatpush.msrb.mxu0 %v14925_v39  ;;  %2433 = vmatpush.msrb.mxu1 %v11278_v62  ;;  %v14959_v39 = vld [vmem:[#allocation29_spill] sm:$0xff]  ;;  %v14972_v18 = vld [vmem:[#allocation94_spill] sm:$0xff] }
 0x2ed   :  { %2329 = vmatpush.msra.mxu3 %v14955_v55  ;;  %2496 = vmatpush.msrb.mxu2 %v14956_v29  ;;  %v14973_v55 = vld [vmem:[#allocation57_spill] sm:$0xff]  ;;  %v14974_v29 = vld [vmem:[#allocation95_spill] sm:$0xff] }
 0x2ee   :  { %2400 = vmatpush.msrb.mxu0 %v14928_v33  ;;  %2435 = vmatpush.msrb.mxu1 %v11311_v2  ;;  %v11665_v33 = vsub.f32 %v1363_v16, %v11654_v63  ;;  %v14969_v16 = vld [vmem:[#allocation50_spill] sm:$0xff] }
 0x2ef   :  { %2333 = vmatpush.msra.mxu3 %v14957_v43  ;;  %2502 = vmatpush.msrb.mxu2 %v14958_v7  ;;  %v14976_v43 = vld [vmem:[#allocation96_spill] sm:$0xff]  ;;  %v14977_v7 = vld [vmem:[#allocation65_spill] sm:$0xff] }
 0x2f0   :  { %2402 = vmatpush.msrb.mxu0 %v14931_v19  ;;  %2437 = vmatpush.msrb.mxu1 %v11323_v6  ;;  %v14963_v19 = vld [vmem:[#allocation39_spill] sm:$0xff] }
 0x2f1   :  { %2337 = vmatpush.msra.mxu3 %v14959_v39  ;;  %2508 = vmatpush.msrb.mxu2 %v14960_v14  ;;  %v2778_v14 = vld [vmem:[%s14394_s9 + $0x10] sm:$0xff] }
 0x2f2   :  { %2404 = vmatpush.msrb.mxu0 %v14934_v15  ;;  %2439 = vmatpush.msrb.mxu1 %v11337_v58  ;;  %v2454_v15 = vand.u32 4294901760, %v11665_v33 }
 0x2f3   :  { %2341 = vmatpush.msra.mxu3 %v14961_v61  ;;  %2514 = vmatpush.msrb.mxu2 %v14962_v50  ;;  %v2776_v50 = vld [vmem:[%s14394_s9] sm:$0xff] }
 0x2f4   :  { %2406 = vmatpush.msrb.mxu0 %v14937_v22  ;;  %2441 = vmatpush.msrb.mxu1 %v11353_v60  ;;  %v14967_v22 = vld [vmem:[#allocation47_spill] sm:$0xff] }
 0x2f5   :  { %2345 = vmatpush.msra.mxu3 %v14963_v19  ;;  %2520 = vmatpush.msrb.mxu2 %v14964_v4 }
 0x2f6   :  { %2408 = vmatpush.msrb.mxu0 %v14940_v51  ;;  %2443 = vmatpush.msrb.mxu1 %v11367_v12  ;;  %v2455_v51 = vsub.f32 %v11665_v33, %v2454_v15 }
 0x2f7   :  { %2349 = vmatpush.msra.mxu3 %v14965_v3  ;;  %2526 = vmatpush.msrb.mxu2 %v14966_v48 }
 0x2f8   :  { %2410 = vmatpush.msrb.mxu0 %v14943_v56  ;;  %2445 = vmatpush.msrb.mxu1 %v11385_v53  ;;  %v14971_v56 = vld [vmem:[#allocation53_spill] sm:$0xff] }
 0x2f9   :  { %2353 = vmatpush.msra.mxu3 %v14967_v22  ;;  %2532 = vmatpush.msrb.mxu2 %v14968_v10 }
 0x2fa   :  { %2412 = vmatpush.msrb.mxu0 %v14945_v49  ;;  %2447 = vmatpush.msrb.mxu1 %v11402_v21  ;;  %v2456_v49 = vand.u32 4294901760, %v2455_v51 }
 0x2fb   :  { %2357 = vmatpush.msra.mxu3 %v14969_v16  ;;  %2538 = vmatpush.msrb.mxu2 %v14970_v27 }
 0x2fc   :  { %2414 = vmatpush.msrb.mxu0 %v14946_v54  ;;  %2449 = vmatpush.msrb.mxu1 %v11420_v44  ;;  %v14975_v54 = vld [vmem:[#allocation62_spill] sm:$0xff] }
 0x2fd   :  { %2361 = vmatpush.msra.mxu3 %v14971_v56  ;;  %2544 = vmatpush.msrb.mxu2 %v14972_v18 }
 0x2fe   :  { %2416 = vmatmul.f32.vlgmr.msrb.gmra.mxu0 %v11602_v24  ;;  %2451 = vmatpush.msrb.mxu1 %v11434_v41 }
 0x2ff   :  { %2617 = vmatpush.msra.mxu0 %v11107_v1  ;;  %2365 = vmatpush.msra.mxu3 %v14973_v55 }
 0x300   :  { %2550 = vmatpush.msrb.mxu2 %v14974_v29  ;;  %2457 = vmatmul.f32.vlgmr.msrb.gmra.mxu1 %v2456_v49  ;;  %v2779_v49 = vld [vmem:[%s14394_s9 + $0x18] sm:$0xff] }
 0x301   :  { %2619 = vmatpush.msra.mxu0 %v11113_v38  ;;  %2658 = vmatpush.msra.mxu1 %v11151_v31  ;;  %v14978_v31 = vld [vmem:[#allocation67_spill] sm:$0xff] }
 0x302   :  { %2369 = vmatpush.msra.mxu3 %v14975_v54  ;;  %2556 = vmatpush.msrb.mxu2 %v14976_v43  ;;  %v11805_v43 = vand.u32 4294901760, %v2779_v49 }
 0x303   :  { %2558 = vmatmul.f32.vlgmr.msrb.gmra.mxu2 %v11654_v63  ;;  %2621 = vmatpush.msra.mxu0 %v11115_v0 }
 0x304   :  { %2662 = vmatpush.msra.mxu1 %v11170_v47  ;;  %2725 = vmatpush.msra.mxu2 %v11107_v1  ;;  %v14980_v1 = vld [vmem:[#allocation80_spill] sm:$0xff] }
 0x305   :  { %2373 = vmatpush.msra.mxu3 %v14977_v7  ;;  %2623 = vmatpush.msra.mxu0 %v11130_v25 }
 0x306   :  { %2666 = vmatpush.msra.mxu1 %v11192_v42  ;;  %2727 = vmatpush.msra.mxu2 %v11113_v38  ;;  %v14979_v38 = vld [vmem:[#allocation89_spill] sm:$0xff] }
 0x307   :  { %2377 = vmatpush.msra.mxu3 %v14978_v31  ;;  %2625 = vmatpush.msra.mxu0 %v11156_v23  ;;  %v2777_v31 = vld [vmem:[%s14394_s9 + $0x8] sm:$0xff] }
 0x308   :  { %2379 = vmatmul.f32.vlgmr.msra.gmra.mxu3 %v11602_v24  ;;  %2670 = vmatpush.msra.mxu1 %v11208_v32 }
 0x309   :  { %2564 = vmatpush.msrb.mxu3 %v11128_v13  ;;  %2729 = vmatpush.msra.mxu2 %v11115_v0  ;;  %v14987_v0 = vld [vmem:[#allocation92_spill] sm:$0xff] }
 0x30a   :  { %2627 = vmatpush.msra.mxu0 %v11175_v45  ;;  %2674 = vmatpush.msra.mxu1 %v11224_v30  ;;  %v14983_v30 = vld [vmem:[#allocation93_spill] sm:$0xff] }
 0x30b   :  { %2567 = vmatpush.msrb.mxu3 %v11140_v9  ;;  %2731 = vmatpush.msra.mxu2 %v11130_v25 }
 0x30c   :  { %2629 = vmatpush.msra.mxu0 %v11278_v62  ;;  %2678 = vmatpush.msra.mxu1 %v11237_v11 }
 0x30d   :  { %2570 = vmatpush.msrb.mxu3 %v11154_v8  ;;  %2733 = vmatpush.msra.mxu2 %v11156_v23 }
 0x30e   :  { %2631 = vmatpush.msra.mxu0 %v11311_v2  ;;  %2682 = vmatpush.msra.mxu1 %v11321_v5 }
 0x30f   :  { %2573 = vmatpush.msrb.mxu3 %v11173_v28  ;;  %2735 = vmatpush.msra.mxu2 %v11175_v45 }
 0x310   :  { %2633 = vmatpush.msra.mxu0 %v11323_v6  ;;  %2686 = vmatpush.msra.mxu1 %v11335_v46 }
 0x311   :  { %2576 = vmatpush.msrb.mxu3 %v11195_v20  ;;  %2737 = vmatpush.msra.mxu2 %v11278_v62 }
 0x312   :  { %2635 = vmatpush.msra.mxu0 %v11337_v58  ;;  %2690 = vmatpush.msra.mxu1 %v11351_v36 }
 0x313   :  { %2579 = vmatpush.msrb.mxu3 %v11211_v57  ;;  %2739 = vmatpush.msra.mxu2 %v11311_v2 }
 0x314   :  { %2637 = vmatpush.msra.mxu0 %v11353_v60  ;;  %2694 = vmatpush.msra.mxu1 %v11373_v59  ;;  %v1535_v25 = vpop.f32.mrf.mxu0 }
 0x315   :  { %2582 = vmatpush.msrb.mxu3 %v11314_v52  ;;  %2741 = vmatpush.msra.mxu2 %v11323_v6 }
 0x316   :  { %2639 = vmatpush.msra.mxu0 %v11367_v12  ;;  %2698 = vmatpush.msra.mxu1 %v11383_v40  ;;  %v14981_v40 = vld [vmem:[#allocation91_spill] sm:$0xff]  ;;  %v1589_v46 = vpop.f32.mrf.mxu1 }
 0x317   :  { %2585 = vmatpush.msrb.mxu3 %v11326_v35  ;;  %2743 = vmatpush.msra.mxu2 %v11337_v58  ;;  %v14986_v58 = vld [vmem:[#allocation88_spill] sm:$0xff] }
 0x318   :  { %2641 = vmatpush.msra.mxu0 %v11385_v53  ;;  %2702 = vmatpush.msra.mxu1 %v11400_v17 }
 0x319   :  { %2588 = vmatpush.msrb.mxu3 %v11340_v37  ;;  %2745 = vmatpush.msra.mxu2 %v11353_v60  ;;  %v14982_v60 = vld [vmem:[#allocation82_spill] sm:$0xff]  ;;  %v14984_v37 = vld [vmem:[#allocation83_spill] sm:$0xff] }
 0x31a   :  { %2643 = vmatpush.msra.mxu0 %v11402_v21  ;;  %2706 = vmatpush.msra.mxu1 %v11418_v34 }
 0x31b   :  { %2591 = vmatpush.msrb.mxu3 %v11356_v26  ;;  %2747 = vmatpush.msra.mxu2 %v11367_v12 }
 0x31c   :  { %2645 = vmatpush.msra.mxu0 %v11420_v44  ;;  %2710 = vmatpush.msra.mxu1 %v14979_v38 }
 0x31d   :  { %2594 = vmatpush.msrb.mxu3 %v14980_v1  ;;  %2749 = vmatpush.msra.mxu2 %v11385_v53  ;;  %v14985_v53 = vld [vmem:[#allocation86_spill] sm:$0xff] }
 0x31e   :  { %2647 = vmatpush.msra.mxu0 %v11434_v41  ;;  %2714 = vmatpush.msra.mxu1 %v14981_v40  ;;  %v1628_v35 = vpop.f32.mrf.mxu2  ;;  %v11811_v40 = vsub.f32 %v2779_v49, %v11805_v43  ;;  %v9315_v49 = vld [vmem:[%s14388_s3 + $0x1c0] sm:$0xf] }
 0x31f   :  { %2597 = vmatpush.msrb.mxu3 %v14982_v60  ;;  %2751 = vmatpush.msra.mxu2 %v11402_v21  ;;  %v11813_v60 = vand.u32 4294901760, %v2777_v31 }
 0x320   :  { %2651 = vmatmul.f32.vlgmr.msra.gmra.mxu0 %v2454_v15  ;;  %2718 = vmatpush.msra.mxu1 %v14983_v30  ;;  %v11783_v15 = vand.u32 4294901760, %v2776_v50 }
 0x321   :  { %2600 = vmatpush.msrb.mxu3 %v14984_v37  ;;  %2753 = vmatpush.msra.mxu2 %v11420_v44  ;;  %v1734_v44 = vpop.f32.mrf.mxu0 }
 0x322   :  { %2720 = vmatmul.f32.vlgmr.msra.gmra.mxu1 %v11654_v63  ;;  %v1434_v23 = vpop.f32.mrf.mxu3  ;;  %v11790_v22 = vsub.f32 %v2776_v50, %v11783_v15  ;;  %v9331_v50 = vld [vmem:[%s14388_s3 + $0x1e0] sm:$0xf] }
 0x323   :  { %2603 = vmatpush.msrb.mxu3 %v14985_v53  ;;  %2755 = vmatpush.msra.mxu2 %v11434_v41  ;;  %v1536_v21 = vadd.f32 %v1535_v25, %v1434_v23 }
 0x324   :  { %2757 = vmatmul.f32.vlgmr.msra.gmra.mxu2 %v11654_v63  ;;  %v1775_v52 = vpop.f32.mrf.mxu1  ;;  %v11797_v27 = vand.u32 4294901760, %v11790_v22  ;;  %3016 = vmatpush.msrb.mxu1 %v11811_v40 }
 0x325   :  { %2606 = vmatpush.msrb.mxu3 %v14986_v58  ;;  %v1590_v9 = vadd.f32 %v1589_v46, %v1536_v21  ;;  %3041 = vmatpush.msrb.mxu2 %v11805_v43  ;;  %v11818_v58 = vsub.f32 %v2777_v31, %v11813_v60 }
 0x326   :  { %v2833_v54 = vsub.f32 %v11790_v22, %v11797_v27 }
 0x327   :  { %2609 = vmatpush.msrb.mxu3 %v14987_v0  ;;  %v1629_v8 = vadd.f32 %v1628_v35, %v1590_v9  ;;  %3043 = vmatpush.msrb.mxu2 %v11813_v60 }
 0x328   :  { %2612 = vmatmul.f32.vlgmr.msrb.gmra.mxu3 %v11665_v33  ;;  %v1876_v12 = vpop.f32.mrf.mxu2  ;;  %v11775_v33 = vand.u32 4294901760, %v2778_v14  ;;  %v2834_v1 = vand.u32 4294901760, %v2833_v54  ;;  %3019 = vmatpush.msrb.mxu1 %v11818_v58  ;;  %v9932_v54 = vld [vmem:[%s14388_s3 + $0x1cc] sm:$0xf0] }
 0x329   :  { %v9316_v31 = vor.u32 %v9932_v54, %v9315_v49  ;;  %v9880_v54 = vld [vmem:[%s14388_s3 + $0x2c] sm:$0xf0] }
 0x32a   :  { %v11781_v4 = vsub.f32 %v2778_v14, %v11775_v33  ;;  %2798 = vmatpush.msra.mxu3 %v11775_v33  ;;  %3120 = vmatpush.msra.mxu1 %v11775_v33 }
 0x32c   :  { %v1697_v2 = vpop.f32.mrf.mxu3  ;;  %v11787_v48 = vand.u32 4294901760, %v11781_v4  ;;  %2800 = vmatpush.msra.mxu3 %v11783_v15  ;;  %3122 = vmatpush.msra.mxu1 %v11783_v15 }
 0x32d   :  { %v1698_v47 = vadd.f32 %v1697_v2, %v1629_v8 }
 0x32e   :  { %2857 = vmatpush.msrb.mxu3 %v11781_v4  ;;  %v2827_v16 = vsub.f32 %v11781_v4, %v11787_v48 }
 0x32f   :  { %v1735_v20 = vadd.f32 %v1734_v44, %v1698_v47 }
 0x330   :  { %2860 = vmatpush.msrb.mxu3 %v11790_v22  ;;  %v2828_v29 = vand.u32 4294901760, %v2827_v16 }
 0x331   :  { %v1776_v34 = vadd.f32 %v1775_v52, %v1735_v20 }
 0x332   :  { %2829 = vmatpush.msrb.mxu0 %v2828_v29  ;;  %3151 = vmatpush.msra.mxu2 %v2828_v29 }
 0x333   :  { %v1877_v62 = vadd.f32 %v1876_v12, %v1776_v34 }
 0x334   :  { %2835 = vmatpush.msrb.mxu0 %v2834_v1  ;;  %3157 = vmatpush.msra.mxu2 %v2834_v1  ;;  %v9930_v1 = vld [vmem:[%s14388_s3 + $0x1c4] sm:$0xf] }
 0x336   :  { %2882 = vmatpush.msra.mxu0 %v11775_v33 }
 0x337   :  { %v1969_v41 = vpop.f32.mrf.mxu0 }
 0x338   :  { %2884 = vmatpush.msra.mxu0 %v11783_v15 }
 0x339   :  { %v2038_v5 = vpop.f32.mrf.mxu1 }
 0x342   :  { %v2075_v45 = vpop.f32.mrf.mxu2 }
 0x347   :  { %v1930_v13 = vpop.f32.mrf.mxu3 }
 0x348   :  { %v1931_v59 = vadd.f32 %v1930_v13, %v1877_v62 }
 0x34a   :  { %v1970_v39 = vadd.f32 %v1969_v41, %v1931_v59 }
 0x34c   :  { %v2039_v3 = vadd.f32 %v2038_v5, %v1970_v39 }
 0x34e   :  { %v2076_v56 = vadd.f32 %v2075_v45, %v2039_v3  ;;  %v9205_v3 = vld [vmem:[%s14388_s3 + $0xf0] sm:$0xf0] }
 0x350   :  { %v2078_v37 = vmul.f32 0.03125, %v2076_v56  ;;  %v9187_v56 = vld [vmem:[%s14388_s3 + $0xc0] sm:$0xf] }
 0x352   :  { %v2762_v25 = vmul.f32 %v2078_v37, %v2078_v37 }
 0x359   :  { %v2218_v6 = vpop.f32.mrf.mxu0 }
 0x35b   :  { %v2272_v32 = vpop.f32.mrf.mxu1 }
 0x364   :  { %v2311_v36 = vpop.f32.mrf.mxu2 }
 0x369   :  { %v2117_v28 = vpop.f32.mrf.mxu3 }
 0x36a   :  { %v2219_v42 = vadd.f32 %v2218_v6, %v2117_v28  ;;  %v11828_v28 = vand.u32 4294901760, %v11811_v40 }
 0x36c   :  { %v2273_v57 = vadd.f32 %v2272_v32, %v2219_v42  ;;  %v11832_v42 = vand.u32 4294901760, %v11818_v58 }
 0x36e   :  { %v2312_v26 = vadd.f32 %v2311_v36, %v2273_v57  ;;  %v2986_v57 = vsub.f32 %v11811_v40, %v11828_v28 }
 0x37b   :  { %v2417_v24 = vpop.f32.mrf.mxu0 }
 0x37d   :  { %v2458_v61 = vpop.f32.mrf.mxu1 }
 0x386   :  { %v2559_v10 = vpop.f32.mrf.mxu2 }
 0x38b   :  { %v2380_v11 = vpop.f32.mrf.mxu3 }
 0x38c   :  { %v2381_v17 = vadd.f32 %v2380_v11, %v2312_v26  ;;  %v2992_v11 = vsub.f32 %v11818_v58, %v11832_v42 }
 0x38e   :  { %v2418_v63 = vadd.f32 %v2417_v24, %v2381_v17  ;;  %v2987_v17 = vand.u32 4294901760, %v2986_v57  ;;  %v9139_v57 = vld [vmem:[%s14388_s3 + $0x60] sm:$0xf] }
 0x390   :  { %v2459_v19 = vadd.f32 %v2458_v61, %v2418_v63  ;;  %v2993_v63 = vand.u32 4294901760, %v2992_v11  ;;  %v9904_v61 = vld [vmem:[%s14388_s3 + $0xec] sm:$0xf0] }
 0x392   :  { %v2560_v51 = vadd.f32 %v2559_v10, %v2459_v19  ;;  %v9934_v10 = vld [vmem:[%s14388_s3 + $0x1e4] sm:$0xf] }
 0x39d   :  { %v2652_v7 = vpop.f32.mrf.mxu0 }
 0x39f   :  { %v2721_v30 = vpop.f32.mrf.mxu1 }
 0x3a7   :  { %v2758_v0 = vpop.f32.mrf.mxu2 }
 0x3ab   :  { %v2613_v18 = vpop.f32.mrf.mxu3 }
 0x3ac   :  { %v2614_v55 = vadd.f32 %v2613_v18, %v2560_v51  ;;  %v9333_v51 = vld [vmem:[%s14388_s3 + $0x1f0] sm:$0xf0]  ;;  %v9900_v18 = vld [vmem:[%s14388_s3 + $0xcc] sm:$0xf0] }
 0x3ad   :  { %v9188_v29 = vor.u32 %v9900_v18, %v9187_v56  ;;  %v9253_v56 = vld [vmem:[%s14388_s3 + $0x150] sm:$0xf0] }
 0x3ae   :  { %v2653_v38 = vadd.f32 %v2652_v7, %v2614_v55  ;;  %v9189_v7 = vld [vmem:[%s14388_s3 + $0xd0] sm:$0xf0] }
 0x3b0   :  { %v2722_v53 = vadd.f32 %v2721_v30, %v2653_v38  ;;  %v9171_v30 = vld [vmem:[%s14388_s3 + $0xa0] sm:$0xf] }
 0x3b2   :  { %v2759_v23 = vadd.f32 %v2758_v0, %v2722_v53  ;;  %v9299_v53 = vld [vmem:[%s14388_s3 + $0x1a0] sm:$0xf]  ;;  %v9928_v0 = vld [vmem:[%s14388_s3 + $0x1ac] sm:$0xf0] }
 0x3b4   :  { %v2761_v46 = vmul.f32 0.03125, %v2759_v23  ;;  %v9894_v23 = vld [vmem:[%s14388_s3 + $0xa4] sm:$0xf] }
 0x3b6   :  { %v2763_v35 = vsub.f32 %v2761_v46, %v2762_v25  ;;  %v9173_v25 = vld [vmem:[%s14388_s3 + $0xb0] sm:$0xf0]  ;;  %v9300_v46 = vor.u32 %v9928_v0, %v9299_v53  ;;  %v9091_v0 = vld [vmem:[%s14388_s3] sm:$0xf] }
 0x3b7   :  { %v9237_v53 = vld [vmem:[%s14388_s3 + $0x130] sm:$0xf0] }
 0x3b8   :  { %v2764_v2 = vmax.f32 %v2763_v35, 0.0  ;;  %v9176_v35 = vor.u32 %v9894_v23, %v9173_v25  ;;  %v9876_v23 = vld [vmem:[%s14388_s3 + $0xc] sm:$0xf0]  ;;  %v9219_v25 = vld [vmem:[%s14388_s3 + $0x100] sm:$0xf] }
 0x3ba   :  { %v2765_v44 = vadd.f32 1e-05, %v2764_v2  ;;  %v9926_v2 = vld [vmem:[%s14388_s3 + $0x1a4] sm:$0xf] }
 0x3bc   :  { %10073 = vrsqrt.f32 %v2765_v44  ;;  %vm2772_vm7 = vweird.f32 %v2765_v44 }
 0x3c2   :  { %v10074_v21 = vpop.eup %10073 }
 0x3c3   :  { %v2767_v52 = vmul.f32 %v10074_v21, %v2765_v44  ;;  %vm2773_vm6 = vweird.f32 %v10074_v21  ;;  %v9301_v44 = vld [vmem:[%s14388_s3 + $0x1b0] sm:$0xf0] }
 0x3c4   :  { %vm2774_vm8 = vmor %vm2772_vm7, %vm2773_vm6 }
 0x3c5   :  { %v2768_v13 = vmul.f32 %v10074_v21, %v2767_v52  ;;  %v9155_v52 = vld [vmem:[%s14388_s3 + $0x80] sm:$0xf] }
 0x3c7   :  { %v2769_v9 = vmul.f32 0.5, %v2768_v13  ;;  %v9892_v13 = vld [vmem:[%s14388_s3 + $0x8c] sm:$0xf0] }
 0x3c9   :  { %v2770_v12 = vsub.f32 1.5, %v2769_v9  ;;  %v9283_v9 = vld [vmem:[%s14388_s3 + $0x180] sm:$0xf] }
 0x3cb   :  { %v2771_v41 = vmul.f32 %v10074_v21, %v2770_v12 }
 0x3cd   :  { %v2775_v8 = vsel %vm2774_vm8, %v10074_v21, %v2771_v41  ;;  %v9304_v21 = vor.u32 %v9926_v2, %v9301_v44  ;;  %v9092_v2 = vor.u32 %v9876_v23, %v9091_v0  ;;  %v9908_v44 = vld [vmem:[%s14388_s3 + $0x10c] sm:$0xf0]  ;;  %v9291_v0 = vld [vmem:[%s14388_s3 + $0x188] sm:$0xf]  ;;  %v9925_v23 = vld [vmem:[%s14388_s3 + $0x194] sm:$0xf0] }
 0x3ce   :  { %v2781_v5 = vsel %vm80_vm0, %v2775_v8, 0  ;;  %v3101_v47 = vmul.f32 %v2775_v8, %v2078_v37  ;;  %v9896_v37 = vld [vmem:[%s14388_s3 + $0xac] sm:$0xf0]  ;;  %v9156_v8 = vor.u32 %v9892_v13, %v9155_v52  ;;  %v9093_v52 = vld [vmem:[%s14388_s3 + $0x10] sm:$0xf0]  ;;  %v9220_v13 = vor.u32 %v9908_v44, %v9219_v25 }
 0x3cf   :  { %v2801_v45 = vand.u32 4294901760, %v2781_v5  ;;  %v9891_v25 = vld [vmem:[%s14388_s3 + $0x8c] sm:$0xf] }
 0x3d0   :  { %v3103_v6 = vsel %vm80_vm0, %v3101_v47, 0  ;;  %v9890_v47 = vld [vmem:[%s14388_s3 + $0x84] sm:$0xf]  ;;  %v9923_v44 = vld [vmem:[%s14388_s3 + $0x18c] sm:$0xf] }
 0x3d1   :  { %2837 = vmatmul.f32.vlgmr.msrb.gmra.mxu0 %v2801_v45  ;;  %v2802_v20 = vsub.f32 %v2781_v5, %v2801_v45  ;;  %v11834_v32 = vand.u32 4294901760, %v3103_v6  ;;  %v9924_v5 = vld [vmem:[%s14388_s3 + $0x18c] sm:$0xf0] }
 0x3d2   :  { %2934 = vmatpush.msrb.mxu0 %v11775_v33 }
 0x3d3   :  { %3022 = vmatmul.f32.vlgmr.msrb.gmra.mxu1 %v2802_v20  ;;  %v2803_v34 = vand.u32 4294901760, %v2802_v20  ;;  %v3124_v36 = vsub.f32 %v3103_v6, %v11834_v32 }
 0x3d4   :  { %2936 = vmatpush.msrb.mxu0 %v11783_v15  ;;  %3231 = vmatpush.msrb.mxu1 %v11787_v48 }
 0x3d5   :  { %3047 = vmatmul.f32.vlgmr.msrb.gmra.mxu2 %v2803_v34  ;;  %v2804_v26 = vsub.f32 %v2802_v20, %v2803_v34  ;;  %v3125_v62 = vand.u32 4294901760, %v3124_v36 }
 0x3d6   :  { %3235 = vmatpush.msrb.mxu1 %v11797_v27  ;;  %3256 = vmatpush.msrb.mxu2 %v11775_v33 }
 0x3d7   :  { %v2805_v59 = vand.u32 4294901760, %v2804_v26  ;;  %v3126_v24 = vsub.f32 %v3124_v36, %v3125_v62  ;;  %v9920_v26 = vld [vmem:[%s14388_s3 + $0x16c] sm:$0xf0] }
 0x3d8   :  { %3258 = vmatpush.msrb.mxu2 %v11783_v15 }
 0x3d9   :  { %2806 = vmatmul.f32.vlgmr.msra.gmra.mxu3 %v2805_v59  ;;  %2888 = vmatmul.f32.vlgmr.msra.gmra.mxu0 %v2803_v34  ;;  %v3127_v39 = vand.u32 4294901760, %v3126_v24  ;;  %v9888_v34 = vld [vmem:[%s14388_s3 + $0x6c] sm:$0xf0] }
 0x3da   :  { %2909 = vmatpush.msra.mxu3 %v11787_v48  ;;  %2988 = vmatpush.msra.mxu0 %v2987_v17  ;;  %v9140_v11 = vor.u32 %v9888_v34, %v9139_v57  ;;  %v9903_v57 = vld [vmem:[%s14388_s3 + $0xec] sm:$0xf]  ;;  %v9213_v34 = vld [vmem:[%s14388_s3 + $0xf8] sm:$0xf0] }
 0x3db   :  { %3128 = vmatmul.f32.vlgmr.msra.gmra.mxu1 %v3127_v39 }
 0x3dc   :  { %2913 = vmatpush.msra.mxu3 %v11797_v27  ;;  %2994 = vmatpush.msra.mxu0 %v2993_v63  ;;  %v9336_v27 = vor.u32 %v9934_v10, %v9333_v51 }
 0x3dd   :  { %3159 = vmatmul.f32.vlgmr.msra.gmra.mxu2 %v11834_v32  ;;  %3338 = vmatpush.msra.mxu1 %v11811_v40  ;;  %v9317_v40 = vld [vmem:[%s14388_s3 + $0x1d0] sm:$0xf0] }
 0x3de   :  { %3363 = vmatpush.msra.mxu2 %v11805_v43 }
 0x3df   :  { %3341 = vmatpush.msra.mxu1 %v11818_v58  ;;  %v9172_v58 = vor.u32 %v9896_v37, %v9171_v30  ;;  %v9910_v37 = vld [vmem:[%s14388_s3 + $0x124] sm:$0xf] }
 0x3e0   :  { %3365 = vmatpush.msra.mxu2 %v11813_v60 }
 0x3e1   :  { %2863 = vmatmul.f32.vlgmr.msrb.gmra.mxu3 %v2802_v20  ;;  %2938 = vmatmul.f32.vlgmr.msrb.gmra.mxu0 %v2801_v45  ;;  %v9285_v20 = vld [vmem:[%s14388_s3 + $0x190] sm:$0xf0] }
 0x3e2   :  { %2957 = vmatpush.msrb.mxu3 %v11805_v43  ;;  %3093 = vmatpush.msrb.mxu0 %v11805_v43 }
 0x3e3   :  { %3237 = vmatmul.f32.vlgmr.msrb.gmra.mxu1 %v11834_v32 }
 0x3e4   :  { %2959 = vmatpush.msrb.mxu3 %v11813_v60  ;;  %3095 = vmatpush.msrb.mxu0 %v11813_v60 }
 0x3e5   :  { %3260 = vmatmul.f32.vlgmr.msrb.gmra.mxu2 %v11834_v32 }
 0x3e9   :  { %2915 = vmatmul.f32.vlgmr.msra.gmra.mxu3 %v2801_v45  ;;  %2996 = vmatmul.f32.vlgmr.msra.gmra.mxu0 %v2801_v45 }
 0x3ea   :  { %3068 = vmatpush.msra.mxu3 %v11828_v28  ;;  %3204 = vmatpush.msra.mxu0 %v11775_v33  ;;  %v9203_v33 = vld [vmem:[%s14388_s3 + $0xe0] sm:$0xf] }
 0x3eb   :  { %3344 = vmatmul.f32.vlgmr.msra.gmra.mxu1 %v3124_v36  ;;  %v9204_v19 = vor.u32 %v9904_v61, %v9203_v33  ;;  %v9123_v61 = vld [vmem:[%s14388_s3 + $0x40] sm:$0xf] }
 0x3ec   :  { %3072 = vmatpush.msra.mxu3 %v11832_v42  ;;  %3206 = vmatpush.msra.mxu0 %v11783_v15  ;;  %v9902_v15 = vld [vmem:[%s14388_s3 + $0xe4] sm:$0xf] }
 0x3ed   :  { %3369 = vmatmul.f32.vlgmr.msra.gmra.mxu2 %v3125_v62  ;;  %3830 = vmatpush.bf16.msrb.mxu1 %v9204_v19  ;;  %v9251_v19 = vld [vmem:[%s14388_s3 + $0x140] sm:$0xf] }
 0x3f1   :  { %2965 = vmatmul.f32.vlgmr.msrb.gmra.mxu3 %v2805_v59  ;;  %3097 = vmatmul.f32.vlgmr.msrb.gmra.mxu0 %v2801_v45 }
 0x3f2   :  { %3179 = vmatpush.msrb.mxu3 %v11781_v4  ;;  %3310 = vmatpush.msrb.mxu0 %v2987_v17  ;;  %v9936_v4 = vld [vmem:[%s14388_s3 + $0x1ec] sm:$0xf0]  ;;  %v9141_v17 = vld [vmem:[%s14388_s3 + $0x70] sm:$0xf0] }
 0x3f3   :  { %v9332_v48 = vor.u32 %v9936_v4, %v9331_v50  ;;  %3831 = vmatpush.bf16.msrb.mxu1 %v9188_v29  ;;  %v9884_v50 = vld [vmem:[%s14388_s3 + $0x4c] sm:$0xf0]  ;;  %v9107_v29 = vld [vmem:[%s14388_s3 + $0x20] sm:$0xf] }
 0x3f4   :  { %3182 = vmatpush.msrb.mxu3 %v11790_v22  ;;  %3316 = vmatpush.msrb.mxu0 %v2993_v63  ;;  %v9208_v22 = vor.u32 %v9902_v15, %v9205_v3  ;;  %v9918_v63 = vld [vmem:[%s14388_s3 + $0x164] sm:$0xf]  ;;  %v9124_v15 = vor.u32 %v9884_v50, %v9123_v61  ;;  %v9916_v3 = vld [vmem:[%s14388_s3 + $0x14c] sm:$0xf0]  ;;  %v9933_v61 = vld [vmem:[%s14388_s3 + $0x1d4] sm:$0xf0] }
 0x3f5   :  { %3843 = vmatpush.bf16.msrb.mxu2 %v9332_v48  ;;  %v9882_v48 = vld [vmem:[%s14388_s3 + $0x44] sm:$0xf]  ;;  %v9252_v10 = vor.u32 %v9916_v3, %v9251_v19  ;;  %v9899_v50 = vld [vmem:[%s14388_s3 + $0xcc] sm:$0xf]  ;;  %v9197_v19 = vld [vmem:[%s14388_s3 + $0xd8] sm:$0xf0] }
 0x3f6   :  { %v9200_v3 = vor.u32 %v9899_v50, %v9197_v19  ;;  %v9917_v50 = vld [vmem:[%s14388_s3 + $0x154] sm:$0xf0] }
 0x3f7   :  { %3832 = vmatpush.bf16.msrb.mxu1 %v9172_v58  ;;  %v9240_v58 = vor.u32 %v9910_v37, %v9237_v53  ;;  %v9163_v37 = vld [vmem:[%s14388_s3 + $0x88] sm:$0xf] }
 0x3f9   :  { %3074 = vmatmul.f32.vlgmr.msra.gmra.mxu3 %v2801_v45  ;;  %3210 = vmatmul.f32.vlgmr.msra.gmra.mxu0 %v3125_v62  ;;  %v9284_v45 = vor.u32 %v9924_v5, %v9283_v9  ;;  %v9886_v62 = vld [vmem:[%s14388_s3 + $0x64] sm:$0xf]  ;;  %v9221_v5 = vld [vmem:[%s14388_s3 + $0x110] sm:$0xf0] }
 0x3fa   :  { %3279 = vmatpush.msra.mxu3 %v11805_v43  ;;  %3415 = vmatpush.msra.mxu0 %v11805_v43  ;;  %v9898_v43 = vld [vmem:[%s14388_s3 + $0xc4] sm:$0xf]  ;;  %v9144_v24 = vor.u32 %v9886_v62, %v9141_v17  ;;  %v9341_v62 = vld [vmem:[%s14388_s3 + $0x1f8] sm:$0xf0]  ;;  %v9195_v17 = vld [vmem:[%s14388_s3 + $0xc8] sm:$0xf] }
 0x3fb   :  { %v9192_v38 = vor.u32 %v9898_v43, %v9189_v7  ;;  %3844 = vmatpush.bf16.msrb.mxu2 %v9316_v31  ;;  %3833 = vmatpush.bf16.msrb.mxu1 %v9156_v8  ;;  %v9235_v43 = vld [vmem:[%s14388_s3 + $0x120] sm:$0xf]  ;;  %v9108_v31 = vor.u32 %v9880_v54, %v9107_v29  ;;  %v9906_v8 = vld [vmem:[%s14388_s3 + $0x104] sm:$0xf]  ;;  %v9929_v54 = vld [vmem:[%s14388_s3 + $0x1b4] sm:$0xf0] }
 0x3fc   :  { %3281 = vmatpush.msra.mxu3 %v11813_v60  ;;  %3417 = vmatpush.msra.mxu0 %v11813_v60  ;;  %v9320_v60 = vor.u32 %v9930_v1, %v9317_v40  ;;  %v9878_v1 = vld [vmem:[%s14388_s3 + $0x24] sm:$0xf]  ;;  %v9109_v40 = vld [vmem:[%s14388_s3 + $0x30] sm:$0xf0] }
 0x3fd   :  { %v9112_v30 = vor.u32 %v9878_v1, %v9109_v40 }
 0x3ff   :  { %3845 = vmatpush.bf16.msrb.mxu2 %v9300_v46  ;;  %3834 = vmatpush.bf16.msrb.mxu1 %v9140_v11  ;;  %v9216_v11 = vor.u32 %v9903_v57, %v9213_v34  ;;  %v9921_v57 = vld [vmem:[%s14388_s3 + $0x174] sm:$0xf0]  ;;  %v9887_v34 = vld [vmem:[%s14388_s3 + $0x6c] sm:$0xf] }
 0x401   :  { %3185 = vmatmul.f32.vlgmr.msrb.gmra.mxu3 %v3124_v36  ;;  %3318 = vmatmul.f32.vlgmr.msrb.gmra.mxu0 %v11834_v32  ;;  %v9267_v36 = vld [vmem:[%s14388_s3 + $0x160] sm:$0xf] }
 0x402   :  { %3390 = vmatpush.msrb.mxu3 %v11828_v28  ;;  %3869 = vmatpush.bf16.msrb.mxu0 %v9336_v27  ;;  %v9157_v28 = vld [vmem:[%s14388_s3 + $0x90] sm:$0xf0]  ;;  %v9268_v59 = vor.u32 %v9920_v26, %v9267_v36  ;;  %v9914_v27 = vld [vmem:[%s14388_s3 + $0x144] sm:$0xf]  ;;  %v9935_v26 = vld [vmem:[%s14388_s3 + $0x1ec] sm:$0xf] }
 0x403   :  { %v9160_v6 = vor.u32 %v9890_v47, %v9157_v28  ;;  %3846 = vmatpush.bf16.msrb.mxu2 %v9284_v45  ;;  %3835 = vmatpush.bf16.msrb.mxu1 %v9124_v15  ;;  %v9256_v49 = vor.u32 %v9914_v27, %v9253_v56  ;;  %v9211_v47 = vld [vmem:[%s14388_s3 + $0xe8] sm:$0xf]  ;;  %v9224_v28 = vor.u32 %v9906_v8, %v9221_v5  ;;  %v9905_v45 = vld [vmem:[%s14388_s3 + $0xf4] sm:$0xf0] }
 0x404   :  { %3394 = vmatpush.msrb.mxu3 %v11832_v42  ;;  %v9922_v42 = vld [vmem:[%s14388_s3 + $0x184] sm:$0xf]  ;;  %v9179_v27 = vld [vmem:[%s14388_s3 + $0xa8] sm:$0xf]  ;;  %v9897_v56 = vld [vmem:[%s14388_s3 + $0xb4] sm:$0xf0] }
 0x405   :  { %v9180_v29 = vor.u32 %v9897_v56, %v9179_v27  ;;  %v9261_v56 = vld [vmem:[%s14388_s3 + $0x158] sm:$0xf0] }
 0x406   :  { %3870 = vmatpush.bf16.msrb.mxu0 %v9320_v60 }
 0x407   :  { %3847 = vmatpush.bf16.msrb.mxu2 %v9268_v59  ;;  %3836 = vmatpush.bf16.msrb.mxu1 %v9108_v31  ;;  %v9344_v59 = vor.u32 %v9935_v26, %v9341_v62  ;;  %v9181_v31 = vld [vmem:[%s14388_s3 + $0xb8] sm:$0xf0] }
 0x409   :  { %3287 = vmatmul.f32.vlgmr.msra.gmra.mxu3 %v3127_v39  ;;  %3419 = vmatmul.f32.vlgmr.msra.gmra.mxu0 %v11834_v32  ;;  %v9269_v39 = vld [vmem:[%s14388_s3 + $0x170] sm:$0xf0] }
 0x40a   :  { %3856 = vmatpush.bf16.msra.mxu3 %v9208_v22  ;;  %3871 = vmatpush.bf16.msrb.mxu0 %v9304_v21  ;;  %v9272_v33 = vor.u32 %v9918_v63, %v9269_v39  ;;  %v9125_v22 = vld [vmem:[%s14388_s3 + $0x50] sm:$0xf0]  ;;  %v9874_v21 = vld [vmem:[%s14388_s3 + $0x4] sm:$0xf]  ;;  %v9323_v63 = vld [vmem:[%s14388_s3 + $0x1c8] sm:$0xf] }
 0x40b   :  { %v9128_v51 = vor.u32 %v9882_v48, %v9125_v22  ;;  %3848 = vmatpush.bf16.msrb.mxu2 %v9252_v10  ;;  %v9096_v9 = vor.u32 %v9874_v21, %v9093_v52  ;;  %3837 = vmatpush.bf16.msrb.mxu1 %v9092_v2  ;;  %v9324_v15 = vor.u32 %v9933_v61, %v9323_v63  ;;  %v9931_v48 = vld [vmem:[%s14388_s3 + $0x1cc] sm:$0xf]  ;;  %v9325_v22 = vld [vmem:[%s14388_s3 + $0x1d8] sm:$0xf0]  ;;  %v9259_v61 = vld [vmem:[%s14388_s3 + $0x148] sm:$0xf] }
 0x40c   :  { %v9165_v2 = vld [vmem:[%s14388_s3 + $0x98] sm:$0xf0]  ;;  %v9292_v52 = vor.u32 %v9925_v23, %v9291_v0 }
 0x40d   :  { %v9168_v8 = vor.u32 %v9891_v25, %v9165_v2 }
 0x40e   :  { %3857 = vmatpush.bf16.msra.mxu3 %v9192_v38  ;;  %v9912_v38 = vld [vmem:[%s14388_s3 + $0x12c] sm:$0xf0] }
 0x40f   :  { %v9236_v60 = vor.u32 %v9912_v38, %v9235_v43  ;;  %v9895_v43 = vld [vmem:[%s14388_s3 + $0xac] sm:$0xf] }
 0x410   :  { %v9184_v40 = vor.u32 %v9895_v43, %v9181_v31 }
 0x411   :  { %3396 = vmatmul.f32.vlgmr.msrb.gmra.mxu3 %v11834_v32  ;;  %v9288_v32 = vor.u32 %v9922_v42, %v9285_v20  ;;  %3849 = vmatpush.bf16.msrb.mxu2 %v9236_v60  ;;  %v9937_v42 = vld [vmem:[%s14388_s3 + $0x1f4] sm:$0xf0]  ;;  %v9212_v20 = vor.u32 %v9905_v45, %v9211_v47  ;;  %v9927_v60 = vld [vmem:[%s14388_s3 + $0x1ac] sm:$0xf]  ;;  %v9147_v45 = vld [vmem:[%s14388_s3 + $0x68] sm:$0xf] }
 0x412   :  { %3858 = vmatpush.bf16.msra.mxu3 %v9176_v35 }
 0x413   :  { %3872 = vmatpush.bf16.msrb.mxu0 %v9288_v32  ;;  %3882 = vmatpush.bf16.msra.mxu1 %v9212_v20 }
 0x415   :  { %3850 = vmatpush.bf16.msrb.mxu2 %v9220_v13  ;;  %v9293_v13 = vld [vmem:[%s14388_s3 + $0x198] sm:$0xf0] }
 0x416   :  { %3859 = vmatpush.bf16.msra.mxu3 %v9160_v6  ;;  %v9339_v6 = vld [vmem:[%s14388_s3 + $0x1e8] sm:$0xf]  ;;  %v9296_v5 = vor.u32 %v9923_v44, %v9293_v13  ;;  %v9877_v44 = vld [vmem:[%s14388_s3 + $0x14] sm:$0xf0] }
 0x417   :  { %3873 = vmatpush.bf16.msrb.mxu0 %v9272_v33  ;;  %v9340_v32 = vor.u32 %v9937_v42, %v9339_v6  ;;  %v9889_v6 = vld [vmem:[%s14388_s3 + $0x74] sm:$0xf0]  ;;  %v9275_v42 = vld [vmem:[%s14388_s3 + $0x168] sm:$0xf] }
 0x418   :  { %v9276_v26 = vor.u32 %v9921_v57, %v9275_v42 }
 0x419   :  { %3895 = vmatpush.bf16.msra.mxu2 %v9340_v32  ;;  %v9148_v32 = vor.u32 %v9889_v6, %v9147_v45  ;;  %v9907_v45 = vld [vmem:[%s14388_s3 + $0x10c] sm:$0xf]  ;;  %v9229_v6 = vld [vmem:[%s14388_s3 + $0x118] sm:$0xf0] }
 0x41a   :  { %3860 = vmatpush.bf16.msra.mxu3 %v9144_v24  ;;  %v9901_v24 = vld [vmem:[%s14388_s3 + $0xd4] sm:$0xf0] }
 0x41b   :  { %3874 = vmatpush.bf16.msrb.mxu0 %v9256_v49  ;;  %v9196_v33 = vor.u32 %v9901_v24, %v9195_v17  ;;  %v9307_v49 = vld [vmem:[%s14388_s3 + $0x1a8] sm:$0xf] }
 0x41c   :  { %v9308_v1 = vor.u32 %v9929_v54, %v9307_v49  ;;  %v9131_v17 = vld [vmem:[%s14388_s3 + $0x48] sm:$0xf]  ;;  %v9879_v54 = vld [vmem:[%s14388_s3 + $0x2c] sm:$0xf] }
 0x41d   :  { %3883 = vmatpush.bf16.msra.mxu1 %v9196_v33  ;;  %3896 = vmatpush.bf16.msra.mxu2 %v9324_v15  ;;  %v9885_v33 = vld [vmem:[%s14388_s3 + $0x54] sm:$0xf0]  ;;  %v9260_v15 = vor.u32 %v9917_v50, %v9259_v61  ;;  %v9115_v49 = vld [vmem:[%s14388_s3 + $0x28] sm:$0xf]  ;;  %v3998_v61 = vld [vmem:[%s14396_s11 + $0x60] sm:$0xff] }
 0x41e   :  { %3861 = vmatpush.bf16.msra.mxu3 %v9128_v51  ;;  %v9328_v51 = vor.u32 %v9931_v48, %v9325_v22  ;;  %v9132_v19 = vor.u32 %v9885_v33, %v9131_v17  ;;  %v3997_v50 = vld [vmem:[%s14396_s11 + $0x58] sm:$0xff] }
 0x41f   :  { %3875 = vmatpush.bf16.msrb.mxu0 %v9240_v58  ;;  %v9893_v58 = vld [vmem:[%s14388_s3 + $0x94] sm:$0xf0] }
 0x420   :  { %v9164_v21 = vor.u32 %v9893_v58, %v9163_v37  ;;  %v9099_v58 = vld [vmem:[%s14388_s3 + $0x8] sm:$0xf] }
 0x421   :  { %3884 = vmatpush.bf16.msra.mxu1 %v9180_v29  ;;  %3897 = vmatpush.bf16.msra.mxu2 %v9308_v1  ;;  %v9881_v29 = vld [vmem:[%s14388_s3 + $0x34] sm:$0xf0]  ;;  %v9117_v1 = vld [vmem:[%s14388_s3 + $0x38] sm:$0xf0] }
 0x422   :  { %3862 = vmatpush.bf16.msra.mxu3 %v9112_v30  ;;  %v9309_v30 = vld [vmem:[%s14388_s3 + $0x1b8] sm:$0xf0]  ;;  %v9116_v37 = vor.u32 %v9881_v29, %v9115_v49  ;;  %v9120_v2 = vor.u32 %v9879_v54, %v9117_v1  ;;  %v12346_v49 = vand.u32 4294901760, %v3997_v50 }
 0x423   :  { %3876 = vmatpush.bf16.msrb.mxu0 %v9224_v28  ;;  %v9312_v53 = vor.u32 %v9927_v60, %v9309_v30  ;;  %v9245_v60 = vld [vmem:[%s14388_s3 + $0x138] sm:$0xf0] }
 0x424   :  { %14995 = vst [vmem:[#allocation9_spill] sm:$0xff] %v12346_v49 }
 0x425   :  { %3885 = vmatpush.bf16.msra.mxu1 %v9164_v21  ;;  %3898 = vmatpush.bf16.msra.mxu2 %v9292_v52  ;;  %v9227_v21 = vld [vmem:[%s14388_s3 + $0x108] sm:$0xf]  ;;  %v9909_v52 = vld [vmem:[%s14388_s3 + $0x114] sm:$0xf0] }
 0x426   :  { %3863 = vmatpush.bf16.msra.mxu3 %v9096_v9 }
 0x427   :  { %3921 = vmatpush.bf16.msra.mxu0 %v9344_v59 }
 0x429   :  { %3886 = vmatpush.bf16.msra.mxu1 %v9148_v32  ;;  %3899 = vmatpush.bf16.msra.mxu2 %v9276_v26  ;;  %v9228_v32 = vor.u32 %v9909_v52, %v9227_v21  ;;  %v15006_v21 = vld [vmem:[#allocation52_spill] sm:$0xff] }
 0x42a   :  { %3908 = vmatpush.bf16.msrb.mxu3 %v9216_v11  ;;  %v9149_v11 = vld [vmem:[%s14388_s3 + $0x78] sm:$0xf0] }
 0x42b   :  { %3922 = vmatpush.bf16.msra.mxu0 %v9328_v51  ;;  %v9152_v62 = vor.u32 %v9887_v34, %v9149_v11 }
 0x42d   :  { %3887 = vmatpush.bf16.msra.mxu1 %v9132_v19  ;;  %3900 = vmatpush.bf16.msra.mxu2 %v9260_v15 }
 0x42e   :  { %3909 = vmatpush.bf16.msrb.mxu3 %v9200_v3  ;;  %v9915_v3 = vld [vmem:[%s14388_s3 + $0x14c] sm:$0xf] }
 0x42f   :  { %3923 = vmatpush.bf16.msra.mxu0 %v9312_v53 }
 0x431   :  { %3888 = vmatpush.bf16.msra.mxu1 %v9116_v37 }
 0x432   :  { %3910 = vmatpush.bf16.msrb.mxu3 %v9184_v40  ;;  %v9911_v40 = vld [vmem:[%s14388_s3 + $0x12c] sm:$0xf] }
 0x433   :  { %3924 = vmatpush.bf16.msra.mxu0 %v9296_v5 }
 0x436   :  { %3911 = vmatpush.bf16.msrb.mxu3 %v9168_v8  ;;  %v9248_v8 = vor.u32 %v9911_v40, %v9245_v60 }
 0x43a   :  { %3912 = vmatpush.bf16.msrb.mxu3 %v9152_v62 }
 0x44e   :  { %v11875_v14 = vpop.f32.mrf.mxu0 }
 0x450   :  { %v12042_v7 = vpop.f32.mrf.mxu1 }
 0x456   :  { %v11901_v16 = vpop.f32.mrf.mxu0 }
 0x458   :  { %v12068_v46 = vpop.f32.mrf.mxu2  ;;  %v12122_v39 = vpop.f32.mrf.mxu1 }
 0x45c   :  { %v11912_v55 = vpop.f32.mrf.mxu3 }
 0x45d   :  { %v2839_v59 = vadd.f32 %v11875_v14, %v11912_v55  ;;  %v9883_v14 = vld [vmem:[%s14388_s3 + $0x4c] sm:$0xf]  ;;  %v9133_v55 = vld [vmem:[%s14388_s3 + $0x58] sm:$0xf0] }
 0x45e   :  { %v11962_v12 = vpop.f32.mrf.mxu0  ;;  %v9136_v27 = vor.u32 %v9883_v14, %v9133_v55  ;;  %v3423_v55 = vld [vmem:[%s14395_s10] sm:$0x3] }
 0x460   :  { %v3160_v38 = vpop.f32.mrf.mxu2  ;;  %v12191_v47 = vpop.f32.mrf.mxu1  ;;  %3913 = vmatpush.bf16.msrb.mxu3 %v9136_v27  ;;  %v3996_v27 = vld [vmem:[%s14396_s11 + $0x50] sm:$0xff] }
 0x461   :  { %v3161_v48 = vadd.f32 %v3160_v38, %v12122_v39  ;;  %v9264_v39 = vor.u32 %v9915_v3, %v9261_v56 }
 0x464   :  { %v11964_v41 = vpop.f32.mrf.mxu3  ;;  %3914 = vmatpush.bf16.msrb.mxu3 %v9120_v2 }
 0x465   :  { %v2865_v22 = vadd.f32 %v11964_v41, %v2839_v59  ;;  %v9243_v41 = vld [vmem:[%s14388_s3 + $0x128] sm:$0xf]  ;;  %v4001_v59 = vld [vmem:[%s14396_s11 + $0x78] sm:$0xff] }
 0x466   :  { %v12031_v18 = vpop.f32.mrf.mxu0 }
 0x467   :  { %v2890_v23 = vadd.f32 %v11901_v16, %v2865_v22  ;;  %v9875_v16 = vld [vmem:[%s14388_s3 + $0xc] sm:$0xf] }
 0x468   :  { %v12224_v24 = vpop.f32.mrf.mxu2  ;;  %v3345_v0 = vpop.f32.mrf.mxu1 }
 0x46c   :  { %v12014_v4 = vpop.f32.mrf.mxu3 }
 0x46d   :  { %v2917_v5 = vadd.f32 %v12014_v4, %v2890_v23 }
 0x46e   :  { %v12105_v36 = vpop.f32.mrf.mxu0 }
 0x46f   :  { %v2940_v11 = vadd.f32 %v11962_v12, %v2917_v5  ;;  %v4000_v12 = vld [vmem:[%s14396_s11 + $0x70] sm:$0xff] }
 0x470   :  { %v3370_v57 = vpop.f32.mrf.mxu2 }
 0x471   :  { %v3431_v19 = vperm.slane %v2940_v11, 0 }
 0x474   :  { %v12070_v35 = vpop.f32.mrf.mxu3 }
 0x475   :  { %v2998_v20 = vadd.f32 %v12031_v18, %v12070_v35  ;;  %v9919_v18 = vld [vmem:[%s14388_s3 + $0x16c] sm:$0xf]  ;;  %v9277_v35 = vld [vmem:[%s14388_s3 + $0x178] sm:$0xf0] }
 0x476   :  { %v12189_v9 = vpop.f32.mrf.mxu0  ;;  %v9280_v63 = vor.u32 %v9919_v18, %v9277_v35 }
 0x477   :  { %v3024_v51 = vadd.f32 %v12042_v7, %v2998_v20  ;;  %v9913_v7 = vld [vmem:[%s14388_s3 + $0x134] sm:$0xf0]  ;;  %v9100_v20 = vor.u32 %v9877_v44, %v9099_v58  ;;  %v3994_v44 = vld [vmem:[%s14396_s11 + $0x40] sm:$0xff] }
 0x478   :  { %3925 = vmatpush.bf16.msra.mxu0 %v9280_v63  ;;  %v9244_v53 = vor.u32 %v9913_v7, %v9243_v41  ;;  %v12317_v63 = vand.u32 4294901760, %v4000_v12  ;;  %v3995_v41 = vld [vmem:[%s14396_s11 + $0x48] sm:$0xff] }
 0x479   :  { %v3049_v25 = vadd.f32 %v12068_v46, %v3024_v51  ;;  %v9101_v46 = vld [vmem:[%s14388_s3 + $0x18] sm:$0xf0]  ;;  %3889 = vmatpush.bf16.msra.mxu1 %v9100_v20  ;;  %v12337_v51 = vand.u32 4294901760, %v3998_v61  ;;  %v14997_v7 = vld [vmem:[#allocation97_spill] sm:$0xff]  ;;  %v12370_v58 = vand.u32 4294901760, %v3995_v41 }
 0x47a   :  { %3901 = vmatpush.bf16.msra.mxu2 %v9244_v53  ;;  %v9104_v34 = vor.u32 %v9875_v16, %v9101_v46  ;;  %14989 = vst [vmem:[#allocation15_spill] sm:$0xff] %v12317_v63  ;;  %v12335_v22 = vsub.f32 %v4000_v12, %v12317_v63  ;;  %v3433_v54 = vmul.f32 %v3431_v19, %v14997_v7 }
 0x47b   :  { %14993 = vst [vmem:[#allocation36_spill] sm:$0xff] %v12337_v51  ;;  %v12368_v53 = vsub.f32 %v3997_v50, %v12346_v49 }
 0x47c   :  { %v12139_v10 = vpop.f32.mrf.mxu3  ;;  %3926 = vmatpush.bf16.msra.mxu0 %v9264_v39  ;;  %3915 = vmatpush.bf16.msrb.mxu3 %v9104_v34  ;;  %14992 = vst [vmem:[#allocation8_spill] sm:$0xff] %v12335_v22  ;;  %v12359_v60 = vand.u32 4294901760, %v12335_v22 }
 0x47d   :  { %15003 = vst [vmem:[#allocation12_spill] sm:$0xff] %v12368_v53  ;;  %v12390_v5 = vand.u32 4294901760, %v12368_v53 }
 0x47e   :  { %v3319_v43 = vpop.f32.mrf.mxu0  ;;  %3902 = vmatpush.bf16.msra.mxu2 %v9228_v32  ;;  %15000 = vst [vmem:[#allocation11_spill] sm:$0xff] %v12359_v60  ;;  %v12404_v32 = vand.u32 4294901760, %v3994_v44 }
 0x47f   :  { %15004 = vst [vmem:[#allocation10_spill] sm:$0xff] %v12370_v58 }
 0x480   :  { %3927 = vmatpush.bf16.msra.mxu0 %v9248_v8  ;;  %v4100_v8 = vsub.f32 %v12335_v22, %v12359_v60  ;;  %15008 = vst [vmem:[#allocation55_spill] sm:$0xff] %v12390_v5 }
 0x481   :  { %15011 = vst [vmem:[#allocation59_spill] sm:$0xff] %v12404_v32 }
 0x482   :  { %v12411_v34 = vand.u32 4294901760, %v4100_v8 }
 0x484   :  { %v3186_v28 = vpop.f32.mrf.mxu3  ;;  %15012 = vst [vmem:[#allocation33_spill] sm:$0xff] %v12411_v34 }
 0x485   :  { %v3187_v31 = vadd.f32 %v3186_v28, %v3161_v48  ;;  %v3076_v28 = vadd.f32 %v12139_v10, %v3049_v25  ;;  %v9232_v10 = vor.u32 %v9907_v45, %v9229_v6  ;;  %v3993_v45 = vld [vmem:[%s14396_s11 + $0x38] sm:$0xff] }
 0x486   :  { %v12418_v11 = vand.u32 4294901760, %v3993_v45 }
 0x487   :  { %v3212_v42 = vadd.f32 %v12189_v9, %v3187_v31  ;;  %v3099_v62 = vadd.f32 %v12105_v36, %v3076_v28  ;;  %v3420_v9 = vpop.f32.mrf.mxu0  ;;  %3928 = vmatpush.bf16.msra.mxu0 %v9232_v10  ;;  %v3999_v36 = vld [vmem:[%s14396_s11 + $0x68] sm:$0xff]  ;;  %v12393_v28 = vsub.f32 %v3995_v41, %v12370_v58 }
 0x488   :  { %v12319_v33 = vand.u32 4294901760, %v3999_v36  ;;  %15014 = vst [vmem:[#allocation61_spill] sm:$0xff] %v12418_v11 }
 0x489   :  { %v3239_v18 = vadd.f32 %v12191_v47, %v3212_v42  ;;  %v12315_v47 = vand.u32 4294901760, %v4001_v59  ;;  %v3432_v15 = vperm.slane %v3099_v62, 0  ;;  %15009 = vst [vmem:[#allocation27_spill] sm:$0xff] %v12393_v28  ;;  %v3991_v62 = vld [vmem:[%s14396_s11 + $0x28] sm:$0xff] }
 0x48a   :  { %14990 = vst [vmem:[#allocation32_spill] sm:$0xff] %v12319_v33  ;;  %v12453_v50 = vand.u32 4294901760, %v3991_v62 }
 0x48b   :  { %14988 = vst [vmem:[#allocation30_spill] sm:$0xff] %v12315_v47  ;;  %v3262_v14 = vadd.f32 %v12224_v24, %v3239_v18  ;;  %v12332_v48 = vsub.f32 %v4001_v59, %v12315_v47  ;;  %v12344_v24 = vsub.f32 %v3999_v36, %v12319_v33  ;;  %v3990_v59 = vld [vmem:[%s14396_s11 + $0x20] sm:$0xff] }
 0x48c   :  { %v3288_v38 = vpop.f32.mrf.mxu3  ;;  %15021 = vst [vmem:[#allocation43_spill] sm:$0xff] %v12453_v50  ;;  %v12457_v19 = vand.u32 4294901760, %v3990_v59  ;;  %v12487_v7 = vsub.f32 %v3991_v62, %v12453_v50  ;;  %v4017_v62 = vld [vmem:[%s14396_s11 + $0xf8] sm:$0xff] }
 0x48d   :  { %v3320_v30 = vadd.f32 %v3319_v43, %v3288_v38  ;;  %14991 = vst [vmem:[#allocation16_spill] sm:$0xff] %v12332_v48  ;;  %v12349_v39 = vand.u32 4294901760, %v12332_v48  ;;  %v14998_v43 = vld [vmem:[#allocation98_spill] sm:$0xff]  ;;  %v12356_v38 = vand.u32 4294901760, %v3996_v27  ;;  %v12365_v37 = vand.u32 4294901760, %v12344_v24 }
 0x48e   :  { %14994 = vst [vmem:[#allocation17_spill] sm:$0xff] %v12344_v24  ;;  %v3434_v31 = vmul.f32 %v3432_v15, %v14998_v43  ;;  %v3989_v15 = vld [vmem:[%s14396_s11 + $0x18] sm:$0xff]  ;;  %v12494_v43 = vsub.f32 %v3990_v59, %v12457_v19 }
 0x48f   :  { %v3346_v13 = vadd.f32 %v3345_v0, %v3320_v30  ;;  %14996 = vst [vmem:[#allocation45_spill] sm:$0xff] %v12349_v39  ;;  %v12362_v30 = vsub.f32 %v3998_v61, %v12337_v51  ;;  %v4094_v25 = vsub.f32 %v12332_v48, %v12349_v39  ;;  %v12375_v2 = vsub.f32 %v3996_v27, %v12356_v38 }
 0x490   :  { %14999 = vst [vmem:[#allocation19_spill] sm:$0xff] %v12356_v38  ;;  %v4106_v46 = vsub.f32 %v12344_v24, %v12365_v37  ;;  %v12451_v61 = vsub.f32 %v3993_v45, %v12418_v11 }
 0x491   :  { %v3371_v4 = vadd.f32 %v3370_v57, %v3346_v13  ;;  %15001 = vst [vmem:[#allocation49_spill] sm:$0xff] %v12362_v30  ;;  %v12385_v16 = vand.u32 4294901760, %v12362_v30  ;;  %v12402_v20 = vand.u32 4294901760, %v4094_v25  ;;  %v3992_v57 = vld [vmem:[%s14396_s11 + $0x30] sm:$0xff]  ;;  %v12416_v10 = vand.u32 4294901760, %v12375_v2  ;;  %v3986_v25 = vld [vmem:[%s14396_s11] sm:$0xff] }
 0x492   :  { %15002 = vst [vmem:[#allocation20_spill] sm:$0xff] %v12365_v37  ;;  %v12429_v18 = vand.u32 4294901760, %v4106_v46  ;;  %v12484_v41 = vand.u32 4294901760, %v12451_v61  ;;  %v12530_v46 = vand.u32 4294901760, %v12494_v43 }
 0x493   :  { %15005 = vst [vmem:[#allocation21_spill] sm:$0xff] %v12375_v2  ;;  %v4124_v36 = vsub.f32 %v12375_v2, %v12416_v10 }
 0x494   :  { %v3397_v26 = vpop.f32.mrf.mxu3  ;;  %15007 = vst [vmem:[#allocation13_spill] sm:$0xff] %v12385_v16 }
 0x495   :  { %v3398_v35 = vadd.f32 %v3397_v26, %v3371_v4  ;;  %15010 = vst [vmem:[#allocation14_spill] sm:$0xff] %v12402_v20  ;;  %v4112_v4 = vsub.f32 %v12362_v30, %v12385_v16  ;;  %v4118_v26 = vsub.f32 %v12368_v53, %v12390_v5 }
 0x496   :  { %15013 = vst [vmem:[#allocation18_spill] sm:$0xff] %v12416_v10 }
 0x497   :  { %v3421_v17 = vadd.f32 %v3420_v9, %v3398_v35  ;;  %15015 = vst [vmem:[#allocation40_spill] sm:$0xff] %v12429_v18  ;;  %v12432_v35 = vand.u32 4294901760, %v12393_v28  ;;  %v12435_v9 = vsub.f32 %v3994_v44, %v12404_v32  ;;  %v12446_v12 = vand.u32 4294901760, %v4112_v4 }
 0x498   :  { %15020 = vst [vmem:[#allocation66_spill] sm:$0xff] %v12451_v61  ;;  %v4142_v44 = vsub.f32 %v12451_v61, %v12484_v41 }
 0x499   :  { %v3426_v3 = vrot.slane %v3421_v17, 7  ;;  %15016 = vst [vmem:[#allocation28_spill] sm:$0xff] %v12432_v35  ;;  %v12437_v17 = vand.u32 4294901760, %v3992_v57 }
 0x49a   :  { %15017 = vst [vmem:[#allocation64_spill] sm:$0xff] %v12435_v9  ;;  %v12550_v59 = vand.u32 4294901760, %v4142_v44 }
 0x49b   :  { %v3428_v56 = vsel %vm3427_vm9, %v3262_v14, %v3426_v3  ;;  %15018 = vst [vmem:[#allocation41_spill] sm:$0xff] %v12437_v17  ;;  %v12464_v14 = vand.u32 4294901760, %v4118_v26  ;;  %v12469_v3 = vand.u32 4294901760, %v12435_v9  ;;  %v12472_v27 = vsub.f32 %v3992_v57, %v12437_v17 }
 0x49c   :  { %v3430_v29 = vsub.f32 %v3423_v55, %v3428_v56  ;;  %15019 = vst [vmem:[#allocation34_spill] sm:$0xff] %v12446_v12  ;;  %v4130_v55 = vsub.f32 %v12393_v28, %v12432_v35  ;;  %v3988_v56 = vld [vmem:[%s14396_s11 + $0x10] sm:$0xff]  ;;  %v12541_v26 = vand.u32 4294901760, %v3986_v25 }
 0x49d   :  { %15022 = vst [vmem:[#allocation35_spill] sm:$0xff] %v12457_v19 }
 0x49e   :  { %v3436_v1 = vperm.slane %v3430_v29, 0  ;;  %v3437_v40 = vperm.slane %v3430_v29, 1  ;;  %15023 = vst [vmem:[#allocation68_spill] sm:$0xff] %v12464_v14  ;;  %v12481_v29 = vand.u32 4294901760, %v4124_v36 }
 0x49f   :  { %15024 = vst [vmem:[#allocation44_spill] sm:$0xff] %v12469_v3 }
 0x4a0   :  { %v3440_v0 = vadd.f32 %v3436_v1, %v3433_v54  ;;  %v3441_v23 = vadd.f32 %v3437_v40, %v3434_v31  ;;  %15025 = vst [vmem:[#allocation37_spill] sm:$0xff] %v12472_v27  ;;  %v12489_v54 = vand.u32 4294901760, %v3989_v15  ;;  %v3987_v31 = vld [vmem:[%s14396_s11 + $0x8] sm:$0xff]  ;;  %v12501_v1 = vand.u32 4294901760, %v4130_v55 }
 0x4a1   :  { %15026 = vst [vmem:[#allocation69_spill] sm:$0xff] %v12481_v29  ;;  %v4136_v40 = vsub.f32 %v12435_v9, %v12469_v3  ;;  %v12525_v8 = vand.u32 4294901760, %v3987_v31 }
 0x4a2   :  { %v3442_v52 = vmul.f32 %v15006_v21, %v3440_v0  ;;  %v3443_v13 = vmul.f32 %v15006_v21, %v3441_v23  ;;  %15027 = vst [vmem:[#allocation51_spill] sm:$0xff] %v12484_v41  ;;  %v12506_v0 = vand.u32 4294901760, %v12472_v27  ;;  %v12508_v23 = vand.u32 4294901760, %v3988_v56 }
 0x4a3   :  { %15028 = vst [vmem:[#allocation38_spill] sm:$0xff] %v12487_v7  ;;  %v12533_v45 = vand.u32 4294901760, %v4136_v40  ;;  %v12558_v55 = vsub.f32 %v3987_v31, %v12525_v8  ;;  %v4016_v40 = vld [vmem:[%s14396_s11 + $0xf0] sm:$0xff] }
 0x4a4   :  { %v12398_v6 = vpack.c.bf16 %v3442_v52, %v3442_v52  ;;  %v12400_v42 = vpack.c.bf16 %v3443_v13, %v3443_v13  ;;  %15029 = vst [vmem:[#allocation71_spill] sm:$0xff] %v12489_v54  ;;  %v12520_v52 = vand.u32 4294901760, %v12487_v7  ;;  %v12523_v13 = vsub.f32 %v3989_v15, %v12489_v54 }
 0x4a5   :  { %15030 = vst [vmem:[#allocation56_spill] sm:$0xff] %v12494_v43  ;;  %v4148_v57 = vsub.f32 %v12472_v27, %v12506_v0  ;;  %v12539_v4 = vsub.f32 %v3988_v56, %v12508_v23  ;;  %v4160_v56 = vsub.f32 %v12494_v43, %v12530_v46 }
 0x4a6   :  { %3838 = vmatmul.bf16.vlgmr.msrb.gmra.mxu1 %v12398_v6  ;;  %3851 = vmatmul.bf16.vlgmr.msrb.gmra.mxu2 %v12400_v42  ;;  %15031 = vst [vmem:[#allocation42_spill] sm:$0xff] %v12501_v1  ;;  %v4154_v36 = vsub.f32 %v12487_v7, %v12520_v52  ;;  %v12555_v15 = vand.u32 4294901760, %v12523_v13 }
 0x4a7   :  { %3864 = vmatmul.bf16.vlgmr.msra.gmra.mxu3 %v12398_v6  ;;  %3877 = vmatmul.bf16.vlgmr.msrb.gmra.mxu0 %v12400_v42  ;;  %15032 = vst [vmem:[#allocation73_spill] sm:$0xff] %v12506_v0  ;;  %v12569_v44 = vand.u32 4294901760, %v4148_v57  ;;  %v12572_v31 = vand.u32 4294901760, %v12539_v4 }
 0x4a8   :  { %4096 = vmatpush.msrb.mxu2 %v12402_v20  ;;  %4194 = vmatpush.msra.mxu3 %v12332_v48  ;;  %15033 = vst [vmem:[#allocation60_spill] sm:$0xff] %v12508_v23  ;;  %v12583_v21 = vand.u32 4294901760, %v4154_v36  ;;  %v4166_v57 = vsub.f32 %v12523_v13, %v12555_v15 }
 0x4a9   :  { %4247 = vmatpush.msrb.mxu0 %v12315_v47  ;;  %4051 = vmatpush.msrb.mxu1 %v12315_v47  ;;  %15034 = vst [vmem:[#allocation48_spill] sm:$0xff] %v12520_v52  ;;  %v4172_v36 = vsub.f32 %v12539_v4, %v12572_v31 }
 0x4aa   :  { %4102 = vmatpush.msrb.mxu2 %v12411_v34  ;;  %4197 = vmatpush.msra.mxu3 %v12335_v22  ;;  %15035 = vst [vmem:[#allocation63_spill] sm:$0xff] %v12523_v13 }
 0x4ab   :  { %4249 = vmatpush.msrb.mxu0 %v12317_v63  ;;  %4053 = vmatpush.msrb.mxu1 %v12317_v63  ;;  %15036 = vst [vmem:[#allocation54_spill] sm:$0xff] %v12525_v8 }
 0x4ac   :  { %4108 = vmatpush.msrb.mxu2 %v12429_v18  ;;  %4200 = vmatpush.msra.mxu3 %v12344_v24  ;;  %15037 = vst [vmem:[#allocation58_spill] sm:$0xff] %v12530_v46 }
 0x4ad   :  { %4251 = vmatpush.msrb.mxu0 %v12319_v33  ;;  %4055 = vmatpush.msrb.mxu1 %v12319_v33  ;;  %15038 = vst [vmem:[#allocation70_spill] sm:$0xff] %v12533_v45 }
 0x4ae   :  { %4114 = vmatpush.msrb.mxu2 %v12446_v12  ;;  %4203 = vmatpush.msra.mxu3 %v12362_v30  ;;  %15039 = vst [vmem:[#allocation72_spill] sm:$0xff] %v12539_v4 }
 0x4af   :  { %4253 = vmatpush.msrb.mxu0 %v12337_v51  ;;  %4057 = vmatpush.msrb.mxu1 %v12337_v51  ;;  %15040 = vst [vmem:[#allocation22_spill] sm:$0xff] %v12541_v26 }
 0x4b0   :  { %4120 = vmatpush.msrb.mxu2 %v12464_v14  ;;  %4206 = vmatpush.msra.mxu3 %v12368_v53  ;;  %15041 = vst [vmem:[#allocation74_spill] sm:$0xff] %v12550_v59 }
 0x4b1   :  { %4255 = vmatpush.msrb.mxu0 %v12346_v49  ;;  %4059 = vmatpush.msrb.mxu1 %v12346_v49  ;;  %15042 = vst [vmem:[#allocation23_spill] sm:$0xff] %v12555_v15 }
 0x4b2   :  { %4126 = vmatpush.msrb.mxu2 %v12481_v29  ;;  %4209 = vmatpush.msra.mxu3 %v12375_v2  ;;  %15043 = vst [vmem:[#allocation75_spill] sm:$0xff] %v12558_v55 }
 0x4b3   :  { %4257 = vmatpush.msrb.mxu0 %v12356_v38  ;;  %4061 = vmatpush.msrb.mxu1 %v12356_v38  ;;  %15044 = vst [vmem:[#allocation24_spill] sm:$0xff] %v12569_v44 }
 0x4b4   :  { %4132 = vmatpush.msrb.mxu2 %v12501_v1  ;;  %4212 = vmatpush.msra.mxu3 %v12393_v28  ;;  %15045 = vst [vmem:[#allocation76_spill] sm:$0xff] %v12572_v31 }
 0x4b5   :  { %4259 = vmatpush.msrb.mxu0 %v12370_v58  ;;  %4063 = vmatpush.msrb.mxu1 %v12370_v58  ;;  %15048 = vst [vmem:[#allocation26_spill] sm:$0xff] %v12583_v21 }
 0x4b6   :  { %3890 = vmatmul.bf16.vlgmr.msra.gmra.mxu1 %v12398_v6  ;;  %3903 = vmatmul.bf16.vlgmr.msra.gmra.mxu2 %v12400_v42 }
 0x4b7   :  { %3916 = vmatmul.bf16.vlgmr.msrb.gmra.mxu3 %v12398_v6  ;;  %3929 = vmatmul.bf16.vlgmr.msra.gmra.mxu0 %v12400_v42  ;;  %v12575_v6 = vsub.f32 %v3986_v25, %v12541_v26  ;;  %v12577_v42 = vand.u32 4294901760, %v4017_v62  ;;  %v12590_v25 = vand.u32 4294901760, %v4016_v40 }
 0x4b8   :  { %4138 = vmatpush.msrb.mxu2 %v12533_v45  ;;  %4215 = vmatpush.msra.mxu3 %v12435_v9  ;;  %v12588_v9 = vand.u32 4294901760, %v12558_v55  ;;  %v4003_v45 = vld [vmem:[%s14396_s11 + $0x88] sm:$0xff] }
 0x4b9   :  { %15046 = vst [vmem:[#allocation25_spill] sm:$0xff] %v12575_v6  ;;  %4261 = vmatpush.msrb.mxu0 %v12404_v32  ;;  %4065 = vmatpush.msrb.mxu1 %v12404_v32  ;;  %v12604_v28 = vsub.f32 %v4017_v62, %v12577_v42  ;;  %v12621_v62 = vand.u32 4294901760, %v4172_v36 }
 0x4ba   :  { %15047 = vst [vmem:[#allocation77_spill] sm:$0xff] %v12577_v42  ;;  %4144 = vmatpush.msrb.mxu2 %v12550_v59  ;;  %4218 = vmatpush.msra.mxu3 %v12451_v61  ;;  %v12596_v59 = vand.u32 4294901760, %v4160_v56  ;;  %v12601_v61 = vand.u32 4294901760, %v12575_v6  ;;  %v4178_v56 = vsub.f32 %v12558_v55, %v12588_v9 }
 0x4bb   :  { %15049 = vst [vmem:[#allocation78_spill] sm:$0xff] %v12588_v9  ;;  %4263 = vmatpush.msrb.mxu0 %v12418_v11  ;;  %4067 = vmatpush.msrb.mxu1 %v12418_v11 }
 0x4bc   :  { %15050 = vst [vmem:[#allocation29_spill] sm:$0xff] %v12590_v25  ;;  %4150 = vmatpush.msrb.mxu2 %v12569_v44  ;;  %4221 = vmatpush.msra.mxu3 %v12472_v27  ;;  %v12610_v27 = vand.u32 4294901760, %v4166_v57  ;;  %v12615_v44 = vsub.f32 %v4016_v40, %v12590_v25  ;;  %v4184_v57 = vsub.f32 %v12575_v6, %v12601_v61  ;;  %v12632_v40 = vand.u32 4294901760, %v4178_v56 }
 0x4bd   :  { %15051 = vst [vmem:[#allocation79_spill] sm:$0xff] %v12596_v59  ;;  %4265 = vmatpush.msrb.mxu0 %v12437_v17  ;;  %4069 = vmatpush.msrb.mxu1 %v12437_v17 }
 0x4be   :  { %15052 = vst [vmem:[#allocation31_spill] sm:$0xff] %v12601_v61  ;;  %4156 = vmatpush.msrb.mxu2 %v12583_v21  ;;  %4224 = vmatpush.msra.mxu3 %v12487_v7  ;;  %v12626_v7 = vand.u32 4294901760, %v12604_v28  ;;  %v12641_v36 = vand.u32 4294901760, %v4184_v57 }
 0x4bf   :  { %15053 = vst [vmem:[#allocation81_spill] sm:$0xff] %v12604_v28  ;;  %4267 = vmatpush.msrb.mxu0 %v12453_v50  ;;  %4071 = vmatpush.msrb.mxu1 %v12453_v50 }
 0x4c0   :  { %15054 = vst [vmem:[#allocation39_spill] sm:$0xff] %v12610_v27  ;;  %4162 = vmatpush.msrb.mxu2 %v12596_v59  ;;  %4227 = vmatpush.msra.mxu3 %v12494_v43  ;;  %v12635_v43 = vand.u32 4294901760, %v12615_v44 }
 0x4c1   :  { %15055 = vst [vmem:[#allocation84_spill] sm:$0xff] %v12615_v44  ;;  %4269 = vmatpush.msrb.mxu0 %v12457_v19  ;;  %4073 = vmatpush.msrb.mxu1 %v12457_v19 }
 0x4c2   :  { %15056 = vst [vmem:[#allocation46_spill] sm:$0xff] %v12621_v62  ;;  %4168 = vmatpush.msrb.mxu2 %v12610_v27  ;;  %4230 = vmatpush.msra.mxu3 %v12523_v13  ;;  %v4435_v27 = vsub.f32 %v12604_v28, %v12626_v7  ;;  %v4441_v56 = vsub.f32 %v12615_v44, %v12635_v43 }
 0x4c3   :  { %15057 = vst [vmem:[#allocation85_spill] sm:$0xff] %v12626_v7  ;;  %4271 = vmatpush.msrb.mxu0 %v12489_v54  ;;  %4075 = vmatpush.msrb.mxu1 %v12489_v54 }
 0x4c4   :  { %15058 = vst [vmem:[#allocation47_spill] sm:$0xff] %v12632_v40  ;;  %4174 = vmatpush.msrb.mxu2 %v12621_v62  ;;  %4233 = vmatpush.msra.mxu3 %v12539_v4  ;;  %v12655_v57 = vand.u32 4294901760, %v4435_v27  ;;  %v4015_v4 = vld [vmem:[%s14396_s11 + $0xe8] sm:$0xff] }
 0x4c5   :  { %15059 = vst [vmem:[#allocation87_spill] sm:$0xff] %v12635_v43  ;;  %4273 = vmatpush.msrb.mxu0 %v12508_v23  ;;  %4077 = vmatpush.msrb.mxu1 %v12508_v23  ;;  %v12668_v27 = vand.u32 4294901760, %v4015_v4 }
 0x4c6   :  { %15060 = vst [vmem:[#allocation50_spill] sm:$0xff] %v12641_v36  ;;  %4180 = vmatpush.msrb.mxu2 %v12632_v40  ;;  %4236 = vmatpush.msra.mxu3 %v12558_v55  ;;  %v12663_v55 = vand.u32 4294901760, %v4441_v56  ;;  %v4014_v56 = vld [vmem:[%s14396_s11 + $0xe0] sm:$0xff]  ;;  %v4007_v40 = vld [vmem:[%s14396_s11 + $0xa8] sm:$0xff] }
 0x4c7   :  { %4275 = vmatpush.msrb.mxu0 %v12525_v8  ;;  %4079 = vmatpush.msrb.mxu1 %v12525_v8  ;;  %15061 = vst [vmem:[#allocation90_spill] sm:$0xff] %v12655_v57  ;;  %v12815_v62 = vand.u32 4294901760, %v4007_v40 }
 0x4c8   :  { %4186 = vmatpush.msrb.mxu2 %v12641_v36  ;;  %4239 = vmatpush.msra.mxu3 %v12575_v6  ;;  %15062 = vst [vmem:[#allocation53_spill] sm:$0xff] %v12663_v55 }
 0x4c9   :  { %4277 = vmatpush.msrb.mxu0 %v12541_v26  ;;  %4081 = vmatpush.msrb.mxu1 %v12541_v26  ;;  %15063 = vst [vmem:[#allocation94_spill] sm:$0xff] %v12668_v27  ;;  %v12832_v59 = vsub.f32 %v4007_v40, %v12815_v62 }
 0x4ca   :  { %4355 = vmatpush.msra.mxu2 %v12315_v47  ;;  %4392 = vmatpush.msrb.mxu3 %v12577_v42  ;;  %15090 = vst [vmem:[#allocation108_spill] sm:$0xff] %v12815_v62 }
 0x4cb   :  { %4437 = vmatpush.msra.mxu0 %v12655_v57  ;;  %4288 = vmatpush.msra.mxu1 %v12349_v39  ;;  %15094 = vst [vmem:[#allocation112_spill] sm:$0xff] %v12832_v59 }
 0x4cc   :  { %4357 = vmatpush.msra.mxu2 %v12317_v63  ;;  %4394 = vmatpush.msrb.mxu3 %v12590_v25 }
 0x4cd   :  { %4443 = vmatpush.msra.mxu0 %v12663_v55  ;;  %4292 = vmatpush.msra.mxu1 %v12359_v60 }
 0x4ce   :  { %4359 = vmatpush.msra.mxu2 %v12319_v33  ;;  %4396 = vmatpush.msrb.mxu3 %v12668_v27 }
 0x4cf   :  { %4296 = vmatpush.msra.mxu1 %v12365_v37 }
 0x4d0   :  { %4361 = vmatpush.msra.mxu2 %v12337_v51 }
 0x4d1   :  { %4300 = vmatpush.msra.mxu1 %v12385_v16 }
 0x4d2   :  { %4363 = vmatpush.msra.mxu2 %v12346_v49 }
 0x4d3   :  { %4304 = vmatpush.msra.mxu1 %v12390_v5 }
 0x4d4   :  { %4365 = vmatpush.msra.mxu2 %v12356_v38 }
 0x4d5   :  { %4308 = vmatpush.msra.mxu1 %v12416_v10 }
 0x4d6   :  { %4367 = vmatpush.msra.mxu2 %v12370_v58 }
 0x4d7   :  { %4312 = vmatpush.msra.mxu1 %v12432_v35 }
 0x4d8   :  { %4369 = vmatpush.msra.mxu2 %v12404_v32 }
 0x4d9   :  { %4316 = vmatpush.msra.mxu1 %v12469_v3 }
 0x4da   :  { %4371 = vmatpush.msra.mxu2 %v12418_v11  ;;  %v12845_v11 = vand.u32 4294901760, %v12832_v59 }
 0x4db   :  { %4320 = vmatpush.msra.mxu1 %v12484_v41 }
 0x4dc   :  { %4373 = vmatpush.msra.mxu2 %v12437_v17  ;;  %15097 = vst [vmem:[#allocation115_spill] sm:$0xff] %v12845_v11  ;;  %v4495_v32 = vsub.f32 %v12832_v59, %v12845_v11 }
 0x4dd   :  { %4324 = vmatpush.msra.mxu1 %v12506_v0  ;;  %v4012_v0 = vld [vmem:[%s14396_s11 + $0xd0] sm:$0xff] }
 0x4de   :  { %4375 = vmatpush.msra.mxu2 %v12453_v50  ;;  %v12732_v3 = vand.u32 4294901760, %v4012_v0  ;;  %v12875_v49 = vand.u32 4294901760, %v4495_v32  ;;  %v4002_v32 = vld [vmem:[%s14396_s11 + $0x80] sm:$0xff] }
 0x4df   :  { %4328 = vmatpush.msra.mxu1 %v12520_v52  ;;  %v12706_v52 = vand.u32 4294901760, %v4014_v56  ;;  %v12897_v53 = vand.u32 4294901760, %v4002_v32 }
 0x4e0   :  { %4377 = vmatpush.msra.mxu2 %v12457_v19  ;;  %15070 = vst [vmem:[#allocation89_spill] sm:$0xff] %v12732_v3  ;;  %v12751_v60 = vsub.f32 %v4012_v0, %v12732_v3 }
 0x4e1   :  { %4332 = vmatpush.msra.mxu1 %v12530_v46  ;;  %15064 = vst [vmem:[#allocation57_spill] sm:$0xff] %v12706_v52  ;;  %v12709_v46 = vsub.f32 %v4015_v4, %v12668_v27  ;;  %4398 = vmatpush.msrb.mxu3 %v12706_v52  ;;  %v12913_v33 = vsub.f32 %v4002_v32, %v12897_v53 }
 0x4e2   :  { %4379 = vmatpush.msra.mxu2 %v12489_v54  ;;  %15075 = vst [vmem:[#allocation83_spill] sm:$0xff] %v12751_v60  ;;  %v12768_v0 = vand.u32 4294901760, %v12751_v60 }
 0x4e3   :  { %4336 = vmatpush.msra.mxu1 %v12555_v15  ;;  %15065 = vst [vmem:[#allocation95_spill] sm:$0xff] %v12709_v46  ;;  %v4013_v15 = vld [vmem:[%s14396_s11 + $0xd8] sm:$0xff]  ;;  %v12921_v30 = vand.u32 4294901760, %v12913_v33 }
 0x4e4   :  { %4381 = vmatpush.msra.mxu2 %v12508_v23  ;;  %15079 = vst [vmem:[#allocation97_spill] sm:$0xff] %v12768_v0  ;;  %v4465_v6 = vsub.f32 %v12751_v60, %v12768_v0  ;;  %v4008_v23 = vld [vmem:[%s14396_s11 + $0xb0] sm:$0xff] }
 0x4e5   :  { %4340 = vmatpush.msra.mxu1 %v12572_v31  ;;  %v12716_v31 = vand.u32 4294901760, %v12709_v46  ;;  %v12797_v36 = vand.u32 4294901760, %v4008_v23  ;;  %15104 = vst [vmem:[#allocation122_spill] sm:$0xff] %v12875_v49  ;;  %v4525_v32 = vsub.f32 %v12913_v33, %v12921_v30 }
 0x4e6   :  { %4383 = vmatpush.msra.mxu2 %v12525_v8  ;;  %v12802_v54 = vand.u32 4294901760, %v4465_v6  ;;  %v4006_v6 = vld [vmem:[%s14396_s11 + $0xa0] sm:$0xff]  ;;  %15109 = vst [vmem:[#allocation127_spill] sm:$0xff] %v12897_v53 }
 0x4e7   :  { %4344 = vmatpush.msra.mxu1 %v12588_v9  ;;  %15066 = vst [vmem:[#allocation62_spill] sm:$0xff] %v12716_v31  ;;  %v12718_v9 = vand.u32 4294901760, %v4013_v15  ;;  %v4447_v4 = vsub.f32 %v12709_v46, %v12716_v31  ;;  %v12829_v17 = vand.u32 4294901760, %v4006_v6 }
 0x4e8   :  { %4385 = vmatpush.msra.mxu2 %v12541_v26  ;;  %v4009_v26 = vld [vmem:[%s14396_s11 + $0xb8] sm:$0xff]  ;;  %15085 = vst [vmem:[#allocation103_spill] sm:$0xff] %v12797_v36 }
 0x4e9   :  { %4348 = vmatpush.msra.mxu1 %v12601_v61  ;;  %15067 = vst [vmem:[#allocation96_spill] sm:$0xff] %v12718_v9  ;;  %v12721_v61 = vsub.f32 %v4014_v56, %v12706_v52  ;;  %4400 = vmatpush.msrb.mxu3 %v12718_v9  ;;  %v12735_v35 = vsub.f32 %v4013_v15, %v12718_v9  ;;  %v4011_v56 = vld [vmem:[%s14396_s11 + $0xc8] sm:$0xff]  ;;  %v12740_v10 = vand.u32 4294901760, %v4447_v4  ;;  %v4010_v15 = vld [vmem:[%s14396_s11 + $0xc0] sm:$0xff]  ;;  %v12780_v8 = vand.u32 4294901760, %v4009_v26 }
 0x4ea   :  { %v12748_v37 = vand.u32 4294901760, %v4011_v56  ;;  %v12762_v55 = vand.u32 4294901760, %v4010_v15  ;;  %15087 = vst [vmem:[#allocation105_spill] sm:$0xff] %v12802_v54  ;;  %v12850_v40 = vsub.f32 %v4006_v6, %v12829_v17 }
 0x4eb   :  { %15068 = vst [vmem:[#allocation65_spill] sm:$0xff] %v12721_v61  ;;  %v12730_v41 = vand.u32 4294901760, %v12721_v61  ;;  %4402 = vmatpush.msrb.mxu3 %v12732_v3  ;;  %v12746_v16 = vand.u32 4294901760, %v12735_v35  ;;  %4449 = vmatpush.msra.mxu0 %v12740_v10 }
 0x4ec   :  { %15071 = vst [vmem:[#allocation80_spill] sm:$0xff] %v12735_v35  ;;  %v12765_v57 = vsub.f32 %v4011_v56, %v12748_v37  ;;  %v12783_v56 = vsub.f32 %v4010_v15, %v12762_v55  ;;  %v12800_v15 = vsub.f32 %v4009_v26, %v12780_v8  ;;  %v12819_v26 = vsub.f32 %v4008_v23, %v12797_v36 }
 0x4ed   :  { %15069 = vst [vmem:[#allocation67_spill] sm:$0xff] %v12730_v41  ;;  %v4453_v5 = vsub.f32 %v12721_v61, %v12730_v41  ;;  %v4459_v39 = vsub.f32 %v12735_v35, %v12746_v16  ;;  %4404 = vmatpush.msrb.mxu3 %v12748_v37  ;;  %v12862_v58 = vand.u32 4294901760, %v12850_v40 }
 0x4ee   :  { %15072 = vst [vmem:[#allocation91_spill] sm:$0xff] %v12740_v10  ;;  %v12778_v10 = vand.u32 4294901760, %v12765_v57  ;;  %v12813_v13 = vand.u32 4294901760, %v12800_v15  ;;  %v12836_v23 = vand.u32 4294901760, %v12819_v26 }
 0x4ef   :  { %15073 = vst [vmem:[#allocation82_spill] sm:$0xff] %v12746_v16  ;;  %v12757_v4 = vand.u32 4294901760, %v4453_v5  ;;  %v12774_v5 = vand.u32 4294901760, %v4459_v39  ;;  %4406 = vmatpush.msrb.mxu3 %v12762_v55  ;;  %v4501_v2 = vsub.f32 %v12850_v40, %v12862_v58 }
 0x4f0   :  { %15074 = vst [vmem:[#allocation93_spill] sm:$0xff] %v12748_v37  ;;  %v4471_v39 = vsub.f32 %v12765_v57, %v12778_v10  ;;  %v4483_v50 = vsub.f32 %v12800_v15, %v12813_v13 }
 0x4f1   :  { %15076 = vst [vmem:[#allocation86_spill] sm:$0xff] %v12757_v4  ;;  %4455 = vmatpush.msra.mxu0 %v12757_v4  ;;  %4408 = vmatpush.msrb.mxu3 %v12780_v8  ;;  %v12795_v4 = vand.u32 4294901760, %v12783_v56 }
 0x4f2   :  { %15077 = vst [vmem:[#allocation88_spill] sm:$0xff] %v12762_v55 }
 0x4f3   :  { %15078 = vst [vmem:[#allocation92_spill] sm:$0xff] %v12765_v57  ;;  %4461 = vmatpush.msra.mxu0 %v12774_v5  ;;  %v4477_v19 = vsub.f32 %v12783_v56, %v12795_v4  ;;  %4410 = vmatpush.msrb.mxu3 %v12797_v36 }
 0x4f4   :  { %15080 = vst [vmem:[#allocation98_spill] sm:$0xff] %v12774_v5  ;;  %v12807_v5 = vand.u32 4294901760, %v4471_v39 }
 0x4f5   :  { %15081 = vst [vmem:[#allocation99_spill] sm:$0xff] %v12778_v10  ;;  %4467 = vmatpush.msra.mxu0 %v12802_v54  ;;  %v12824_v39 = vand.u32 4294901760, %v4477_v19  ;;  %4412 = vmatpush.msrb.mxu3 %v12815_v62  ;;  %v4005_v19 = vld [vmem:[%s14396_s11 + $0x98] sm:$0xff]  ;;  %v12841_v54 = vand.u32 4294901760, %v4483_v50  ;;  %v4004_v50 = vld [vmem:[%s14396_s11 + $0x90] sm:$0xff] }
 0x4f6   :  { %15082 = vst [vmem:[#allocation100_spill] sm:$0xff] %v12780_v8  ;;  %v12847_v21 = vand.u32 4294901760, %v4005_v19  ;;  %v12864_v38 = vand.u32 4294901760, %v4004_v50 }
 0x4f7   :  { %15083 = vst [vmem:[#allocation101_spill] sm:$0xff] %v12783_v56  ;;  %4473 = vmatpush.msra.mxu0 %v12807_v5  ;;  %4414 = vmatpush.msrb.mxu3 %v12829_v17 }
 0x4f8   :  { %15084 = vst [vmem:[#allocation102_spill] sm:$0xff] %v12795_v4  ;;  %v12867_v6 = vsub.f32 %v4005_v19, %v12847_v21  ;;  %v12883_v19 = vand.u32 4294901760, %v4003_v45 }
 0x4f9   :  { %15086 = vst [vmem:[#allocation104_spill] sm:$0xff] %v12800_v15  ;;  %4479 = vmatpush.msra.mxu0 %v12824_v39  ;;  %4416 = vmatpush.msrb.mxu3 %v12847_v21 }
 0x4fa   :  { %15088 = vst [vmem:[#allocation106_spill] sm:$0xff] %v12807_v5  ;;  %v4489_v5 = vsub.f32 %v12819_v26, %v12836_v23  ;;  %v12881_v1 = vand.u32 4294901760, %v12867_v6  ;;  %v12900_v29 = vsub.f32 %v4003_v45, %v12883_v19 }
 0x4fb   :  { %15089 = vst [vmem:[#allocation107_spill] sm:$0xff] %v12813_v13  ;;  %4485 = vmatpush.msra.mxu0 %v12841_v54  ;;  %4418 = vmatpush.msrb.mxu3 %v12864_v38 }
 0x4fc   :  { %15091 = vst [vmem:[#allocation109_spill] sm:$0xff] %v12819_v26  ;;  %v4507_v51 = vsub.f32 %v12867_v6, %v12881_v1 }
 0x4fd   :  { %15092 = vst [vmem:[#allocation110_spill] sm:$0xff] %v12824_v39  ;;  %v12870_v39 = vand.u32 4294901760, %v4489_v5  ;;  %v12887_v5 = vsub.f32 %v4004_v50, %v12864_v38  ;;  %4420 = vmatpush.msrb.mxu3 %v12883_v19 }
 0x4fe   :  { %15093 = vst [vmem:[#allocation111_spill] sm:$0xff] %v12829_v17 }
 0x4ff   :  { %15095 = vst [vmem:[#allocation113_spill] sm:$0xff] %v12836_v23  ;;  %4491 = vmatpush.msra.mxu0 %v12870_v39  ;;  %v12904_v50 = vand.u32 4294901760, %v12887_v5  ;;  %4422 = vmatpush.msrb.mxu3 %v12897_v53 }
 0x500   :  { %15096 = vst [vmem:[#allocation114_spill] sm:$0xff] %v12841_v54  ;;  %v12892_v54 = vand.u32 4294901760, %v4501_v2  ;;  %v12910_v2 = vand.u32 4294901760, %v12900_v29 }
 0x501   :  { %15098 = vst [vmem:[#allocation116_spill] sm:$0xff] %v12847_v21  ;;  %4497 = vmatpush.msra.mxu0 %v12875_v49  ;;  %v4513_v45 = vsub.f32 %v12887_v5, %v12904_v50 }
 0x502   :  { %15099 = vst [vmem:[#allocation117_spill] sm:$0xff] %v12850_v40  ;;  %v4519_v49 = vsub.f32 %v12900_v29, %v12910_v2 }
 0x503   :  { %15100 = vst [vmem:[#allocation118_spill] sm:$0xff] %v12862_v58  ;;  %4503 = vmatpush.msra.mxu0 %v12892_v54 }
 0x504   :  { %15101 = vst [vmem:[#allocation119_spill] sm:$0xff] %v12864_v38  ;;  %v12926_v14 = vand.u32 4294901760, %v4519_v49 }
 0x505   :  { %15102 = vst [vmem:[#allocation120_spill] sm:$0xff] %v12867_v6 }
 0x506   :  { %15103 = vst [vmem:[#allocation121_spill] sm:$0xff] %v12870_v39  ;;  %v12906_v39 = vand.u32 4294901760, %v4507_v51  ;;  %v12924_v51 = vand.u32 4294901760, %v4513_v45 }
 0x507   :  { %15105 = vst [vmem:[#allocation123_spill] sm:$0xff] %v12881_v1 }
 0x508   :  { %15106 = vst [vmem:[#allocation124_spill] sm:$0xff] %v12883_v19  ;;  %4509 = vmatpush.msra.mxu0 %v12906_v39 }
 0x509   :  { %15107 = vst [vmem:[#allocation125_spill] sm:$0xff] %v12887_v5 }
 0x50a   :  { %15108 = vst [vmem:[#allocation126_spill] sm:$0xff] %v12892_v54  ;;  %4515 = vmatpush.msra.mxu0 %v12924_v51  ;;  %v12931_v54 = vand.u32 4294901760, %v4525_v32 }
 0x50b   :  { %15110 = vst [vmem:[#allocation128_spill] sm:$0xff] %v12900_v29 }
 0x50c   :  { %15111 = vst [vmem:[#allocation129_spill] sm:$0xff] %v12904_v50  ;;  %4521 = vmatpush.msra.mxu0 %v12926_v14 }
 0x50d   :  { %15112 = vst [vmem:[#allocation130_spill] sm:$0xff] %v12906_v39 }
 0x50e   :  { %15113 = vst [vmem:[#allocation131_spill] sm:$0xff] %v12910_v2  ;;  %4527 = vmatpush.msra.mxu0 %v12931_v54 }
 0x50f   :  { %15114 = vst [vmem:[#allocation132_spill] sm:$0xff] %v12913_v33 }
 0x510   :  { %15115 = vst [vmem:[#allocation133_spill] sm:$0xff] %v12921_v30 }
 0x511   :  { %15116 = vst [vmem:[#allocation134_spill] sm:$0xff] %v12924_v51 }
 0x512   :  { %15117 = vst [vmem:[#allocation135_spill] sm:$0xff] %v12926_v14 }
 0x513   :  { %15118 = vst [vmem:[#allocation136_spill] sm:$0xff] %v12931_v54 }
 0x523   :  { %v3839_v63 = vpop.f32.mrf.mxu1 }
 0x524   :  { %v3878_v24 = vpop.f32.mrf.mxu0 }
 0x529   :  { %v3852_v12 = vpop.f32.mrf.mxu2 }
 0x52a   :  { %v12935_v47 = vadd.f32 %v3852_v12, %v3839_v63  ;;  %v3865_v45 = vpop.f32.mrf.mxu3 }
 0x52b   :  { %v12937_v39 = vadd.f32 %v3878_v24, %v3865_v45  ;;  %v3841_v49 = vpop.f32.mrf.mxu1 }
 0x52c   :  { %15119 = vst [vmem:[#allocation137_spill] sm:$0xff] %v12935_v47  ;;  %v3934_v22 = vrot.slane %v12935_v47, 4  ;;  %v3880_v18 = vpop.f32.mrf.mxu0 }
 0x52d   :  { %15120 = vst [vmem:[#allocation138_spill] sm:$0xff] %v12937_v39  ;;  %v3940_v51 = vrot.slane %v12937_v39, 4 }
 0x52e   :  { %v3935_v32 = vadd.f32 %v3934_v22, %v12935_v47 }
 0x52f   :  { %v3941_v14 = vadd.f32 %v3940_v51, %v12937_v39 }
 0x530   :  { %v3936_v48 = vrot.slane %v3935_v32, 2 }
 0x531   :  { %v3942_v54 = vrot.slane %v3941_v14, 2  ;;  %v3854_v34 = vpop.f32.mrf.mxu2 }
 0x532   :  { %v3867_v20 = vpop.f32.mrf.mxu3  ;;  %v3937_v33 = vadd.f32 %v3936_v48, %v3935_v32 }
 0x533   :  { %v3943_v63 = vadd.f32 %v3942_v54, %v3941_v14  ;;  %v12943_v12 = vpop.f32.mrf.mxu1 }
 0x534   :  { %v12945_v24 = vpop.f32.mrf.mxu0  ;;  %v3938_v45 = vrot.slane %v3937_v33, 1 }
 0x535   :  { %v3944_v49 = vrot.slane %v3943_v63, 1 }
 0x536   :  { %v3939_v29 = vadd.f32 %v3938_v45, %v3937_v33 }
 0x537   :  { %v3945_v18 = vadd.f32 %v3944_v49, %v3943_v63  ;;  %v4033_v49 = vld [vmem:[%s14396_s11 + $0x178] sm:$0xff] }
 0x538   :  { %v4082_v5 = vand.u32 4294901760, %v3939_v29 }
 0x539   :  { %v12947_v30 = vand.u32 4294901760, %v3945_v18  ;;  %v12949_v22 = vpop.f32.mrf.mxu2 }
 0x53a   :  { %v12951_v51 = vpop.f32.mrf.mxu3  ;;  %v4083_v39 = vsub.f32 %v3939_v29, %v4082_v5  ;;  %4188 = vmatmul.f32.vlgmr.msrb.gmra.mxu2 %v4082_v5 }
 0x53b   :  { %v12954_v48 = vsub.f32 %v3945_v18, %v12947_v30  ;;  %4588 = vmatpush.msrb.mxu2 %v12577_v42  ;;  %v3893_v20 = vpop.f32.mrf.mxu1  ;;  %v4032_v18 = vld [vmem:[%s14396_s11 + $0x170] sm:$0xff] }
 0x53c   :  { %v3932_v34 = vpop.f32.mrf.mxu0  ;;  %4242 = vmatmul.f32.vlgmr.msra.gmra.mxu3 %v4083_v39  ;;  %v4084_v14 = vand.u32 4294901760, %v4083_v39  ;;  %v12989_v20 = vand.u32 4294901760, %v4033_v49 }
 0x53d   :  { %4590 = vmatpush.msrb.mxu2 %v12590_v25  ;;  %4629 = vmatpush.msra.mxu3 %v12626_v7  ;;  %v14621_v33 = vand.u32 4294901760, %v12954_v48  ;;  %v4031_v34 = vld [vmem:[%s14396_s11 + $0x168] sm:$0xff]  ;;  %v4020_v7 = vld [vmem:[%s14396_s11 + $0x110] sm:$0xff] }
 0x53e   :  { %4281 = vmatmul.f32.vlgmr.msrb.gmra.mxu0 %v4084_v14  ;;  %v4085_v54 = vsub.f32 %v4083_v39, %v4084_v14  ;;  %15121 = vst [vmem:[#allocation139_spill] sm:$0xff] %v12989_v20  ;;  %v12997_v14 = vand.u32 4294901760, %v4032_v18 }
 0x53f   :  { %4592 = vmatpush.msrb.mxu2 %v12668_v27  ;;  %4633 = vmatpush.msra.mxu3 %v12635_v43  ;;  %v4426_v29 = vsub.f32 %v12954_v48, %v14621_v33 }
 0x540   :  { %4696 = vmatpush.msrb.mxu0 %v12577_v42  ;;  %v4086_v32 = vand.u32 4294901760, %v4085_v54  ;;  %15122 = vst [vmem:[#allocation140_spill] sm:$0xff] %v12997_v14  ;;  %v4030_v54 = vld [vmem:[%s14396_s11 + $0x160] sm:$0xff] }
 0x541   :  { %4594 = vmatpush.msrb.mxu2 %v12706_v52  ;;  %4637 = vmatpush.msra.mxu3 %v12716_v31  ;;  %v3906_v63 = vpop.f32.mrf.mxu2  ;;  %v4427_v39 = vand.u32 4294901760, %v4426_v29  ;;  %v13007_v29 = vsub.f32 %v4033_v49, %v12989_v20  ;;  %v15153_v31 = vld [vmem:[#allocation125_spill] sm:$0xff] }
 0x542   :  { %4698 = vmatpush.msrb.mxu0 %v12590_v25  ;;  %v3919_v45 = vpop.f32.mrf.mxu3  ;;  %4087 = vmatmul.f32.vlgmr.msrb.gmra.mxu1 %v4086_v32  ;;  %v13009_v32 = vand.u32 4294901760, %v4031_v34  ;;  %v13019_v63 = vsub.f32 %v4032_v18, %v12997_v14  ;;  %v4028_v18 = vld [vmem:[%s14396_s11 + $0x150] sm:$0xff] }
 0x543   :  { %4387 = vmatmul.f32.vlgmr.msra.gmra.mxu2 %v4082_v5  ;;  %4535 = vmatpush.msrb.mxu1 %v12604_v28  ;;  %15123 = vst [vmem:[#allocation141_spill] sm:$0xff] %v13007_v29  ;;  %v13021_v45 = vand.u32 4294901760, %v4030_v54 }
 0x544   :  { %4596 = vmatpush.msrb.mxu2 %v12718_v9  ;;  %4641 = vmatpush.msra.mxu3 %v12730_v41  ;;  %15124 = vst [vmem:[#allocation142_spill] sm:$0xff] %v13009_v32  ;;  %v13031_v49 = vsub.f32 %v4031_v34, %v13009_v32  ;;  %v13046_v34 = vand.u32 4294901760, %v13019_v63  ;;  %v4021_v41 = vld [vmem:[%s14396_s11 + $0x118] sm:$0xff] }
 0x545   :  { %4700 = vmatpush.msrb.mxu0 %v12668_v27  ;;  %4428 = vmatmul.f32.vlgmr.msrb.gmra.mxu3 %v4427_v39  ;;  %15125 = vst [vmem:[#allocation143_spill] sm:$0xff] %v13019_v63  ;;  %v13028_v39 = vand.u32 4294901760, %v13007_v29 }
 0x546   :  { %4538 = vmatpush.msrb.mxu1 %v12615_v44  ;;  %4598 = vmatpush.msrb.mxu2 %v12732_v3  ;;  %15126 = vst [vmem:[#allocation144_spill] sm:$0xff] %v13021_v45 }
 0x547   :  { %4645 = vmatpush.msra.mxu3 %v12746_v16  ;;  %4702 = vmatpush.msrb.mxu0 %v12706_v52  ;;  %15127 = vst [vmem:[#allocation145_spill] sm:$0xff] %v13028_v39 }
 0x548   :  { %4529 = vmatmul.f32.vlgmr.msra.gmra.mxu0 %v12947_v30  ;;  %4541 = vmatpush.msrb.mxu1 %v12709_v46  ;;  %15128 = vst [vmem:[#allocation146_spill] sm:$0xff] %v13031_v49 }
 0x549   :  { %4600 = vmatpush.msrb.mxu2 %v12748_v37  ;;  %4649 = vmatpush.msra.mxu3 %v12768_v0  ;;  %15130 = vst [vmem:[#allocation148_spill] sm:$0xff] %v13046_v34 }
 0x54a   :  { %4704 = vmatpush.msrb.mxu0 %v12718_v9  ;;  %4544 = vmatpush.msrb.mxu1 %v12721_v61  ;;  %v4042_v9 = vld [vmem:[%s14396_s11 + $0x1c0] sm:$0xff] }
 0x54b   :  { %4602 = vmatpush.msrb.mxu2 %v12762_v55  ;;  %4653 = vmatpush.msra.mxu3 %v12778_v10  ;;  %v13421_v27 = vand.u32 4294901760, %v4042_v9 }
 0x54c   :  { %4706 = vmatpush.msrb.mxu0 %v12732_v3  ;;  %4350 = vmatmul.f32.vlgmr.msra.gmra.mxu1 %v4082_v5  ;;  %v4029_v5 = vld [vmem:[%s14396_s11 + $0x158] sm:$0xff]  ;;  %v4043_v3 = vld [vmem:[%s14396_s11 + $0x1c8] sm:$0xff] }
 0x54d   :  { %4547 = vmatpush.msrb.mxu1 %v12735_v35  ;;  %4604 = vmatpush.msrb.mxu2 %v12780_v8  ;;  %v13033_v33 = vand.u32 4294901760, %v4029_v5 }
 0x54e   :  { %4657 = vmatpush.msra.mxu3 %v12795_v4  ;;  %4708 = vmatpush.msrb.mxu0 %v12748_v37 }
 0x54f   :  { %4550 = vmatpush.msrb.mxu1 %v12751_v60  ;;  %4606 = vmatpush.msrb.mxu2 %v12797_v36  ;;  %15129 = vst [vmem:[#allocation147_spill] sm:$0xff] %v13033_v33  ;;  %v4026_v60 = vld [vmem:[%s14396_s11 + $0x140] sm:$0xff] }
 0x550   :  { %4661 = vmatpush.msra.mxu3 %v12813_v13  ;;  %4710 = vmatpush.msrb.mxu0 %v12762_v55  ;;  %v13079_v4 = vand.u32 4294901760, %v4026_v60  ;;  %v4044_v55 = vld [vmem:[%s14396_s11 + $0x1d0] sm:$0xff] }
 0x551   :  { %4553 = vmatpush.msrb.mxu1 %v12765_v57  ;;  %4608 = vmatpush.msrb.mxu2 %v12815_v62  ;;  %v4027_v57 = vld [vmem:[%s14396_s11 + $0x148] sm:$0xff] }
 0x552   :  { %4665 = vmatpush.msra.mxu3 %v12836_v23  ;;  %4712 = vmatpush.msrb.mxu0 %v12780_v8  ;;  %v13049_v23 = vsub.f32 %v4030_v54, %v13021_v45  ;;  %v13063_v54 = vand.u32 4294901760, %v13031_v49  ;;  %v13068_v13 = vand.u32 4294901760, %v4027_v57  ;;  %15137 = vst [vmem:[#allocation155_spill] sm:$0xff] %v13079_v4  ;;  %v4047_v8 = vld [vmem:[%s14396_s11 + $0x1e8] sm:$0xff] }
 0x553   :  { %4556 = vmatpush.msrb.mxu1 %v12783_v56  ;;  %4610 = vmatpush.msrb.mxu2 %v12829_v17  ;;  %v13053_v56 = vand.u32 4294901760, %v4028_v18 }
 0x554   :  { %4669 = vmatpush.msra.mxu3 %v12845_v11  ;;  %4714 = vmatpush.msrb.mxu0 %v12797_v36  ;;  %15131 = vst [vmem:[#allocation149_spill] sm:$0xff] %v13049_v23  ;;  %v4776_v11 = vsub.f32 %v13007_v29, %v13028_v39  ;;  %v13077_v35 = vand.u32 4294901760, %v13049_v23  ;;  %v4788_v10 = vsub.f32 %v13031_v49, %v13063_v54 }
 0x555   :  { %4559 = vmatpush.msrb.mxu1 %v12800_v15  ;;  %4612 = vmatpush.msrb.mxu2 %v12847_v21  ;;  %15132 = vst [vmem:[#allocation150_spill] sm:$0xff] %v13053_v56  ;;  %v13066_v15 = vsub.f32 %v4029_v5, %v13033_v33  ;;  %v4025_v5 = vld [vmem:[%s14396_s11 + $0x138] sm:$0xff] }
 0x556   :  { %4673 = vmatpush.msra.mxu3 %v12862_v58  ;;  %4716 = vmatpush.msrb.mxu0 %v12815_v62  ;;  %15133 = vst [vmem:[#allocation151_spill] sm:$0xff] %v13063_v54  ;;  %v4782_v58 = vsub.f32 %v13019_v63, %v13046_v34  ;;  %v13095_v61 = vand.u32 4294901760, %v4776_v11  ;;  %v13135_v44 = vand.u32 4294901760, %v4788_v10 }
 0x557   :  { %15134 = vst [vmem:[#allocation152_spill] sm:$0xff] %v13066_v15  ;;  %4562 = vmatpush.msrb.mxu1 %v12819_v26  ;;  %4614 = vmatpush.msrb.mxu2 %v12864_v38  ;;  %v13086_v26 = vadd.f32 %v12949_v22, %v12943_v12  ;;  %v13100_v46 = vand.u32 4294901760, %v13066_v15  ;;  %v13103_v12 = vsub.f32 %v4027_v57, %v13068_v13  ;;  %v4024_v22 = vld [vmem:[%s14396_s11 + $0x130] sm:$0xff] }
 0x558   :  { %15135 = vst [vmem:[#allocation153_spill] sm:$0xff] %v13068_v13  ;;  %4677 = vmatpush.msra.mxu3 %v12881_v1  ;;  %4718 = vmatpush.msrb.mxu0 %v12829_v17  ;;  %v13091_v1 = vsub.f32 %v4028_v18, %v13053_v56  ;;  %v13110_v18 = vand.u32 4294901760, %v4025_v5  ;;  %v13114_v11 = vand.u32 4294901760, %v4782_v58  ;;  %v4794_v57 = vsub.f32 %v13049_v23, %v13077_v35 }
 0x559   :  { %15136 = vst [vmem:[#allocation154_spill] sm:$0xff] %v13077_v35  ;;  %4565 = vmatpush.msrb.mxu1 %v12832_v59  ;;  %4616 = vmatpush.msrb.mxu2 %v12883_v19  ;;  %v13119_v59 = vsub.f32 %v4026_v60, %v13079_v4  ;;  %v13130_v58 = vand.u32 4294901760, %v4024_v22  ;;  %v3946_v0 = vrot.slane %v13086_v26, 4  ;;  %v15147_v60 = vld [vmem:[#allocation133_spill] sm:$0xff]  ;;  %v4800_v16 = vsub.f32 %v13066_v15, %v13100_v46 }
 0x55a   :  { %15138 = vst [vmem:[#allocation156_spill] sm:$0xff] %v13086_v26  ;;  %4681 = vmatpush.msra.mxu3 %v12904_v50  ;;  %4720 = vmatpush.msrb.mxu0 %v12847_v21  ;;  %v15146_v50 = vand.u32 4294901760, %v12954_v48  ;;  %v13154_v10 = vand.u32 4294901760, %v4794_v57 }
 0x55b   :  { %15139 = vst [vmem:[#allocation157_spill] sm:$0xff] %v13091_v1  ;;  %4568 = vmatpush.msrb.mxu1 %v12850_v40  ;;  %4618 = vmatpush.msrb.mxu2 %v12897_v53  ;;  %v4023_v40 = vld [vmem:[%s14396_s11 + $0x128] sm:$0xff]  ;;  %v13157_v28 = vand.u32 4294901760, %v13119_v59  ;;  %v3947_v57 = vadd.f32 %v3946_v0, %v13086_v26  ;;  %v13174_v43 = vand.u32 4294901760, %v4800_v16  ;;  %v13189_v0 = vand.u32 4294901760, %v4021_v41  ;;  %v15158_v16 = vld [vmem:[#allocation128_spill] sm:$0xff] }
 0x55c   :  { %15140 = vst [vmem:[#allocation158_spill] sm:$0xff] %v13095_v61  ;;  %4685 = vmatpush.msra.mxu3 %v12910_v2  ;;  %4722 = vmatpush.msrb.mxu0 %v12864_v38  ;;  %v13128_v2 = vand.u32 4294901760, %v13091_v1 }
 0x55d   :  { %15141 = vst [vmem:[#allocation159_spill] sm:$0xff] %v13100_v46  ;;  %4622 = vmatmul.f32.vlgmr.msrb.gmra.mxu2 %v15146_v50  ;;  %4571 = vmatpush.msrb.mxu1 %v12867_v6  ;;  %v13140_v50 = vand.u32 4294901760, %v13103_v12  ;;  %v4022_v6 = vld [vmem:[%s14396_s11 + $0x120] sm:$0xff] }
 0x55e   :  { %15142 = vst [vmem:[#allocation160_spill] sm:$0xff] %v13103_v12  ;;  %4778 = vmatpush.msra.mxu2 %v13095_v61  ;;  %4689 = vmatpush.msra.mxu3 %v15147_v60  ;;  %v13148_v61 = vsub.f32 %v4025_v5, %v13110_v18  ;;  %v13150_v60 = vand.u32 4294901760, %v4023_v40  ;;  %v4806_v5 = vsub.f32 %v13091_v1, %v13128_v2 }
 0x55f   :  { %15143 = vst [vmem:[#allocation161_spill] sm:$0xff] %v13110_v18  ;;  %4724 = vmatpush.msrb.mxu0 %v12883_v19  ;;  %4691 = vmatmul.f32.vlgmr.msra.gmra.mxu3 %v12947_v30  ;;  %v15161_v19 = vld [vmem:[#allocation132_spill] sm:$0xff] }
 0x560   :  { %15144 = vst [vmem:[#allocation162_spill] sm:$0xff] %v13114_v11  ;;  %4784 = vmatpush.msra.mxu2 %v13114_v11  ;;  %4876 = vmatpush.msrb.mxu3 %v13007_v29  ;;  %v13167_v11 = vsub.f32 %v4024_v22, %v13130_v58  ;;  %v13169_v29 = vand.u32 4294901760, %v4022_v6  ;;  %v13184_v22 = vand.u32 4294901760, %v13148_v61  ;;  %v13200_v26 = vand.u32 4294901760, %v4806_v5  ;;  %v4018_v5 = vld [vmem:[%s14396_s11 + $0x100] sm:$0xff] }
 0x561   :  { %15145 = vst [vmem:[#allocation163_spill] sm:$0xff] %v13119_v59  ;;  %4574 = vmatpush.msrb.mxu1 %v15153_v31  ;;  %4726 = vmatpush.msrb.mxu0 %v12897_v53  ;;  %v4812_v31 = vsub.f32 %v13103_v12, %v13140_v50  ;;  %v3948_v53 = vrot.slane %v3947_v57, 2  ;;  %v13243_v21 = vand.u32 4294901760, %v4018_v5 }
 0x562   :  { %15148 = vst [vmem:[#allocation164_spill] sm:$0xff] %v13135_v44  ;;  %4728 = vmatmul.f32.vlgmr.msrb.gmra.mxu0 %v12947_v30  ;;  %4790 = vmatpush.msra.mxu2 %v13135_v44  ;;  %v13187_v30 = vsub.f32 %v4023_v40, %v13150_v60  ;;  %v4818_v44 = vsub.f32 %v13119_v59, %v13157_v28  ;;  %v13203_v40 = vand.u32 4294901760, %v13167_v11 }
 0x563   :  { %15149 = vst [vmem:[#allocation165_spill] sm:$0xff] %v13140_v50  ;;  %4879 = vmatpush.msrb.mxu3 %v13019_v63  ;;  %4929 = vmatpush.msra.mxu0 %v12989_v20  ;;  %v4019_v63 = vld [vmem:[%s14396_s11 + $0x108] sm:$0xff]  ;;  %v13212_v38 = vand.u32 4294901760, %v4812_v31  ;;  %v3949_v17 = vadd.f32 %v3948_v53, %v3947_v57 }
 0x564   :  { %15150 = vst [vmem:[#allocation166_spill] sm:$0xff] %v13148_v61  ;;  %4577 = vmatpush.msrb.mxu1 %v15158_v16  ;;  %4796 = vmatpush.msra.mxu2 %v13154_v10  ;;  %v13206_v16 = vsub.f32 %v4022_v6, %v13169_v29  ;;  %v4824_v6 = vsub.f32 %v13148_v61, %v13184_v22  ;;  %v13231_v31 = vand.u32 4294901760, %v4818_v44 }
 0x565   :  { %15151 = vst [vmem:[#allocation167_spill] sm:$0xff] %v13154_v10  ;;  %4882 = vmatpush.msrb.mxu3 %v13031_v49  ;;  %4931 = vmatpush.msra.mxu0 %v12997_v14  ;;  %v13208_v10 = vand.u32 4294901760, %v4020_v7  ;;  %v13222_v49 = vand.u32 4294901760, %v13187_v30 }
 0x566   :  { %15152 = vst [vmem:[#allocation168_spill] sm:$0xff] %v13157_v28  ;;  %4580 = vmatpush.msrb.mxu1 %v15161_v19  ;;  %4802 = vmatpush.msra.mxu2 %v13174_v43  ;;  %v13225_v19 = vsub.f32 %v4021_v41, %v13189_v0  ;;  %v13249_v44 = vand.u32 4294901760, %v4824_v6 }
 0x567   :  { %15154 = vst [vmem:[#allocation169_spill] sm:$0xff] %v13167_v11  ;;  %4583 = vmatmul.f32.vlgmr.msrb.gmra.mxu1 %v12954_v48  ;;  %4885 = vmatpush.msrb.mxu3 %v13049_v23  ;;  %v4830_v48 = vsub.f32 %v13167_v11, %v13203_v40  ;;  %v13238_v23 = vand.u32 4294901760, %v13206_v16  ;;  %v13241_v41 = vsub.f32 %v4020_v7, %v13208_v10 }
 0x568   :  { %15155 = vst [vmem:[#allocation170_spill] sm:$0xff] %v13174_v43  ;;  %v13227_v43 = vand.u32 4294901760, %v4019_v63  ;;  %4733 = vmatpush.msra.mxu1 %v12989_v20  ;;  %4933 = vmatpush.msra.mxu0 %v13009_v32 }
 0x569   :  { %15156 = vst [vmem:[#allocation171_spill] sm:$0xff] %v13184_v22  ;;  %4808 = vmatpush.msra.mxu2 %v13200_v26  ;;  %4888 = vmatpush.msrb.mxu3 %v13066_v15  ;;  %v4836_v15 = vsub.f32 %v13187_v30, %v13222_v49  ;;  %v13263_v53 = vand.u32 4294901760, %v4830_v48  ;;  %v4842_v57 = vsub.f32 %v13206_v16, %v13238_v23  ;;  %v13268_v6 = vand.u32 4294901760, %v13241_v41 }
 0x56a   :  { %15157 = vst [vmem:[#allocation172_spill] sm:$0xff] %v13187_v30  ;;  %4735 = vmatpush.msra.mxu1 %v12997_v14  ;;  %4935 = vmatpush.msra.mxu0 %v13021_v45  ;;  %v13257_v7 = vsub.f32 %v4019_v63, %v13227_v43  ;;  %v4049_v63 = vld [vmem:[%s14396_s11 + $0x1f8] sm:$0xff] }
 0x56b   :  { %15159 = vst [vmem:[#allocation173_spill] sm:$0xff] %v13200_v26  ;;  %4814 = vmatpush.msra.mxu2 %v13212_v38  ;;  %4891 = vmatpush.msrb.mxu3 %v13091_v1  ;;  %v13254_v26 = vand.u32 4294901760, %v13225_v19  ;;  %v13271_v1 = vsub.f32 %v4018_v5, %v13243_v21  ;;  %v13280_v48 = vand.u32 4294901760, %v4836_v15  ;;  %v13294_v15 = vand.u32 4294901760, %v4842_v57 }
 0x56c   :  { %15160 = vst [vmem:[#allocation174_spill] sm:$0xff] %v13206_v16  ;;  %4737 = vmatpush.msra.mxu1 %v13009_v32  ;;  %4937 = vmatpush.msra.mxu0 %v13033_v33  ;;  %v13285_v5 = vand.u32 4294901760, %v13257_v7  ;;  %v13301_v62 = vand.u32 4294901760, %v4049_v63 }
 0x56d   :  { %15162 = vst [vmem:[#allocation175_spill] sm:$0xff] %v13212_v38  ;;  %4820 = vmatpush.msra.mxu2 %v13231_v31  ;;  %4894 = vmatpush.msrb.mxu3 %v13103_v12  ;;  %v3950_v12 = vrot.slane %v3949_v17, 1  ;;  %v4048_v38 = vld [vmem:[%s14396_s11 + $0x1f0] sm:$0xff] }
 0x56e   :  { %15163 = vst [vmem:[#allocation176_spill] sm:$0xff] %v13225_v19  ;;  %4739 = vmatpush.msra.mxu1 %v13021_v45  ;;  %4939 = vmatpush.msra.mxu0 %v13053_v56  ;;  %v4860_v57 = vsub.f32 %v13257_v7, %v13285_v5 }
 0x56f   :  { %15164 = vst [vmem:[#allocation177_spill] sm:$0xff] %v13231_v31  ;;  %4826 = vmatpush.msra.mxu2 %v13249_v44  ;;  %4897 = vmatpush.msrb.mxu3 %v13119_v59  ;;  %v4848_v31 = vsub.f32 %v13225_v19, %v13254_v26  ;;  %v4854_v59 = vsub.f32 %v13241_v41, %v13268_v6 }
 0x570   :  { %15165 = vst [vmem:[#allocation178_spill] sm:$0xff] %v13241_v41  ;;  %4741 = vmatpush.msra.mxu1 %v13033_v33  ;;  %4941 = vmatpush.msra.mxu0 %v13068_v13  ;;  %v3951_v36 = vadd.f32 %v3950_v12, %v3949_v17  ;;  %v13320_v17 = vadd.f32 %v12945_v24, %v12951_v51  ;;  %v13336_v24 = vand.u32 4294901760, %v4047_v8  ;;  %v13343_v51 = vand.u32 4294901760, %v4860_v57 }
 0x571   :  { %15166 = vst [vmem:[#allocation179_spill] sm:$0xff] %v13249_v44  ;;  %4832 = vmatpush.msra.mxu2 %v13263_v53  ;;  %4900 = vmatpush.msrb.mxu3 %v13148_v61  ;;  %v13299_v44 = vand.u32 4294901760, %v13271_v1  ;;  %v13307_v61 = vand.u32 4294901760, %v4848_v31  ;;  %v13324_v12 = vand.u32 4294901760, %v4854_v59  ;;  %v4045_v59 = vld [vmem:[%s14396_s11 + $0x1d8] sm:$0xff] }
 0x572   :  { %15167 = vst [vmem:[#allocation180_spill] sm:$0xff] %v13257_v7  ;;  %4743 = vmatpush.msra.mxu1 %v13053_v56  ;;  %4943 = vmatpush.msra.mxu0 %v13079_v4  ;;  %v13370_v37 = vsub.f32 %v4047_v8, %v13336_v24 }
 0x573   :  { %15168 = vst [vmem:[#allocation181_spill] sm:$0xff] %v13263_v53  ;;  %4838 = vmatpush.msra.mxu2 %v13280_v48  ;;  %4903 = vmatpush.msrb.mxu3 %v13167_v11  ;;  %v13311_v53 = vand.u32 4294901760, %v4048_v38  ;;  %v4866_v31 = vsub.f32 %v13271_v1, %v13299_v44  ;;  %v13329_v11 = vsub.f32 %v4049_v63, %v13301_v62  ;;  %v13345_v63 = vand.u32 4294901760, %v3951_v36 }
 0x574   :  { %15169 = vst [vmem:[#allocation182_spill] sm:$0xff] %v13271_v1  ;;  %4745 = vmatpush.msra.mxu1 %v13068_v13  ;;  %4945 = vmatpush.msra.mxu0 %v13110_v18 }
 0x575   :  { %15170 = vst [vmem:[#allocation183_spill] sm:$0xff] %v13280_v48  ;;  %4844 = vmatpush.msra.mxu2 %v13294_v15  ;;  %4906 = vmatpush.msrb.mxu3 %v13187_v30  ;;  %v4046_v48 = vld [vmem:[%s14396_s11 + $0x1e0] sm:$0xff]  ;;  %v13348_v30 = vsub.f32 %v4048_v38, %v13311_v53  ;;  %v13360_v57 = vand.u32 4294901760, %v4866_v31  ;;  %v13363_v38 = vand.u32 4294901760, %v13329_v11 }
 0x576   :  { %15171 = vst [vmem:[#allocation184_spill] sm:$0xff] %v13294_v15  ;;  %4747 = vmatpush.msra.mxu1 %v13079_v4  ;;  %4947 = vmatpush.msra.mxu0 %v13130_v58  ;;  %v13352_v15 = vand.u32 4294901760, %v4046_v48 }
 0x577   :  { %15172 = vst [vmem:[#allocation185_spill] sm:$0xff] %v13299_v44  ;;  %4850 = vmatpush.msra.mxu2 %v13307_v61  ;;  %4909 = vmatpush.msrb.mxu3 %v13206_v16  ;;  %v13365_v16 = vand.u32 4294901760, %v4045_v59  ;;  %v13376_v31 = vand.u32 4294901760, %v13348_v30 }
 0x578   :  { %15173 = vst [vmem:[#allocation186_spill] sm:$0xff] %v13307_v61  ;;  %4749 = vmatpush.msra.mxu1 %v13110_v18  ;;  %4949 = vmatpush.msra.mxu0 %v13150_v60  ;;  %v3952_v61 = vrot.slane %v13320_v17, 4  ;;  %v13386_v8 = vsub.f32 %v4046_v48, %v13352_v15  ;;  %v13404_v48 = vand.u32 4294901760, %v4043_v3 }
 0x579   :  { %15174 = vst [vmem:[#allocation187_spill] sm:$0xff] %v13320_v17  ;;  %4856 = vmatpush.msra.mxu2 %v13324_v12  ;;  %4912 = vmatpush.msrb.mxu3 %v13225_v19  ;;  %v4765_v19 = vsub.f32 %v3951_v36, %v13345_v63  ;;  %v5117_v36 = vsub.f32 %v13329_v11, %v13363_v38 }
 0x57a   :  { %15175 = vst [vmem:[#allocation188_spill] sm:$0xff] %v13324_v12  ;;  %4751 = vmatpush.msra.mxu1 %v13130_v58  ;;  %4951 = vmatpush.msra.mxu0 %v13169_v29  ;;  %v13378_v12 = vand.u32 4294901760, %v4044_v55  ;;  %v13419_v52 = vand.u32 4294901760, %v13386_v8  ;;  %v13437_v47 = vsub.f32 %v4043_v3, %v13404_v48 }
 0x57b   :  { %15176 = vst [vmem:[#allocation189_spill] sm:$0xff] %v13329_v11  ;;  %4862 = vmatpush.msra.mxu2 %v13343_v51  ;;  %4915 = vmatpush.msrb.mxu3 %v13241_v41  ;;  %v3953_v41 = vadd.f32 %v3952_v61, %v13320_v17  ;;  %v13402_v61 = vand.u32 4294901760, %v13370_v37  ;;  %v4041_v17 = vld [vmem:[%s14396_s11 + $0x1b8] sm:$0xff]  ;;  %v13424_v25 = vand.u32 4294901760, %v5117_v36 }
 0x57c   :  { %15177 = vst [vmem:[#allocation190_spill] sm:$0xff] %v13343_v51  ;;  %4753 = vmatpush.msra.mxu1 %v13150_v60  ;;  %4953 = vmatpush.msra.mxu0 %v13189_v0  ;;  %v13394_v51 = vsub.f32 %v4045_v59, %v13365_v16  ;;  %v5123_v59 = vsub.f32 %v13348_v30, %v13376_v31 }
 0x57d   :  { %15178 = vst [vmem:[#allocation191_spill] sm:$0xff] %v13348_v30  ;;  %4868 = vmatpush.msra.mxu2 %v13360_v57  ;;  %4918 = vmatpush.msrb.mxu3 %v13257_v7  ;;  %v4766_v7 = vand.u32 4294901760, %v4765_v19  ;;  %v5129_v42 = vsub.f32 %v13370_v37, %v13402_v61  ;;  %v13439_v30 = vand.u32 4294901760, %v4041_v17  ;;  %v5135_v3 = vsub.f32 %v13386_v8, %v13419_v52 }
 0x57e   :  { %15179 = vst [vmem:[#allocation192_spill] sm:$0xff] %v13360_v57  ;;  %4755 = vmatpush.msra.mxu1 %v13169_v29  ;;  %4955 = vmatpush.msra.mxu0 %v13208_v10  ;;  %v13411_v57 = vsub.f32 %v4044_v55, %v13378_v12  ;;  %v13427_v55 = vand.u32 4294901760, %v13394_v51  ;;  %v13443_v36 = vand.u32 4294901760, %v5123_v59 }
 0x57f   :  { %15180 = vst [vmem:[#allocation193_spill] sm:$0xff] %v13370_v37  ;;  %4870 = vmatmul.f32.vlgmr.msra.gmra.mxu2 %v13345_v63  ;;  %4921 = vmatpush.msrb.mxu3 %v13271_v1  ;;  %v3954_v1 = vrot.slane %v3953_v41, 2  ;;  %v4767_v11 = vsub.f32 %v4765_v19, %v4766_v7  ;;  %v13455_v37 = vsub.f32 %v4042_v9, %v13421_v27  ;;  %v13468_v9 = vand.u32 4294901760, %v5129_v42  ;;  %v4037_v42 = vld [vmem:[%s14396_s11 + $0x198] sm:$0xff] }
 0x580   :  { %15181 = vst [vmem:[#allocation194_spill] sm:$0xff] %v13386_v8  ;;  %5037 = vmatpush.msrb.mxu2 %v12989_v20  ;;  %4757 = vmatpush.msra.mxu1 %v13189_v0  ;;  %v4040_v20 = vld [vmem:[%s14396_s11 + $0x1b0] sm:$0xff]  ;;  %v13446_v44 = vand.u32 4294901760, %v13411_v57 }
 0x581   :  { %15182 = vst [vmem:[#allocation195_spill] sm:$0xff] %v13394_v51  ;;  %4957 = vmatpush.msra.mxu0 %v13227_v43  ;;  %4924 = vmatmul.f32.vlgmr.msrb.gmra.mxu3 %v4765_v19  ;;  %v3955_v59 = vadd.f32 %v3954_v1, %v3953_v41  ;;  %v5141_v19 = vsub.f32 %v13394_v51, %v13427_v55 }
 0x582   :  { %15183 = vst [vmem:[#allocation196_spill] sm:$0xff] %v13402_v61  ;;  %5039 = vmatpush.msrb.mxu2 %v12997_v14  ;;  %5074 = vmatpush.msra.mxu3 %v13301_v62  ;;  %v4039_v14 = vld [vmem:[%s14396_s11 + $0x1a8] sm:$0xff]  ;;  %v13457_v61 = vand.u32 4294901760, %v4040_v20  ;;  %v13474_v1 = vsub.f32 %v4041_v17, %v13439_v30  ;;  %v5147_v51 = vsub.f32 %v13411_v57, %v13446_v44  ;;  %v13487_v17 = vand.u32 4294901760, %v5135_v3 }
 0x583   :  { %15184 = vst [vmem:[#allocation197_spill] sm:$0xff] %v13411_v57  ;;  %4759 = vmatpush.msra.mxu1 %v13208_v10  ;;  %4959 = vmatpush.msra.mxu0 %v13243_v21  ;;  %v13476_v41 = vand.u32 4294901760, %v4039_v14  ;;  %v13498_v57 = vand.u32 4294901760, %v5141_v19 }
 0x584   :  { %15185 = vst [vmem:[#allocation198_spill] sm:$0xff] %v13419_v52  ;;  %4963 = vmatmul.f32.vlgmr.msra.gmra.mxu0 %v4766_v7  ;;  %5041 = vmatpush.msrb.mxu2 %v13009_v32  ;;  %v4038_v7 = vld [vmem:[%s14396_s11 + $0x1a0] sm:$0xff]  ;;  %v13471_v32 = vand.u32 4294901760, %v13437_v47  ;;  %v13493_v8 = vsub.f32 %v4040_v20, %v13457_v61  ;;  %v13508_v3 = vand.u32 4294901760, %v13474_v1  ;;  %v13517_v19 = vand.u32 4294901760, %v5147_v51  ;;  %v4035_v51 = vld [vmem:[%s14396_s11 + $0x188] sm:$0xff] }
 0x585   :  { %15186 = vst [vmem:[#allocation199_spill] sm:$0xff] %v13424_v25  ;;  %5076 = vmatpush.msra.mxu3 %v13311_v53  ;;  %5119 = vmatpush.msrb.mxu0 %v13424_v25  ;;  %v4768_v25 = vand.u32 4294901760, %v4767_v11  ;;  %v13495_v11 = vand.u32 4294901760, %v4038_v7 }
 0x586   :  { %15187 = vst [vmem:[#allocation200_spill] sm:$0xff] %v13427_v55  ;;  %4761 = vmatpush.msra.mxu1 %v13227_v43  ;;  %5043 = vmatpush.msrb.mxu2 %v13021_v45  ;;  %v13490_v45 = vand.u32 4294901760, %v13455_v37  ;;  %v5153_v20 = vsub.f32 %v13437_v47, %v13471_v32 }
 0x587   :  { %15188 = vst [vmem:[#allocation201_spill] sm:$0xff] %v13437_v47  ;;  %5078 = vmatpush.msra.mxu3 %v13336_v24  ;;  %5125 = vmatpush.msrb.mxu0 %v13443_v36 }
 0x588   :  { %15189 = vst [vmem:[#allocation202_spill] sm:$0xff] %v13443_v36  ;;  %4763 = vmatpush.msra.mxu1 %v13243_v21  ;;  %5045 = vmatpush.msrb.mxu2 %v13033_v33  ;;  %v3956_v36 = vrot.slane %v3955_v59, 1  ;;  %v4036_v33 = vld [vmem:[%s14396_s11 + $0x190] sm:$0xff] }
 0x589   :  { %15190 = vst [vmem:[#allocation203_spill] sm:$0xff] %v13446_v44  ;;  %4769 = vmatmul.f32.vlgmr.msra.gmra.mxu1 %v4768_v25  ;;  %5080 = vmatpush.msra.mxu3 %v13352_v15  ;;  %v13511_v25 = vsub.f32 %v4039_v14, %v13476_v41  ;;  %v13513_v44 = vand.u32 4294901760, %v4037_v42  ;;  %v13527_v14 = vsub.f32 %v4038_v7, %v13495_v11  ;;  %v13529_v47 = vand.u32 4294901760, %v4036_v33 }
 0x58a   :  { %15191 = vst [vmem:[#allocation204_spill] sm:$0xff] %v13455_v37  ;;  %4970 = vmatpush.msrb.mxu1 %v13028_v39  ;;  %5131 = vmatpush.msrb.mxu0 %v13468_v9  ;;  %v13524_v39 = vand.u32 4294901760, %v13493_v8  ;;  %v5165_v7 = vsub.f32 %v13474_v1, %v13508_v3 }
 0x58b   :  { %15192 = vst [vmem:[#allocation205_spill] sm:$0xff] %v13468_v9  ;;  %5047 = vmatpush.msrb.mxu2 %v13053_v56  ;;  %5082 = vmatpush.msra.mxu3 %v13365_v16  ;;  %v5159_v9 = vsub.f32 %v13455_v37, %v13490_v45  ;;  %v3957_v56 = vadd.f32 %v3956_v36, %v3955_v59  ;;  %v4034_v36 = vld [vmem:[%s14396_s11 + $0x180] sm:$0xff]  ;;  %v13553_v59 = vand.u32 4294901760, %v4035_v51 }
 0x58c   :  { %15193 = vst [vmem:[#allocation206_spill] sm:$0xff] %v13471_v32  ;;  %4974 = vmatpush.msrb.mxu1 %v13046_v34  ;;  %5137 = vmatpush.msrb.mxu0 %v13487_v17  ;;  %v13543_v34 = vand.u32 4294901760, %v13511_v25  ;;  %v13546_v37 = vsub.f32 %v4037_v42, %v13513_v44  ;;  %v5171_v42 = vsub.f32 %v13493_v8, %v13524_v39 }
 0x58d   :  { %15194 = vst [vmem:[#allocation207_spill] sm:$0xff] %v13474_v1  ;;  %5049 = vmatpush.msrb.mxu2 %v13068_v13  ;;  %5084 = vmatpush.msra.mxu3 %v13378_v12 }
 0x58e   :  { %15195 = vst [vmem:[#allocation208_spill] sm:$0xff] %v13487_v17  ;;  %4978 = vmatpush.msrb.mxu1 %v13063_v54  ;;  %5143 = vmatpush.msrb.mxu0 %v13498_v57  ;;  %v13538_v17 = vand.u32 4294901760, %v5153_v20  ;;  %v13557_v20 = vand.u32 4294901760, %v5159_v9  ;;  %v13565_v54 = vsub.f32 %v4036_v33, %v13529_v47  ;;  %v13575_v9 = vand.u32 4294901760, %v5165_v7 }
 0x58f   :  { %15196 = vst [vmem:[#allocation209_spill] sm:$0xff] %v13490_v45  ;;  %5051 = vmatpush.msrb.mxu2 %v13079_v4  ;;  %5086 = vmatpush.msra.mxu3 %v13404_v48  ;;  %v13567_v4 = vand.u32 4294901760, %v3957_v56  ;;  %v13580_v33 = vand.u32 4294901760, %v13546_v37 }
 0x590   :  { %15197 = vst [vmem:[#allocation210_spill] sm:$0xff] %v13493_v8  ;;  %4982 = vmatpush.msrb.mxu1 %v13077_v35  ;;  %5149 = vmatpush.msrb.mxu0 %v13517_v19  ;;  %v13571_v35 = vand.u32 4294901760, %v4034_v36 }
 0x591   :  { %15198 = vst [vmem:[#allocation211_spill] sm:$0xff] %v13498_v57  ;;  %v13562_v57 = vand.u32 4294901760, %v13527_v14  ;;  %5053 = vmatpush.msrb.mxu2 %v13110_v18  ;;  %5088 = vmatpush.msra.mxu3 %v13421_v27  ;;  %v13585_v18 = vsub.f32 %v4035_v51, %v13553_v59  ;;  %v13597_v13 = vsub.f32 %v3957_v56, %v13567_v4 }
 0x592   :  { %15199 = vst [vmem:[#allocation212_spill] sm:$0xff] %v13508_v3  ;;  %4986 = vmatpush.msrb.mxu1 %v13100_v46  ;;  %5155 = vmatpush.msrb.mxu0 %v13538_v17  ;;  %v13594_v46 = vand.u32 4294901760, %v13565_v54  ;;  %v13602_v51 = vsub.f32 %v4034_v36, %v13571_v35 }
 0x593   :  { %15200 = vst [vmem:[#allocation213_spill] sm:$0xff] %v13511_v25  ;;  %5055 = vmatpush.msrb.mxu2 %v13130_v58  ;;  %5090 = vmatpush.msra.mxu3 %v13439_v30  ;;  %v5183_v7 = vsub.f32 %v13527_v14, %v13562_v57  ;;  %v13613_v56 = vand.u32 4294901760, %v13585_v18 }
 0x594   :  { %15201 = vst [vmem:[#allocation214_spill] sm:$0xff] %v13517_v19  ;;  %v5177_v19 = vsub.f32 %v13511_v25, %v13543_v34  ;;  %4990 = vmatpush.msrb.mxu1 %v13128_v2  ;;  %5161 = vmatpush.msrb.mxu0 %v13557_v20 }
 0x595   :  { %15202 = vst [vmem:[#allocation215_spill] sm:$0xff] %v13524_v39  ;;  %5057 = vmatpush.msrb.mxu2 %v13150_v60  ;;  %5092 = vmatpush.msra.mxu3 %v13457_v61  ;;  %v13617_v36 = vand.u32 4294901760, %v5183_v7  ;;  %v5201_v7 = vsub.f32 %v13585_v18, %v13613_v56 }
 0x596   :  { %15203 = vst [vmem:[#allocation216_spill] sm:$0xff] %v13527_v14  ;;  %4994 = vmatpush.msrb.mxu1 %v13140_v50  ;;  %5167 = vmatpush.msrb.mxu0 %v13575_v9  ;;  %v13625_v50 = vand.u32 4294901760, %v13602_v51 }
 0x597   :  { %15204 = vst [vmem:[#allocation217_spill] sm:$0xff] %v13538_v17  ;;  %v13589_v17 = vand.u32 4294901760, %v5171_v42  ;;  %v13606_v42 = vand.u32 4294901760, %v5177_v19  ;;  %5059 = vmatpush.msrb.mxu2 %v13169_v29  ;;  %5094 = vmatpush.msra.mxu3 %v13476_v41  ;;  %v5195_v19 = vsub.f32 %v13565_v54, %v13594_v46 }
 0x598   :  { %15205 = vst [vmem:[#allocation218_spill] sm:$0xff] %v13543_v34  ;;  %4998 = vmatpush.msrb.mxu1 %v13157_v28 }
 0x599   :  { %15206 = vst [vmem:[#allocation219_spill] sm:$0xff] %v13546_v37  ;;  %5173 = vmatpush.msrb.mxu0 %v13589_v17  ;;  %5061 = vmatpush.msrb.mxu2 %v13189_v0 }
 0x59a   :  { %15207 = vst [vmem:[#allocation220_spill] sm:$0xff] %v13557_v20  ;;  %v5189_v20 = vsub.f32 %v13546_v37, %v13580_v33  ;;  %5096 = vmatpush.msra.mxu3 %v13495_v11  ;;  %5002 = vmatpush.msrb.mxu1 %v13184_v22  ;;  %v5207_v22 = vsub.f32 %v13602_v51, %v13625_v50 }
 0x59b   :  { %15208 = vst [vmem:[#allocation221_spill] sm:$0xff] %v13562_v57  ;;  %5179 = vmatpush.msrb.mxu0 %v13606_v42  ;;  %5063 = vmatpush.msrb.mxu2 %v13208_v10 }
 0x59c   :  { %15209 = vst [vmem:[#allocation222_spill] sm:$0xff] %v13565_v54  ;;  %v13629_v28 = vand.u32 4294901760, %v5189_v20  ;;  %5098 = vmatpush.msra.mxu3 %v13513_v44  ;;  %5006 = vmatpush.msrb.mxu1 %v13203_v40  ;;  %v15219_v20 = vand.u32 4294901760, %v13597_v13 }
 0x59d   :  { %15210 = vst [vmem:[#allocation223_spill] sm:$0xff] %v13575_v9  ;;  %5185 = vmatpush.msrb.mxu0 %v13617_v36  ;;  %v13637_v9 = vand.u32 4294901760, %v5195_v19  ;;  %5065 = vmatpush.msrb.mxu2 %v13227_v43  ;;  %v13650_v19 = vand.u32 4294901760, %v5201_v7  ;;  %v15222_v7 = vld [vmem:[#allocation189_spill] sm:$0xff] }
 0x59e   :  { %15211 = vst [vmem:[#allocation224_spill] sm:$0xff] %v13580_v33  ;;  %5100 = vmatpush.msra.mxu3 %v13529_v47  ;;  %5010 = vmatpush.msrb.mxu1 %v13222_v49 }
 0x59f   :  { %15212 = vst [vmem:[#allocation225_spill] sm:$0xff] %v13585_v18  ;;  %5191 = vmatpush.msrb.mxu0 %v13629_v28  ;;  %5067 = vmatpush.msrb.mxu2 %v13243_v21 }
 0x5a0   :  { %15213 = vst [vmem:[#allocation226_spill] sm:$0xff] %v13594_v46  ;;  %5102 = vmatpush.msra.mxu3 %v13553_v59  ;;  %5014 = vmatpush.msrb.mxu1 %v13238_v23 }
 0x5a1   :  { %15214 = vst [vmem:[#allocation227_spill] sm:$0xff] %v13602_v51  ;;  %5197 = vmatpush.msrb.mxu0 %v13637_v9  ;;  %5069 = vmatmul.f32.vlgmr.msrb.gmra.mxu2 %v13345_v63 }
 0x5a2   :  { %15215 = vst [vmem:[#allocation228_spill] sm:$0xff] %v13606_v42  ;;  %v5108_v42 = vsub.f32 %v13597_v13, %v15219_v20  ;;  %5104 = vmatpush.msra.mxu3 %v13571_v35  ;;  %5270 = vmatpush.msra.mxu2 %v13301_v62 }
 0x5a3   :  { %15216 = vst [vmem:[#allocation229_spill] sm:$0xff] %v13613_v56  ;;  %5018 = vmatpush.msrb.mxu1 %v13254_v26  ;;  %5203 = vmatpush.msrb.mxu0 %v13650_v19 }
 0x5a4   :  { %15217 = vst [vmem:[#allocation230_spill] sm:$0xff] %v13617_v36  ;;  %v5109_v20 = vand.u32 4294901760, %v5108_v42  ;;  %v13656_v36 = vand.u32 4294901760, %v5207_v22  ;;  %5272 = vmatpush.msra.mxu2 %v13311_v53  ;;  %5311 = vmatpush.msrb.mxu3 %v13363_v38  ;;  %v15220_v22 = vld [vmem:[#allocation196_spill] sm:$0xff]  ;;  %v15221_v42 = vld [vmem:[#allocation185_spill] sm:$0xff] }
 0x5a5   :  { %15218 = vst [vmem:[#allocation231_spill] sm:$0xff] %v13625_v50  ;;  %5022 = vmatpush.msrb.mxu1 %v13268_v6 }
 0x5a6   :  { %5110 = vmatmul.f32.vlgmr.msra.gmra.mxu3 %v5109_v20  ;;  %5209 = vmatpush.msrb.mxu0 %v13656_v36  ;;  %v15223_v20 = vld [vmem:[#allocation191_spill] sm:$0xff] }
 0x5a7   :  { %5211 = vmatmul.f32.vlgmr.msrb.gmra.mxu0 %v13567_v4  ;;  %5274 = vmatpush.msra.mxu2 %v13336_v24 }
 0x5a8   :  { %5315 = vmatpush.msrb.mxu3 %v13376_v31  ;;  %5378 = vmatpush.msra.mxu0 %v13301_v62 }
 0x5a9   :  { %5026 = vmatpush.msrb.mxu1 %v13285_v5  ;;  %5276 = vmatpush.msra.mxu2 %v13352_v15 }
 0x5aa   :  { %5319 = vmatpush.msrb.mxu3 %v15220_v22  ;;  %5380 = vmatpush.msra.mxu0 %v13311_v53  ;;  %v15225_v22 = vld [vmem:[#allocation193_spill] sm:$0xff] }
 0x5ab   :  { %5030 = vmatpush.msrb.mxu1 %v15221_v42  ;;  %5278 = vmatpush.msra.mxu2 %v13365_v16  ;;  %v15224_v42 = vld [vmem:[#allocation203_spill] sm:$0xff] }
 0x5ac   :  { %5032 = vmatmul.f32.vlgmr.msrb.gmra.mxu1 %v13345_v63  ;;  %5323 = vmatpush.msrb.mxu3 %v13419_v52  ;;  %v15226_v63 = vld [vmem:[#allocation194_spill] sm:$0xff] }
 0x5ad   :  { %5217 = vmatpush.msra.mxu1 %v15222_v7  ;;  %5382 = vmatpush.msra.mxu0 %v13336_v24  ;;  %v15286_v7 = vld [vmem:[#allocation53_spill] sm:$0xff] }
 0x5ae   :  { %5280 = vmatpush.msra.mxu2 %v13378_v12  ;;  %5327 = vmatpush.msrb.mxu3 %v13427_v55  ;;  %v15280_v55 = vld [vmem:[#allocation54_spill] sm:$0xff] }
 0x5af   :  { %5220 = vmatpush.msra.mxu1 %v15223_v20  ;;  %5384 = vmatpush.msra.mxu0 %v13352_v15  ;;  %v15227_v20 = vld [vmem:[#allocation195_spill] sm:$0xff] }
 0x5b0   :  { %5282 = vmatpush.msra.mxu2 %v13404_v48  ;;  %5331 = vmatpush.msrb.mxu3 %v15224_v42  ;;  %v15276_v42 = vld [vmem:[#allocation50_spill] sm:$0xff] }
 0x5b1   :  { %5223 = vmatpush.msra.mxu1 %v15225_v22  ;;  %5386 = vmatpush.msra.mxu0 %v13365_v16  ;;  %v15228_v22 = vld [vmem:[#allocation197_spill] sm:$0xff] }
 0x5b2   :  { %5284 = vmatpush.msra.mxu2 %v13421_v27  ;;  %5335 = vmatpush.msrb.mxu3 %v13471_v32 }
 0x5b3   :  { %5226 = vmatpush.msra.mxu1 %v15226_v63  ;;  %5388 = vmatpush.msra.mxu0 %v13378_v12  ;;  %v15229_v63 = vld [vmem:[#allocation201_spill] sm:$0xff] }
 0x5b4   :  { %5286 = vmatpush.msra.mxu2 %v13439_v30  ;;  %5339 = vmatpush.msrb.mxu3 %v13490_v45  ;;  %v15275_v45 = vld [vmem:[#allocation71_spill] sm:$0xff] }
 0x5b5   :  { %5229 = vmatpush.msra.mxu1 %v15227_v20  ;;  %5390 = vmatpush.msra.mxu0 %v13404_v48  ;;  %v15230_v20 = vld [vmem:[#allocation204_spill] sm:$0xff] }
 0x5b6   :  { %5288 = vmatpush.msra.mxu2 %v13457_v61  ;;  %5343 = vmatpush.msrb.mxu3 %v13508_v3  ;;  %v15273_v3 = vld [vmem:[#allocation47_spill] sm:$0xff] }
 0x5b7   :  { %5232 = vmatpush.msra.mxu1 %v15228_v22  ;;  %5392 = vmatpush.msra.mxu0 %v13421_v27  ;;  %v15267_v22 = vld [vmem:[#allocation39_spill] sm:$0xff] }
 0x5b8   :  { %5290 = vmatpush.msra.mxu2 %v13476_v41  ;;  %5347 = vmatpush.msrb.mxu3 %v13524_v39  ;;  %v15264_v39 = vld [vmem:[#allocation79_spill] sm:$0xff] }
 0x5b9   :  { %5235 = vmatpush.msra.mxu1 %v15229_v63  ;;  %5394 = vmatpush.msra.mxu0 %v13439_v30 }
 0x5ba   :  { %5292 = vmatpush.msra.mxu2 %v13495_v11  ;;  %5351 = vmatpush.msrb.mxu3 %v13543_v34 }
 0x5bb   :  { %5238 = vmatpush.msra.mxu1 %v15230_v20  ;;  %5396 = vmatpush.msra.mxu0 %v13457_v61  ;;  %v15261_v20 = vld [vmem:[#allocation37_spill] sm:$0xff] }
 0x5bc   :  { %5294 = vmatpush.msra.mxu2 %v13513_v44  ;;  %5355 = vmatpush.msrb.mxu3 %v13562_v57  ;;  %v15231_v57 = vld [vmem:[#allocation137_spill] sm:$0xff] }
 0x5bd   :  { %5241 = vmatpush.msra.mxu1 %v13474_v1  ;;  %5398 = vmatpush.msra.mxu0 %v13476_v41  ;;  %v3958_v1 = vmul.f32 %v15231_v57, %v15231_v57  ;;  %v15234_v57 = vld [vmem:[#allocation33_spill] sm:$0xff] }
 0x5be   :  { %5296 = vmatpush.msra.mxu2 %v13529_v47  ;;  %5359 = vmatpush.msrb.mxu3 %v13580_v33  ;;  %v15254_v33 = vld [vmem:[#allocation74_spill] sm:$0xff] }
 0x5bf   :  { %5244 = vmatpush.msra.mxu1 %v13493_v8  ;;  %5400 = vmatpush.msra.mxu0 %v13495_v11  ;;  %v15232_v8 = vand.u32 4294901760, %v13597_v13 }
 0x5c0   :  { %5298 = vmatpush.msra.mxu2 %v13553_v59  ;;  %5363 = vmatpush.msrb.mxu3 %v13594_v46  ;;  %v15233_v46 = vld [vmem:[#allocation14_spill] sm:$0xff] }
 0x5c1   :  { %5247 = vmatpush.msra.mxu1 %v13511_v25  ;;  %5402 = vmatpush.msra.mxu0 %v13513_v44  ;;  %v3962_v25 = vrot.slane %v3958_v1, 4 }
 0x5c2   :  { %5300 = vmatpush.msra.mxu2 %v13571_v35  ;;  %5367 = vmatpush.msrb.mxu3 %v13613_v56  ;;  %v15235_v56 = vld [vmem:[#allocation16_spill] sm:$0xff] }
 0x5c3   :  { %5250 = vmatpush.msra.mxu1 %v13527_v14  ;;  %5404 = vmatpush.msra.mxu0 %v13529_v47  ;;  %v15239_v14 = vld [vmem:[#allocation34_spill] sm:$0xff] }
 0x5c4   :  { %5304 = vmatmul.f32.vlgmr.msra.gmra.mxu2 %v15232_v8  ;;  %5371 = vmatpush.msrb.mxu3 %v13625_v50  ;;  %v15236_v8 = vld [vmem:[#allocation40_spill] sm:$0xff] }
 0x5c5   :  { %5461 = vmatpush.msrb.mxu2 %v15233_v46  ;;  %5253 = vmatpush.msra.mxu1 %v13546_v37  ;;  %v3963_v46 = vadd.f32 %v3962_v25, %v3958_v1  ;;  %v15237_v50 = vld [vmem:[#allocation8_spill] sm:$0xff]  ;;  %v15238_v37 = vld [vmem:[#allocation30_spill] sm:$0xff]  ;;  %v15243_v1 = vld [vmem:[#allocation49_spill] sm:$0xff] }
 0x5c6   :  { %5406 = vmatpush.msra.mxu0 %v13553_v59  ;;  %5373 = vmatmul.f32.vlgmr.msrb.gmra.mxu3 %v13567_v4  ;;  %v15245_v25 = vld [vmem:[#allocation69_spill] sm:$0xff] }
 0x5c7   :  { %5467 = vmatpush.msrb.mxu2 %v15234_v57  ;;  %5559 = vmatpush.msra.mxu3 %v15235_v56  ;;  %v15240_v57 = vld [vmem:[#allocation17_spill] sm:$0xff]  ;;  %v15241_v56 = vld [vmem:[#allocation15_spill] sm:$0xff] }
 0x5c8   :  { %5256 = vmatpush.msra.mxu1 %v13565_v54  ;;  %5408 = vmatpush.msra.mxu0 %v13571_v35  ;;  %v15242_v54 = vld [vmem:[#allocation68_spill] sm:$0xff] }
 0x5c9   :  { %5410 = vmatmul.f32.vlgmr.msra.gmra.mxu0 %v13567_v4  ;;  %5473 = vmatpush.msrb.mxu2 %v15236_v8  ;;  %v3964_v4 = vrot.slane %v3963_v46, 2  ;;  %v15247_v8 = vld [vmem:[#allocation36_spill] sm:$0xff] }
 0x5ca   :  { %5562 = vmatpush.msra.mxu3 %v15237_v50  ;;  %5612 = vmatpush.msrb.mxu0 %v15238_v37  ;;  %v15244_v50 = vld [vmem:[#allocation32_spill] sm:$0xff] }
 0x5cb   :  { %5259 = vmatpush.msra.mxu1 %v13585_v18  ;;  %5479 = vmatpush.msrb.mxu2 %v15239_v14  ;;  %v15246_v14 = vld [vmem:[#allocation12_spill] sm:$0xff]  ;;  %v15252_v18 = vld [vmem:[#allocation27_spill] sm:$0xff] }
 0x5cc   :  { %5565 = vmatpush.msra.mxu3 %v15240_v57  ;;  %5614 = vmatpush.msrb.mxu0 %v15241_v56  ;;  %v3965_v57 = vadd.f32 %v3964_v4, %v3963_v46  ;;  %v15255_v46 = vld [vmem:[#allocation64_spill] sm:$0xff] }
 0x5cd   :  { %5262 = vmatpush.msra.mxu1 %v13602_v51  ;;  %5485 = vmatpush.msrb.mxu2 %v15242_v54  ;;  %v15248_v51 = vld [vmem:[#allocation42_spill] sm:$0xff]  ;;  %v15249_v54 = vld [vmem:[#allocation21_spill] sm:$0xff]  ;;  %v15257_v4 = vld [vmem:[#allocation24_spill] sm:$0xff] }
 0x5ce   :  { %5265 = vmatmul.f32.vlgmr.msra.gmra.mxu1 %v13597_v13  ;;  %5568 = vmatpush.msra.mxu3 %v15243_v1  ;;  %v15250_v13 = vld [vmem:[#allocation9_spill] sm:$0xff]  ;;  %v15251_v1 = vld [vmem:[#allocation70_spill] sm:$0xff] }
 0x5cf   :  { %5416 = vmatpush.msrb.mxu1 %v15238_v37  ;;  %5616 = vmatpush.msrb.mxu0 %v15244_v50 }
 0x5d0   :  { %5491 = vmatpush.msrb.mxu2 %v15245_v25  ;;  %5571 = vmatpush.msra.mxu3 %v15246_v14  ;;  %v15253_v25 = vld [vmem:[#allocation19_spill] sm:$0xff]  ;;  %v3966_v14 = vrot.slane %v3965_v57, 1 }
 0x5d1   :  { %5418 = vmatpush.msrb.mxu1 %v15241_v56  ;;  %5618 = vmatpush.msrb.mxu0 %v15247_v8 }
 0x5d2   :  { %5497 = vmatpush.msrb.mxu2 %v15248_v51  ;;  %5574 = vmatpush.msra.mxu3 %v15249_v54  ;;  %v15256_v51 = vld [vmem:[#allocation10_spill] sm:$0xff]  ;;  %v3967_v34 = vadd.f32 %v3966_v14, %v3965_v57  ;;  %v15269_v57 = vld [vmem:[#allocation43_spill] sm:$0xff] }
 0x5d3   :  { %5420 = vmatpush.msrb.mxu1 %v15244_v50  ;;  %5620 = vmatpush.msrb.mxu0 %v15250_v13  ;;  %v15258_v54 = vld [vmem:[#allocation66_spill] sm:$0xff] }
 0x5d4   :  { %5503 = vmatpush.msrb.mxu2 %v15251_v1  ;;  %5577 = vmatpush.msra.mxu3 %v15252_v18  ;;  %v15259_v18 = vld [vmem:[#allocation59_spill] sm:$0xff]  ;;  %v15260_v1 = vld [vmem:[#allocation26_spill] sm:$0xff] }
 0x5d5   :  { %5422 = vmatpush.msrb.mxu1 %v15247_v8  ;;  %5622 = vmatpush.msrb.mxu0 %v15253_v25 }
 0x5d6   :  { %5509 = vmatpush.msrb.mxu2 %v15254_v33  ;;  %5580 = vmatpush.msra.mxu3 %v15255_v46  ;;  %v15262_v33 = vld [vmem:[#allocation61_spill] sm:$0xff]  ;;  %v15263_v46 = vld [vmem:[#allocation138_spill] sm:$0xff] }
 0x5d7   :  { %5424 = vmatpush.msrb.mxu1 %v15250_v13  ;;  %5624 = vmatpush.msrb.mxu0 %v15256_v51  ;;  %v3959_v63 = vmul.f32 %v15263_v46, %v15263_v46  ;;  %v15270_v46 = vld [vmem:[#allocation46_spill] sm:$0xff] }
 0x5d8   :  { %5515 = vmatpush.msrb.mxu2 %v15257_v4  ;;  %5583 = vmatpush.msra.mxu3 %v15258_v54  ;;  %v15265_v4 = vld [vmem:[#allocation38_spill] sm:$0xff]  ;;  %v15266_v54 = vld [vmem:[#allocation41_spill] sm:$0xff] }
 0x5d9   :  { %5426 = vmatpush.msrb.mxu1 %v15253_v25  ;;  %5626 = vmatpush.msrb.mxu0 %v15259_v18  ;;  %v3968_v14 = vrot.slane %v3959_v63, 4 }
 0x5da   :  { %5521 = vmatpush.msrb.mxu2 %v15260_v1  ;;  %5586 = vmatpush.msra.mxu3 %v15261_v20  ;;  %v15268_v1 = vld [vmem:[#allocation56_spill] sm:$0xff]  ;;  %v13782_v20 = vand.u32 4294901760, %v3967_v34 }
 0x5db   :  { %5428 = vmatpush.msrb.mxu1 %v15256_v51  ;;  %5628 = vmatpush.msrb.mxu0 %v15262_v33  ;;  %v3969_v32 = vadd.f32 %v3968_v14, %v3959_v63  ;;  %v15282_v63 = vld [vmem:[#allocation22_spill] sm:$0xff] }
 0x5dc   :  { %5527 = vmatpush.msrb.mxu2 %v15264_v39  ;;  %5589 = vmatpush.msra.mxu3 %v15265_v4  ;;  %v15271_v39 = vld [vmem:[#allocation63_spill] sm:$0xff] }
 0x5dd   :  { %5430 = vmatpush.msrb.mxu1 %v15259_v18  ;;  %5630 = vmatpush.msrb.mxu0 %v15266_v54  ;;  %v15272_v4 = vld [vmem:[#allocation35_spill] sm:$0xff] }
 0x5de   :  { %5533 = vmatpush.msrb.mxu2 %v15267_v22  ;;  %5592 = vmatpush.msra.mxu3 %v15268_v1  ;;  %v15274_v22 = vld [vmem:[#allocation72_spill] sm:$0xff]  ;;  %v5448_v1 = vsub.f32 %v3967_v34, %v13782_v20  ;;  %v3970_v34 = vrot.slane %v3969_v32, 2 }
 0x5df   :  { %5432 = vmatpush.msrb.mxu1 %v15262_v33  ;;  %5632 = vmatpush.msrb.mxu0 %v15269_v57 }
 0x5e0   :  { %5539 = vmatpush.msrb.mxu2 %v15270_v46  ;;  %5595 = vmatpush.msra.mxu3 %v15271_v39  ;;  %v15277_v46 = vld [vmem:[#allocation75_spill] sm:$0xff]  ;;  %v15278_v39 = vld [vmem:[#allocation60_spill] sm:$0xff] }
 0x5e1   :  { %5434 = vmatpush.msrb.mxu1 %v15266_v54  ;;  %5634 = vmatpush.msrb.mxu0 %v15272_v4 }
 0x5e2   :  { %5545 = vmatpush.msrb.mxu2 %v15273_v3  ;;  %5598 = vmatpush.msra.mxu3 %v15274_v22  ;;  %v15279_v3 = vld [vmem:[#allocation25_spill] sm:$0xff]  ;;  %v5449_v22 = vand.u32 4294901760, %v5448_v1 }
 0x5e3   :  { %5436 = vmatpush.msrb.mxu1 %v15269_v57  ;;  %5636 = vmatpush.msrb.mxu0 %v15275_v45 }
 0x5e4   :  { %5551 = vmatpush.msrb.mxu2 %v15276_v42  ;;  %5601 = vmatpush.msra.mxu3 %v15277_v46  ;;  %v15281_v42 = vld [vmem:[#allocation77_spill] sm:$0xff]  ;;  %v5450_v14 = vsub.f32 %v5448_v1, %v5449_v22  ;;  %v3971_v46 = vadd.f32 %v3970_v34, %v3969_v32  ;;  %v15291_v34 = vld [vmem:[#allocation11_spill] sm:$0xff] }
 0x5e5   :  { %5438 = vmatpush.msrb.mxu1 %v15272_v4  ;;  %5638 = vmatpush.msrb.mxu0 %v15278_v39  ;;  %v15287_v32 = vld [vmem:[#allocation57_spill] sm:$0xff] }
 0x5e6   :  { %5553 = vmatmul.f32.vlgmr.msrb.gmra.mxu2 %v13782_v20  ;;  %5604 = vmatpush.msra.mxu3 %v15279_v3  ;;  %v15284_v3 = vld [vmem:[#allocation90_spill] sm:$0xff]  ;;  %v5451_v52 = vand.u32 4294901760, %v5450_v14 }
 0x5e7   :  { %5720 = vmatpush.msra.mxu2 %v15238_v37  ;;  %5440 = vmatpush.msrb.mxu1 %v15275_v45  ;;  %v15283_v37 = vld [vmem:[#allocation29_spill] sm:$0xff] }
 0x5e8   :  { %5640 = vmatpush.msrb.mxu0 %v15280_v55  ;;  %5607 = vmatmul.f32.vlgmr.msra.gmra.mxu3 %v5448_v1  ;;  %v3972_v1 = vrot.slane %v3971_v46, 1 }
 0x5e9   :  { %5722 = vmatpush.msra.mxu2 %v15241_v56  ;;  %5757 = vmatpush.msrb.mxu3 %v15281_v42  ;;  %v15285_v56 = vld [vmem:[#allocation94_spill] sm:$0xff] }
 0x5ea   :  { %5442 = vmatpush.msrb.mxu1 %v15278_v39  ;;  %5642 = vmatpush.msrb.mxu0 %v15282_v63  ;;  %v3973_v14 = vadd.f32 %v3972_v1, %v3971_v46  ;;  %v15299_v46 = vld [vmem:[#allocation88_spill] sm:$0xff]  ;;  %v15301_v1 = vld [vmem:[#allocation106_spill] sm:$0xff] }
 0x5eb   :  { %5646 = vmatmul.f32.vlgmr.msrb.gmra.mxu0 %v5449_v22  ;;  %5724 = vmatpush.msra.mxu2 %v15244_v50  ;;  %v15288_v50 = vld [vmem:[#allocation45_spill] sm:$0xff]  ;;  %v15289_v22 = vld [vmem:[#allocation91_spill] sm:$0xff] }
 0x5ec   :  { %5759 = vmatpush.msrb.mxu3 %v15283_v37  ;;  %5802 = vmatpush.msra.mxu0 %v15284_v3  ;;  %v15295_v3 = vld [vmem:[#allocation98_spill] sm:$0xff] }
 0x5ed   :  { %5444 = vmatpush.msrb.mxu1 %v15280_v55  ;;  %5726 = vmatpush.msra.mxu2 %v15247_v8  ;;  %v15290_v8 = vld [vmem:[#allocation96_spill] sm:$0xff] }
 0x5ee   :  { %5761 = vmatpush.msrb.mxu3 %v15285_v56  ;;  %5808 = vmatpush.msra.mxu0 %v15286_v7  ;;  %v15292_v7 = vld [vmem:[#allocation86_spill] sm:$0xff] }
 0x5ef   :  { %5446 = vmatpush.msrb.mxu1 %v15282_v63  ;;  %5728 = vmatpush.msra.mxu2 %v15250_v13  ;;  %v15293_v13 = vld [vmem:[#allocation89_spill] sm:$0xff] }
 0x5f0   :  { %5452 = vmatmul.f32.vlgmr.msrb.gmra.mxu1 %v5451_v52  ;;  %5763 = vmatpush.msrb.mxu3 %v15287_v32  ;;  %v15294_v52 = vld [vmem:[#allocation20_spill] sm:$0xff] }
 0x5f1   :  { %5653 = vmatpush.msra.mxu1 %v15288_v50  ;;  %5814 = vmatpush.msra.mxu0 %v15289_v22  ;;  %v15296_v50 = vld [vmem:[#allocation93_spill] sm:$0xff] }
 0x5f2   :  { %5730 = vmatpush.msra.mxu2 %v15253_v25  ;;  %5765 = vmatpush.msrb.mxu3 %v15290_v8  ;;  %v15297_v25 = vld [vmem:[#allocation13_spill] sm:$0xff] }
 0x5f3   :  { %5657 = vmatpush.msra.mxu1 %v15291_v34  ;;  %5820 = vmatpush.msra.mxu0 %v15292_v7  ;;  %v15298_v22 = vld [vmem:[#allocation105_spill] sm:$0xff]  ;;  %v13832_v34 = vand.u32 4294901760, %v3973_v14  ;;  %v15302_v7 = vld [vmem:[#allocation100_spill] sm:$0xff] }
 0x5f4   :  { %5732 = vmatpush.msra.mxu2 %v15256_v51  ;;  %5767 = vmatpush.msrb.mxu3 %v15293_v13  ;;  %v15300_v51 = vld [vmem:[#allocation55_spill] sm:$0xff] }
 0x5f5   :  { %5661 = vmatpush.msra.mxu1 %v15294_v52  ;;  %5826 = vmatpush.msra.mxu0 %v15295_v3  ;;  %v15304_v52 = vld [vmem:[#allocation110_spill] sm:$0xff]  ;;  %v15305_v3 = vld [vmem:[#allocation103_spill] sm:$0xff] }
 0x5f6   :  { %5734 = vmatpush.msra.mxu2 %v15259_v18  ;;  %5769 = vmatpush.msrb.mxu3 %v15296_v50  ;;  %v15303_v18 = vld [vmem:[#allocation18_spill] sm:$0xff] }
 0x5f7   :  { %5665 = vmatpush.msra.mxu1 %v15297_v25  ;;  %5832 = vmatpush.msra.mxu0 %v15298_v22  ;;  %v15306_v25 = vld [vmem:[#allocation28_spill] sm:$0xff]  ;;  %v15307_v22 = vld [vmem:[#allocation114_spill] sm:$0xff] }
 0x5f8   :  { %5736 = vmatpush.msra.mxu2 %v15262_v33  ;;  %5771 = vmatpush.msrb.mxu3 %v15299_v46  ;;  %v13845_v33 = vsub.f32 %v3973_v14, %v13832_v34  ;;  %v15312_v14 = vld [vmem:[#allocation51_spill] sm:$0xff] }
 0x5f9   :  { %5669 = vmatpush.msra.mxu1 %v15300_v51  ;;  %5838 = vmatpush.msra.mxu0 %v15301_v1  ;;  %v15309_v51 = vld [vmem:[#allocation44_spill] sm:$0xff]  ;;  %v15310_v1 = vld [vmem:[#allocation121_spill] sm:$0xff] }
 0x5fa   :  { %5738 = vmatpush.msra.mxu2 %v15266_v54  ;;  %5773 = vmatpush.msrb.mxu3 %v15302_v7  ;;  %v15308_v54 = vld [vmem:[#allocation108_spill] sm:$0xff] }
 0x5fb   :  { %5673 = vmatpush.msra.mxu1 %v15303_v18  ;;  %5844 = vmatpush.msra.mxu0 %v15304_v52  ;;  %v14799_v18 = vand.u32 4294901760, %v13845_v33  ;;  %v15313_v52 = vld [vmem:[#allocation122_spill] sm:$0xff] }
 0x5fc   :  { %5740 = vmatpush.msra.mxu2 %v15269_v57  ;;  %5775 = vmatpush.msrb.mxu3 %v15305_v3  ;;  %v15311_v57 = vld [vmem:[#allocation111_spill] sm:$0xff] }
 0x5fd   :  { %5677 = vmatpush.msra.mxu1 %v15306_v25  ;;  %5850 = vmatpush.msra.mxu0 %v15307_v22  ;;  %v15314_v25 = vld [vmem:[#allocation116_spill] sm:$0xff]  ;;  %v15316_v22 = vld [vmem:[#allocation126_spill] sm:$0xff] }
 0x5fe   :  { %5742 = vmatpush.msra.mxu2 %v15272_v4  ;;  %5777 = vmatpush.msrb.mxu3 %v15308_v54  ;;  %v15315_v4 = vld [vmem:[#allocation73_spill] sm:$0xff] }
 0x5ff   :  { %5681 = vmatpush.msra.mxu1 %v15309_v51  ;;  %5856 = vmatpush.msra.mxu0 %v15310_v1  ;;  %v15317_v51 = vld [vmem:[#allocation119_spill] sm:$0xff]  ;;  %v15318_v1 = vld [vmem:[#allocation48_spill] sm:$0xff] }
 0x600   :  { %5744 = vmatpush.msra.mxu2 %v15275_v45  ;;  %5779 = vmatpush.msrb.mxu3 %v15311_v57  ;;  %v5791_v45 = vsub.f32 %v13845_v33, %v14799_v18  ;;  %v15324_v18 = vld [vmem:[#allocation23_spill] sm:$0xff] }
 0x601   :  { %5685 = vmatpush.msra.mxu1 %v15312_v14  ;;  %5862 = vmatpush.msra.mxu0 %v15313_v52  ;;  %v15319_v14 = vld [vmem:[#allocation130_spill] sm:$0xff] }
 0x602   :  { %5746 = vmatpush.msra.mxu2 %v15278_v39  ;;  %5781 = vmatpush.msrb.mxu3 %v15314_v25  ;;  %v15320_v39 = vld [vmem:[#allocation124_spill] sm:$0xff]  ;;  %v15321_v52 = vld [vmem:[#allocation58_spill] sm:$0xff] }
 0x603   :  { %5689 = vmatpush.msra.mxu1 %v15315_v4  ;;  %5868 = vmatpush.msra.mxu0 %v15316_v22  ;;  %v15322_v4 = vld [vmem:[#allocation134_spill] sm:$0xff]  ;;  %v5792_v22 = vand.u32 4294901760, %v5791_v45  ;;  %v15329_v45 = vld [vmem:[#allocation87_spill] sm:$0xff] }
 0x604   :  { %5748 = vmatpush.msra.mxu2 %v15280_v55  ;;  %5783 = vmatpush.msrb.mxu3 %v15317_v51  ;;  %v15323_v55 = vld [vmem:[#allocation127_spill] sm:$0xff] }
 0x605   :  { %5693 = vmatpush.msra.mxu1 %v15318_v1  ;;  %5874 = vmatpush.msra.mxu0 %v15319_v14  ;;  %v15325_v1 = vld [vmem:[#allocation135_spill] sm:$0xff]  ;;  %v15327_v14 = vld [vmem:[#allocation76_spill] sm:$0xff] }
 0x606   :  { %5750 = vmatpush.msra.mxu2 %v15282_v63  ;;  %5785 = vmatpush.msrb.mxu3 %v15320_v39  ;;  %v15326_v63 = vld [vmem:[#allocation85_spill] sm:$0xff] }
 0x607   :  { %5697 = vmatpush.msra.mxu1 %v15321_v52  ;;  %5880 = vmatpush.msra.mxu0 %v15322_v4  ;;  %v15328_v52 = vld [vmem:[#allocation136_spill] sm:$0xff]  ;;  %v15331_v4 = vld [vmem:[#allocation62_spill] sm:$0xff] }
 0x608   :  { %5752 = vmatmul.f32.vlgmr.msra.gmra.mxu2 %v13782_v20  ;;  %5787 = vmatpush.msrb.mxu3 %v15323_v55 }
 0x609   :  { %5953 = vmatpush.msrb.mxu2 %v15281_v42  ;;  %5701 = vmatpush.msra.mxu1 %v15324_v18  ;;  %v15330_v18 = vld [vmem:[#allocation78_spill] sm:$0xff] }
 0x60a   :  { %5886 = vmatpush.msra.mxu0 %v15325_v1  ;;  %5793 = vmatmul.f32.vlgmr.msrb.gmra.mxu3 %v5792_v22  ;;  %v15332_v22 = vld [vmem:[#allocation31_spill] sm:$0xff] }
 0x60b   :  { %5955 = vmatpush.msrb.mxu2 %v15283_v37  ;;  %5994 = vmatpush.msra.mxu3 %v15326_v63  ;;  %v15333_v1 = vld [vmem:[#allocation67_spill] sm:$0xff]  ;;  %v15334_v63 = vld [vmem:[#allocation81_spill] sm:$0xff] }
 0x60c   :  { %5705 = vmatpush.msra.mxu1 %v15327_v14  ;;  %5892 = vmatpush.msra.mxu0 %v15328_v52  ;;  %v15336_v14 = vld [vmem:[#allocation84_spill] sm:$0xff]  ;;  %v15338_v52 = vld [vmem:[#allocation95_spill] sm:$0xff] }
 0x60d   :  { %5894 = vmatmul.f32.vlgmr.msra.gmra.mxu0 %v13832_v34  ;;  %5957 = vmatpush.msrb.mxu2 %v15285_v56 }
 0x60e   :  { %5998 = vmatpush.msra.mxu3 %v15329_v45  ;;  %6061 = vmatpush.msrb.mxu0 %v15281_v42  ;;  %v15335_v42 = vld [vmem:[#allocation82_spill] sm:$0xff] }
 0x60f   :  { %5709 = vmatpush.msra.mxu1 %v15330_v18  ;;  %5959 = vmatpush.msrb.mxu2 %v15287_v32  ;;  %v15341_v45 = vld [vmem:[#allocation102_spill] sm:$0xff]  ;;  %v15343_v18 = vld [vmem:[#allocation107_spill] sm:$0xff] }
 0x610   :  { %6002 = vmatpush.msra.mxu3 %v15331_v4  ;;  %6063 = vmatpush.msrb.mxu0 %v15283_v37  ;;  %v15337_v37 = vld [vmem:[#allocation97_spill] sm:$0xff] }
 0x611   :  { %5713 = vmatpush.msra.mxu1 %v15332_v22  ;;  %5961 = vmatpush.msrb.mxu2 %v15290_v8  ;;  %v15345_v4 = vld [vmem:[#allocation113_spill] sm:$0xff]  ;;  %v15347_v22 = vld [vmem:[#allocation115_spill] sm:$0xff] }
 0x612   :  { %5715 = vmatmul.f32.vlgmr.msra.gmra.mxu1 %v13782_v20  ;;  %6006 = vmatpush.msra.mxu3 %v15333_v1  ;;  %v15339_v20 = vld [vmem:[#allocation99_spill] sm:$0xff]  ;;  %v15349_v1 = vld [vmem:[#allocation118_spill] sm:$0xff] }
 0x613   :  { %5900 = vmatpush.msrb.mxu1 %v15334_v63  ;;  %6065 = vmatpush.msrb.mxu0 %v15285_v56  ;;  %v15340_v56 = vld [vmem:[#allocation65_spill] sm:$0xff]  ;;  %v15351_v63 = vld [vmem:[#allocation123_spill] sm:$0xff] }
 0x614   :  { %5963 = vmatpush.msrb.mxu2 %v15293_v13  ;;  %6010 = vmatpush.msra.mxu3 %v15335_v42  ;;  %v15353_v42 = vld [vmem:[#allocation129_spill] sm:$0xff] }
 0x615   :  { %5903 = vmatpush.msrb.mxu1 %v15336_v14  ;;  %6067 = vmatpush.msrb.mxu0 %v15287_v32  ;;  %v15342_v32 = vld [vmem:[#allocation80_spill] sm:$0xff] }
 0x616   :  { %5965 = vmatpush.msrb.mxu2 %v15296_v50  ;;  %6014 = vmatpush.msra.mxu3 %v15337_v37  ;;  %v15355_v14 = vld [vmem:[#allocation156_spill] sm:$0xff] }
 0x617   :  { %5906 = vmatpush.msrb.mxu1 %v15338_v52  ;;  %6069 = vmatpush.msrb.mxu0 %v15290_v8  ;;  %v15344_v8 = vld [vmem:[#allocation83_spill] sm:$0xff]  ;;  %v3960_v37 = vmul.f32 %v15355_v14, %v15355_v14  ;;  %v15357_v52 = vld [vmem:[#allocation117_spill] sm:$0xff] }
 0x618   :  { %5967 = vmatpush.msrb.mxu2 %v15299_v46  ;;  %6018 = vmatpush.msra.mxu3 %v15339_v20  ;;  %v15359_v20 = vld [vmem:[#allocation133_spill] sm:$0xff] }
 0x619   :  { %5909 = vmatpush.msrb.mxu1 %v15340_v56  ;;  %6071 = vmatpush.msrb.mxu0 %v15293_v13  ;;  %v15346_v13 = vld [vmem:[#allocation92_spill] sm:$0xff]  ;;  %v15360_v56 = vld [vmem:[#allocation158_spill] sm:$0xff] }
 0x61a   :  { %5969 = vmatpush.msrb.mxu2 %v15302_v7  ;;  %6022 = vmatpush.msra.mxu3 %v15341_v45  ;;  %v15361_v45 = vld [vmem:[#allocation120_spill] sm:$0xff] }
 0x61b   :  { %5912 = vmatpush.msrb.mxu1 %v15342_v32  ;;  %6073 = vmatpush.msrb.mxu0 %v15296_v50  ;;  %v15348_v50 = vld [vmem:[#allocation101_spill] sm:$0xff]  ;;  %v15362_v32 = vld [vmem:[#allocation162_spill] sm:$0xff] }
 0x61c   :  { %5971 = vmatpush.msrb.mxu2 %v15305_v3  ;;  %6026 = vmatpush.msra.mxu3 %v15343_v18  ;;  %v15363_v18 = vld [vmem:[#allocation141_spill] sm:$0xff] }
 0x61d   :  { %5915 = vmatpush.msrb.mxu1 %v15344_v8  ;;  %6075 = vmatpush.msrb.mxu0 %v15299_v46  ;;  %v15350_v46 = vld [vmem:[#allocation104_spill] sm:$0xff]  ;;  %v15364_v8 = vld [vmem:[#allocation125_spill] sm:$0xff] }
 0x61e   :  { %5973 = vmatpush.msrb.mxu2 %v15308_v54  ;;  %6030 = vmatpush.msra.mxu3 %v15345_v4 }
 0x61f   :  { %5918 = vmatpush.msrb.mxu1 %v15346_v13  ;;  %6077 = vmatpush.msrb.mxu0 %v15302_v7  ;;  %v15352_v7 = vld [vmem:[#allocation109_spill] sm:$0xff]  ;;  %v15366_v13 = vld [vmem:[#allocation143_spill] sm:$0xff] }
 0x620   :  { %5975 = vmatpush.msrb.mxu2 %v15311_v57  ;;  %6034 = vmatpush.msra.mxu3 %v15347_v22  ;;  %v15367_v22 = vld [vmem:[#allocation139_spill] sm:$0xff] }
 0x621   :  { %5921 = vmatpush.msrb.mxu1 %v15348_v50  ;;  %6079 = vmatpush.msrb.mxu0 %v15305_v3  ;;  %v15354_v3 = vld [vmem:[#allocation112_spill] sm:$0xff]  ;;  %v15369_v50 = vld [vmem:[#allocation167_spill] sm:$0xff] }
 0x622   :  { %5977 = vmatpush.msrb.mxu2 %v15314_v25  ;;  %6038 = vmatpush.msra.mxu3 %v15349_v1  ;;  %v15370_v1 = vld [vmem:[#allocation146_spill] sm:$0xff] }
 0x623   :  { %5924 = vmatpush.msrb.mxu1 %v15350_v46  ;;  %6081 = vmatpush.msrb.mxu0 %v15308_v54  ;;  %v15356_v54 = vld [vmem:[#allocation131_spill] sm:$0xff]  ;;  %v15371_v46 = vld [vmem:[#allocation140_spill] sm:$0xff] }
 0x624   :  { %5979 = vmatpush.msrb.mxu2 %v15317_v51  ;;  %6042 = vmatpush.msra.mxu3 %v15351_v63  ;;  %v15372_v63 = vld [vmem:[#allocation132_spill] sm:$0xff] }
 0x625   :  { %5927 = vmatpush.msrb.mxu1 %v15352_v7  ;;  %6083 = vmatpush.msrb.mxu0 %v15311_v57  ;;  %v15358_v57 = vand.u32 4294901760, %v13845_v33  ;;  %v15374_v7 = vld [vmem:[#allocation149_spill] sm:$0xff] }
 0x626   :  { %5981 = vmatpush.msrb.mxu2 %v15320_v39  ;;  %6046 = vmatpush.msra.mxu3 %v15353_v42  ;;  %v15375_v42 = vld [vmem:[#allocation142_spill] sm:$0xff] }
 0x627   :  { %5930 = vmatpush.msrb.mxu1 %v15354_v3  ;;  %6085 = vmatpush.msrb.mxu0 %v15314_v25  ;;  %v3974_v25 = vrot.slane %v3960_v37, 4  ;;  %v15376_v3 = vld [vmem:[#allocation173_spill] sm:$0xff] }
 0x628   :  { %5983 = vmatpush.msrb.mxu2 %v15323_v55  ;;  %6050 = vmatpush.msra.mxu3 %v15356_v54  ;;  %v15378_v54 = vld [vmem:[#allocation144_spill] sm:$0xff] }
 0x629   :  { %5933 = vmatpush.msrb.mxu1 %v15357_v52  ;;  %6087 = vmatpush.msrb.mxu0 %v15317_v51  ;;  %v15365_v51 = vld [vmem:[#allocation164_spill] sm:$0xff]  ;;  %v3975_v4 = vadd.f32 %v3974_v25, %v3960_v37  ;;  %v15384_v25 = vld [vmem:[#allocation150_spill] sm:$0xff] }
 0x62a   :  { %5987 = vmatmul.f32.vlgmr.msrb.gmra.mxu2 %v15358_v57  ;;  %6054 = vmatpush.msra.mxu3 %v15359_v20  ;;  %v15377_v37 = vld [vmem:[#allocation152_spill] sm:$0xff]  ;;  %v15379_v57 = vld [vmem:[#allocation175_spill] sm:$0xff]  ;;  %v15380_v20 = vld [vmem:[#allocation157_spill] sm:$0xff] }
 0x62b   :  { %6143 = vmatpush.msra.mxu2 %v15360_v56  ;;  %5936 = vmatpush.msrb.mxu1 %v15361_v45  ;;  %v15382_v56 = vld [vmem:[#allocation177_spill] sm:$0xff]  ;;  %v15383_v45 = vld [vmem:[#allocation160_spill] sm:$0xff] }
 0x62c   :  { %6089 = vmatpush.msrb.mxu0 %v15320_v39  ;;  %6056 = vmatmul.f32.vlgmr.msra.gmra.mxu3 %v13832_v34  ;;  %v15368_v39 = vld [vmem:[#allocation128_spill] sm:$0xff] }
 0x62d   :  { %6149 = vmatpush.msra.mxu2 %v15362_v32  ;;  %6241 = vmatpush.msrb.mxu3 %v15363_v18  ;;  %v15385_v18 = vld [vmem:[#allocation179_spill] sm:$0xff] }
 0x62e   :  { %5939 = vmatpush.msrb.mxu1 %v15364_v8  ;;  %6091 = vmatpush.msrb.mxu0 %v15323_v55  ;;  %v15373_v55 = vld [vmem:[#allocation170_spill] sm:$0xff]  ;;  %v15386_v8 = vld [vmem:[#allocation163_spill] sm:$0xff] }
 0x62f   :  { %6093 = vmatmul.f32.vlgmr.msrb.gmra.mxu0 %v13832_v34  ;;  %6155 = vmatpush.msra.mxu2 %v15365_v51  ;;  %v3976_v34 = vrot.slane %v3975_v4, 2  ;;  %v15387_v51 = vld [vmem:[#allocation153_spill] sm:$0xff] }
 0x630   :  { %6244 = vmatpush.msrb.mxu3 %v15366_v13  ;;  %6294 = vmatpush.msra.mxu0 %v15367_v22  ;;  %v15389_v13 = vld [vmem:[#allocation166_spill] sm:$0xff] }
 0x631   :  { %5942 = vmatpush.msrb.mxu1 %v15368_v39  ;;  %6161 = vmatpush.msra.mxu2 %v15369_v50  ;;  %v3977_v52 = vadd.f32 %v3976_v34, %v3975_v4  ;;  %v15388_v4 = vld [vmem:[#allocation181_spill] sm:$0xff]  ;;  %v15390_v39 = vld [vmem:[#allocation155_spill] sm:$0xff] }
 0x632   :  { %6247 = vmatpush.msrb.mxu3 %v15370_v1  ;;  %6296 = vmatpush.msra.mxu0 %v15371_v46  ;;  %v15391_v50 = vld [vmem:[#allocation183_spill] sm:$0xff]  ;;  %v15392_v1 = vld [vmem:[#allocation169_spill] sm:$0xff] }
 0x633   :  { %5945 = vmatpush.msrb.mxu1 %v15372_v63  ;;  %6167 = vmatpush.msra.mxu2 %v15373_v55  ;;  %v3978_v32 = vrot.slane %v3977_v52, 1  ;;  %v15393_v55 = vld [vmem:[#allocation161_spill] sm:$0xff]  ;;  %v15394_v34 = vld [vmem:[#allocation187_spill] sm:$0xff] }
 0x634   :  { %5948 = vmatmul.f32.vlgmr.msrb.gmra.mxu1 %v13845_v33  ;;  %6250 = vmatpush.msrb.mxu3 %v15374_v7  ;;  %v15381_v33 = vld [vmem:[#allocation147_spill] sm:$0xff]  ;;  %v3961_v7 = vmul.f32 %v15394_v34, %v15394_v34 }
 0x635   :  { %6098 = vmatpush.msra.mxu1 %v15367_v22  ;;  %6298 = vmatpush.msra.mxu0 %v15375_v42  ;;  %v3979_v63 = vadd.f32 %v3978_v32, %v3977_v52  ;;  %v15400_v32 = vld [vmem:[#allocation176_spill] sm:$0xff] }
 0x636   :  { %6173 = vmatpush.msra.mxu2 %v15376_v3  ;;  %6253 = vmatpush.msrb.mxu3 %v15377_v37  ;;  %v15395_v3 = vld [vmem:[#allocation184_spill] sm:$0xff] }
 0x637   :  { %6100 = vmatpush.msra.mxu1 %v15371_v46  ;;  %6300 = vmatpush.msra.mxu0 %v15378_v54  ;;  %v15396_v37 = vld [vmem:[#allocation172_spill] sm:$0xff]  ;;  %v13999_v52 = vand.u32 4294901760, %v3979_v63 }
 0x638   :  { %6179 = vmatpush.msra.mxu2 %v15379_v57  ;;  %6256 = vmatpush.msrb.mxu3 %v15380_v20  ;;  %v15397_v57 = vld [vmem:[#allocation186_spill] sm:$0xff] }
 0x639   :  { %6102 = vmatpush.msra.mxu1 %v15375_v42  ;;  %6302 = vmatpush.msra.mxu0 %v15381_v33  ;;  %v15398_v20 = vld [vmem:[#allocation174_spill] sm:$0xff] }
 0x63a   :  { %6185 = vmatpush.msra.mxu2 %v15382_v56  ;;  %6259 = vmatpush.msrb.mxu3 %v15383_v45  ;;  %v3980_v56 = vrot.slane %v3961_v7, 4  ;;  %v15399_v45 = vld [vmem:[#allocation188_spill] sm:$0xff] }
 0x63b   :  { %6104 = vmatpush.msra.mxu1 %v15378_v54  ;;  %6304 = vmatpush.msra.mxu0 %v15384_v25 }
 0x63c   :  { %6191 = vmatpush.msra.mxu2 %v15385_v18  ;;  %6262 = vmatpush.msrb.mxu3 %v15386_v8  ;;  %v15401_v18 = vld [vmem:[#allocation190_spill] sm:$0xff] }
 0x63d   :  { %6106 = vmatpush.msra.mxu1 %v15381_v33  ;;  %6306 = vmatpush.msra.mxu0 %v15387_v51  ;;  %v15402_v8 = vld [vmem:[#allocation178_spill] sm:$0xff] }
 0x63e   :  { %6197 = vmatpush.msra.mxu2 %v15388_v4  ;;  %6265 = vmatpush.msrb.mxu3 %v15389_v13  ;;  %v6130_v4 = vsub.f32 %v3979_v63, %v13999_v52  ;;  %v3981_v13 = vadd.f32 %v3980_v56, %v3961_v7 }
 0x63f   :  { %6108 = vmatpush.msra.mxu1 %v15384_v25  ;;  %6308 = vmatpush.msra.mxu0 %v15390_v39 }
 0x640   :  { %6203 = vmatpush.msra.mxu2 %v15391_v50  ;;  %6268 = vmatpush.msrb.mxu3 %v15392_v1  ;;  %v15403_v50 = vld [vmem:[#allocation192_spill] sm:$0xff]  ;;  %v3982_v63 = vrot.slane %v3981_v13, 2 }
 0x641   :  { %6110 = vmatpush.msra.mxu1 %v15387_v51  ;;  %6310 = vmatpush.msra.mxu0 %v15393_v55  ;;  %v15404_v1 = vld [vmem:[#allocation180_spill] sm:$0xff] }
 0x642   :  { %6209 = vmatpush.msra.mxu2 %v15395_v3  ;;  %6271 = vmatpush.msrb.mxu3 %v15396_v37  ;;  %v15405_v3 = vld [vmem:[#allocation182_spill] sm:$0xff]  ;;  %v6131_v37 = vand.u32 4294901760, %v6130_v4 }
 0x643   :  { %6112 = vmatpush.msra.mxu1 %v15390_v39  ;;  %6312 = vmatpush.msra.mxu0 %v13130_v58 }
 0x644   :  { %6215 = vmatpush.msra.mxu2 %v15397_v57  ;;  %6274 = vmatpush.msrb.mxu3 %v15398_v20  ;;  %v6132_v7 = vsub.f32 %v6130_v4, %v6131_v37  ;;  %v3983_v57 = vadd.f32 %v3982_v63, %v3981_v13  ;;  %v15454_v63 = vld [vmem:[#allocation225_spill] sm:$0xff] }
 0x645   :  { %6114 = vmatpush.msra.mxu1 %v15393_v55  ;;  %6314 = vmatpush.msra.mxu0 %v13150_v60 }
 0x646   :  { %6221 = vmatpush.msra.mxu2 %v15399_v45  ;;  %6277 = vmatpush.msrb.mxu3 %v15400_v32  ;;  %v6133_v20 = vand.u32 4294901760, %v6132_v7  ;;  %v3984_v56 = vrot.slane %v3983_v57, 1  ;;  %v15409_v45 = vld [vmem:[#allocation205_spill] sm:$0xff]  ;;  %v15411_v32 = vld [vmem:[#allocation208_spill] sm:$0xff]  ;;  %v4088_v7 = vpop.f32.mrf.mxu1 }
 0x647   :  { %6116 = vmatpush.msra.mxu1 %v13130_v58  ;;  %6316 = vmatpush.msra.mxu0 %v13169_v29 }
 0x648   :  { %6227 = vmatpush.msra.mxu2 %v15401_v18  ;;  %6280 = vmatpush.msrb.mxu3 %v15402_v8  ;;  %v3985_v18 = vadd.f32 %v3984_v56, %v3983_v57  ;;  %v15413_v8 = vld [vmem:[#allocation211_spill] sm:$0xff]  ;;  %v4189_v57 = vpop.f32.mrf.mxu2 }
 0x649   :  { %6118 = vmatpush.msra.mxu1 %v13150_v60  ;;  %6318 = vmatpush.msra.mxu0 %v13189_v0 }
 0x64a   :  { %6233 = vmatpush.msra.mxu2 %v15403_v50  ;;  %6283 = vmatpush.msrb.mxu3 %v15404_v1  ;;  %v14049_v13 = vand.u32 4294901760, %v3985_v18  ;;  %v15417_v50 = vld [vmem:[#allocation217_spill] sm:$0xff] }
 0x64b   :  { %6120 = vmatpush.msra.mxu1 %v13169_v29  ;;  %6320 = vmatpush.msra.mxu0 %v13208_v10  ;;  %v15419_v1 = vld [vmem:[#allocation165_spill] sm:$0xff] }
 0x64c   :  { %6235 = vmatmul.f32.vlgmr.msra.gmra.mxu2 %v13999_v52  ;;  %6286 = vmatpush.msrb.mxu3 %v15405_v3  ;;  %v15420_v3 = vld [vmem:[#allocation223_spill] sm:$0xff] }
 0x64d   :  { %6402 = vmatpush.msrb.mxu2 %v15367_v22  ;;  %6122 = vmatpush.msra.mxu1 %v13189_v0  ;;  %v15406_v22 = vld [vmem:[#allocation199_spill] sm:$0xff] }
 0x64e   :  { %6322 = vmatpush.msra.mxu0 %v13227_v43  ;;  %6289 = vmatmul.f32.vlgmr.msrb.gmra.mxu3 %v6130_v4  ;;  %v15415_v4 = vld [vmem:[#allocation214_spill] sm:$0xff] }
 0x64f   :  { %6404 = vmatpush.msrb.mxu2 %v15371_v46  ;;  %6439 = vmatpush.msra.mxu3 %v13301_v62  ;;  %v15407_v46 = vld [vmem:[#allocation202_spill] sm:$0xff] }
 0x650   :  { %6124 = vmatpush.msra.mxu1 %v13208_v10  ;;  %6324 = vmatpush.msra.mxu0 %v13243_v21 }
 0x651   :  { %6328 = vmatmul.f32.vlgmr.msra.gmra.mxu0 %v6131_v37  ;;  %6406 = vmatpush.msrb.mxu2 %v15375_v42  ;;  %v15408_v42 = vld [vmem:[#allocation145_spill] sm:$0xff]  ;;  %v15423_v37 = vld [vmem:[#allocation228_spill] sm:$0xff] }
 0x652   :  { %6441 = vmatpush.msra.mxu3 %v13311_v53  ;;  %6484 = vmatpush.msrb.mxu0 %v15406_v22  ;;  %v4243_v22 = vpop.f32.mrf.mxu3 }
 0x653   :  { %6126 = vmatpush.msra.mxu1 %v13227_v43  ;;  %6408 = vmatpush.msrb.mxu2 %v15378_v54  ;;  %v15410_v54 = vld [vmem:[#allocation148_spill] sm:$0xff] }
 0x654   :  { %6443 = vmatpush.msra.mxu3 %v13336_v24  ;;  %6490 = vmatpush.msrb.mxu0 %v15407_v46  ;;  %v4282_v46 = vpop.f32.mrf.mxu0 }
 0x655   :  { %6128 = vmatpush.msra.mxu1 %v13243_v21  ;;  %6410 = vmatpush.msrb.mxu2 %v15381_v33  ;;  %v15412_v33 = vld [vmem:[#allocation151_spill] sm:$0xff] }
 0x656   :  { %6134 = vmatmul.f32.vlgmr.msra.gmra.mxu1 %v6133_v20  ;;  %6445 = vmatpush.msra.mxu3 %v13352_v15  ;;  %v4351_v20 = vpop.f32.mrf.mxu1 }
 0x657   :  { %6335 = vmatpush.msrb.mxu1 %v15408_v42  ;;  %6496 = vmatpush.msrb.mxu0 %v15409_v45 }
 0x658   :  { %6412 = vmatpush.msrb.mxu2 %v15384_v25  ;;  %6447 = vmatpush.msra.mxu3 %v13365_v16  ;;  %v15414_v25 = vld [vmem:[#allocation154_spill] sm:$0xff] }
 0x659   :  { %6339 = vmatpush.msrb.mxu1 %v15410_v54  ;;  %6502 = vmatpush.msrb.mxu0 %v15411_v32 }
 0x65a   :  { %6414 = vmatpush.msrb.mxu2 %v15387_v51  ;;  %6449 = vmatpush.msra.mxu3 %v13378_v12  ;;  %v15416_v51 = vld [vmem:[#allocation159_spill] sm:$0xff]  ;;  %v4429_v56 = vpop.f32.mrf.mxu3 }
 0x65b   :  { %6343 = vmatpush.msrb.mxu1 %v15412_v33  ;;  %6508 = vmatpush.msrb.mxu0 %v15413_v8 }
 0x65c   :  { %6416 = vmatpush.msrb.mxu2 %v15390_v39  ;;  %6451 = vmatpush.msra.mxu3 %v13404_v48  ;;  %v15418_v39 = vld [vmem:[#allocation220_spill] sm:$0xff]  ;;  %v4530_v45 = vpop.f32.mrf.mxu0 }
 0x65d   :  { %6347 = vmatpush.msrb.mxu1 %v15414_v25  ;;  %6514 = vmatpush.msrb.mxu0 %v15415_v4 }
 0x65e   :  { %6418 = vmatpush.msrb.mxu2 %v15393_v55  ;;  %6453 = vmatpush.msra.mxu3 %v13421_v27  ;;  %v14062_v55 = vsub.f32 %v3985_v18, %v14049_v13  ;;  %v4584_v42 = vpop.f32.mrf.mxu1 }
 0x65f   :  { %6351 = vmatpush.msrb.mxu1 %v15416_v51  ;;  %6520 = vmatpush.msrb.mxu0 %v15417_v50  ;;  %v4190_v50 = vadd.f32 %v4189_v57, %v4088_v7 }
 0x660   :  { %6420 = vmatpush.msrb.mxu2 %v13130_v58  ;;  %6455 = vmatpush.msra.mxu3 %v13439_v30  ;;  %v15421_v58 = vld [vmem:[#allocation168_spill] sm:$0xff] }
 0x661   :  { %6355 = vmatpush.msrb.mxu1 %v13128_v2  ;;  %6526 = vmatpush.msrb.mxu0 %v15418_v39  ;;  %v6472_v2 = vand.u32 4294901760, %v14062_v55 }
 0x662   :  { %6422 = vmatpush.msrb.mxu2 %v13150_v60  ;;  %6457 = vmatpush.msra.mxu3 %v13457_v61  ;;  %v15422_v60 = vld [vmem:[#allocation171_spill] sm:$0xff]  ;;  %v4692_v32 = vpop.f32.mrf.mxu3 }
 0x663   :  { %6359 = vmatpush.msrb.mxu1 %v15419_v1  ;;  %6532 = vmatpush.msrb.mxu0 %v15420_v3  ;;  %v4244_v3 = vadd.f32 %v4243_v22, %v4190_v50 }
 0x664   :  { %6424 = vmatpush.msrb.mxu2 %v13169_v29  ;;  %6459 = vmatpush.msra.mxu3 %v13476_v41  ;;  %v15424_v29 = vld [vmem:[#allocation230_spill] sm:$0xff]  ;;  %v4729_v18 = vpop.f32.mrf.mxu0 }
 0x665   :  { %6363 = vmatpush.msrb.mxu1 %v15421_v58  ;;  %6538 = vmatpush.msrb.mxu0 %v13589_v17  ;;  %v15443_v17 = vld [vmem:[#allocation221_spill] sm:$0xff] }
 0x666   :  { %6426 = vmatpush.msrb.mxu2 %v13189_v0  ;;  %6461 = vmatpush.msra.mxu3 %v13495_v11  ;;  %v6473_v0 = vsub.f32 %v14062_v55, %v6472_v2 }
 0x667   :  { %6367 = vmatpush.msrb.mxu1 %v15422_v60  ;;  %6544 = vmatpush.msrb.mxu0 %v15423_v37 }
 0x668   :  { %6428 = vmatpush.msrb.mxu2 %v13208_v10  ;;  %6463 = vmatpush.msra.mxu3 %v13513_v44  ;;  %v15431_v10 = vld [vmem:[#allocation203_spill] sm:$0xff] }
 0x669   :  { %6371 = vmatpush.msrb.mxu1 %v13203_v40  ;;  %6550 = vmatpush.msrb.mxu0 %v15424_v29  ;;  %v15432_v40 = vld [vmem:[#allocation193_spill] sm:$0xff] }
 0x66a   :  { %6430 = vmatpush.msrb.mxu2 %v13227_v43  ;;  %6465 = vmatpush.msra.mxu3 %v13529_v47  ;;  %v6474_v43 = vand.u32 4294901760, %v6473_v0  ;;  %v4925_v8 = vpop.f32.mrf.mxu3 }
 0x66b   :  { %6375 = vmatpush.msrb.mxu1 %v13222_v49  ;;  %6556 = vmatpush.msrb.mxu0 %v13629_v28  ;;  %v15426_v28 = vld [vmem:[#allocation185_spill] sm:$0xff]  ;;  %v15430_v49 = vld [vmem:[#allocation191_spill] sm:$0xff] }
 0x66c   :  { %6432 = vmatpush.msrb.mxu2 %v13243_v21  ;;  %6467 = vmatpush.msra.mxu3 %v13553_v59  ;;  %v15425_v21 = vld [vmem:[#allocation196_spill] sm:$0xff]  ;;  %v4964_v4 = vpop.f32.mrf.mxu0 }
 0x66d   :  { %6379 = vmatpush.msrb.mxu1 %v13238_v23  ;;  %6562 = vmatpush.msrb.mxu0 %v13637_v9  ;;  %v15428_v23 = vld [vmem:[#allocation189_spill] sm:$0xff]  ;;  %v15445_v9 = vld [vmem:[#allocation224_spill] sm:$0xff] }
 0x66e   :  { %6434 = vmatmul.f32.vlgmr.msrb.gmra.mxu2 %v13999_v52  ;;  %6469 = vmatpush.msra.mxu3 %v13571_v35 }
 0x66f   :  { %6635 = vmatpush.msra.mxu2 %v13301_v62  ;;  %6383 = vmatpush.msrb.mxu1 %v13254_v26  ;;  %v15427_v26 = vld [vmem:[#allocation198_spill] sm:$0xff] }
 0x670   :  { %6568 = vmatpush.msrb.mxu0 %v13650_v19  ;;  %6475 = vmatmul.f32.vlgmr.msra.gmra.mxu3 %v6474_v43  ;;  %v15449_v19 = vld [vmem:[#allocation229_spill] sm:$0xff] }
 0x671   :  { %6637 = vmatpush.msra.mxu2 %v13311_v53  ;;  %6676 = vmatpush.msrb.mxu3 %v13363_v38  ;;  %v15439_v38 = vld [vmem:[#allocation215_spill] sm:$0xff] }
 0x672   :  { %6387 = vmatpush.msrb.mxu1 %v13268_v6  ;;  %6574 = vmatpush.msrb.mxu0 %v13656_v36  ;;  %v15434_v6 = vld [vmem:[#allocation194_spill] sm:$0xff]  ;;  %v5111_v51 = vpop.f32.mrf.mxu3 }
 0x673   :  { %6576 = vmatmul.f32.vlgmr.msrb.gmra.mxu0 %v14049_v13  ;;  %6639 = vmatpush.msra.mxu2 %v13336_v24  ;;  %v15447_v36 = vld [vmem:[#allocation226_spill] sm:$0xff] }
 0x674   :  { %6680 = vmatpush.msrb.mxu3 %v13376_v31  ;;  %6743 = vmatpush.msra.mxu0 %v13301_v62  ;;  %v15429_v62 = vld [vmem:[#allocation200_spill] sm:$0xff]  ;;  %v15441_v31 = vld [vmem:[#allocation218_spill] sm:$0xff] }
 0x675   :  { %6391 = vmatpush.msrb.mxu1 %v13285_v5  ;;  %6641 = vmatpush.msra.mxu2 %v13352_v15  ;;  %v15435_v5 = vld [vmem:[#allocation209_spill] sm:$0xff] }
 0x676   :  { %6684 = vmatpush.msrb.mxu3 %v15425_v21  ;;  %6745 = vmatpush.msra.mxu0 %v13311_v53  ;;  %v15433_v53 = vld [vmem:[#allocation206_spill] sm:$0xff] }
 0x677   :  { %6395 = vmatpush.msrb.mxu1 %v15426_v28  ;;  %6643 = vmatpush.msra.mxu2 %v13365_v16 }
 0x678   :  { %6397 = vmatmul.f32.vlgmr.msrb.gmra.mxu1 %v13999_v52  ;;  %6688 = vmatpush.msrb.mxu3 %v15427_v26  ;;  %v15452_v52 = vld [vmem:[#allocation219_spill] sm:$0xff] }
 0x679   :  { %6582 = vmatpush.msra.mxu1 %v15428_v23  ;;  %6747 = vmatpush.msra.mxu0 %v13336_v24  ;;  %v15437_v24 = vld [vmem:[#allocation212_spill] sm:$0xff] }
 0x67a   :  { %6645 = vmatpush.msra.mxu2 %v13378_v12  ;;  %6692 = vmatpush.msrb.mxu3 %v15429_v62  ;;  %v5374_v58 = vpop.f32.mrf.mxu3 }
 0x67b   :  { %6585 = vmatpush.msra.mxu1 %v15430_v49  ;;  %6749 = vmatpush.msra.mxu0 %v13352_v15  ;;  %v15436_v15 = vld [vmem:[#allocation195_spill] sm:$0xff] }
 0x67c   :  { %6647 = vmatpush.msra.mxu2 %v13404_v48  ;;  %6696 = vmatpush.msrb.mxu3 %v15431_v10 }
 0x67d   :  { %6588 = vmatpush.msra.mxu1 %v15432_v40  ;;  %6751 = vmatpush.msra.mxu0 %v13365_v16  ;;  %v15438_v16 = vld [vmem:[#allocation197_spill] sm:$0xff] }
 0x67e   :  { %6649 = vmatpush.msra.mxu2 %v13421_v27  ;;  %6700 = vmatpush.msrb.mxu3 %v15433_v53 }
 0x67f   :  { %6591 = vmatpush.msra.mxu1 %v15434_v6  ;;  %6753 = vmatpush.msra.mxu0 %v13378_v12  ;;  %v15440_v12 = vld [vmem:[#allocation201_spill] sm:$0xff] }
 0x680   :  { %6651 = vmatpush.msra.mxu2 %v13439_v30  ;;  %6704 = vmatpush.msrb.mxu3 %v15435_v5 }
 0x681   :  { %6594 = vmatpush.msra.mxu1 %v15436_v15  ;;  %6755 = vmatpush.msra.mxu0 %v13404_v48  ;;  %v15442_v48 = vld [vmem:[#allocation204_spill] sm:$0xff] }
 0x682   :  { %6653 = vmatpush.msra.mxu2 %v13457_v61  ;;  %6708 = vmatpush.msrb.mxu3 %v15437_v24  ;;  %v5608_v28 = vpop.f32.mrf.mxu3 }
 0x683   :  { %6597 = vmatpush.msra.mxu1 %v15438_v16  ;;  %6757 = vmatpush.msra.mxu0 %v13421_v27  ;;  %v15444_v27 = vld [vmem:[#allocation207_spill] sm:$0xff] }
 0x684   :  { %6655 = vmatpush.msra.mxu2 %v13476_v41  ;;  %6712 = vmatpush.msrb.mxu3 %v15439_v38 }
 0x685   :  { %6600 = vmatpush.msra.mxu1 %v15440_v12  ;;  %6759 = vmatpush.msra.mxu0 %v13439_v30  ;;  %v15446_v30 = vld [vmem:[#allocation210_spill] sm:$0xff] }
 0x686   :  { %6657 = vmatpush.msra.mxu2 %v13495_v11  ;;  %6716 = vmatpush.msrb.mxu3 %v15441_v31 }
 0x687   :  { %6603 = vmatpush.msra.mxu1 %v15442_v48  ;;  %6761 = vmatpush.msra.mxu0 %v13457_v61  ;;  %v15448_v61 = vld [vmem:[#allocation213_spill] sm:$0xff] }
 0x688   :  { %6659 = vmatpush.msra.mxu2 %v13513_v44  ;;  %6720 = vmatpush.msrb.mxu3 %v15443_v17 }
 0x689   :  { %6606 = vmatpush.msra.mxu1 %v15444_v27  ;;  %6763 = vmatpush.msra.mxu0 %v13476_v41  ;;  %v15450_v41 = vld [vmem:[#allocation216_spill] sm:$0xff] }
 0x68a   :  { %6661 = vmatpush.msra.mxu2 %v13529_v47  ;;  %6724 = vmatpush.msrb.mxu3 %v15445_v9 }
 0x68b   :  { %6609 = vmatpush.msra.mxu1 %v15446_v30  ;;  %6765 = vmatpush.msra.mxu0 %v13495_v11  ;;  %v15451_v11 = vld [vmem:[#allocation231_spill] sm:$0xff] }
 0x68c   :  { %6663 = vmatpush.msra.mxu2 %v13553_v59  ;;  %6728 = vmatpush.msrb.mxu3 %v15447_v36 }
 0x68d   :  { %6612 = vmatpush.msra.mxu1 %v15448_v61  ;;  %6767 = vmatpush.msra.mxu0 %v13513_v44  ;;  %v15453_v44 = vld [vmem:[#allocation222_spill] sm:$0xff]  ;;  %v5794_v16 = vpop.f32.mrf.mxu3 }
 0x68e   :  { %6665 = vmatpush.msra.mxu2 %v13571_v35  ;;  %6732 = vmatpush.msrb.mxu3 %v15449_v19 }
 0x68f   :  { %6615 = vmatpush.msra.mxu1 %v15450_v41  ;;  %6769 = vmatpush.msra.mxu0 %v13529_v47  ;;  %v15455_v47 = vld [vmem:[#allocation227_spill] sm:$0xff] }
 0x690   :  { %6669 = vmatmul.f32.vlgmr.msra.gmra.mxu2 %v6472_v2  ;;  %6736 = vmatpush.msrb.mxu3 %v15451_v11  ;;  %v4283_v2 = vadd.f32 %v4282_v46, %v4244_v3 }
 0x691   :  { %6618 = vmatpush.msra.mxu1 %v15452_v52  ;;  %6771 = vmatpush.msra.mxu0 %v13553_v59  ;;  %v4388_v59 = vpop.f32.mrf.mxu2 }
 0x692   :  { %6738 = vmatmul.f32.vlgmr.msrb.gmra.mxu3 %v14049_v13  ;;  %v4352_v37 = vadd.f32 %v4351_v20, %v4283_v2 }
 0x693   :  { %6621 = vmatpush.msra.mxu1 %v15453_v44  ;;  %6773 = vmatpush.msra.mxu0 %v13571_v35  ;;  %v4770_v35 = vpop.f32.mrf.mxu1 }
 0x694   :  { %6775 = vmatmul.f32.vlgmr.msra.gmra.mxu0 %v14049_v13  ;;  %v4389_v21 = vadd.f32 %v4388_v59, %v4352_v37 }
 0x695   :  { %6624 = vmatpush.msra.mxu1 %v15454_v63 }
 0x696   :  { %v4430_v23 = vadd.f32 %v4429_v56, %v4389_v21 }
 0x697   :  { %6627 = vmatpush.msra.mxu1 %v15455_v47 }
 0x698   :  { %6630 = vmatmul.f32.vlgmr.msra.gmra.mxu1 %v14062_v55  ;;  %v5212_v55 = vpop.f32.mrf.mxu0  ;;  %v4531_v40 = vadd.f32 %v4530_v45, %v4430_v23 }
 0x699   :  { %v4623_v54 = vpop.f32.mrf.mxu2 }
 0x69a   :  { %v4585_v6 = vadd.f32 %v4584_v42, %v4531_v40 }
 0x69b   :  { %v5033_v25 = vpop.f32.mrf.mxu1 }
 0x69c   :  { %v4624_v24 = vadd.f32 %v4623_v54, %v4585_v6 }
 0x69e   :  { %v4693_v12 = vadd.f32 %v4692_v32, %v4624_v24 }
 0x6a0   :  { %v14169_v29 = vpop.f32.mrf.mxu0  ;;  %v4730_v27 = vadd.f32 %v4729_v18, %v4693_v12 }
 0x6a1   :  { %v4871_v33 = vpop.f32.mrf.mxu2 }
 0x6a2   :  { %v4771_v30 = vadd.f32 %v4770_v35, %v4730_v27 }
 0x6a3   :  { %v5266_v39 = vpop.f32.mrf.mxu1 }
 0x6a4   :  { %v4872_v19 = vadd.f32 %v4871_v33, %v4771_v30  ;;  %v6796_v30 = vld [vmem:[%s14397_s12 + $0x10] sm:$0xff] }
 0x6a6   :  { %v4926_v52 = vadd.f32 %v4925_v8, %v4872_v19 }
 0x6a8   :  { %v5647_v62 = vpop.f32.mrf.mxu0  ;;  %v4965_v7 = vadd.f32 %v4964_v4, %v4926_v52 }
 0x6a9   :  { %v5070_v13 = vpop.f32.mrf.mxu2 }
 0x6aa   :  { %v5034_v22 = vadd.f32 %v5033_v25, %v4965_v7  ;;  %v6794_v25 = vld [vmem:[%s14397_s12] sm:$0xff] }
 0x6ab   :  { %v5453_v60 = vpop.f32.mrf.mxu1  ;;  %v14174_v37 = vand.u32 4294901760, %v6794_v25 }
 0x6ac   :  { %v5071_v59 = vadd.f32 %v5070_v13, %v5034_v22 }
 0x6ad   :  { %6894 = vmatpush.msrb.mxu0 %v14174_v37  ;;  %6818 = vmatpush.msrb.mxu1 %v14174_v37 }
 0x6ae   :  { %v5112_v45 = vadd.f32 %v5111_v51, %v5071_v59  ;;  %v14177_v51 = vsub.f32 %v6794_v25, %v14174_v37 }
 0x6af   :  { %v6057_v41 = vpop.f32.mrf.mxu3 }
 0x6b0   :  { %v5895_v31 = vpop.f32.mrf.mxu0  ;;  %v5213_v18 = vadd.f32 %v5212_v55, %v5112_v45  ;;  %6871 = vmatpush.msra.mxu3 %v14177_v51 }
 0x6b1   :  { %v5305_v1 = vpop.f32.mrf.mxu2 }
 0x6b2   :  { %v5267_v50 = vadd.f32 %v5266_v39, %v5213_v18 }
 0x6b3   :  { %v5716_v49 = vpop.f32.mrf.mxu1 }
 0x6b4   :  { %v5306_v2 = vadd.f32 %v5305_v1, %v5267_v50  ;;  %v14182_v1 = vand.u32 4294901760, %v14177_v51 }
 0x6b6   :  { %v5375_v13 = vadd.f32 %v5374_v58, %v5306_v2  ;;  %v6846_v58 = vsub.f32 %v14177_v51, %v14182_v1  ;;  %6920 = vmatpush.msra.mxu1 %v14182_v1 }
 0x6b8   :  { %v6094_v44 = vpop.f32.mrf.mxu0  ;;  %v14189_v23 = vand.u32 4294901760, %v6846_v58 }
 0x6b9   :  { %v5554_v0 = vpop.f32.mrf.mxu2 }
 0x6ba   :  { %v5555_v43 = vadd.f32 %v5554_v0, %v5453_v60  ;;  %6848 = vmatpush.msrb.mxu2 %v14189_v23 }
 0x6bb   :  { %v5949_v48 = vpop.f32.mrf.mxu1 }
 0x6bc   :  { %v5609_v26 = vadd.f32 %v5608_v28, %v5555_v43  ;;  %v5412_v43 = vadd.f32 %v14169_v29, %v5375_v13  ;;  %6942 = vmatpush.msra.mxu2 %v14174_v37  ;;  %v6795_v29 = vld [vmem:[%s14397_s12 + $0x8] sm:$0xff] }
 0x6bd   :  { %v14198_v6 = vand.u32 4294901760, %v6795_v29 }
 0x6be   :  { %v5648_v10 = vadd.f32 %v5647_v62, %v5609_v26 }
 0x6bf   :  { %6964 = vmatpush.msrb.mxu3 %v14198_v6  ;;  %v14204_v24 = vsub.f32 %v6795_v29, %v14198_v6 }
 0x6c0   :  { %v5717_v53 = vadd.f32 %v5716_v49, %v5648_v10  ;;  %v14191_v49 = vmul.f32 0.008928572, %v5412_v43 }
 0x6c1   :  { %v5753_v5 = vpop.f32.mrf.mxu2 }
 0x6c2   :  { %v5754_v15 = vadd.f32 %v5753_v5, %v5717_v53  ;;  %v6780_v5 = vmul.f32 %v14191_v49, %v14191_v49 }
 0x6c4   :  { %v5795_v38 = vadd.f32 %v5794_v16, %v5754_v15 }
 0x6c6   :  { %v5896_v17 = vadd.f32 %v5895_v31, %v5795_v38  ;;  %v14207_v38 = vand.u32 4294901760, %v14204_v24 }
 0x6c8   :  { %v5950_v9 = vadd.f32 %v5949_v48, %v5896_v17  ;;  %v6992_v31 = vsub.f32 %v14204_v24, %v14207_v38 }
 0x6c9   :  { %v5988_v36 = vpop.f32.mrf.mxu2 }
 0x6ca   :  { %v5989_v61 = vadd.f32 %v5988_v36, %v5950_v9  ;;  %v14211_v17 = vand.u32 4294901760, %v6992_v31 }
 0x6cc   :  { %v6058_v11 = vadd.f32 %v6057_v41, %v5989_v61  ;;  %6994 = vmatpush.msra.mxu0 %v14211_v17  ;;  %v14217_v61 = vand.u32 4294901760, %v6796_v30 }
 0x6ce   :  { %v6095_v47 = vadd.f32 %v6094_v44, %v6058_v11  ;;  %v6329_v54 = vpop.f32.mrf.mxu0  ;;  %v14220_v11 = vsub.f32 %v6796_v30, %v14217_v61 }
 0x6d1   :  { %v6236_v46 = vpop.f32.mrf.mxu2  ;;  %v6290_v56 = vpop.f32.mrf.mxu3 }
 0x6d3   :  { %v6135_v63 = vpop.f32.mrf.mxu1 }
 0x6d4   :  { %v6136_v57 = vadd.f32 %v6135_v63, %v6095_v47  ;;  %v14224_v47 = vand.u32 4294901760, %v14220_v11 }
 0x6d6   :  { %v6237_v20 = vadd.f32 %v6236_v46, %v6136_v57  ;;  %v6797_v57 = vld [vmem:[%s14397_s12 + $0x18] sm:$0xff]  ;;  %v7138_v46 = vsub.f32 %v14220_v11, %v14224_v47 }
 0x6d8   :  { %v6291_v42 = vadd.f32 %v6290_v56, %v6237_v20  ;;  %v14232_v20 = vand.u32 4294901760, %v6797_v57 }
 0x6da   :  { %v6330_v35 = vadd.f32 %v6329_v54, %v6291_v42  ;;  %v14236_v42 = vand.u32 4294901760, %v7138_v46  ;;  %v14239_v45 = vsub.f32 %v6797_v57, %v14232_v20 }
 0x6f0   :  { %v6577_v39 = vpop.f32.mrf.mxu0 }
 0x6f1   :  { %v6435_v3 = vpop.f32.mrf.mxu2 }
 0x6f3   :  { %v6476_v60 = vpop.f32.mrf.mxu3 }
 0x6f5   :  { %v6398_v32 = vpop.f32.mrf.mxu1 }
 0x6f6   :  { %v6399_v33 = vadd.f32 %v6398_v32, %v6330_v35  ;;  %v14244_v32 = vand.u32 4294901760, %v14239_v45 }
 0x6f8   :  { %v6436_v8 = vadd.f32 %v6435_v3, %v6399_v33  ;;  %v7284_v35 = vsub.f32 %v14239_v45, %v14244_v32 }
 0x6fa   :  { %v6477_v4 = vadd.f32 %v6476_v60, %v6436_v8  ;;  %v7285_v18 = vand.u32 4294901760, %v7284_v35  ;;  %v9555_v35 = vld [vmem:[#allocation2 + $0x1a0] sm:$0xf] }
 0x6fc   :  { %v6578_v55 = vadd.f32 %v6577_v39, %v6477_v4 }
 0x711   :  { %v6776_v40 = vpop.f32.mrf.mxu0 }
 0x713   :  { %v6670_v28 = vpop.f32.mrf.mxu2 }
 0x715   :  { %v6631_v0 = vpop.f32.mrf.mxu1  ;;  %v6739_v62 = vpop.f32.mrf.mxu3 }
 0x716   :  { %v6632_v21 = vadd.f32 %v6631_v0, %v6578_v55 }
 0x718   :  { %v6671_v26 = vadd.f32 %v6670_v28, %v6632_v21 }
 0x71a   :  { %v6740_v10 = vadd.f32 %v6739_v62, %v6671_v26 }
 0x71c   :  { %v6777_v53 = vadd.f32 %v6776_v40, %v6740_v10 }
 0x71e   :  { %v6779_v15 = vmul.f32 0.008928572, %v6777_v53  ;;  %v9459_v53 = vld [vmem:[#allocation2 + $0xe0] sm:$0xf] }
 0x720   :  { %v6781_v16 = vsub.f32 %v6779_v15, %v6780_v5  ;;  %v9587_v5 = vld [vmem:[#allocation2 + $0x1e0] sm:$0xf] }
 0x722   :  { %v6782_v12 = vmax.f32 %v6781_v16, 0.0  ;;  %v10000_v16 = vld [vmem:[#allocation2 + $0x1ec] sm:$0xf0] }
 0x724   :  { %v6783_v48 = vadd.f32 1e-05, %v6782_v12  ;;  %v10032_v12 = vld [vmem:[#allocation2 + $0x2ec] sm:$0xf0] }
 0x726   :  { %10075 = vrsqrt.f32 %v6783_v48  ;;  %vm6790_vm11 = vweird.f32 %v6783_v48 }
 0x72c   :  { %v10076_v27 = vpop.eup %10075 }
 0x72d   :  { %v6785_v9 = vmul.f32 %v10076_v27, %v6783_v48  ;;  %vm6791_vm10 = vweird.f32 %v10076_v27  ;;  %v9588_v48 = vor.u32 %v10000_v16, %v9587_v5  ;;  %v9395_v5 = vld [vmem:[#allocation2 + $0x60] sm:$0xf] }
 0x72e   :  { %vm6792_vm13 = vmor %vm6790_vm11, %vm6791_vm10 }
 0x72f   :  { %v6786_v36 = vmul.f32 %v10076_v27, %v6785_v9  ;;  %v10064_v9 = vld [vmem:[#allocation2 + $0x3ec] sm:$0xf0] }
 0x731   :  { %v6787_v19 = vmul.f32 0.5, %v6786_v36 }
 0x733   :  { %v6788_v41 = vsub.f32 1.5, %v6787_v19  ;;  %v9443_v19 = vld [vmem:[#allocation2 + $0xc0] sm:$0xf] }
 0x735   :  { %v6789_v52 = vmul.f32 %v10076_v27, %v6788_v41  ;;  %v9964_v41 = vld [vmem:[#allocation2 + $0xcc] sm:$0xf0] }
 0x737   :  { %v6793_v44 = vsel %vm6792_vm13, %v10076_v27, %v6789_v52  ;;  %v9843_v27 = vld [vmem:[#allocation2 + $0x3e0] sm:$0xf] }
 0x738   :  { %v6800_v63 = vsel %vm6798_vm12, %v6793_v44, 0  ;;  %v7386_v33 = vmul.f32 %v6793_v44, %v14191_v49  ;;  %v9844_v36 = vor.u32 %v10064_v9, %v9843_v27  ;;  %v9444_v44 = vor.u32 %v9964_v41, %v9443_v19  ;;  %v9379_v41 = vld [vmem:[#allocation2 + $0x40] sm:$0xf] }
 0x739   :  { %v6819_v7 = vand.u32 4294901760, %v6800_v63 }
 0x73a   :  { %v7388_v50 = vsel %vm6798_vm12, %v7386_v33, 0 }
 0x73b   :  { %v6820_v22 = vsub.f32 %v6800_v63, %v6819_v7  ;;  %6850 = vmatmul.f32.vlgmr.msrb.gmra.mxu2 %v6819_v7  ;;  %v7407_v3 = vand.u32 4294901760, %v7388_v50  ;;  %v9996_v63 = vld [vmem:[#allocation2 + $0x1cc] sm:$0xf0] }
 0x73c   :  { %7040 = vmatpush.msrb.mxu2 %v14198_v6 }
 0x73d   :  { %6874 = vmatmul.f32.vlgmr.msra.gmra.mxu3 %v6820_v22  ;;  %v6821_v59 = vand.u32 4294901760, %v6820_v22  ;;  %v7408_v8 = vsub.f32 %v7388_v50, %v7407_v3  ;;  %v9992_v50 = vld [vmem:[#allocation2 + $0x1ac] sm:$0xf0] }
 0x73e   :  { %7066 = vmatpush.msra.mxu3 %v14207_v38 }
 0x73f   :  { %6898 = vmatmul.f32.vlgmr.msrb.gmra.mxu0 %v6821_v59  ;;  %v6822_v56 = vsub.f32 %v6820_v22, %v6821_v59  ;;  %v7409_v2 = vand.u32 4294901760, %v7408_v8 }
 0x740   :  { %7088 = vmatpush.msrb.mxu0 %v14198_v6 }
 0x741   :  { %v6823_v54 = vand.u32 4294901760, %v6822_v56  ;;  %v7410_v60 = vsub.f32 %v7408_v8, %v7409_v2  ;;  %v10060_v56 = vld [vmem:[#allocation2 + $0x3cc] sm:$0xf0] }
 0x743   :  { %6824 = vmatmul.f32.vlgmr.msrb.gmra.mxu1 %v6823_v54  ;;  %6944 = vmatmul.f32.vlgmr.msra.gmra.mxu2 %v6819_v7  ;;  %v7411_v25 = vand.u32 4294901760, %v7410_v60  ;;  %v9556_v60 = vor.u32 %v9992_v50, %v9555_v35  ;;  %v9491_v35 = vld [vmem:[#allocation2 + $0x120] sm:$0xf] }
 0x744   :  { %7017 = vmatpush.msrb.mxu1 %v14204_v24  ;;  %7140 = vmatpush.msra.mxu2 %v14236_v42  ;;  %v9619_v50 = vld [vmem:[#allocation2 + $0x220] sm:$0xf] }
 0x745   :  { %6970 = vmatmul.f32.vlgmr.msrb.gmra.mxu3 %v6823_v54 }
 0x746   :  { %7163 = vmatpush.msrb.mxu3 %v14220_v11 }
 0x747   :  { %6996 = vmatmul.f32.vlgmr.msra.gmra.mxu0 %v6819_v7 }
 0x748   :  { %7186 = vmatpush.msra.mxu0 %v14217_v61 }
 0x74b   :  { %6922 = vmatmul.f32.vlgmr.msra.gmra.mxu1 %v6819_v7  ;;  %7044 = vmatmul.f32.vlgmr.msrb.gmra.mxu2 %v6821_v59 }
 0x74c   :  { %7110 = vmatpush.msra.mxu1 %v14217_v61  ;;  %7234 = vmatpush.msrb.mxu2 %v14217_v61 }
 0x74d   :  { %7068 = vmatmul.f32.vlgmr.msra.gmra.mxu3 %v6819_v7 }
 0x74e   :  { %7256 = vmatpush.msra.mxu3 %v14232_v20 }
 0x74f   :  { %7090 = vmatmul.f32.vlgmr.msrb.gmra.mxu0 %v6819_v7 }
 0x750   :  { %7286 = vmatpush.msrb.mxu0 %v7285_v18 }
 0x753   :  { %7020 = vmatmul.f32.vlgmr.msrb.gmra.mxu1 %v6820_v22  ;;  %7142 = vmatmul.f32.vlgmr.msra.gmra.mxu2 %v6819_v7 }
 0x754   :  { %7212 = vmatpush.msrb.mxu1 %v14224_v47  ;;  %7332 = vmatpush.msra.mxu2 %v14232_v20 }
 0x755   :  { %7166 = vmatmul.f32.vlgmr.msrb.gmra.mxu3 %v6820_v22 }
 0x756   :  { %7358 = vmatpush.msrb.mxu3 %v14244_v32 }
 0x757   :  { %7190 = vmatmul.f32.vlgmr.msra.gmra.mxu0 %v6821_v59 }
 0x758   :  { %7380 = vmatpush.msra.mxu0 %v14232_v20 }
 0x75b   :  { %7116 = vmatmul.f32.vlgmr.msra.gmra.mxu1 %v6823_v54  ;;  %7236 = vmatmul.f32.vlgmr.msrb.gmra.mxu2 %v6819_v7 }
 0x75c   :  { %7309 = vmatpush.msra.mxu1 %v14239_v45  ;;  %7436 = vmatpush.msrb.mxu2 %v14189_v23 }
 0x75d   :  { %7262 = vmatmul.f32.vlgmr.msra.gmra.mxu3 %v6823_v54  ;;  %v9427_v54 = vld [vmem:[#allocation2 + $0xa0] sm:$0xf] }
 0x75e   :  { %7459 = vmatpush.msra.mxu3 %v14177_v51 }
 0x75f   :  { %7288 = vmatmul.f32.vlgmr.msrb.gmra.mxu0 %v6819_v7 }
 0x760   :  { %7482 = vmatpush.msrb.mxu0 %v14174_v37 }
 0x763   :  { %7214 = vmatmul.f32.vlgmr.msrb.gmra.mxu1 %v6819_v7  ;;  %7336 = vmatmul.f32.vlgmr.msra.gmra.mxu2 %v6821_v59  ;;  %v9827_v59 = vld [vmem:[#allocation2 + $0x3c0] sm:$0xf] }
 0x764   :  { %7406 = vmatpush.msrb.mxu1 %v14174_v37  ;;  %7530 = vmatpush.msra.mxu2 %v14174_v37 }
 0x765   :  { %7360 = vmatmul.f32.vlgmr.msrb.gmra.mxu3 %v6819_v7 }
 0x766   :  { %7552 = vmatpush.msrb.mxu3 %v14198_v6 }
 0x767   :  { %7382 = vmatmul.f32.vlgmr.msra.gmra.mxu0 %v6819_v7  ;;  %v10028_v7 = vld [vmem:[#allocation2 + $0x2cc] sm:$0xf0] }
 0x768   :  { %7582 = vmatpush.msra.mxu0 %v14211_v17 }
 0x76b   :  { %7312 = vmatmul.f32.vlgmr.msra.gmra.mxu1 %v6820_v22  ;;  %7438 = vmatmul.f32.vlgmr.msrb.gmra.mxu2 %v7407_v3 }
 0x76c   :  { %7508 = vmatpush.msra.mxu1 %v14182_v1  ;;  %7628 = vmatpush.msrb.mxu2 %v14198_v6 }
 0x76d   :  { %7462 = vmatmul.f32.vlgmr.msra.gmra.mxu3 %v7408_v8 }
 0x76e   :  { %7654 = vmatpush.msra.mxu3 %v14207_v38  ;;  %v9715_v38 = vld [vmem:[#allocation2 + $0x2e0] sm:$0xf] }
 0x76f   :  { %7486 = vmatmul.f32.vlgmr.msrb.gmra.mxu0 %v7409_v2  ;;  %v9716_v17 = vor.u32 %v10032_v12, %v9715_v38  ;;  %v9984_v12 = vld [vmem:[#allocation2 + $0x16c] sm:$0xf0] }
 0x770   :  { %7676 = vmatpush.msrb.mxu0 %v14198_v6  ;;  %v9968_v6 = vld [vmem:[#allocation2 + $0xec] sm:$0xf0] }
 0x773   :  { %7412 = vmatmul.f32.vlgmr.msrb.gmra.mxu1 %v7411_v25  ;;  %7532 = vmatmul.f32.vlgmr.msra.gmra.mxu2 %v7407_v3 }
 0x774   :  { %7605 = vmatpush.msrb.mxu1 %v14204_v24  ;;  %7728 = vmatpush.msra.mxu2 %v14236_v42  ;;  %v9460_v24 = vor.u32 %v9968_v6, %v9459_v53 }
 0x775   :  { %7558 = vmatmul.f32.vlgmr.msrb.gmra.mxu3 %v7411_v25 }
 0x776   :  { %7751 = vmatpush.msrb.mxu3 %v14220_v11  ;;  %v9571_v11 = vld [vmem:[#allocation2 + $0x1c0] sm:$0xf] }
 0x777   :  { %7584 = vmatmul.f32.vlgmr.msra.gmra.mxu0 %v7407_v3  ;;  %v9572_v46 = vor.u32 %v9996_v63, %v9571_v11  ;;  %v9948_v11 = vld [vmem:[#allocation2 + $0x4c] sm:$0xf0] }
 0x778   :  { %7774 = vmatpush.msra.mxu0 %v14217_v61  ;;  %v9380_v63 = vor.u32 %v9948_v11, %v9379_v41  ;;  %v9445_v41 = vld [vmem:[#allocation2 + $0xd0] sm:$0xf0]  ;;  %v9994_v11 = vld [vmem:[#allocation2 + $0x1c4] sm:$0xf] }
 0x77b   :  { %7510 = vmatmul.f32.vlgmr.msra.gmra.mxu1 %v7407_v3  ;;  %7632 = vmatmul.f32.vlgmr.msrb.gmra.mxu2 %v7409_v2 }
 0x77c   :  { %7698 = vmatpush.msra.mxu1 %v14217_v61  ;;  %7822 = vmatpush.msrb.mxu2 %v14217_v61 }
 0x77d   :  { %7656 = vmatmul.f32.vlgmr.msra.gmra.mxu3 %v7407_v3 }
 0x77e   :  { %7844 = vmatpush.msra.mxu3 %v14232_v20 }
 0x77f   :  { %7678 = vmatmul.f32.vlgmr.msrb.gmra.mxu0 %v7407_v3 }
 0x780   :  { %7874 = vmatpush.msrb.mxu0 %v7285_v18 }
 0x783   :  { %7608 = vmatmul.f32.vlgmr.msrb.gmra.mxu1 %v7408_v8  ;;  %7730 = vmatmul.f32.vlgmr.msra.gmra.mxu2 %v7407_v3 }
 0x784   :  { %7800 = vmatpush.msrb.mxu1 %v14224_v47  ;;  %7920 = vmatpush.msra.mxu2 %v14232_v20  ;;  %v9699_v47 = vld [vmem:[#allocation2 + $0x2c0] sm:$0xf] }
 0x785   :  { %7754 = vmatmul.f32.vlgmr.msrb.gmra.mxu3 %v7408_v8 }
 0x786   :  { %7946 = vmatpush.msrb.mxu3 %v14244_v32  ;;  %v9960_v32 = vld [vmem:[#allocation2 + $0xac] sm:$0xf0] }
 0x787   :  { %7778 = vmatmul.f32.vlgmr.msra.gmra.mxu0 %v7409_v2  ;;  %v9428_v33 = vor.u32 %v9960_v32, %v9427_v54  ;;  %v9363_v54 = vld [vmem:[#allocation2 + $0x20] sm:$0xf]  ;;  %v9944_v32 = vld [vmem:[#allocation2 + $0x2c] sm:$0xf0] }
 0x788   :  { %7968 = vmatpush.msra.mxu0 %v14232_v20  ;;  %v9700_v20 = vor.u32 %v10028_v7, %v9699_v47  ;;  %v9980_v47 = vld [vmem:[#allocation2 + $0x14c] sm:$0xf0]  ;;  %v9635_v7 = vld [vmem:[#allocation2 + $0x240] sm:$0xf] }
 0x78b   :  { %7704 = vmatmul.f32.vlgmr.msra.gmra.mxu1 %v7411_v25  ;;  %7824 = vmatmul.f32.vlgmr.msrb.gmra.mxu2 %v7407_v3 }
 0x78c   :  { %7897 = vmatpush.msra.mxu1 %v14239_v45  ;;  %8799 = vmatpush.bf16.msrb.mxu2 %v9588_v48  ;;  %v9828_v45 = vor.u32 %v10060_v56, %v9827_v59  ;;  %v10016_v48 = vld [vmem:[#allocation2 + $0x26c] sm:$0xf0]  ;;  %v9763_v56 = vld [vmem:[#allocation2 + $0x340] sm:$0xf] }
 0x78d   :  { %7850 = vmatmul.f32.vlgmr.msra.gmra.mxu3 %v7411_v25 }
 0x78e   :  { %8812 = vmatpush.bf16.msra.mxu3 %v9716_v17 }
 0x78f   :  { %7876 = vmatmul.f32.vlgmr.msrb.gmra.mxu0 %v7407_v3 }
 0x790   :  { %8825 = vmatpush.bf16.msrb.mxu0 %v9844_v36  ;;  %8800 = vmatpush.bf16.msrb.mxu2 %v9572_v46  ;;  %v10048_v36 = vld [vmem:[#allocation2 + $0x36c] sm:$0xf0] }
 0x792   :  { %8813 = vmatpush.bf16.msra.mxu3 %v9700_v20 }
 0x793   :  { %7802 = vmatmul.f32.vlgmr.msrb.gmra.mxu1 %v7407_v3  ;;  %7924 = vmatmul.f32.vlgmr.msra.gmra.mxu2 %v7409_v2 }
 0x794   :  { %8786 = vmatpush.bf16.msrb.mxu1 %v9460_v24  ;;  %8826 = vmatpush.bf16.msrb.mxu0 %v9828_v45  ;;  %v9523_v24 = vld [vmem:[#allocation2 + $0x160] sm:$0xf] }
 0x795   :  { %7948 = vmatmul.f32.vlgmr.msrb.gmra.mxu3 %v7407_v3  ;;  %8801 = vmatpush.bf16.msrb.mxu2 %v9556_v60  ;;  %v9524_v27 = vor.u32 %v9984_v12, %v9523_v24  ;;  %v10030_v12 = vld [vmem:[#allocation2 + $0x2e4] sm:$0xf] }
 0x797   :  { %7970 = vmatmul.f32.vlgmr.msra.gmra.mxu0 %v7407_v3  ;;  %v9683_v3 = vld [vmem:[#allocation2 + $0x2a0] sm:$0xf] }
 0x798   :  { %8787 = vmatpush.bf16.msrb.mxu1 %v9444_v44  ;;  %v9507_v44 = vld [vmem:[#allocation2 + $0x140] sm:$0xf] }
 0x799   :  { %v9508_v20 = vor.u32 %v9980_v47, %v9507_v44  ;;  %v9573_v44 = vld [vmem:[#allocation2 + $0x1d0] sm:$0xf0] }
 0x79b   :  { %7900 = vmatmul.f32.vlgmr.msra.gmra.mxu1 %v7408_v8  ;;  %v10024_v8 = vld [vmem:[#allocation2 + $0x2ac] sm:$0xf0] }
 0x79c   :  { %v9684_v25 = vor.u32 %v10024_v8, %v9683_v3  ;;  %8788 = vmatpush.bf16.msrb.mxu1 %v9428_v33  ;;  %v9976_v33 = vld [vmem:[#allocation2 + $0x12c] sm:$0xf0] }
 0x79d   :  { %v10008_v3 = vld [vmem:[#allocation2 + $0x22c] sm:$0xf0]  ;;  %v9492_v60 = vor.u32 %v9976_v33, %v9491_v35  ;;  %v9429_v35 = vld [vmem:[#allocation2 + $0xb0] sm:$0xf0] }
 0x79e   :  { %8814 = vmatpush.bf16.msra.mxu3 %v9684_v25  ;;  %v9620_v25 = vor.u32 %v10008_v3, %v9619_v50 }
 0x7bc   :  { %v6899_v4 = vpop.f32.mrf.mxu0 }
 0x7be   :  { %v6851_v37 = vpop.f32.mrf.mxu2 }
 0x7c0   :  { %v6825_v13 = vpop.f32.mrf.mxu1  ;;  %v6875_v51 = vpop.f32.mrf.mxu3 }
 0x7c1   :  { %v6852_v39 = vadd.f32 %v6851_v37, %v6825_v13  ;;  %v10056_v37 = vld [vmem:[#allocation2 + $0x3ac] sm:$0xf0] }
 0x7c3   :  { %v6876_v55 = vadd.f32 %v6875_v51, %v6852_v39 }
 0x7c4   :  { %v6997_v1 = vpop.f32.mrf.mxu0 }
 0x7c5   :  { %v6900_v0 = vadd.f32 %v6899_v4, %v6876_v55  ;;  %v9811_v4 = vld [vmem:[#allocation2 + $0x3a0] sm:$0xf] }
 0x7c6   :  { %v6945_v43 = vpop.f32.mrf.mxu2  ;;  %v9812_v51 = vor.u32 %v10056_v37, %v9811_v4  ;;  %v9411_v55 = vld [vmem:[#allocation2 + $0x80] sm:$0xf]  ;;  %v10040_v37 = vld [vmem:[#allocation2 + $0x32c] sm:$0xf0] }
 0x7c7   :  { %v9747_v4 = vld [vmem:[#allocation2 + $0x320] sm:$0xf] }
 0x7c8   :  { %v6923_v21 = vpop.f32.mrf.mxu1  ;;  %v6971_v58 = vpop.f32.mrf.mxu3  ;;  %8827 = vmatpush.bf16.msrb.mxu0 %v9812_v51 }
 0x7c9   :  { %v6924_v28 = vadd.f32 %v6923_v21, %v6900_v0  ;;  %v6998_v26 = vadd.f32 %v6997_v1, %v6971_v58  ;;  %v9956_v1 = vld [vmem:[#allocation2 + $0x8c] sm:$0xf0]  ;;  %v9539_v0 = vld [vmem:[#allocation2 + $0x180] sm:$0xf] }
 0x7ca   :  { %v9988_v21 = vld [vmem:[#allocation2 + $0x18c] sm:$0xf0]  ;;  %v9667_v58 = vld [vmem:[#allocation2 + $0x280] sm:$0xf] }
 0x7cb   :  { %v14283_v23 = vadd.f32 %v6945_v43, %v6924_v28  ;;  %v9412_v43 = vor.u32 %v9956_v1, %v9411_v55  ;;  %v10020_v28 = vld [vmem:[#allocation2 + $0x28c] sm:$0xf0]  ;;  %v9475_v1 = vld [vmem:[#allocation2 + $0x100] sm:$0xf] }
 0x7cc   :  { %v7091_v62 = vpop.f32.mrf.mxu0  ;;  %v9940_v55 = vld [vmem:[#allocation2 + $0xc] sm:$0xf0] }
 0x7cd   :  { %8789 = vmatpush.bf16.msrb.mxu1 %v9412_v43  ;;  %v9972_v43 = vld [vmem:[#allocation2 + $0x10c] sm:$0xf0] }
 0x7ce   :  { %v7045_v49 = vpop.f32.mrf.mxu2 }
 0x7d0   :  { %v7021_v10 = vpop.f32.mrf.mxu1  ;;  %v7069_v40 = vpop.f32.mrf.mxu3 }
 0x7d1   :  { %v7022_v29 = vadd.f32 %v7021_v10, %v6998_v26  ;;  %v9668_v10 = vor.u32 %v10020_v28, %v9667_v58  ;;  %v10004_v58 = vld [vmem:[#allocation2 + $0x20c] sm:$0xf0] }
 0x7d3   :  { %v7046_v15 = vadd.f32 %v7045_v49, %v7022_v29  ;;  %v9540_v49 = vor.u32 %v9988_v21, %v9539_v0  ;;  %v10052_v29 = vld [vmem:[#allocation2 + $0x38c] sm:$0xf0]  ;;  %8815 = vmatpush.bf16.msra.mxu3 %v9668_v10  ;;  %v9603_v21 = vld [vmem:[#allocation2 + $0x200] sm:$0xf] }
 0x7d4   :  { %v7191_v31 = vpop.f32.mrf.mxu0  ;;  %v9604_v10 = vor.u32 %v10004_v58, %v9603_v21  ;;  %v9986_v21 = vld [vmem:[#allocation2 + $0x184] sm:$0xf] }
 0x7d5   :  { %v7070_v30 = vadd.f32 %v7069_v40, %v7046_v15  ;;  %v9795_v40 = vld [vmem:[#allocation2 + $0x380] sm:$0xf]  ;;  %8802 = vmatpush.bf16.msrb.mxu2 %v9540_v49  ;;  %v9952_v15 = vld [vmem:[#allocation2 + $0x6c] sm:$0xf0]  ;;  %v9476_v49 = vor.u32 %v9972_v43, %v9475_v1  ;;  %v9413_v43 = vld [vmem:[#allocation2 + $0x90] sm:$0xf0] }
 0x7d6   :  { %v7143_v61 = vpop.f32.mrf.mxu2  ;;  %v9796_v6 = vor.u32 %v10052_v29, %v9795_v40  ;;  %v9396_v38 = vor.u32 %v9952_v15, %v9395_v5  ;;  %v9731_v40 = vld [vmem:[#allocation2 + $0x300] sm:$0xf]  ;;  %v10036_v29 = vld [vmem:[#allocation2 + $0x30c] sm:$0xf0]  ;;  %v9461_v5 = vld [vmem:[#allocation2 + $0xf0] sm:$0xf0] }
 0x7d7   :  { %v14285_v52 = vadd.f32 %v7091_v62, %v7070_v30  ;;  %v9779_v30 = vld [vmem:[#allocation2 + $0x360] sm:$0xf]  ;;  %v9998_v15 = vld [vmem:[#allocation2 + $0x1e4] sm:$0xf] }
 0x7d8   :  { %v7117_v57 = vpop.f32.mrf.mxu1  ;;  %v7167_v22 = vpop.f32.mrf.mxu3  ;;  %8828 = vmatpush.bf16.msrb.mxu0 %v9796_v6  ;;  %8790 = vmatpush.bf16.msrb.mxu1 %v9396_v38  ;;  %v9732_v6 = vor.u32 %v10036_v29, %v9731_v40  ;;  %v9589_v38 = vld [vmem:[#allocation2 + $0x1f0] sm:$0xf0] }
 0x7d9   :  { %v7144_v42 = vadd.f32 %v7143_v61, %v7117_v57  ;;  %v9780_v61 = vor.u32 %v10048_v36, %v9779_v30  ;;  %8803 = vmatpush.bf16.msrb.mxu2 %v9524_v27  ;;  %v10012_v57 = vld [vmem:[#allocation2 + $0x24c] sm:$0xf0]  ;;  %v9845_v30 = vld [vmem:[#allocation2 + $0x3f0] sm:$0xf0]  ;;  %v9962_v36 = vld [vmem:[#allocation2 + $0xc4] sm:$0xf] }
 0x7da   :  { %v9636_v59 = vor.u32 %v10012_v57, %v9635_v7  ;;  %v9448_v47 = vor.u32 %v9962_v36, %v9445_v41  ;;  %v9576_v7 = vor.u32 %v9994_v11, %v9573_v44  ;;  %v10026_v57 = vld [vmem:[#allocation2 + $0x2c4] sm:$0xf]  ;;  %v9669_v40 = vld [vmem:[#allocation2 + $0x290] sm:$0xf0] }
 0x7db   :  { %v7168_v18 = vadd.f32 %v7167_v22, %v7144_v42  ;;  %v10044_v42 = vld [vmem:[#allocation2 + $0x34c] sm:$0xf0]  ;;  %v9525_v36 = vld [vmem:[#allocation2 + $0x170] sm:$0xf0]  ;;  %v10046_v44 = vld [vmem:[#allocation2 + $0x364] sm:$0xf] }
 0x7dc   :  { %v14287_v2 = vpop.f32.mrf.mxu0  ;;  %8829 = vmatpush.bf16.msrb.mxu0 %v9780_v61  ;;  %8791 = vmatpush.bf16.msrb.mxu1 %v9380_v63  ;;  %v9764_v45 = vor.u32 %v10044_v42, %v9763_v56  ;;  %v9653_v11 = vld [vmem:[#allocation2 + $0x270] sm:$0xf0] }
 0x7dd   :  { %v7192_v13 = vadd.f32 %v7191_v31, %v7168_v18  ;;  %v9651_v31 = vld [vmem:[#allocation2 + $0x260] sm:$0xf]  ;;  %8804 = vmatpush.bf16.msrb.mxu2 %v9508_v20  ;;  %v9364_v18 = vor.u32 %v9944_v32, %v9363_v54  ;;  %v9701_v20 = vld [vmem:[#allocation2 + $0x2d0] sm:$0xf0]  ;;  %v9958_v32 = vld [vmem:[#allocation2 + $0xa4] sm:$0xf] }
 0x7de   :  { %v7237_v39 = vpop.f32.mrf.mxu2  ;;  %v9652_v9 = vor.u32 %v10016_v48, %v9651_v31  ;;  %v9717_v31 = vld [vmem:[#allocation2 + $0x2f0] sm:$0xf0]  ;;  %v9592_v48 = vor.u32 %v9998_v15, %v9589_v38  ;;  %v9704_v42 = vor.u32 %v10026_v57, %v9701_v20  ;;  %v9432_v3 = vor.u32 %v9958_v32, %v9429_v35  ;;  %v9946_v20 = vld [vmem:[#allocation2 + $0x44] sm:$0xf] }
 0x7df   :  { %v9720_v27 = vor.u32 %v10030_v12, %v9717_v31  ;;  %v9950_v12 = vld [vmem:[#allocation2 + $0x64] sm:$0xf]  ;;  %v9397_v31 = vld [vmem:[#allocation2 + $0x70] sm:$0xf0] }
 0x7e0   :  { %v7215_v26 = vpop.f32.mrf.mxu1  ;;  %v14289_v62 = vpop.f32.mrf.mxu3  ;;  %8816 = vmatpush.bf16.msra.mxu3 %v9652_v9  ;;  %8830 = vmatpush.bf16.msrb.mxu0 %v9764_v45  ;;  %v10062_v9 = vld [vmem:[#allocation2 + $0x3e4] sm:$0xf]  ;;  %v9829_v45 = vld [vmem:[#allocation2 + $0x3d0] sm:$0xf0] }
 0x7e1   :  { %v7216_v53 = vadd.f32 %v7215_v26, %v7192_v13  ;;  %8792 = vmatpush.bf16.msrb.mxu1 %v9364_v18  ;;  %v9748_v13 = vor.u32 %v10040_v37, %v9747_v4  ;;  %8805 = vmatpush.bf16.msrb.mxu2 %v9492_v60  ;;  %v9848_v61 = vor.u32 %v10062_v9, %v9845_v30  ;;  %v9990_v18 = vld [vmem:[#allocation2 + $0x1a4] sm:$0xf]  ;;  %v9557_v60 = vld [vmem:[#allocation2 + $0x1b0] sm:$0xf0] }
 0x7e2   :  { %v9685_v4 = vld [vmem:[#allocation2 + $0x2b0] sm:$0xf0]  ;;  %v9560_v37 = vor.u32 %v9990_v18, %v9557_v60  ;;  %v9400_v9 = vor.u32 %v9950_v12, %v9397_v31  ;;  %v9982_v30 = vld [vmem:[#allocation2 + $0x164] sm:$0xf] }
 0x7e3   :  { %v14291_v16 = vadd.f32 %v7237_v39, %v7216_v53  ;;  %v9347_v39 = vld [vmem:[#allocation2] sm:$0xf]  ;;  %v9966_v53 = vld [vmem:[#allocation2 + $0xe4] sm:$0xf]  ;;  %v9528_v41 = vor.u32 %v9982_v30, %v9525_v36  ;;  %v9637_v18 = vld [vmem:[#allocation2 + $0x250] sm:$0xf0] }
 0x7e4   :  { %v14293_v17 = vpop.f32.mrf.mxu0  ;;  %8817 = vmatpush.bf16.msra.mxu3 %v9636_v59  ;;  %8831 = vmatpush.bf16.msrb.mxu0 %v9748_v13  ;;  %v9348_v0 = vor.u32 %v9940_v55, %v9347_v39  ;;  %v9464_v24 = vor.u32 %v9966_v53, %v9461_v5  ;;  %v10058_v59 = vld [vmem:[#allocation2 + $0x3c4] sm:$0xf]  ;;  %v9813_v39 = vld [vmem:[#allocation2 + $0x3b0] sm:$0xf0] }
 0x7e5   :  { %8806 = vmatpush.bf16.msrb.mxu2 %v9476_v49  ;;  %v9832_v54 = vor.u32 %v10058_v59, %v9829_v45  ;;  %v10054_v13 = vld [vmem:[#allocation2 + $0x3a4] sm:$0xf]  ;;  %v9541_v49 = vld [vmem:[#allocation2 + $0x190] sm:$0xf0] }
 0x7e6   :  { %v14295_v19 = vpop.f32.mrf.mxu2  ;;  %8793 = vmatpush.bf16.msrb.mxu1 %v9348_v0  ;;  %v9816_v1 = vor.u32 %v10054_v13, %v9813_v39  ;;  %v9954_v0 = vld [vmem:[#allocation2 + $0x84] sm:$0xf]  ;;  %v9544_v29 = vor.u32 %v9986_v21, %v9541_v49  ;;  %v9797_v5 = vld [vmem:[#allocation2 + $0x390] sm:$0xf0] }
 0x7e7   :  { %v9416_v58 = vor.u32 %v9954_v0, %v9413_v43  ;;  %v9381_v59 = vld [vmem:[#allocation2 + $0x50] sm:$0xf0]  ;;  %v9978_v45 = vld [vmem:[#allocation2 + $0x144] sm:$0xf] }
 0x7e8   :  { %v14297_v22 = vpop.f32.mrf.mxu1  ;;  %v14299_v46 = vpop.f32.mrf.mxu3  ;;  %8818 = vmatpush.bf16.msra.mxu3 %v9620_v25  ;;  %8832 = vmatpush.bf16.msrb.mxu0 %v9732_v6  ;;  %v10022_v25 = vld [vmem:[#allocation2 + $0x2a4] sm:$0xf]  ;;  %v9765_v60 = vld [vmem:[#allocation2 + $0x350] sm:$0xf0] }
 0x7e9   :  { %8851 = vmatpush.bf16.msra.mxu2 %v9592_v48  ;;  %v9688_v55 = vor.u32 %v10022_v25, %v9685_v4  ;;  %v10050_v6 = vld [vmem:[#allocation2 + $0x384] sm:$0xf]  ;;  %v9365_v39 = vld [vmem:[#allocation2 + $0x30] sm:$0xf0] }
 0x7ea   :  { %8838 = vmatpush.bf16.msra.mxu1 %v9464_v24  ;;  %v9800_v24 = vor.u32 %v10050_v6, %v9797_v5  ;;  %v10010_v32 = vld [vmem:[#allocation2 + $0x244] sm:$0xf]  ;;  %v9621_v43 = vld [vmem:[#allocation2 + $0x230] sm:$0xf0] }
 0x7eb   :  { %v9640_v4 = vor.u32 %v10010_v32, %v9637_v18  ;;  %v9942_v13 = vld [vmem:[#allocation2 + $0x24] sm:$0xf]  ;;  %v9349_v5 = vld [vmem:[#allocation2 + $0x10] sm:$0xf0] }
 0x7ec   :  { %v14301_v8 = vpop.f32.mrf.mxu0  ;;  %8819 = vmatpush.bf16.msra.mxu3 %v9604_v10  ;;  %8877 = vmatpush.bf16.msra.mxu0 %v9848_v61  ;;  %v10018_v10 = vld [vmem:[#allocation2 + $0x284] sm:$0xf]  ;;  %v9368_v49 = vor.u32 %v9942_v13, %v9365_v39  ;;  %v9605_v36 = vld [vmem:[#allocation2 + $0x210] sm:$0xf0] }
 0x7ed   :  { %8852 = vmatpush.bf16.msra.mxu2 %v9576_v7  ;;  %v9672_v53 = vor.u32 %v10018_v10, %v9669_v40  ;;  %v10014_v61 = vld [vmem:[#allocation2 + $0x264] sm:$0xf]  ;;  %v9781_v7 = vld [vmem:[#allocation2 + $0x370] sm:$0xf0] }
 0x7ee   :  { %v14303_v51 = vpop.f32.mrf.mxu2  ;;  %8839 = vmatpush.bf16.msra.mxu1 %v9448_v47  ;;  %v9656_v47 = vor.u32 %v10014_v61, %v9653_v11  ;;  %v9784_v57 = vor.u32 %v10046_v44, %v9781_v7  ;;  %v10006_v0 = vld [vmem:[#allocation2 + $0x224] sm:$0xf]  ;;  %v9749_v40 = vld [vmem:[#allocation2 + $0x330] sm:$0xf0] }
 0x7ef   :  { %v10038_v10 = vld [vmem:[#allocation2 + $0x324] sm:$0xf] }
 0x7f0   :  { %v14305_v28 = vpop.f32.mrf.mxu1  ;;  %v14307_v26 = vpop.f32.mrf.mxu3  ;;  %8864 = vmatpush.bf16.msrb.mxu3 %v9720_v27  ;;  %8878 = vmatpush.bf16.msra.mxu0 %v9832_v54  ;;  %v9509_v54 = vld [vmem:[#allocation2 + $0x150] sm:$0xf0]  ;;  %v9938_v6 = vld [vmem:[#allocation2 + $0x4] sm:$0xf]  ;;  %v9752_v31 = vor.u32 %v10038_v10, %v9749_v40  ;;  %v7991_v10 = vperm.slane %v14291_v16, 0 }
 0x7f1   :  { %8853 = vmatpush.bf16.msra.mxu2 %v9560_v37  ;;  %v9512_v35 = vor.u32 %v9978_v45, %v9509_v54  ;;  %v10002_v30 = vld [vmem:[#allocation2 + $0x204] sm:$0xf]  ;;  %v9352_v11 = vor.u32 %v9938_v6, %v9349_v5 }
 0x7f2   :  { %8840 = vmatpush.bf16.msra.mxu1 %v9432_v3  ;;  %v10042_v3 = vld [vmem:[#allocation2 + $0x344] sm:$0xf]  ;;  %v9608_v7 = vor.u32 %v10002_v30, %v9605_v36  ;;  %v9467_v36 = vld [vmem:[#allocation2 + $0xe8] sm:$0xf] }
 0x7f3   :  { %v9768_v37 = vor.u32 %v10042_v3, %v9765_v60  ;;  %v10034_v61 = vld [vmem:[#allocation2 + $0x304] sm:$0xf] }
 0x7f4   :  { %v14309_v63 = vpop.f32.mrf.mxu0  ;;  %8865 = vmatpush.bf16.msrb.mxu3 %v9704_v42  ;;  %8879 = vmatpush.bf16.msra.mxu0 %v9816_v1  ;;  %v9384_v42 = vor.u32 %v9946_v20, %v9381_v59  ;;  %v9493_v1 = vld [vmem:[#allocation2 + $0x130] sm:$0xf0] }
 0x7f5   :  { %8854 = vmatpush.bf16.msra.mxu2 %v9544_v29 }
 0x7f6   :  { %v14311_v56 = vpop.f32.mrf.mxu2  ;;  %8841 = vmatpush.bf16.msra.mxu1 %v9416_v58 }
 0x7f8   :  { %v14313_v33 = vpop.f32.mrf.mxu1  ;;  %v14315_v50 = vpop.f32.mrf.mxu3  ;;  %8866 = vmatpush.bf16.msrb.mxu3 %v9688_v55  ;;  %8880 = vmatpush.bf16.msra.mxu0 %v9800_v24  ;;  %v9974_v55 = vld [vmem:[#allocation2 + $0x124] sm:$0xf] }
 0x7f9   :  { %8855 = vmatpush.bf16.msra.mxu2 %v9528_v41  ;;  %v9496_v29 = vor.u32 %v9974_v55, %v9493_v1  ;;  %v9970_v24 = vld [vmem:[#allocation2 + $0x104] sm:$0xf]  ;;  %v9733_v41 = vld [vmem:[#allocation2 + $0x310] sm:$0xf0]  ;;  %v7586_v44 = vadd.f32 %v14309_v63, %v14315_v50  ;;  %v7440_v50 = vadd.f32 %v14303_v51, %v14305_v28 }
 0x7fa   :  { %8842 = vmatpush.bf16.msra.mxu1 %v9400_v9  ;;  %v9477_v9 = vld [vmem:[#allocation2 + $0x110] sm:$0xf0] }
 0x7fc   :  { %v14319_v38 = vpop.f32.mrf.mxu0  ;;  %8867 = vmatpush.bf16.msrb.mxu3 %v9672_v53  ;;  %8881 = vmatpush.bf16.msra.mxu0 %v9784_v57  ;;  %v9624_v53 = vor.u32 %v10006_v0, %v9621_v43  ;;  %v9736_v57 = vor.u32 %v10034_v61, %v9733_v41 }
 0x7fd   :  { %8856 = vmatpush.bf16.msra.mxu2 %v9512_v35 }
 0x7fe   :  { %v14317_v15 = vpop.f32.mrf.mxu2  ;;  %8843 = vmatpush.bf16.msra.mxu1 %v9384_v42  ;;  %v7290_v42 = vadd.f32 %v14287_v2, %v14289_v62  ;;  %v7464_v2 = vadd.f32 %v14307_v26, %v7440_v50 }
 0x800   :  { %v14321_v48 = vpop.f32.mrf.mxu1  ;;  %v14323_v27 = vpop.f32.mrf.mxu3  ;;  %8868 = vmatpush.bf16.msrb.mxu3 %v9656_v47  ;;  %8882 = vmatpush.bf16.msra.mxu0 %v9768_v37  ;;  %v9480_v47 = vor.u32 %v9970_v24, %v9477_v9  ;;  %v7314_v32 = vadd.f32 %v14297_v22, %v7290_v42  ;;  %v7488_v51 = vadd.f32 %v14301_v8, %v7464_v2  ;;  %v7989_v8 = vperm.slane %v14283_v23, 0  ;;  %v15457_v24 = vld [vmem:[#allocation138_spill] sm:$0xff] }
 0x801   :  { %8857 = vmatpush.bf16.msra.mxu2 %v9496_v29  ;;  %v7610_v20 = vadd.f32 %v14321_v48, %v7586_v44  ;;  %v7995_v23 = vmul.f32 %v7991_v10, %v15355_v14  ;;  %v9419_v10 = vld [vmem:[#allocation2 + $0x88] sm:$0xf] }
 0x802   :  { %8844 = vmatpush.bf16.msra.mxu1 %v9368_v49  ;;  %v7338_v3 = vadd.f32 %v14295_v19, %v7314_v32  ;;  %v7512_v19 = vadd.f32 %v14313_v33, %v7488_v51  ;;  %v9851_v32 = vld [vmem:[#allocation2 + $0x3e8] sm:$0xf] }
 0x803   :  { %v7634_v35 = vadd.f32 %v14317_v15, %v7610_v20  ;;  %v9723_v20 = vld [vmem:[#allocation2 + $0x2e8] sm:$0xf] }
 0x804   :  { %8869 = vmatpush.bf16.msrb.mxu3 %v9640_v4  ;;  %v7779_v12 = vpop.f32.mrf.mxu0  ;;  %8883 = vmatpush.bf16.msra.mxu0 %v9752_v31  ;;  %v7362_v13 = vadd.f32 %v14299_v46, %v7338_v3  ;;  %v9835_v51 = vld [vmem:[#allocation2 + $0x3c8] sm:$0xf] }
 0x805   :  { %8858 = vmatpush.bf16.msra.mxu2 %v9480_v47  ;;  %v7658_v62 = vadd.f32 %v14323_v27, %v7634_v35  ;;  %v9969_v47 = vld [vmem:[#allocation2 + $0xf4] sm:$0xf0] }
 0x806   :  { %v7731_v25 = vpop.f32.mrf.mxu2  ;;  %8845 = vmatpush.bf16.msra.mxu1 %v9352_v11  ;;  %v7384_v27 = vadd.f32 %v14293_v17, %v7362_v13  ;;  %v7974_v17 = vld [vmem:[%s14398_s13] sm:$0xf]  ;;  %v9468_v50 = vor.u32 %v9969_v47, %v9467_v36  ;;  %v9707_v13 = vld [vmem:[#allocation2 + $0x2c8] sm:$0xf]  ;;  %v9985_v36 = vld [vmem:[#allocation2 + $0x174] sm:$0xf0] }
 0x807   :  { %v7680_v28 = vadd.f32 %v14319_v38, %v7658_v62  ;;  %v7990_v38 = vperm.slane %v14285_v52, 0  ;;  %v9451_v62 = vld [vmem:[#allocation2 + $0xc8] sm:$0xf]  ;;  %s10141_s13 = smov [#allocation5]  }
 0x808   :  { %v7705_v21 = vpop.f32.mrf.mxu1  ;;  %v7755_v58 = vpop.f32.mrf.mxu3  ;;  %8870 = vmatpush.bf16.msrb.mxu3 %v9624_v53  ;;  %8884 = vmatpush.bf16.msra.mxu0 %v9736_v57  ;;  %v7992_v33 = vperm.slane %v7384_v27, 0  ;;  %v10001_v57 = vld [vmem:[#allocation2 + $0x1f4] sm:$0xf0]  ;;  %s9007_s17 = sshll.u32 %s10141_s13, 4  ;;  %s9008_s17 = int_to_ptr.vmem [resolvable:$true] %s9007_s17 }
 0x809   :  { %v7732_v59 = vadd.f32 %v7731_v25, %v7705_v21  ;;  %v7979_v43 = vrot.slane %v7680_v28, 7  ;;  %v10061_v28 = vld [vmem:[#allocation2 + $0x3d4] sm:$0xf0] }
 0x80a   :  { %v7996_v52 = vmul.f32 %v7992_v33, %v15394_v34  ;;  %v9836_v27 = vor.u32 %v10061_v28, %v9835_v51  ;;  %v9957_v33 = vld [vmem:[#allocation2 + $0x94] sm:$0xf0]  ;;  %v9755_v51 = vld [vmem:[#allocation2 + $0x328] sm:$0xf] }
 0x80b   :  { %v7756_v18 = vadd.f32 %v7755_v58, %v7732_v59  ;;  %v7534_v58 = vadd.f32 %v14311_v56, %v7512_v19  ;;  %v15456_v56 = vld [vmem:[#allocation137_spill] sm:$0xff]  ;;  %v15458_v59 = vld [vmem:[#allocation52_spill] sm:$0xff]  ;;  %v10041_v28 = vld [vmem:[#allocation2 + $0x334] sm:$0xf0] }
 0x80c   :  { %8871 = vmatpush.bf16.msrb.mxu3 %v9608_v7  ;;  %v7877_v48 = vpop.f32.mrf.mxu0  ;;  %v7993_v5 = vmul.f32 %v7989_v8, %v15456_v56  ;;  %v9595_v7 = vld [vmem:[#allocation2 + $0x1e8] sm:$0xf]  ;;  %v10021_v56 = vld [vmem:[#allocation2 + $0x294] sm:$0xf0] }
 0x80d   :  { %v7780_v60 = vadd.f32 %v7779_v12, %v7756_v18  ;;  %v7982_v40 = vsel %vm3427_vm9, %v7534_v58, %v7979_v43  ;;  %v7994_v12 = vmul.f32 %v7990_v38, %v15457_v24  ;;  %v9596_v35 = vor.u32 %v10001_v57, %v9595_v7  ;;  %v9435_v19 = vld [vmem:[#allocation2 + $0xa8] sm:$0xf]  ;;  %v9993_v43 = vld [vmem:[#allocation2 + $0x1b4] sm:$0xf0] }
 0x80e   :  { %v7825_v45 = vpop.f32.mrf.mxu2  ;;  %v10025_v58 = vld [vmem:[#allocation2 + $0x2b4] sm:$0xf0]  ;;  %v9387_v57 = vld [vmem:[#allocation2 + $0x48] sm:$0xf] }
 0x80f   :  { %v10053_v24 = vld [vmem:[#allocation2 + $0x394] sm:$0xf0] }
 0x810   :  { %v7803_v54 = vpop.f32.mrf.mxu1  ;;  %v7851_v63 = vpop.f32.mrf.mxu3 }
 0x811   :  { %v7878_v25 = vadd.f32 %v7877_v48, %v7851_v63  ;;  %v7804_v37 = vadd.f32 %v7803_v54, %v7780_v60  ;;  %v10033_v54 = vld [vmem:[#allocation2 + $0x2f4] sm:$0xf0] }
 0x812   :  { %v10065_v63 = vld [vmem:[#allocation2 + $0x3f4] sm:$0xf0] }
 0x813   :  { %v7826_v1 = vadd.f32 %v7825_v45, %v7804_v37  ;;  %v9965_v60 = vld [vmem:[#allocation2 + $0xd4] sm:$0xf0]  ;;  %v9579_v37 = vld [vmem:[#allocation2 + $0x1c8] sm:$0xf] }
 0x814   :  { %v7971_v0 = vpop.f32.mrf.mxu0 }
 0x815   :  { %v7980_v46 = vrot.slane %v7826_v1, 6  ;;  %v9961_v1 = vld [vmem:[#allocation2 + $0xb4] sm:$0xf0] }
 0x816   :  { %v7925_v39 = vpop.f32.mrf.mxu2  ;;  %v9436_v8 = vor.u32 %v9961_v1, %v9435_v19  ;;  %v9941_v1 = vld [vmem:[#allocation2 + $0x14] sm:$0xf0] }
 0x818   :  { %v7901_v4 = vpop.f32.mrf.mxu1  ;;  %v7949_v55 = vpop.f32.mrf.mxu3 }
 0x819   :  { %v7902_v22 = vadd.f32 %v7901_v4, %v7878_v25  ;;  %v9724_v25 = vor.u32 %v10033_v54, %v9723_v20  ;;  %v9852_v4 = vor.u32 %v10065_v63, %v9851_v32  ;;  %v9949_v20 = vld [vmem:[#allocation2 + $0x54] sm:$0xf0]  ;;  %v9771_v32 = vld [vmem:[#allocation2 + $0x348] sm:$0xf] }
 0x81a   :  { %v10013_v54 = vld [vmem:[#allocation2 + $0x254] sm:$0xf0] }
 0x81b   :  { %v7926_v15 = vadd.f32 %v7925_v39, %v7902_v22  ;;  %v9997_v22 = vld [vmem:[#allocation2 + $0x1d4] sm:$0xf0] }
 0x81c   :  { %v10029_v39 = vld [vmem:[#allocation2 + $0x2d4] sm:$0xf0] }
 0x81d   :  { %v7950_v26 = vadd.f32 %v7949_v55, %v7926_v15  ;;  %v9452_v15 = vor.u32 %v9965_v60, %v9451_v62  ;;  %v9580_v55 = vor.u32 %v9997_v22, %v9579_v37  ;;  %v10045_v63 = vld [vmem:[#allocation2 + $0x354] sm:$0xf0]  ;;  %v9371_v62 = vld [vmem:[#allocation2 + $0x28] sm:$0xf] }
 0x81e   :  { %v9945_v60 = vld [vmem:[#allocation2 + $0x34] sm:$0xf0]  ;;  %v9499_v37 = vld [vmem:[#allocation2 + $0x128] sm:$0xf] }
 0x81f   :  { %v7972_v21 = vadd.f32 %v7971_v0, %v7950_v26  ;;  %v9708_v26 = vor.u32 %v10029_v39, %v9707_v13  ;;  %v9563_v0 = vld [vmem:[#allocation2 + $0x1a8] sm:$0xf]  ;;  %v9977_v22 = vld [vmem:[#allocation2 + $0x134] sm:$0xf0] }
 0x820   :  { %v9564_v38 = vor.u32 %v9993_v43, %v9563_v0  ;;  %v9627_v13 = vld [vmem:[#allocation2 + $0x228] sm:$0xf]  ;;  %v10009_v39 = vld [vmem:[#allocation2 + $0x234] sm:$0xf0]  ;;  %v9500_v19 = vor.u32 %v9977_v22, %v9499_v37  ;;  %v9756_v43 = vor.u32 %v10041_v28, %v9755_v51  ;;  %v9987_v37 = vld [vmem:[#allocation2 + $0x18c] sm:$0xf] }
 0x821   :  { %v7981_v49 = vrot.slane %v7972_v21, 5  ;;  %v9691_v21 = vld [vmem:[#allocation2 + $0x2a8] sm:$0xf]  ;;  %v9628_v0 = vor.u32 %v10009_v39, %v9627_v13  ;;  %v9549_v22 = vld [vmem:[#allocation2 + $0x198] sm:$0xf0] }
 0x822   :  { %v10019_v13 = vld [vmem:[#allocation2 + $0x28c] sm:$0xf]  ;;  %v9677_v39 = vld [vmem:[#allocation2 + $0x298] sm:$0xf0] }
 0x823   :  { %v7984_v29 = vsel %vm7983_vm14, %v7980_v46, %v7981_v49  ;;  %v9819_v46 = vld [vmem:[#allocation2 + $0x3a8] sm:$0xf]  ;;  %v10057_v49 = vld [vmem:[#allocation2 + $0x3b4] sm:$0xf0]  ;;  %v10051_v51 = vld [vmem:[#allocation2 + $0x38c] sm:$0xf] }
 0x824   :  { %v7986_v53 = vsel %vm7985_vm15, %v7982_v40, %v7984_v29  ;;  %v9820_v40 = vor.u32 %v10057_v49, %v9819_v46  ;;  %v9547_v29 = vld [vmem:[#allocation2 + $0x188] sm:$0xf]  ;;  %v10037_v49 = vld [vmem:[#allocation2 + $0x314] sm:$0xf0]  ;;  %v9805_v28 = vld [vmem:[#allocation2 + $0x398] sm:$0xf0] }
 0x825   :  { %v7988_v6 = vsub.f32 %v7974_v17, %v7986_v53  ;;  %v9692_v17 = vor.u32 %v10025_v58, %v9691_v21  ;;  %v9989_v53 = vld [vmem:[#allocation2 + $0x194] sm:$0xf0]  ;;  %v9611_v21 = vld [vmem:[#allocation2 + $0x208] sm:$0xf] }
 0x826   :  { %v10005_v58 = vld [vmem:[#allocation2 + $0x214] sm:$0xf0]  ;;  %v9739_v46 = vld [vmem:[#allocation2 + $0x308] sm:$0xf] }
 0x827   :  { %v7998_v31 = vperm.slane %v7988_v6, 0  ;;  %v7999_v16 = vperm.slane %v7988_v6, 1  ;;  %v8000_v9 = vperm.slane %v7988_v6, 2  ;;  %v8001_v30 = vperm.slane %v7988_v6, 3  ;;  %v9675_v6 = vld [vmem:[#allocation2 + $0x288] sm:$0xf] }
 0x829   :  { %v8006_v61 = vadd.f32 %v7998_v31, %v7993_v5  ;;  %v8007_v41 = vadd.f32 %v7999_v16, %v7994_v12  ;;  %v8008_v11 = vadd.f32 %v8000_v9, %v7995_v23  ;;  %v8009_v44 = vadd.f32 %v8001_v30, %v7996_v52  ;;  %v9803_v5 = vld [vmem:[#allocation2 + $0x388] sm:$0xf]  ;;  %v9953_v31 = vld [vmem:[#allocation2 + $0x74] sm:$0xf0] }
 0x82a   :  { %v9420_v12 = vor.u32 %v9957_v33, %v9419_v10  ;;  %v9548_v23 = vor.u32 %v9989_v53, %v9547_v29  ;;  %v9403_v52 = vld [vmem:[#allocation2 + $0x68] sm:$0xf]  ;;  %v9676_v16 = vor.u32 %v10021_v56, %v9675_v6  ;;  %v9804_v9 = vor.u32 %v10053_v24, %v9803_v5  ;;  %v9999_v10 = vld [vmem:[#allocation2 + $0x1ec] sm:$0xf]  ;;  %v9597_v33 = vld [vmem:[#allocation2 + $0x1f8] sm:$0xf0] }
 0x82b   :  { %v8010_v42 = vmul.f32 %v15458_v59, %v8006_v61  ;;  %v8011_v45 = vmul.f32 %v15458_v59, %v8007_v41  ;;  %v8012_v14 = vmul.f32 %v15458_v59, %v8008_v11  ;;  %v8013_v34 = vmul.f32 %v15458_v59, %v8009_v44  ;;  %v9531_v30 = vld [vmem:[#allocation2 + $0x168] sm:$0xf]  ;;  %v10017_v41 = vld [vmem:[#allocation2 + $0x274] sm:$0xf0]  ;;  %v9725_v53 = vld [vmem:[#allocation2 + $0x2f8] sm:$0xf0] }
 0x82c   :  { %v9659_v61 = vld [vmem:[#allocation2 + $0x268] sm:$0xf]  ;;  %v10049_v44 = vld [vmem:[#allocation2 + $0x374] sm:$0xf0]  ;;  %v9404_v47 = vor.u32 %v9953_v31, %v9403_v52  ;;  %v9532_v7 = vor.u32 %v9985_v36, %v9531_v30  ;;  %v10063_v6 = vld [vmem:[#allocation2 + $0x3ec] sm:$0xf]  ;;  %v9612_v5 = vor.u32 %v10005_v58, %v9611_v21  ;;  %v9740_v24 = vor.u32 %v10037_v49, %v9739_v46 }
 0x82d   :  { %v14358_v18 = vpack.c.bf16 %v8010_v42, %v8010_v42  ;;  %v14360_v48 = vpack.c.bf16 %v8011_v45, %v8011_v45  ;;  %v14362_v3 = vpack.c.bf16 %v8012_v14, %v8012_v14  ;;  %v14364_v2 = vpack.c.bf16 %v8013_v34, %v8013_v34  ;;  %v9787_v11 = vld [vmem:[#allocation2 + $0x368] sm:$0xf]  ;;  %v9981_v14 = vld [vmem:[#allocation2 + $0x154] sm:$0xf0]  ;;  %v9853_v56 = vld [vmem:[#allocation2 + $0x3f8] sm:$0xf0] }
 0x82e   :  { %v9660_v59 = vor.u32 %v10017_v41, %v9659_v61  ;;  %v9788_v42 = vor.u32 %v10049_v44, %v9787_v11  ;;  %v9515_v45 = vld [vmem:[#allocation2 + $0x148] sm:$0xf]  ;;  %v9963_v52 = vld [vmem:[#allocation2 + $0xcc] sm:$0xf]  ;;  %v9453_v31 = vld [vmem:[#allocation2 + $0xd8] sm:$0xf0] }
 0x82f   :  { %8794 = vmatmul.bf16.vlgmr.msrb.gmra.mxu1 %v14358_v18  ;;  %8807 = vmatmul.bf16.vlgmr.msrb.gmra.mxu2 %v14360_v48  ;;  %v9643_v34 = vld [vmem:[#allocation2 + $0x248] sm:$0xf]  ;;  %v9995_v30 = vld [vmem:[#allocation2 + $0x1cc] sm:$0xf]  ;;  %v9581_v36 = vld [vmem:[#allocation2 + $0x1d8] sm:$0xf0] }
 0x830   :  { %8820 = vmatmul.bf16.vlgmr.msra.gmra.mxu3 %v14362_v3  ;;  %8833 = vmatmul.bf16.vlgmr.msrb.gmra.mxu0 %v14364_v2  ;;  %v10027_v61 = vld [vmem:[#allocation2 + $0x2cc] sm:$0xf]  ;;  %v9709_v41 = vld [vmem:[#allocation2 + $0x2d8] sm:$0xf0] }
 0x831   :  { %8890 = vmatpush.bf16.msrb.mxu1 %v9468_v50  ;;  %8903 = vmatpush.bf16.msrb.mxu2 %v9596_v35  ;;  %v9388_v50 = vor.u32 %v9949_v20, %v9387_v57  ;;  %v9516_v35 = vor.u32 %v9981_v14, %v9515_v45  ;;  %v10059_v11 = vld [vmem:[#allocation2 + $0x3cc] sm:$0xf]  ;;  %v9837_v44 = vld [vmem:[#allocation2 + $0x3d8] sm:$0xf0] }
 0x832   :  { %8916 = vmatpush.bf16.msra.mxu3 %v9724_v25  ;;  %8929 = vmatpush.bf16.msrb.mxu0 %v9852_v4  ;;  %v9644_v25 = vor.u32 %v10013_v54, %v9643_v34  ;;  %v9772_v4 = vor.u32 %v10045_v63, %v9771_v32  ;;  %v9959_v57 = vld [vmem:[#allocation2 + $0xac] sm:$0xf]  ;;  %v9437_v20 = vld [vmem:[#allocation2 + $0xb8] sm:$0xf0] }
 0x833   :  { %v9991_v45 = vld [vmem:[#allocation2 + $0x1ac] sm:$0xf]  ;;  %v9565_v14 = vld [vmem:[#allocation2 + $0x1b8] sm:$0xf0] }
 0x834   :  { %v10023_v34 = vld [vmem:[#allocation2 + $0x2ac] sm:$0xf]  ;;  %v9693_v54 = vld [vmem:[#allocation2 + $0x2b8] sm:$0xf0] }
 0x835   :  { %8891 = vmatpush.bf16.msrb.mxu1 %v9452_v15  ;;  %8904 = vmatpush.bf16.msrb.mxu2 %v9580_v55  ;;  %v9355_v15 = vld [vmem:[#allocation2 + $0x8] sm:$0xf]  ;;  %v9372_v55 = vor.u32 %v9945_v60, %v9371_v62  ;;  %v10055_v32 = vld [vmem:[#allocation2 + $0x3ac] sm:$0xf]  ;;  %v9821_v63 = vld [vmem:[#allocation2 + $0x3b8] sm:$0xf0] }
 0x836   :  { %8917 = vmatpush.bf16.msra.mxu3 %v9708_v26  ;;  %8930 = vmatpush.bf16.msrb.mxu0 %v9836_v27  ;;  %v9483_v26 = vld [vmem:[#allocation2 + $0x108] sm:$0xf]  ;;  %v9973_v27 = vld [vmem:[#allocation2 + $0x114] sm:$0xf0]  ;;  %v9955_v62 = vld [vmem:[#allocation2 + $0x8c] sm:$0xf] }
 0x837   :  { %v9484_v29 = vor.u32 %v9973_v27, %v9483_v26  ;;  %v9421_v60 = vld [vmem:[#allocation2 + $0x98] sm:$0xf0]  ;;  %v9680_v26 = vor.u32 %v10019_v13, %v9677_v39  ;;  %v9808_v27 = vor.u32 %v10051_v51, %v9805_v28  ;;  %v10015_v21 = vld [vmem:[#allocation2 + $0x26c] sm:$0xf] }
 0x838   :  { %v9661_v58 = vld [vmem:[#allocation2 + $0x278] sm:$0xf0]  ;;  %v10047_v46 = vld [vmem:[#allocation2 + $0x36c] sm:$0xf] }
 0x839   :  { %8892 = vmatpush.bf16.msrb.mxu1 %v9436_v8  ;;  %8905 = vmatpush.bf16.msrb.mxu2 %v9564_v38  ;;  %v9967_v8 = vld [vmem:[#allocation2 + $0xec] sm:$0xf]  ;;  %v9469_v38 = vld [vmem:[#allocation2 + $0xf8] sm:$0xf0] }
 0x83a   :  { %8918 = vmatpush.bf16.msra.mxu3 %v9692_v17  ;;  %8931 = vmatpush.bf16.msrb.mxu0 %v9820_v40  ;;  %v10031_v17 = vld [vmem:[#allocation2 + $0x2ec] sm:$0xf]  ;;  %v9356_v40 = vor.u32 %v9941_v1, %v9355_v15  ;;  %v9424_v15 = vor.u32 %v9955_v62, %v9421_v60  ;;  %v9405_v1 = vld [vmem:[#allocation2 + $0x78] sm:$0xf0] }
 0x83b   :  { %v9789_v49 = vld [vmem:[#allocation2 + $0x378] sm:$0xf0] }
 0x83d   :  { %8893 = vmatpush.bf16.msrb.mxu1 %v9420_v12  ;;  %8906 = vmatpush.bf16.msrb.mxu2 %v9548_v23  ;;  %v9472_v12 = vor.u32 %v9967_v8, %v9469_v38  ;;  %v9600_v23 = vor.u32 %v9999_v10, %v9597_v33  ;;  %v9947_v10 = vld [vmem:[#allocation2 + $0x4c] sm:$0xf]  ;;  %v9389_v33 = vld [vmem:[#allocation2 + $0x58] sm:$0xf0] }
 0x83e   :  { %8919 = vmatpush.bf16.msra.mxu3 %v9676_v16  ;;  %8932 = vmatpush.bf16.msrb.mxu0 %v9804_v9  ;;  %v9728_v16 = vor.u32 %v10031_v17, %v9725_v53  ;;  %v9856_v9 = vor.u32 %v10063_v6, %v9853_v56  ;;  %v9664_v17 = vor.u32 %v10015_v21, %v9661_v58  ;;  %v9517_v53 = vld [vmem:[#allocation2 + $0x158] sm:$0xf0]  ;;  %v10011_v6 = vld [vmem:[#allocation2 + $0x24c] sm:$0xf] }
 0x83f   :  { %8846 = vmatmul.bf16.vlgmr.msra.gmra.mxu1 %v14358_v18  ;;  %8859 = vmatmul.bf16.vlgmr.msra.gmra.mxu2 %v14360_v48  ;;  %v9645_v56 = vld [vmem:[#allocation2 + $0x258] sm:$0xf0] }
 0x840   :  { %8872 = vmatmul.bf16.vlgmr.msrb.gmra.mxu3 %v14362_v3  ;;  %8885 = vmatmul.bf16.vlgmr.msra.gmra.mxu0 %v14364_v2 }
 0x841   :  { %8894 = vmatpush.bf16.msrb.mxu1 %v9404_v47  ;;  %8907 = vmatpush.bf16.msrb.mxu2 %v9532_v7  ;;  %v9456_v47 = vor.u32 %v9963_v52, %v9453_v31  ;;  %v9584_v7 = vor.u32 %v9995_v30, %v9581_v36  ;;  %v9943_v52 = vld [vmem:[#allocation2 + $0x2c] sm:$0xf]  ;;  %v9373_v31 = vld [vmem:[#allocation2 + $0x38] sm:$0xf0] }
 0x842   :  { %8920 = vmatpush.bf16.msra.mxu3 %v9660_v59  ;;  %8933 = vmatpush.bf16.msrb.mxu0 %v9788_v42  ;;  %v9712_v59 = vor.u32 %v10027_v61, %v9709_v41  ;;  %v9840_v42 = vor.u32 %v10059_v11, %v9837_v44  ;;  %v9975_v30 = vld [vmem:[#allocation2 + $0x12c] sm:$0xf]  ;;  %v9501_v36 = vld [vmem:[#allocation2 + $0x138] sm:$0xf0] }
 0x843   :  { %v10007_v61 = vld [vmem:[#allocation2 + $0x22c] sm:$0xf]  ;;  %v9629_v41 = vld [vmem:[#allocation2 + $0x238] sm:$0xf0] }
 0x844   :  { %v10039_v11 = vld [vmem:[#allocation2 + $0x32c] sm:$0xf]  ;;  %v9757_v44 = vld [vmem:[#allocation2 + $0x338] sm:$0xf0] }
 0x845   :  { %8895 = vmatpush.bf16.msrb.mxu1 %v9388_v50  ;;  %8908 = vmatpush.bf16.msrb.mxu2 %v9516_v35  ;;  %v9440_v50 = vor.u32 %v9959_v57, %v9437_v20  ;;  %v9568_v35 = vor.u32 %v9991_v45, %v9565_v14  ;;  %v9939_v57 = vld [vmem:[#allocation2 + $0xc] sm:$0xf]  ;;  %v9357_v20 = vld [vmem:[#allocation2 + $0x18] sm:$0xf0] }
 0x846   :  { %8921 = vmatpush.bf16.msra.mxu3 %v9644_v25  ;;  %8934 = vmatpush.bf16.msrb.mxu0 %v9772_v4  ;;  %v9696_v25 = vor.u32 %v10023_v34, %v9693_v54  ;;  %v9824_v4 = vor.u32 %v10055_v32, %v9821_v63  ;;  %v9971_v45 = vld [vmem:[#allocation2 + $0x10c] sm:$0xf]  ;;  %v9485_v14 = vld [vmem:[#allocation2 + $0x118] sm:$0xf0] }
 0x847   :  { %v10003_v34 = vld [vmem:[#allocation2 + $0x20c] sm:$0xf]  ;;  %v9613_v54 = vld [vmem:[#allocation2 + $0x218] sm:$0xf0] }
 0x848   :  { %v10035_v32 = vld [vmem:[#allocation2 + $0x30c] sm:$0xf]  ;;  %v9741_v63 = vld [vmem:[#allocation2 + $0x318] sm:$0xf0]  ;;  %v9616_v62 = vor.u32 %v10003_v34, %v9613_v54 }
 0x849   :  { %8896 = vmatpush.bf16.msrb.mxu1 %v9372_v55  ;;  %8909 = vmatpush.bf16.msrb.mxu2 %v9500_v19  ;;  %v9552_v55 = vor.u32 %v9987_v37, %v9549_v22  ;;  %v9951_v19 = vld [vmem:[#allocation2 + $0x6c] sm:$0xf]  ;;  %v9744_v60 = vor.u32 %v10035_v32, %v9741_v63 }
 0x84a   :  { %8922 = vmatpush.bf16.msra.mxu3 %v9628_v0  ;;  %8935 = vmatpush.bf16.msrb.mxu0 %v9756_v43  ;;  %v9983_v0 = vld [vmem:[#allocation2 + $0x16c] sm:$0xf]  ;;  %v9533_v43 = vld [vmem:[#allocation2 + $0x178] sm:$0xf0]  ;;  %v9408_v8 = vor.u32 %v9951_v19, %v9405_v1 }
 0x84b   :  { %v9536_v38 = vor.u32 %v9983_v0, %v9533_v43 }
 0x84d   :  { %8897 = vmatpush.bf16.msrb.mxu1 %v9356_v40  ;;  %8910 = vmatpush.bf16.msrb.mxu2 %v9484_v29  ;;  %v9792_v40 = vor.u32 %v10047_v46, %v9789_v49  ;;  %v9979_v29 = vld [vmem:[#allocation2 + $0x14c] sm:$0xf] }
 0x84e   :  { %8923 = vmatpush.bf16.msra.mxu3 %v9612_v5  ;;  %8936 = vmatpush.bf16.msrb.mxu0 %v9740_v24  ;;  %v10043_v5 = vld [vmem:[#allocation2 + $0x34c] sm:$0xf]  ;;  %v9773_v24 = vld [vmem:[#allocation2 + $0x358] sm:$0xf0] }
 0x850   :  { %8898 = vmatmul.bf16.vlgmr.msrb.gmra.mxu1 %v14358_v18  ;;  %8911 = vmatmul.bf16.vlgmr.msrb.gmra.mxu2 %v14360_v48 }
 0x851   :  { %8942 = vmatpush.bf16.msra.mxu1 %v9472_v12  ;;  %8955 = vmatpush.bf16.msra.mxu2 %v9600_v23  ;;  %v9392_v12 = vor.u32 %v9947_v10, %v9389_v33  ;;  %v9520_v23 = vor.u32 %v9979_v29, %v9517_v53 }
 0x852   :  { %8968 = vmatpush.bf16.msrb.mxu3 %v9728_v16  ;;  %8981 = vmatpush.bf16.msra.mxu0 %v9856_v9  ;;  %v9648_v16 = vor.u32 %v10011_v6, %v9645_v56  ;;  %v9776_v9 = vor.u32 %v10043_v5, %v9773_v24 }
 0x853   :  { %8924 = vmatmul.bf16.vlgmr.msra.gmra.mxu3 %v14362_v3  ;;  %8937 = vmatmul.bf16.vlgmr.msrb.gmra.mxu0 %v14364_v2 }
 0x855   :  { %8943 = vmatpush.bf16.msra.mxu1 %v9456_v47  ;;  %8956 = vmatpush.bf16.msra.mxu2 %v9584_v7  ;;  %v9376_v47 = vor.u32 %v9943_v52, %v9373_v31  ;;  %v9504_v7 = vor.u32 %v9975_v30, %v9501_v36 }
 0x856   :  { %8969 = vmatpush.bf16.msrb.mxu3 %v9712_v59  ;;  %8982 = vmatpush.bf16.msra.mxu0 %v9840_v42  ;;  %v9632_v59 = vor.u32 %v10007_v61, %v9629_v41  ;;  %v9760_v42 = vor.u32 %v10039_v11, %v9757_v44 }
 0x859   :  { %8944 = vmatpush.bf16.msra.mxu1 %v9440_v50  ;;  %8957 = vmatpush.bf16.msra.mxu2 %v9568_v35  ;;  %v9360_v50 = vor.u32 %v9939_v57, %v9357_v20  ;;  %v9488_v35 = vor.u32 %v9971_v45, %v9485_v14 }
 0x85a   :  { %8970 = vmatpush.bf16.msrb.mxu3 %v9696_v25  ;;  %8983 = vmatpush.bf16.msra.mxu0 %v9824_v4 }
 0x85d   :  { %8945 = vmatpush.bf16.msra.mxu1 %v9424_v15  ;;  %8958 = vmatpush.bf16.msra.mxu2 %v9552_v55 }
 0x85e   :  { %8971 = vmatpush.bf16.msrb.mxu3 %v9680_v26  ;;  %8984 = vmatpush.bf16.msra.mxu0 %v9808_v27 }
 0x861   :  { %8946 = vmatpush.bf16.msra.mxu1 %v9408_v8  ;;  %8959 = vmatpush.bf16.msra.mxu2 %v9536_v38 }
 0x862   :  { %8972 = vmatpush.bf16.msrb.mxu3 %v9664_v17  ;;  %8985 = vmatpush.bf16.msra.mxu0 %v9792_v40 }
 0x865   :  { %8947 = vmatpush.bf16.msra.mxu1 %v9392_v12  ;;  %8960 = vmatpush.bf16.msra.mxu2 %v9520_v23 }
 0x866   :  { %8973 = vmatpush.bf16.msrb.mxu3 %v9648_v16  ;;  %8986 = vmatpush.bf16.msra.mxu0 %v9776_v9 }
 0x869   :  { %8948 = vmatpush.bf16.msra.mxu1 %v9376_v47  ;;  %8961 = vmatpush.bf16.msra.mxu2 %v9504_v7 }
 0x86a   :  { %8974 = vmatpush.bf16.msrb.mxu3 %v9632_v59  ;;  %8987 = vmatpush.bf16.msra.mxu0 %v9760_v42 }
 0x86d   :  { %8949 = vmatpush.bf16.msra.mxu1 %v9360_v50  ;;  %8962 = vmatpush.bf16.msra.mxu2 %v9488_v35 }
 0x86e   :  { %8975 = vmatpush.bf16.msrb.mxu3 %v9616_v62  ;;  %8988 = vmatpush.bf16.msra.mxu0 %v9744_v60 }
 0x870   :  { %8950 = vmatmul.bf16.vlgmr.msra.gmra.mxu1 %v14358_v18  ;;  %8963 = vmatmul.bf16.vlgmr.msra.gmra.mxu2 %v14360_v48 }
 0x871   :  { %8976 = vmatmul.bf16.vlgmr.msrb.gmra.mxu3 %v14362_v3  ;;  %8989 = vmatmul.bf16.vlgmr.msra.gmra.mxu0 %v14364_v2 }
 0x8ac   :  { %v8795_v25 = vpop.f32.mrf.mxu1 }
 0x8ad   :  { %v8834_v4 = vpop.f32.mrf.mxu0  ;;  %v8796_v37 = vadd.f32 -0.06440999, %v8795_v25 }
 0x8b2   :  { %v8808_v22 = vpop.f32.mrf.mxu2 }
 0x8b3   :  { %v8809_v13 = vadd.f32 %v8808_v22, %v8796_v37  ;;  %v8821_v39 = vpop.f32.mrf.mxu3 }
 0x8b4   :  { %v8797_v51 = vpop.f32.mrf.mxu1 }
 0x8b5   :  { %v8822_v28 = vadd.f32 %v8821_v39, %v8809_v13  ;;  %v8836_v15 = vpop.f32.mrf.mxu0 }
 0x8b7   :  { %v8835_v55 = vadd.f32 %v8834_v4, %v8822_v28 }
 0x8b9   :  { %10077 = vtanh.f32 %v8835_v55 }
 0x8ba   :  { %v8810_v19 = vpop.f32.mrf.mxu2 }
 0x8bb   :  { %v8823_v1 = vpop.f32.mrf.mxu3 }
 0x8bc   :  { %v8847_v18 = vpop.f32.mrf.mxu1 }
 0x8bd   :  { %v8886_v26 = vpop.f32.mrf.mxu0  ;;  %v8848_v3 = vadd.f32 -0.06440999, %v8847_v18 }
 0x8bf   :  { %v10078_v48 = vpop.eup %10077 }
 0x8c0   :  { %8998 = vst [vmem:[#allocation5] sm:$0xff] %v10078_v48 }
 0x8c2   :  { %v8860_v27 = vpop.f32.mrf.mxu2 }
 0x8c3   :  { %v8861_v2 = vadd.f32 %v8860_v27, %v8848_v3  ;;  %v8873_v0 = vpop.f32.mrf.mxu3 }
 0x8c4   :  { %v8849_v43 = vpop.f32.mrf.mxu1 }
 0x8c5   :  { %v8874_v21 = vadd.f32 %v8873_v0, %v8861_v2  ;;  %v8888_v58 = vpop.f32.mrf.mxu0 }
 0x8c7   :  { %v8887_v46 = vadd.f32 %v8886_v26, %v8874_v21 }
 0x8c9   :  { %10079 = vtanh.f32 %v8887_v46 }
 0x8ca   :  { %v8862_v49 = vpop.f32.mrf.mxu2 }
 0x8cb   :  { %v8875_v8 = vpop.f32.mrf.mxu3 }
 0x8cd   :  { %v8899_v38 = vpop.f32.mrf.mxu1 }
 0x8ce   :  { %v8900_v17 = vadd.f32 -0.06440999, %v8899_v38 }
 0x8cf   :  { %v10080_v10 = vpop.eup %10079 }
 0x8d0   :  { %v8938_v33 = vpop.f32.mrf.mxu0  ;;  %8999 = vst [vmem:[#allocation5 + $0x8] sm:$0xff] %v10080_v10 }
 0x8d3   :  { %v8912_v40 = vpop.f32.mrf.mxu2 }
 0x8d4   :  { %v8913_v29 = vadd.f32 %v8912_v40, %v8900_v17 }
 0x8d5   :  { %v8901_v6 = vpop.f32.mrf.mxu1 }
 0x8d6   :  { %v8925_v53 = vpop.f32.mrf.mxu3 }
 0x8d7   :  { %v8926_v56 = vadd.f32 %v8925_v53, %v8913_v29 }
 0x8d8   :  { %v8940_v5 = vpop.f32.mrf.mxu0 }
 0x8d9   :  { %v8939_v24 = vadd.f32 %v8938_v33, %v8926_v56 }
 0x8db   :  { %10081 = vtanh.f32 %v8939_v24  ;;  %v8914_v12 = vpop.f32.mrf.mxu2 }
 0x8de   :  { %v8927_v23 = vpop.f32.mrf.mxu3 }
 0x8e1   :  { %v10082_v52 = vpop.eup %10081 }
 0x8e2   :  { %9000 = vst [vmem:[#allocation5 + $0x10] sm:$0xff] %v10082_v52 }
 0x8ed   :  { %v8951_v31 = vpop.f32.mrf.mxu1 }
 0x8ee   :  { %v8990_v16 = vpop.f32.mrf.mxu0  ;;  %v8952_v9 = vadd.f32 -0.06440999, %v8951_v31 }
 0x8f3   :  { %v8964_v30 = vpop.f32.mrf.mxu2 }
 0x8f4   :  { %v8965_v36 = vadd.f32 %v8964_v30, %v8952_v9  ;;  %v8977_v61 = vpop.f32.mrf.mxu3 }
 0x8f5   :  { %v8953_v41 = vpop.f32.mrf.mxu1 }
 0x8f6   :  { %v8978_v11 = vadd.f32 %v8977_v61, %v8965_v36  ;;  %v8992_v44 = vpop.f32.mrf.mxu0 }
 0x8f8   :  { %v8991_v47 = vadd.f32 %v8990_v16, %v8978_v11 }
 0x8fa   :  { %10083 = vtanh.f32 %v8991_v47 }
 0x8fb   :  { %v8966_v7 = vpop.f32.mrf.mxu2 }
 0x8fc   :  { %v8979_v57 = vpop.f32.mrf.mxu3 }
 0x900   :  { %v10084_v20 = vpop.eup %10083 }
 0x901   :  { %9001 = vst [vmem:[#allocation5 + $0x18] sm:$0xff] %v10084_v20 }
 0x902   :  { %9012 = dma.vmem_to_hbm [thread:$0]  %s9008_s17, 512, %s9010_s19, [#allocation4]  }
 0x903   :  { %10135 = dma.done.wait [#allocation4], 512  }
 0x904   :  { %10136 = vsyncadd [#allocation4], 4294966784 }
 0x905   :  { %9017 = vsyncpa [#allocation3], 1 }
 0x906   :  { %9018 = vsyncpa [#allocation4], 1 }

</bundles_post_ra>
